<compile_context>
chip_gen: v7x
topology: tpu7x:2x2x1
jax: 0.10.0
libtpu: 0.0.40
codegen_flags: <defaults>
</compile_context>

<pallas_src>
import functools
import math

import jax
import jax.numpy as jnp
from jax.experimental import pallas as pl
from jax.experimental.pallas import tpu as pltpu

# ---- hyperparameters from the PyTorch module ----
VOCAB = 16            # NUM_CLUSTERS
EMBED = 16            # EMBED_DIM
HEADS = 2             # NUM_HEADS
HEAD_DIM = EMBED // HEADS
LAYERS = 8            # NUM_LAYERS
FFN = 4 * EMBED
MAX_SEQ = 28 * 28     # SEQ_LEN
EPS = 1e-5            # nn.LayerNorm default
NEG_BIG = -1e30       # large-negative mask constant (safer than -inf)


# ---------------- in-kernel math helpers ----------------
def _matmul_t(a, b):
    # a: (m, k), b: (n, k) -> a @ b.T : (m, n)   (torch Linear convention)
    return jax.lax.dot_general(
        a, b, (((1,), (1,)), ((), ())), preferred_element_type=jnp.float32)


def _gelu(x):
    # tanh-approx GELU: routes through the otherwise-idle EUP slot.
    c = math.sqrt(2.0 / math.pi)
    return 0.5 * x * (1.0 + jnp.tanh(c * (x + 0.044715 * x * x * x)))


def _layernorm(x, w, b):
    mu = jnp.mean(x, axis=-1, keepdims=True)
    xc = x - mu
    var = jnp.mean(xc * xc, axis=-1, keepdims=True)
    return xc * jax.lax.rsqrt(var + EPS) * w + b


# ---------------- the fused kernel ----------------
def gpt_kernel(x_ref,
               wqkv_sa_ref, bqkv_sa_ref, wo_sa_ref, bo_sa_ref,
               wqkv_ca_ref, bqkv_ca_ref, wo_ca_ref, bo_ca_ref,
               w1_ref, b1_ref, w2_ref, b2_ref,
               ln1w_ref, ln1b_ref, ln2w_ref, ln2b_ref, ln3w_ref, ln3b_ref,
               lnfw_ref, lnfb_ref, headw_ref, headb_ref,
               out_ref, attn_scratch, *, seq, q_tile, use_bf16):
    S = seq
    T = q_tile
    n_tiles = S // T
    cd = jnp.bfloat16 if use_bf16 else jnp.float32   # MXU operand / exp dtype

    x0 = x_ref[...]                                   # (S, E); also the decoder "memory"

    # Small (T, T) intra-tile causal additive bias: only the diagonal key tile of each
    # query tile needs masking; strictly-upper key tiles are never computed.
    row = jax.lax.broadcasted_iota(jnp.int32, (T, T), 0)
    col = jax.lax.broadcasted_iota(jnp.int32, (T, T), 1)
    tri_bias = jnp.where(col <= row, 0.0, NEG_BIG).astype(jnp.float32)

    def _exp(z):
        # v6e/v7x: bf16 exp runs ~2x on the single EUP slot (and feeds the MXU directly);
        # v5e: keep f32 (no bf16 VPU/EUP).
        return jnp.exp(z.astype(cd)) if use_bf16 else jnp.exp(z)

    def _rowsum_f32(e):
        return jnp.sum(e.astype(jnp.float32), axis=-1, keepdims=True)

    def attention(xq, xkv, w_in, b_in, w_out, b_out, causal):
        # torch nn.MultiheadAttention packed weights: w_in (3E,E), b_in (1,3E),
        # w_out (E,E), b_out (1,E). 1/sqrt(head_dim) is pre-folded into the Q rows.
        if causal:
            qkv = _matmul_t(xq, w_in) + b_in                       # one fused QKV matmul
            q = qkv[:, 0:EMBED]
            k = qkv[:, EMBED:2 * EMBED]
            v = qkv[:, 2 * EMBED:3 * EMBED]
        else:
            # cross-attention: q from xq, fused K/V from the shared memory xkv
            q = _matmul_t(xq, w_in[0:EMBED, :]) + b_in[:, 0:EMBED]
            kv = _matmul_t(xkv, w_in[EMBED:3 * EMBED, :]) + b_in[:, EMBED:3 * EMBED]
            k = kv[:, 0:EMBED]
            v = kv[:, EMBED:2 * EMBED]

        q = q.astype(cd)
        k = k.astype(cd)
        v = v.astype(cd)

        for qi in range(n_tiles):            # static unroll: static shapes per tile
            r0 = qi * T
            acc = None
            for h in range(HEADS):
                lo, hi = h * HEAD_DIM, (h + 1) * HEAD_DIM
                qh = q[r0:r0 + T, lo:hi]                           # (T, hd)
                if causal:
                    # diagonal key tile (masked) + strictly-lower prefix (unmasked)
                    kd = k[r0:r0 + T, lo:hi]
                    vd = v[r0:r0 + T, lo:hi]
                    sc_d = _matmul_t(qh, kd) + tri_bias            # (T, T) f32
                    if r0 == 0:
                        m = jnp.max(sc_d, axis=-1, keepdims=True)
                        e_d = _exp(sc_d - m)
                        denom = _rowsum_f32(e_d)
                        pv = jnp.dot(e_d, vd, preferred_element_type=jnp.float32)
                    else:
                        kp = k[0:r0, lo:hi]
                        vp = v[0:r0, lo:hi]
                        sc_p = _matmul_t(qh, kp)                   # (T, r0) f32
                        m = jnp.maximum(jnp.max(sc_d, axis=-1, keepdims=True),
                                        jnp.max(sc_p, axis=-1, keepdims=True))
                        e_d = _exp(sc_d - m)
                        e_p = _exp(sc_p - m)
                        denom = _rowsum_f32(e_d) + _rowsum_f32(e_p)
                        pv = (jnp.dot(e_d, vd, preferred_element_type=jnp.float32)
                              + jnp.dot(e_p, vp, preferred_element_type=jnp.float32))
                else:
                    kh = k[:, lo:hi]
                    vh = v[:, lo:hi]
                    sc = _matmul_t(qh, kh)                         # (T, S) f32
                    m = jnp.max(sc, axis=-1, keepdims=True)
                    e = _exp(sc - m)
                    denom = _rowsum_f32(e)
                    pv = jnp.dot(e, vh, preferred_element_type=jnp.float32)

                # softmax normalization applied to the tiny (T, hd) PV, not (T, S)
                pv = pv * pl.reciprocal(denom, approx=True)
                # fold the head-concat into the output projection
                contrib = _matmul_t(pv, w_out[:, lo:hi])           # (T, E)
                acc = contrib if acc is None else acc + contrib

            # write the tile straight into a preallocated VMEM scratch (no concat)
            attn_scratch[pl.ds(r0, T), :] = acc + b_out

        return attn_scratch[...]                                   # (S, E)

    x = x0
    for l in range(LAYERS):   # statically unrolled: static weight slices + LLO visibility
        # post-norm TransformerDecoderLayer (norm_first=False), dropout = identity
        sa = attention(x, x, wqkv_sa_ref[l], bqkv_sa_ref[l],
                       wo_sa_ref[l], bo_sa_ref[l], causal=True)
        x = _layernorm(x + sa, ln1w_ref[l], ln1b_ref[l])
        ca = attention(x, x0, wqkv_ca_ref[l], bqkv_ca_ref[l],
                       wo_ca_ref[l], bo_ca_ref[l], causal=False)
        x = _layernorm(x + ca, ln2w_ref[l], ln2b_ref[l])
        h = _gelu(_matmul_t(x, w1_ref[l]) + b1_ref[l])
        h = _matmul_t(h, w2_ref[l]) + b2_ref[l]
        x = _layernorm(x + h, ln3w_ref[l], ln3b_ref[l])

    x = _layernorm(x, lnfw_ref[...], lnfb_ref[...])                # ln_f
    # head computed transposed -> (VOCAB, S): lane-dense stores (S on the lane axis)
    logits_t = _matmul_t(headw_ref[...], x) + headb_ref[...]       # (V, S)
    out_ref[...] = logits_t.astype(out_ref.dtype)


# ---------------- wrapper ----------------
def _pick_q_tile(S):
    for t in (128, 112, 96, 80, 64, 56, 48, 40, 32, 24, 16, 8):
        if S % t == 0:
            return t
    return S


def _use_bf16_compute():
    # v5e has no bf16 VPU/EUP: keep f32 operands / f32 exp there; bf16 elsewhere.
    try:
        kind = jax.devices()[0].device_kind.lower()
    except Exception:
        return True
    if "v5e" in kind or "v5 lite" in kind or "v5lite" in kind:
        return False
    return True


def _vmem_limit_bytes():
    # Generation-aware scoped-VMEM budget: ~half of physical capacity, capped at 64 MiB
    # (v5e/v6e: 128 MiB -> 64 MiB; v7x: 64 MiB -> 32 MiB). Fallback 48 MiB.
    try:
        cap = int(pltpu.get_tpu_info().vmem_capacity_bytes)
    except Exception:
        cap = 0
    if cap <= 0:
        return 48 * 1024 * 1024
    return int(min(cap // 2, 64 * 1024 * 1024))


def transformer_gpt_forward(x_emb, params):
    B, S, E = x_emb.shape
    assert E == EMBED, (E, EMBED)
    T = _pick_q_tile(S)
    use_bf16 = _use_bf16_compute()

    # Fold 1/sqrt(head_dim) into the Q rows of the packed in-proj weights/biases (host side).
    q_scale = 1.0 / math.sqrt(HEAD_DIM)
    wqkv_sa = params["wqkv_sa"].at[:, 0:EMBED, :].multiply(q_scale)
    bqkv_sa = params["bqkv_sa"].at[:, :, 0:EMBED].multiply(q_scale)
    wqkv_ca = params["wqkv_ca"].at[:, 0:EMBED, :].multiply(q_scale)
    bqkv_ca = params["bqkv_ca"].at[:, :, 0:EMBED].multiply(q_scale)

    weight_args = [
        wqkv_sa, bqkv_sa, params["wo_sa"], params["bo_sa"],
        wqkv_ca, bqkv_ca, params["wo_ca"], params["bo_ca"],
        params["w1"], params["b1"], params["w2"], params["b2"],
        params["ln1w"], params["ln1b"], params["ln2w"], params["ln2b"],
        params["ln3w"], params["ln3b"],
        params["lnfw"], params["lnfb"], params["headw"], params["headb"],
    ]

    def full_spec(a):
        nd = a.ndim
        return pl.BlockSpec(a.shape, lambda b, _nd=nd: (0,) * _nd)

    in_specs = [pl.BlockSpec((None, S, E), lambda b: (b, 0, 0))]
    in_specs += [full_spec(a) for a in weight_args]
    out_spec = pl.BlockSpec((None, VOCAB, S), lambda b: (b, 0, 0))

    kernel = functools.partial(gpt_kernel, seq=S, q_tile=T, use_bf16=use_bf16)

    out_t = pl.pallas_call(
        kernel,
        out_shape=jax.ShapeDtypeStruct((B, VOCAB, S), jnp.float32),
        grid_spec=pltpu.PrefetchScalarGridSpec(
            num_scalar_prefetch=0,
            # one batch row per step: bounded live ranges and >=2 grid steps for
            # megacore sharding of the 'parallel' axis on v7x (harmless elsewhere)
            grid=(B,),
            in_specs=in_specs,
            out_specs=out_spec,
            scratch_shapes=[pltpu.VMEM((S, EMBED), jnp.float32)],
        ),
        compiler_params=pltpu.CompilerParams(
            dimension_semantics=("parallel",),
            vmem_limit_bytes=_vmem_limit_bytes(),
        ),
    )(x_emb, *weight_args)

    # transpose back to (B, S, VOCAB) outside the kernel (cheap XLA op)
    return jnp.transpose(out_t, (0, 2, 1))


# ---------------- deterministic parameter init ----------------
def init_params(key):
    L, E, V, F = LAYERS, EMBED, VOCAB, FFN
    state = [key]

    def nxt():
        state[0], sub = jax.random.split(state[0])
        return sub

    def nrm(shape, scale):
        return (jax.random.normal(nxt(), shape, jnp.float32) * scale)

    p = {}
    p["embed_tokens"] = nrm((V, E), 0.02)
    p["pos_embed"] = nrm((MAX_SEQ, E), 0.02)
    # self-attention (per layer, stacked)
    p["wqkv_sa"] = nrm((L, 3 * E, E), 0.1)
    p["bqkv_sa"] = nrm((L, 1, 3 * E), 0.01)
    p["wo_sa"] = nrm((L, E, E), 0.1)
    p["bo_sa"] = nrm((L, 1, E), 0.01)
    # cross-attention (per layer, stacked)
    p["wqkv_ca"] = nrm((L, 3 * E, E), 0.1)
    p["bqkv_ca"] = nrm((L, 1, 3 * E), 0.01)
    p["wo_ca"] = nrm((L, E, E), 0.1)
    p["bo_ca"] = nrm((L, 1, E), 0.01)
    # feed-forward
    p["w1"] = nrm((L, F, E), 0.1)
    p["b1"] = nrm((L, 1, F), 0.01)
    p["w2"] = nrm((L, E, F), 0.1)
    p["b2"] = nrm((L, 1, E), 0.01)
    # layer norms (torch default init: weight=1, bias=0)
    for name in ("ln1", "ln2", "ln3"):
        p[name + "w"] = jnp.ones((L, 1, E), jnp.float32)
        p[name + "b"] = jnp.zeros((L, 1, E), jnp.float32)
    p["lnfw"] = jnp.ones((1, E), jnp.float32)
    p["lnfb"] = jnp.zeros((1, E), jnp.float32)
    # lm head (bias stored as a column so the transposed head can broadcast it)
    p["headw"] = nrm((V, E), 0.1)
    p["headb"] = jnp.zeros((V, 1), jnp.float32)
    return p


if __name__ == "__main__":
    key = jax.random.PRNGKey(0)
    pkey, dkey = jax.random.split(key)
    params = init_params(pkey)

    B, S = 2, 8
    input_ids = jax.random.randint(dkey, (B, S), 0, VOCAB, dtype=jnp.int32)

    # glue: embedding lookups in plain JAX (gather), then the fused Pallas kernel
    tok = jnp.take(params["embed_tokens"], input_ids, axis=0)     # (B, S, E)
    pos = params["pos_embed"][:S][None, :, :]                     # (1, S, E)
    x_emb = (tok + pos).astype(jnp.float32)

    logits = transformer_gpt_forward(x_emb, params)
    logits = jax.block_until_ready(logits)

    assert logits.shape == (B, S, VOCAB), logits.shape
    assert bool(jnp.all(jnp.isfinite(logits)))
    print("KERNEL_OK")
</pallas_src>

<mosaic_0001>
module attributes {stable_mosaic.version = 11 : i64} {
  func.func @gpt_kernel(%arg0: i32, %arg1: memref<1x8x16xf32, #tpu.memory_space<vmem>>, %arg2: memref<8x48x16xf32, #tpu.memory_space<vmem>>, %arg3: memref<8x1x48xf32, #tpu.memory_space<vmem>>, %arg4: memref<8x16x16xf32, #tpu.memory_space<vmem>>, %arg5: memref<8x1x16xf32, #tpu.memory_space<vmem>>, %arg6: memref<8x48x16xf32, #tpu.memory_space<vmem>>, %arg7: memref<8x1x48xf32, #tpu.memory_space<vmem>>, %arg8: memref<8x16x16xf32, #tpu.memory_space<vmem>>, %arg9: memref<8x1x16xf32, #tpu.memory_space<vmem>>, %arg10: memref<8x64x16xf32, #tpu.memory_space<vmem>>, %arg11: memref<8x1x64xf32, #tpu.memory_space<vmem>>, %arg12: memref<8x16x64xf32, #tpu.memory_space<vmem>>, %arg13: memref<8x1x16xf32, #tpu.memory_space<vmem>>, %arg14: memref<8x1x16xf32, #tpu.memory_space<vmem>>, %arg15: memref<8x1x16xf32, #tpu.memory_space<vmem>>, %arg16: memref<8x1x16xf32, #tpu.memory_space<vmem>>, %arg17: memref<8x1x16xf32, #tpu.memory_space<vmem>>, %arg18: memref<8x1x16xf32, #tpu.memory_space<vmem>>, %arg19: memref<8x1x16xf32, #tpu.memory_space<vmem>>, %arg20: memref<1x16xf32, #tpu.memory_space<vmem>>, %arg21: memref<1x16xf32, #tpu.memory_space<vmem>>, %arg22: memref<16x16xf32, #tpu.memory_space<vmem>>, %arg23: memref<16x1xf32, #tpu.memory_space<vmem>>, %arg24: memref<1x16x8xf32, #tpu.memory_space<vmem>>, %arg25: memref<8x16xf32, #tpu.memory_space<vmem>>) attributes {dimension_semantics = [#tpu.dimension_semantics<parallel>], iteration_bounds = array<i64: 2>, scalar_prefetch = 0 : i64, scratch_operands = 1 : i64, tpu.core_type = #tpu.core_type<tc>, window_params = [{transform_indices = @transform_0, window_bounds = array<i64: 1, 8, 16>}, {pipeline_mode = #tpu.pipeline_mode<synchronous>, transform_indices = @transform_1, window_bounds = array<i64: 8, 48, 16>}, {pipeline_mode = #tpu.pipeline_mode<synchronous>, transform_indices = @transform_2, window_bounds = array<i64: 8, 1, 48>}, {pipeline_mode = #tpu.pipeline_mode<synchronous>, transform_indices = @transform_3, window_bounds = array<i64: 8, 16, 16>}, {pipeline_mode = #tpu.pipeline_mode<synchronous>, transform_indices = @transform_4, window_bounds = array<i64: 8, 1, 16>}, {pipeline_mode = #tpu.pipeline_mode<synchronous>, transform_indices = @transform_5, window_bounds = array<i64: 8, 48, 16>}, {pipeline_mode = #tpu.pipeline_mode<synchronous>, transform_indices = @transform_6, window_bounds = array<i64: 8, 1, 48>}, {pipeline_mode = #tpu.pipeline_mode<synchronous>, transform_indices = @transform_7, window_bounds = array<i64: 8, 16, 16>}, {pipeline_mode = #tpu.pipeline_mode<synchronous>, transform_indices = @transform_8, window_bounds = array<i64: 8, 1, 16>}, {pipeline_mode = #tpu.pipeline_mode<synchronous>, transform_indices = @transform_9, window_bounds = array<i64: 8, 64, 16>}, {pipeline_mode = #tpu.pipeline_mode<synchronous>, transform_indices = @transform_10, window_bounds = array<i64: 8, 1, 64>}, {pipeline_mode = #tpu.pipeline_mode<synchronous>, transform_indices = @transform_11, window_bounds = array<i64: 8, 16, 64>}, {pipeline_mode = #tpu.pipeline_mode<synchronous>, transform_indices = @transform_12, window_bounds = array<i64: 8, 1, 16>}, {pipeline_mode = #tpu.pipeline_mode<synchronous>, transform_indices = @transform_13, window_bounds = array<i64: 8, 1, 16>}, {pipeline_mode = #tpu.pipeline_mode<synchronous>, transform_indices = @transform_14, window_bounds = array<i64: 8, 1, 16>}, {pipeline_mode = #tpu.pipeline_mode<synchronous>, transform_indices = @transform_15, window_bounds = array<i64: 8, 1, 16>}, {pipeline_mode = #tpu.pipeline_mode<synchronous>, transform_indices = @transform_16, window_bounds = array<i64: 8, 1, 16>}, {pipeline_mode = #tpu.pipeline_mode<synchronous>, transform_indices = @transform_17, window_bounds = array<i64: 8, 1, 16>}, {pipeline_mode = #tpu.pipeline_mode<synchronous>, transform_indices = @transform_18, window_bounds = array<i64: 8, 1, 16>}, {pipeline_mode = #tpu.pipeline_mode<synchronous>, transform_indices = @transform_19, window_bounds = array<i64: 1, 16>}, {pipeline_mode = #tpu.pipeline_mode<synchronous>, transform_indices = @transform_20, window_bounds = array<i64: 1, 16>}, {pipeline_mode = #tpu.pipeline_mode<synchronous>, transform_indices = @transform_21, window_bounds = array<i64: 16, 16>}, {pipeline_mode = #tpu.pipeline_mode<synchronous>, transform_indices = @transform_22, window_bounds = array<i64: 16, 1>}, {transform_indices = @transform_23, window_bounds = array<i64: 1, 16, 8>}]} {
    %c0 = arith.constant 0 : index
    %c0_0 = arith.constant 0 : index
    %c0_1 = arith.constant 0 : index
    %0 = vector.load %arg1[%c0, %c0_0, %c0_1] : memref<1x8x16xf32, #tpu.memory_space<vmem>>, vector<1x8x16xf32>
    %1 = vector.shape_cast %0 : vector<1x8x16xf32> to vector<8x16xf32>
    %2 = tpu.iota {dimensions = array<i32: 0>} : vector<8x8xi32>
    %3 = tpu.iota {dimensions = array<i32: 1>} : vector<8x8xi32>
    %4 = arith.cmpi sle, %3, %2 : vector<8x8xi32>
    %cst = arith.constant 0.000000e+00 : f32
    %cst_2 = arith.constant -1.000000e+30 : f32
    %5 = vector.broadcast %cst : f32 to vector<8x8xf32>
    %6 = vector.broadcast %cst_2 : f32 to vector<8x8xf32>
    %7 = arith.select %4, %5, %6 : vector<8x8xi1>, vector<8x8xf32>
    %c0_3 = arith.constant 0 : index
    %c0_4 = arith.constant 0 : index
    %c0_5 = arith.constant 0 : index
    %8 = vector.load %arg2[%c0_3, %c0_4, %c0_5] : memref<8x48x16xf32, #tpu.memory_space<vmem>>, vector<1x48x16xf32>
    %9 = vector.shape_cast %8 : vector<1x48x16xf32> to vector<48x16xf32>
    %c0_6 = arith.constant 0 : index
    %c0_7 = arith.constant 0 : index
    %c0_8 = arith.constant 0 : index
    %10 = vector.load %arg3[%c0_6, %c0_7, %c0_8] : memref<8x1x48xf32, #tpu.memory_space<vmem>>, vector<1x1x48xf32>
    %11 = vector.shape_cast %10 : vector<1x1x48xf32> to vector<1x48xf32>
    %c0_9 = arith.constant 0 : index
    %c0_10 = arith.constant 0 : index
    %c0_11 = arith.constant 0 : index
    %12 = vector.load %arg4[%c0_9, %c0_10, %c0_11] : memref<8x16x16xf32, #tpu.memory_space<vmem>>, vector<1x16x16xf32>
    %13 = vector.shape_cast %12 : vector<1x16x16xf32> to vector<16x16xf32>
    %c0_12 = arith.constant 0 : index
    %c0_13 = arith.constant 0 : index
    %c0_14 = arith.constant 0 : index
    %14 = vector.load %arg5[%c0_12, %c0_13, %c0_14] : memref<8x1x16xf32, #tpu.memory_space<vmem>>, vector<1x1x16xf32>
    %15 = vector.shape_cast %14 : vector<1x1x16xf32> to vector<1x16xf32>
    %cst_15 = arith.constant dense<0.000000e+00> : vector<8x48xf32>
    %16 = tpu.matmul %1, %9, %cst_15 {dimension_numbers = #tpu.dot_dimension_numbers<[1], [1], [0], [0], [0, 0, 1, 0], [], []>} : vector<8x16xf32>, vector<48x16xf32>, vector<8x48xf32> -> vector<8x48xf32>
    %17 = vector.broadcast %11 : vector<1x48xf32> to vector<8x48xf32>
    %18 = arith.addf %16, %17 : vector<8x48xf32>
    %19 = vector.extract_strided_slice %18 {offsets = [0, 0], sizes = [8, 16], strides = [1, 1]} : vector<8x48xf32> to vector<8x16xf32>
    %20 = vector.extract_strided_slice %18 {offsets = [0, 16], sizes = [8, 16], strides = [1, 1]} : vector<8x48xf32> to vector<8x16xf32>
    %21 = vector.extract_strided_slice %18 {offsets = [0, 32], sizes = [8, 16], strides = [1, 1]} : vector<8x48xf32> to vector<8x16xf32>
    %22 = arith.truncf %19 : vector<8x16xf32> to vector<8x16xbf16>
    %23 = arith.truncf %20 : vector<8x16xf32> to vector<8x16xbf16>
    %24 = arith.truncf %21 : vector<8x16xf32> to vector<8x16xbf16>
    %25 = vector.extract_strided_slice %22 {offsets = [0, 0], sizes = [8, 8], strides = [1, 1]} : vector<8x16xbf16> to vector<8x8xbf16>
    %26 = vector.extract_strided_slice %23 {offsets = [0, 0], sizes = [8, 8], strides = [1, 1]} : vector<8x16xbf16> to vector<8x8xbf16>
    %27 = vector.extract_strided_slice %24 {offsets = [0, 0], sizes = [8, 8], strides = [1, 1]} : vector<8x16xbf16> to vector<8x8xbf16>
    %cst_16 = arith.constant dense<0.000000e+00> : vector<8x8xf32>
    %28 = tpu.matmul %25, %26, %cst_16 {dimension_numbers = #tpu.dot_dimension_numbers<[1], [1], [0], [0], [0, 0, 1, 0], [], []>} : vector<8x8xbf16>, vector<8x8xbf16>, vector<8x8xf32> -> vector<8x8xf32>
    %29 = arith.addf %28, %7 : vector<8x8xf32>
    %cst_17 = arith.constant dense<0xFF800000> : vector<8xf32>
    %30 = vector.multi_reduction <maximumf>, %29, %cst_17 [1] : vector<8x8xf32> to vector<8xf32>
    %31 = vector.shape_cast %30 : vector<8xf32> to vector<8x1xf32>
    %32 = vector.broadcast %31 : vector<8x1xf32> to vector<8x8xf32>
    %33 = arith.subf %29, %32 : vector<8x8xf32>
    %34 = arith.truncf %33 : vector<8x8xf32> to vector<8x8xbf16>
    %35 = math.exp %34 : vector<8x8xbf16>
    %36 = arith.extf %35 : vector<8x8xbf16> to vector<8x8xf32>
    %cst_18 = arith.constant dense<0.000000e+00> : vector<8xf32>
    %37 = vector.multi_reduction <add>, %36, %cst_18 [1] : vector<8x8xf32> to vector<8xf32>
    %38 = vector.shape_cast %37 : vector<8xf32> to vector<8x1xf32>
    %cst_19 = arith.constant dense<0.000000e+00> : vector<8x8xf32>
    %39 = tpu.matmul %35, %27, %cst_19 {dimension_numbers = #tpu.dot_dimension_numbers<[1], [0], [0], [1], [0, 0, 1, 1], [], []>} : vector<8x8xbf16>, vector<8x8xbf16>, vector<8x8xf32> -> vector<8x8xf32>
    %40 = tpu.reciprocal %38 {approx = true} : vector<8x1xf32> -> vector<8x1xf32>
    %41 = vector.broadcast %40 : vector<8x1xf32> to vector<8x8xf32>
    %42 = arith.mulf %39, %41 : vector<8x8xf32>
    %43 = vector.extract_strided_slice %13 {offsets = [0, 0], sizes = [16, 8], strides = [1, 1]} : vector<16x16xf32> to vector<16x8xf32>
    %cst_20 = arith.constant dense<0.000000e+00> : vector<8x16xf32>
    %44 = tpu.matmul %42, %43, %cst_20 {dimension_numbers = #tpu.dot_dimension_numbers<[1], [1], [0], [0], [0, 0, 1, 0], [], []>} : vector<8x8xf32>, vector<16x8xf32>, vector<8x16xf32> -> vector<8x16xf32>
    %45 = vector.extract_strided_slice %22 {offsets = [0, 8], sizes = [8, 8], strides = [1, 1]} : vector<8x16xbf16> to vector<8x8xbf16>
    %46 = vector.extract_strided_slice %23 {offsets = [0, 8], sizes = [8, 8], strides = [1, 1]} : vector<8x16xbf16> to vector<8x8xbf16>
    %47 = vector.extract_strided_slice %24 {offsets = [0, 8], sizes = [8, 8], strides = [1, 1]} : vector<8x16xbf16> to vector<8x8xbf16>
    %cst_21 = arith.constant dense<0.000000e+00> : vector<8x8xf32>
    %48 = tpu.matmul %45, %46, %cst_21 {dimension_numbers = #tpu.dot_dimension_numbers<[1], [1], [0], [0], [0, 0, 1, 0], [], []>} : vector<8x8xbf16>, vector<8x8xbf16>, vector<8x8xf32> -> vector<8x8xf32>
    %49 = arith.addf %48, %7 : vector<8x8xf32>
    %cst_22 = arith.constant dense<0xFF800000> : vector<8xf32>
    %50 = vector.multi_reduction <maximumf>, %49, %cst_22 [1] : vector<8x8xf32> to vector<8xf32>
    %51 = vector.shape_cast %50 : vector<8xf32> to vector<8x1xf32>
    %52 = vector.broadcast %51 : vector<8x1xf32> to vector<8x8xf32>
    %53 = arith.subf %49, %52 : vector<8x8xf32>
    %54 = arith.truncf %53 : vector<8x8xf32> to vector<8x8xbf16>
    %55 = math.exp %54 : vector<8x8xbf16>
    %56 = arith.extf %55 : vector<8x8xbf16> to vector<8x8xf32>
    %cst_23 = arith.constant dense<0.000000e+00> : vector<8xf32>
    %57 = vector.multi_reduction <add>, %56, %cst_23 [1] : vector<8x8xf32> to vector<8xf32>
    %58 = vector.shape_cast %57 : vector<8xf32> to vector<8x1xf32>
    %cst_24 = arith.constant dense<0.000000e+00> : vector<8x8xf32>
    %59 = tpu.matmul %55, %47, %cst_24 {dimension_numbers = #tpu.dot_dimension_numbers<[1], [0], [0], [1], [0, 0, 1, 1], [], []>} : vector<8x8xbf16>, vector<8x8xbf16>, vector<8x8xf32> -> vector<8x8xf32>
    %60 = tpu.reciprocal %58 {approx = true} : vector<8x1xf32> -> vector<8x1xf32>
    %61 = vector.broadcast %60 : vector<8x1xf32> to vector<8x8xf32>
    %62 = arith.mulf %59, %61 : vector<8x8xf32>
    %63 = vector.extract_strided_slice %13 {offsets = [0, 8], sizes = [16, 8], strides = [1, 1]} : vector<16x16xf32> to vector<16x8xf32>
    %cst_25 = arith.constant dense<0.000000e+00> : vector<8x16xf32>
    %64 = tpu.matmul %62, %63, %cst_25 {dimension_numbers = #tpu.dot_dimension_numbers<[1], [1], [0], [0], [0, 0, 1, 0], [], []>} : vector<8x8xf32>, vector<16x8xf32>, vector<8x16xf32> -> vector<8x16xf32>
    %65 = arith.addf %44, %64 : vector<8x16xf32>
    %66 = vector.broadcast %15 : vector<1x16xf32> to vector<8x16xf32>
    %67 = arith.addf %65, %66 : vector<8x16xf32>
    %c0_26 = arith.constant 0 : index
    %c0_27 = arith.constant 0 : index
    %68 = vector.load %arg25[%c0_26, %c0_27] : memref<8x16xf32, #tpu.memory_space<vmem>>, vector<8x16xf32>
    tpu.vector_store %arg25[%c0_26, %c0_27], %67 {strides = array<i32>} : memref<8x16xf32, #tpu.memory_space<vmem>>, vector<8x16xf32>,
    %c0_28 = arith.constant 0 : index
    %c0_29 = arith.constant 0 : index
    %69 = vector.load %arg25[%c0_28, %c0_29] : memref<8x16xf32, #tpu.memory_space<vmem>>, vector<8x16xf32>
    %70 = arith.addf %1, %69 : vector<8x16xf32>
    %c0_30 = arith.constant 0 : index
    %c0_31 = arith.constant 0 : index
    %c0_32 = arith.constant 0 : index
    %71 = vector.load %arg14[%c0_30, %c0_31, %c0_32] : memref<8x1x16xf32, #tpu.memory_space<vmem>>, vector<1x1x16xf32>
    %72 = vector.shape_cast %71 : vector<1x1x16xf32> to vector<1x16xf32>
    %c0_33 = arith.constant 0 : index
    %c0_34 = arith.constant 0 : index
    %c0_35 = arith.constant 0 : index
    %73 = vector.load %arg15[%c0_33, %c0_34, %c0_35] : memref<8x1x16xf32, #tpu.memory_space<vmem>>, vector<1x1x16xf32>
    %74 = vector.shape_cast %73 : vector<1x1x16xf32> to vector<1x16xf32>
    %cst_36 = arith.constant dense<0.000000e+00> : vector<8xf32>
    %75 = vector.multi_reduction <add>, %70, %cst_36 [1] : vector<8x16xf32> to vector<8xf32>
    %76 = vector.shape_cast %75 : vector<8xf32> to vector<8x1xf32>
    %cst_37 = arith.constant 1.600000e+01 : f32
    %77 = vector.broadcast %cst_37 : f32 to vector<8x1xf32>
    %78 = arith.divf %76, %77 : vector<8x1xf32>
    %79 = vector.broadcast %78 : vector<8x1xf32> to vector<8x16xf32>
    %80 = arith.subf %70, %79 : vector<8x16xf32>
    %81 = arith.mulf %80, %80 : vector<8x16xf32>
    %cst_38 = arith.constant dense<0.000000e+00> : vector<8xf32>
    %82 = vector.multi_reduction <add>, %81, %cst_38 [1] : vector<8x16xf32> to vector<8xf32>
    %83 = vector.shape_cast %82 : vector<8xf32> to vector<8x1xf32>
    %cst_39 = arith.constant 1.600000e+01 : f32
    %84 = vector.broadcast %cst_39 : f32 to vector<8x1xf32>
    %85 = arith.divf %83, %84 : vector<8x1xf32>
    %cst_40 = arith.constant 9.99999974E-6 : f32
    %86 = vector.broadcast %cst_40 : f32 to vector<8x1xf32>
    %87 = arith.addf %85, %86 : vector<8x1xf32>
    %88 = math.rsqrt %87 : vector<8x1xf32>
    %89 = vector.broadcast %88 : vector<8x1xf32> to vector<8x16xf32>
    %90 = arith.mulf %80, %89 : vector<8x16xf32>
    %91 = vector.broadcast %72 : vector<1x16xf32> to vector<8x16xf32>
    %92 = arith.mulf %90, %91 : vector<8x16xf32>
    %93 = vector.broadcast %74 : vector<1x16xf32> to vector<8x16xf32>
    %94 = arith.addf %92, %93 : vector<8x16xf32>
    %c0_41 = arith.constant 0 : index
    %c0_42 = arith.constant 0 : index
    %c0_43 = arith.constant 0 : index
    %95 = vector.load %arg6[%c0_41, %c0_42, %c0_43] : memref<8x48x16xf32, #tpu.memory_space<vmem>>, vector<1x48x16xf32>
    %96 = vector.shape_cast %95 : vector<1x48x16xf32> to vector<48x16xf32>
    %c0_44 = arith.constant 0 : index
    %c0_45 = arith.constant 0 : index
    %c0_46 = arith.constant 0 : index
    %97 = vector.load %arg7[%c0_44, %c0_45, %c0_46] : memref<8x1x48xf32, #tpu.memory_space<vmem>>, vector<1x1x48xf32>
    %98 = vector.shape_cast %97 : vector<1x1x48xf32> to vector<1x48xf32>
    %c0_47 = arith.constant 0 : index
    %c0_48 = arith.constant 0 : index
    %c0_49 = arith.constant 0 : index
    %99 = vector.load %arg8[%c0_47, %c0_48, %c0_49] : memref<8x16x16xf32, #tpu.memory_space<vmem>>, vector<1x16x16xf32>
    %100 = vector.shape_cast %99 : vector<1x16x16xf32> to vector<16x16xf32>
    %c0_50 = arith.constant 0 : index
    %c0_51 = arith.constant 0 : index
    %c0_52 = arith.constant 0 : index
    %101 = vector.load %arg9[%c0_50, %c0_51, %c0_52] : memref<8x1x16xf32, #tpu.memory_space<vmem>>, vector<1x1x16xf32>
    %102 = vector.shape_cast %101 : vector<1x1x16xf32> to vector<1x16xf32>
    %103 = vector.extract_strided_slice %96 {offsets = [0, 0], sizes = [16, 16], strides = [1, 1]} : vector<48x16xf32> to vector<16x16xf32>
    %cst_53 = arith.constant dense<0.000000e+00> : vector<8x16xf32>
    %104 = tpu.matmul %94, %103, %cst_53 {dimension_numbers = #tpu.dot_dimension_numbers<[1], [1], [0], [0], [0, 0, 1, 0], [], []>} : vector<8x16xf32>, vector<16x16xf32>, vector<8x16xf32> -> vector<8x16xf32>
    %105 = vector.extract_strided_slice %98 {offsets = [0, 0], sizes = [1, 16], strides = [1, 1]} : vector<1x48xf32> to vector<1x16xf32>
    %106 = vector.broadcast %105 : vector<1x16xf32> to vector<8x16xf32>
    %107 = arith.addf %104, %106 : vector<8x16xf32>
    %108 = vector.extract_strided_slice %96 {offsets = [16, 0], sizes = [32, 16], strides = [1, 1]} : vector<48x16xf32> to vector<32x16xf32>
    %cst_54 = arith.constant dense<0.000000e+00> : vector<8x32xf32>
    %109 = tpu.matmul %1, %108, %cst_54 {dimension_numbers = #tpu.dot_dimension_numbers<[1], [1], [0], [0], [0, 0, 1, 0], [], []>} : vector<8x16xf32>, vector<32x16xf32>, vector<8x32xf32> -> vector<8x32xf32>
    %110 = vector.extract_strided_slice %98 {offsets = [0, 16], sizes = [1, 32], strides = [1, 1]} : vector<1x48xf32> to vector<1x32xf32>
    %111 = vector.broadcast %110 : vector<1x32xf32> to vector<8x32xf32>
    %112 = arith.addf %109, %111 : vector<8x32xf32>
    %113 = vector.extract_strided_slice %112 {offsets = [0, 0], sizes = [8, 16], strides = [1, 1]} : vector<8x32xf32> to vector<8x16xf32>
    %114 = vector.extract_strided_slice %112 {offsets = [0, 16], sizes = [8, 16], strides = [1, 1]} : vector<8x32xf32> to vector<8x16xf32>
    %115 = arith.truncf %107 : vector<8x16xf32> to vector<8x16xbf16>
    %116 = arith.truncf %113 : vector<8x16xf32> to vector<8x16xbf16>
    %117 = arith.truncf %114 : vector<8x16xf32> to vector<8x16xbf16>
    %118 = vector.extract_strided_slice %115 {offsets = [0, 0], sizes = [8, 8], strides = [1, 1]} : vector<8x16xbf16> to vector<8x8xbf16>
    %119 = vector.extract_strided_slice %116 {offsets = [0, 0], sizes = [8, 8], strides = [1, 1]} : vector<8x16xbf16> to vector<8x8xbf16>
    %120 = vector.extract_strided_slice %117 {offsets = [0, 0], sizes = [8, 8], strides = [1, 1]} : vector<8x16xbf16> to vector<8x8xbf16>
    %cst_55 = arith.constant dense<0.000000e+00> : vector<8x8xf32>
    %121 = tpu.matmul %118, %119, %cst_55 {dimension_numbers = #tpu.dot_dimension_numbers<[1], [1], [0], [0], [0, 0, 1, 0], [], []>} : vector<8x8xbf16>, vector<8x8xbf16>, vector<8x8xf32> -> vector<8x8xf32>
    %cst_56 = arith.constant dense<0xFF800000> : vector<8xf32>
    %122 = vector.multi_reduction <maximumf>, %121, %cst_56 [1] : vector<8x8xf32> to vector<8xf32>
    %123 = vector.shape_cast %122 : vector<8xf32> to vector<8x1xf32>
    %124 = vector.broadcast %123 : vector<8x1xf32> to vector<8x8xf32>
    %125 = arith.subf %121, %124 : vector<8x8xf32>
    %126 = arith.truncf %125 : vector<8x8xf32> to vector<8x8xbf16>
    %127 = math.exp %126 : vector<8x8xbf16>
    %128 = arith.extf %127 : vector<8x8xbf16> to vector<8x8xf32>
    %cst_57 = arith.constant dense<0.000000e+00> : vector<8xf32>
    %129 = vector.multi_reduction <add>, %128, %cst_57 [1] : vector<8x8xf32> to vector<8xf32>
    %130 = vector.shape_cast %129 : vector<8xf32> to vector<8x1xf32>
    %cst_58 = arith.constant dense<0.000000e+00> : vector<8x8xf32>
    %131 = tpu.matmul %127, %120, %cst_58 {dimension_numbers = #tpu.dot_dimension_numbers<[1], [0], [0], [1], [0, 0, 1, 1], [], []>} : vector<8x8xbf16>, vector<8x8xbf16>, vector<8x8xf32> -> vector<8x8xf32>
    %132 = tpu.reciprocal %130 {approx = true} : vector<8x1xf32> -> vector<8x1xf32>
    %133 = vector.broadcast %132 : vector<8x1xf32> to vector<8x8xf32>
    %134 = arith.mulf %131, %133 : vector<8x8xf32>
    %135 = vector.extract_strided_slice %100 {offsets = [0, 0], sizes = [16, 8], strides = [1, 1]} : vector<16x16xf32> to vector<16x8xf32>
    %cst_59 = arith.constant dense<0.000000e+00> : vector<8x16xf32>
    %136 = tpu.matmul %134, %135, %cst_59 {dimension_numbers = #tpu.dot_dimension_numbers<[1], [1], [0], [0], [0, 0, 1, 0], [], []>} : vector<8x8xf32>, vector<16x8xf32>, vector<8x16xf32> -> vector<8x16xf32>
    %137 = vector.extract_strided_slice %115 {offsets = [0, 8], sizes = [8, 8], strides = [1, 1]} : vector<8x16xbf16> to vector<8x8xbf16>
    %138 = vector.extract_strided_slice %116 {offsets = [0, 8], sizes = [8, 8], strides = [1, 1]} : vector<8x16xbf16> to vector<8x8xbf16>
    %139 = vector.extract_strided_slice %117 {offsets = [0, 8], sizes = [8, 8], strides = [1, 1]} : vector<8x16xbf16> to vector<8x8xbf16>
    %cst_60 = arith.constant dense<0.000000e+00> : vector<8x8xf32>
    %140 = tpu.matmul %137, %138, %cst_60 {dimension_numbers = #tpu.dot_dimension_numbers<[1], [1], [0], [0], [0, 0, 1, 0], [], []>} : vector<8x8xbf16>, vector<8x8xbf16>, vector<8x8xf32> -> vector<8x8xf32>
    %cst_61 = arith.constant dense<0xFF800000> : vector<8xf32>
    %141 = vector.multi_reduction <maximumf>, %140, %cst_61 [1] : vector<8x8xf32> to vector<8xf32>
    %142 = vector.shape_cast %141 : vector<8xf32> to vector<8x1xf32>
    %143 = vector.broadcast %142 : vector<8x1xf32> to vector<8x8xf32>
    %144 = arith.subf %140, %143 : vector<8x8xf32>
    %145 = arith.truncf %144 : vector<8x8xf32> to vector<8x8xbf16>
    %146 = math.exp %145 : vector<8x8xbf16>
    %147 = arith.extf %146 : vector<8x8xbf16> to vector<8x8xf32>
    %cst_62 = arith.constant dense<0.000000e+00> : vector<8xf32>
    %148 = vector.multi_reduction <add>, %147, %cst_62 [1] : vector<8x8xf32> to vector<8xf32>
    %149 = vector.shape_cast %148 : vector<8xf32> to vector<8x1xf32>
    %cst_63 = arith.constant dense<0.000000e+00> : vector<8x8xf32>
    %150 = tpu.matmul %146, %139, %cst_63 {dimension_numbers = #tpu.dot_dimension_numbers<[1], [0], [0], [1], [0, 0, 1, 1], [], []>} : vector<8x8xbf16>, vector<8x8xbf16>, vector<8x8xf32> -> vector<8x8xf32>
    %151 = tpu.reciprocal %149 {approx = true} : vector<8x1xf32> -> vector<8x1xf32>
    %152 = vector.broadcast %151 : vector<8x1xf32> to vector<8x8xf32>
    %153 = arith.mulf %150, %152 : vector<8x8xf32>
    %154 = vector.extract_strided_slice %100 {offsets = [0, 8], sizes = [16, 8], strides = [1, 1]} : vector<16x16xf32> to vector<16x8xf32>
    %cst_64 = arith.constant dense<0.000000e+00> : vector<8x16xf32>
    %155 = tpu.matmul %153, %154, %cst_64 {dimension_numbers = #tpu.dot_dimension_numbers<[1], [1], [0], [0], [0, 0, 1, 0], [], []>} : vector<8x8xf32>, vector<16x8xf32>, vector<8x16xf32> -> vector<8x16xf32>
    %156 = arith.addf %136, %155 : vector<8x16xf32>
    %157 = vector.broadcast %102 : vector<1x16xf32> to vector<8x16xf32>
    %158 = arith.addf %156, %157 : vector<8x16xf32>
    %c0_65 = arith.constant 0 : index
    %c0_66 = arith.constant 0 : index
    %159 = vector.load %arg25[%c0_65, %c0_66] : memref<8x16xf32, #tpu.memory_space<vmem>>, vector<8x16xf32>
    tpu.vector_store %arg25[%c0_65, %c0_66], %158 {strides = array<i32>} : memref<8x16xf32, #tpu.memory_space<vmem>>, vector<8x16xf32>,
    %c0_67 = arith.constant 0 : index
    %c0_68 = arith.constant 0 : index
    %160 = vector.load %arg25[%c0_67, %c0_68] : memref<8x16xf32, #tpu.memory_space<vmem>>, vector<8x16xf32>
    %161 = arith.addf %94, %160 : vector<8x16xf32>
    %c0_69 = arith.constant 0 : index
    %c0_70 = arith.constant 0 : index
    %c0_71 = arith.constant 0 : index
    %162 = vector.load %arg16[%c0_69, %c0_70, %c0_71] : memref<8x1x16xf32, #tpu.memory_space<vmem>>, vector<1x1x16xf32>
    %163 = vector.shape_cast %162 : vector<1x1x16xf32> to vector<1x16xf32>
    %c0_72 = arith.constant 0 : index
    %c0_73 = arith.constant 0 : index
    %c0_74 = arith.constant 0 : index
    %164 = vector.load %arg17[%c0_72, %c0_73, %c0_74] : memref<8x1x16xf32, #tpu.memory_space<vmem>>, vector<1x1x16xf32>
    %165 = vector.shape_cast %164 : vector<1x1x16xf32> to vector<1x16xf32>
    %cst_75 = arith.constant dense<0.000000e+00> : vector<8xf32>
    %166 = vector.multi_reduction <add>, %161, %cst_75 [1] : vector<8x16xf32> to vector<8xf32>
    %167 = vector.shape_cast %166 : vector<8xf32> to vector<8x1xf32>
    %cst_76 = arith.constant 1.600000e+01 : f32
    %168 = vector.broadcast %cst_76 : f32 to vector<8x1xf32>
    %169 = arith.divf %167, %168 : vector<8x1xf32>
    %170 = vector.broadcast %169 : vector<8x1xf32> to vector<8x16xf32>
    %171 = arith.subf %161, %170 : vector<8x16xf32>
    %172 = arith.mulf %171, %171 : vector<8x16xf32>
    %cst_77 = arith.constant dense<0.000000e+00> : vector<8xf32>
    %173 = vector.multi_reduction <add>, %172, %cst_77 [1] : vector<8x16xf32> to vector<8xf32>
    %174 = vector.shape_cast %173 : vector<8xf32> to vector<8x1xf32>
    %cst_78 = arith.constant 1.600000e+01 : f32
    %175 = vector.broadcast %cst_78 : f32 to vector<8x1xf32>
    %176 = arith.divf %174, %175 : vector<8x1xf32>
    %cst_79 = arith.constant 9.99999974E-6 : f32
    %177 = vector.broadcast %cst_79 : f32 to vector<8x1xf32>
    %178 = arith.addf %176, %177 : vector<8x1xf32>
    %179 = math.rsqrt %178 : vector<8x1xf32>
    %180 = vector.broadcast %179 : vector<8x1xf32> to vector<8x16xf32>
    %181 = arith.mulf %171, %180 : vector<8x16xf32>
    %182 = vector.broadcast %163 : vector<1x16xf32> to vector<8x16xf32>
    %183 = arith.mulf %181, %182 : vector<8x16xf32>
    %184 = vector.broadcast %165 : vector<1x16xf32> to vector<8x16xf32>
    %185 = arith.addf %183, %184 : vector<8x16xf32>
    %c0_80 = arith.constant 0 : index
    %c0_81 = arith.constant 0 : index
    %c0_82 = arith.constant 0 : index
    %186 = vector.load %arg10[%c0_80, %c0_81, %c0_82] : memref<8x64x16xf32, #tpu.memory_space<vmem>>, vector<1x64x16xf32>
    %187 = vector.shape_cast %186 : vector<1x64x16xf32> to vector<64x16xf32>
    %cst_83 = arith.constant dense<0.000000e+00> : vector<8x64xf32>
    %188 = tpu.matmul %185, %187, %cst_83 {dimension_numbers = #tpu.dot_dimension_numbers<[1], [1], [0], [0], [0, 0, 1, 0], [], []>} : vector<8x16xf32>, vector<64x16xf32>, vector<8x64xf32> -> vector<8x64xf32>
    %c0_84 = arith.constant 0 : index
    %c0_85 = arith.constant 0 : index
    %c0_86 = arith.constant 0 : index
    %189 = vector.load %arg11[%c0_84, %c0_85, %c0_86] : memref<8x1x64xf32, #tpu.memory_space<vmem>>, vector<1x1x64xf32>
    %190 = vector.shape_cast %189 : vector<1x1x64xf32> to vector<1x64xf32>
    %191 = vector.broadcast %190 : vector<1x64xf32> to vector<8x64xf32>
    %192 = arith.addf %188, %191 : vector<8x64xf32>
    %cst_87 = arith.constant 5.000000e-01 : f32
    %193 = vector.broadcast %cst_87 : f32 to vector<8x64xf32>
    %194 = arith.mulf %193, %192 : vector<8x64xf32>
    %cst_88 = arith.constant 4.471500e-02 : f32
    %195 = vector.broadcast %cst_88 : f32 to vector<8x64xf32>
    %196 = arith.mulf %195, %192 : vector<8x64xf32>
    %197 = arith.mulf %196, %192 : vector<8x64xf32>
    %198 = arith.mulf %197, %192 : vector<8x64xf32>
    %199 = arith.addf %192, %198 : vector<8x64xf32>
    %cst_89 = arith.constant 0.797884583 : f32
    %200 = vector.broadcast %cst_89 : f32 to vector<8x64xf32>
    %201 = arith.mulf %200, %199 : vector<8x64xf32>
    %202 = math.tanh %201 : vector<8x64xf32>
    %cst_90 = arith.constant 1.000000e+00 : f32
    %203 = vector.broadcast %cst_90 : f32 to vector<8x64xf32>
    %204 = arith.addf %203, %202 : vector<8x64xf32>
    %205 = arith.mulf %194, %204 : vector<8x64xf32>
    %c0_91 = arith.constant 0 : index
    %c0_92 = arith.constant 0 : index
    %c0_93 = arith.constant 0 : index
    %206 = vector.load %arg12[%c0_91, %c0_92, %c0_93] : memref<8x16x64xf32, #tpu.memory_space<vmem>>, vector<1x16x64xf32>
    %207 = vector.shape_cast %206 : vector<1x16x64xf32> to vector<16x64xf32>
    %cst_94 = arith.constant dense<0.000000e+00> : vector<8x16xf32>
    %208 = tpu.matmul %205, %207, %cst_94 {dimension_numbers = #tpu.dot_dimension_numbers<[1], [1], [0], [0], [0, 0, 1, 0], [], []>} : vector<8x64xf32>, vector<16x64xf32>, vector<8x16xf32> -> vector<8x16xf32>
    %c0_95 = arith.constant 0 : index
    %c0_96 = arith.constant 0 : index
    %c0_97 = arith.constant 0 : index
    %209 = vector.load %arg13[%c0_95, %c0_96, %c0_97] : memref<8x1x16xf32, #tpu.memory_space<vmem>>, vector<1x1x16xf32>
    %210 = vector.shape_cast %209 : vector<1x1x16xf32> to vector<1x16xf32>
    %211 = vector.broadcast %210 : vector<1x16xf32> to vector<8x16xf32>
    %212 = arith.addf %208, %211 : vector<8x16xf32>
    %213 = arith.addf %185, %212 : vector<8x16xf32>
    %c0_98 = arith.constant 0 : index
    %c0_99 = arith.constant 0 : index
    %c0_100 = arith.constant 0 : index
    %214 = vector.load %arg18[%c0_98, %c0_99, %c0_100] : memref<8x1x16xf32, #tpu.memory_space<vmem>>, vector<1x1x16xf32>
    %215 = vector.shape_cast %214 : vector<1x1x16xf32> to vector<1x16xf32>
    %c0_101 = arith.constant 0 : index
    %c0_102 = arith.constant 0 : index
    %c0_103 = arith.constant 0 : index
    %216 = vector.load %arg19[%c0_101, %c0_102, %c0_103] : memref<8x1x16xf32, #tpu.memory_space<vmem>>, vector<1x1x16xf32>
    %217 = vector.shape_cast %216 : vector<1x1x16xf32> to vector<1x16xf32>
    %cst_104 = arith.constant dense<0.000000e+00> : vector<8xf32>
    %218 = vector.multi_reduction <add>, %213, %cst_104 [1] : vector<8x16xf32> to vector<8xf32>
    %219 = vector.shape_cast %218 : vector<8xf32> to vector<8x1xf32>
    %cst_105 = arith.constant 1.600000e+01 : f32
    %220 = vector.broadcast %cst_105 : f32 to vector<8x1xf32>
    %221 = arith.divf %219, %220 : vector<8x1xf32>
    %222 = vector.broadcast %221 : vector<8x1xf32> to vector<8x16xf32>
    %223 = arith.subf %213, %222 : vector<8x16xf32>
    %224 = arith.mulf %223, %223 : vector<8x16xf32>
    %cst_106 = arith.constant dense<0.000000e+00> : vector<8xf32>
    %225 = vector.multi_reduction <add>, %224, %cst_106 [1] : vector<8x16xf32> to vector<8xf32>
    %226 = vector.shape_cast %225 : vector<8xf32> to vector<8x1xf32>
    %cst_107 = arith.constant 1.600000e+01 : f32
    %227 = vector.broadcast %cst_107 : f32 to vector<8x1xf32>
    %228 = arith.divf %226, %227 : vector<8x1xf32>
    %cst_108 = arith.constant 9.99999974E-6 : f32
    %229 = vector.broadcast %cst_108 : f32 to vector<8x1xf32>
    %230 = arith.addf %228, %229 : vector<8x1xf32>
    %231 = math.rsqrt %230 : vector<8x1xf32>
    %232 = vector.broadcast %231 : vector<8x1xf32> to vector<8x16xf32>
    %233 = arith.mulf %223, %232 : vector<8x16xf32>
    %234 = vector.broadcast %215 : vector<1x16xf32> to vector<8x16xf32>
    %235 = arith.mulf %233, %234 : vector<8x16xf32>
    %236 = vector.broadcast %217 : vector<1x16xf32> to vector<8x16xf32>
    %237 = arith.addf %235, %236 : vector<8x16xf32>
    %c1 = arith.constant 1 : index
    %c0_109 = arith.constant 0 : index
    %c0_110 = arith.constant 0 : index
    %238 = vector.load %arg2[%c1, %c0_109, %c0_110] : memref<8x48x16xf32, #tpu.memory_space<vmem>>, vector<1x48x16xf32>
    %239 = vector.shape_cast %238 : vector<1x48x16xf32> to vector<48x16xf32>
    %c1_111 = arith.constant 1 : index
    %c0_112 = arith.constant 0 : index
    %c0_113 = arith.constant 0 : index
    %240 = vector.load %arg3[%c1_111, %c0_112, %c0_113] : memref<8x1x48xf32, #tpu.memory_space<vmem>>, vector<1x1x48xf32>
    %241 = vector.shape_cast %240 : vector<1x1x48xf32> to vector<1x48xf32>
    %c1_114 = arith.constant 1 : index
    %c0_115 = arith.constant 0 : index
    %c0_116 = arith.constant 0 : index
    %242 = vector.load %arg4[%c1_114, %c0_115, %c0_116] : memref<8x16x16xf32, #tpu.memory_space<vmem>>, vector<1x16x16xf32>
    %243 = vector.shape_cast %242 : vector<1x16x16xf32> to vector<16x16xf32>
    %c1_117 = arith.constant 1 : index
    %c0_118 = arith.constant 0 : index
    %c0_119 = arith.constant 0 : index
    %244 = vector.load %arg5[%c1_117, %c0_118, %c0_119] : memref<8x1x16xf32, #tpu.memory_space<vmem>>, vector<1x1x16xf32>
    %245 = vector.shape_cast %244 : vector<1x1x16xf32> to vector<1x16xf32>
    %cst_120 = arith.constant dense<0.000000e+00> : vector<8x48xf32>
    %246 = tpu.matmul %237, %239, %cst_120 {dimension_numbers = #tpu.dot_dimension_numbers<[1], [1], [0], [0], [0, 0, 1, 0], [], []>} : vector<8x16xf32>, vector<48x16xf32>, vector<8x48xf32> -> vector<8x48xf32>
    %247 = vector.broadcast %241 : vector<1x48xf32> to vector<8x48xf32>
    %248 = arith.addf %246, %247 : vector<8x48xf32>
    %249 = vector.extract_strided_slice %248 {offsets = [0, 0], sizes = [8, 16], strides = [1, 1]} : vector<8x48xf32> to vector<8x16xf32>
    %250 = vector.extract_strided_slice %248 {offsets = [0, 16], sizes = [8, 16], strides = [1, 1]} : vector<8x48xf32> to vector<8x16xf32>
    %251 = vector.extract_strided_slice %248 {offsets = [0, 32], sizes = [8, 16], strides = [1, 1]} : vector<8x48xf32> to vector<8x16xf32>
    %252 = arith.truncf %249 : vector<8x16xf32> to vector<8x16xbf16>
    %253 = arith.truncf %250 : vector<8x16xf32> to vector<8x16xbf16>
    %254 = arith.truncf %251 : vector<8x16xf32> to vector<8x16xbf16>
    %255 = vector.extract_strided_slice %252 {offsets = [0, 0], sizes = [8, 8], strides = [1, 1]} : vector<8x16xbf16> to vector<8x8xbf16>
    %256 = vector.extract_strided_slice %253 {offsets = [0, 0], sizes = [8, 8], strides = [1, 1]} : vector<8x16xbf16> to vector<8x8xbf16>
    %257 = vector.extract_strided_slice %254 {offsets = [0, 0], sizes = [8, 8], strides = [1, 1]} : vector<8x16xbf16> to vector<8x8xbf16>
    %cst_121 = arith.constant dense<0.000000e+00> : vector<8x8xf32>
    %258 = tpu.matmul %255, %256, %cst_121 {dimension_numbers = #tpu.dot_dimension_numbers<[1], [1], [0], [0], [0, 0, 1, 0], [], []>} : vector<8x8xbf16>, vector<8x8xbf16>, vector<8x8xf32> -> vector<8x8xf32>
    %259 = arith.addf %258, %7 : vector<8x8xf32>
    %cst_122 = arith.constant dense<0xFF800000> : vector<8xf32>
    %260 = vector.multi_reduction <maximumf>, %259, %cst_122 [1] : vector<8x8xf32> to vector<8xf32>
    %261 = vector.shape_cast %260 : vector<8xf32> to vector<8x1xf32>
    %262 = vector.broadcast %261 : vector<8x1xf32> to vector<8x8xf32>
    %263 = arith.subf %259, %262 : vector<8x8xf32>
    %264 = arith.truncf %263 : vector<8x8xf32> to vector<8x8xbf16>
    %265 = math.exp %264 : vector<8x8xbf16>
    %266 = arith.extf %265 : vector<8x8xbf16> to vector<8x8xf32>
    %cst_123 = arith.constant dense<0.000000e+00> : vector<8xf32>
    %267 = vector.multi_reduction <add>, %266, %cst_123 [1] : vector<8x8xf32> to vector<8xf32>
    %268 = vector.shape_cast %267 : vector<8xf32> to vector<8x1xf32>
    %cst_124 = arith.constant dense<0.000000e+00> : vector<8x8xf32>
    %269 = tpu.matmul %265, %257, %cst_124 {dimension_numbers = #tpu.dot_dimension_numbers<[1], [0], [0], [1], [0, 0, 1, 1], [], []>} : vector<8x8xbf16>, vector<8x8xbf16>, vector<8x8xf32> -> vector<8x8xf32>
    %270 = tpu.reciprocal %268 {approx = true} : vector<8x1xf32> -> vector<8x1xf32>
    %271 = vector.broadcast %270 : vector<8x1xf32> to vector<8x8xf32>
    %272 = arith.mulf %269, %271 : vector<8x8xf32>
    %273 = vector.extract_strided_slice %243 {offsets = [0, 0], sizes = [16, 8], strides = [1, 1]} : vector<16x16xf32> to vector<16x8xf32>
    %cst_125 = arith.constant dense<0.000000e+00> : vector<8x16xf32>
    %274 = tpu.matmul %272, %273, %cst_125 {dimension_numbers = #tpu.dot_dimension_numbers<[1], [1], [0], [0], [0, 0, 1, 0], [], []>} : vector<8x8xf32>, vector<16x8xf32>, vector<8x16xf32> -> vector<8x16xf32>
    %275 = vector.extract_strided_slice %252 {offsets = [0, 8], sizes = [8, 8], strides = [1, 1]} : vector<8x16xbf16> to vector<8x8xbf16>
    %276 = vector.extract_strided_slice %253 {offsets = [0, 8], sizes = [8, 8], strides = [1, 1]} : vector<8x16xbf16> to vector<8x8xbf16>
    %277 = vector.extract_strided_slice %254 {offsets = [0, 8], sizes = [8, 8], strides = [1, 1]} : vector<8x16xbf16> to vector<8x8xbf16>
    %cst_126 = arith.constant dense<0.000000e+00> : vector<8x8xf32>
    %278 = tpu.matmul %275, %276, %cst_126 {dimension_numbers = #tpu.dot_dimension_numbers<[1], [1], [0], [0], [0, 0, 1, 0], [], []>} : vector<8x8xbf16>, vector<8x8xbf16>, vector<8x8xf32> -> vector<8x8xf32>
    %279 = arith.addf %278, %7 : vector<8x8xf32>
    %cst_127 = arith.constant dense<0xFF800000> : vector<8xf32>
    %280 = vector.multi_reduction <maximumf>, %279, %cst_127 [1] : vector<8x8xf32> to vector<8xf32>
    %281 = vector.shape_cast %280 : vector<8xf32> to vector<8x1xf32>
    %282 = vector.broadcast %281 : vector<8x1xf32> to vector<8x8xf32>
    %283 = arith.subf %279, %282 : vector<8x8xf32>
    %284 = arith.truncf %283 : vector<8x8xf32> to vector<8x8xbf16>
    %285 = math.exp %284 : vector<8x8xbf16>
    %286 = arith.extf %285 : vector<8x8xbf16> to vector<8x8xf32>
    %cst_128 = arith.constant dense<0.000000e+00> : vector<8xf32>
    %287 = vector.multi_reduction <add>, %286, %cst_128 [1] : vector<8x8xf32> to vector<8xf32>
    %288 = vector.shape_cast %287 : vector<8xf32> to vector<8x1xf32>
    %cst_129 = arith.constant dense<0.000000e+00> : vector<8x8xf32>
    %289 = tpu.matmul %285, %277, %cst_129 {dimension_numbers = #tpu.dot_dimension_numbers<[1], [0], [0], [1], [0, 0, 1, 1], [], []>} : vector<8x8xbf16>, vector<8x8xbf16>, vector<8x8xf32> -> vector<8x8xf32>
    %290 = tpu.reciprocal %288 {approx = true} : vector<8x1xf32> -> vector<8x1xf32>
    %291 = vector.broadcast %290 : vector<8x1xf32> to vector<8x8xf32>
    %292 = arith.mulf %289, %291 : vector<8x8xf32>
    %293 = vector.extract_strided_slice %243 {offsets = [0, 8], sizes = [16, 8], strides = [1, 1]} : vector<16x16xf32> to vector<16x8xf32>
    %cst_130 = arith.constant dense<0.000000e+00> : vector<8x16xf32>
    %294 = tpu.matmul %292, %293, %cst_130 {dimension_numbers = #tpu.dot_dimension_numbers<[1], [1], [0], [0], [0, 0, 1, 0], [], []>} : vector<8x8xf32>, vector<16x8xf32>, vector<8x16xf32> -> vector<8x16xf32>
    %295 = arith.addf %274, %294 : vector<8x16xf32>
    %296 = vector.broadcast %245 : vector<1x16xf32> to vector<8x16xf32>
    %297 = arith.addf %295, %296 : vector<8x16xf32>
    %c0_131 = arith.constant 0 : index
    %c0_132 = arith.constant 0 : index
    %298 = vector.load %arg25[%c0_131, %c0_132] : memref<8x16xf32, #tpu.memory_space<vmem>>, vector<8x16xf32>
    tpu.vector_store %arg25[%c0_131, %c0_132], %297 {strides = array<i32>} : memref<8x16xf32, #tpu.memory_space<vmem>>, vector<8x16xf32>,
    %c0_133 = arith.constant 0 : index
    %c0_134 = arith.constant 0 : index
    %299 = vector.load %arg25[%c0_133, %c0_134] : memref<8x16xf32, #tpu.memory_space<vmem>>, vector<8x16xf32>
    %300 = arith.addf %237, %299 : vector<8x16xf32>
    %c1_135 = arith.constant 1 : index
    %c0_136 = arith.constant 0 : index
    %c0_137 = arith.constant 0 : index
    %301 = vector.load %arg14[%c1_135, %c0_136, %c0_137] : memref<8x1x16xf32, #tpu.memory_space<vmem>>, vector<1x1x16xf32>
    %302 = vector.shape_cast %301 : vector<1x1x16xf32> to vector<1x16xf32>
    %c1_138 = arith.constant 1 : index
    %c0_139 = arith.constant 0 : index
    %c0_140 = arith.constant 0 : index
    %303 = vector.load %arg15[%c1_138, %c0_139, %c0_140] : memref<8x1x16xf32, #tpu.memory_space<vmem>>, vector<1x1x16xf32>
    %304 = vector.shape_cast %303 : vector<1x1x16xf32> to vector<1x16xf32>
    %cst_141 = arith.constant dense<0.000000e+00> : vector<8xf32>
    %305 = vector.multi_reduction <add>, %300, %cst_141 [1] : vector<8x16xf32> to vector<8xf32>
    %306 = vector.shape_cast %305 : vector<8xf32> to vector<8x1xf32>
    %cst_142 = arith.constant 1.600000e+01 : f32
    %307 = vector.broadcast %cst_142 : f32 to vector<8x1xf32>
    %308 = arith.divf %306, %307 : vector<8x1xf32>
    %309 = vector.broadcast %308 : vector<8x1xf32> to vector<8x16xf32>
    %310 = arith.subf %300, %309 : vector<8x16xf32>
    %311 = arith.mulf %310, %310 : vector<8x16xf32>
    %cst_143 = arith.constant dense<0.000000e+00> : vector<8xf32>
    %312 = vector.multi_reduction <add>, %311, %cst_143 [1] : vector<8x16xf32> to vector<8xf32>
    %313 = vector.shape_cast %312 : vector<8xf32> to vector<8x1xf32>
    %cst_144 = arith.constant 1.600000e+01 : f32
    %314 = vector.broadcast %cst_144 : f32 to vector<8x1xf32>
    %315 = arith.divf %313, %314 : vector<8x1xf32>
    %cst_145 = arith.constant 9.99999974E-6 : f32
    %316 = vector.broadcast %cst_145 : f32 to vector<8x1xf32>
    %317 = arith.addf %315, %316 : vector<8x1xf32>
    %318 = math.rsqrt %317 : vector<8x1xf32>
    %319 = vector.broadcast %318 : vector<8x1xf32> to vector<8x16xf32>
    %320 = arith.mulf %310, %319 : vector<8x16xf32>
    %321 = vector.broadcast %302 : vector<1x16xf32> to vector<8x16xf32>
    %322 = arith.mulf %320, %321 : vector<8x16xf32>
    %323 = vector.broadcast %304 : vector<1x16xf32> to vector<8x16xf32>
    %324 = arith.addf %322, %323 : vector<8x16xf32>
    %c1_146 = arith.constant 1 : index
    %c0_147 = arith.constant 0 : index
    %c0_148 = arith.constant 0 : index
    %325 = vector.load %arg6[%c1_146, %c0_147, %c0_148] : memref<8x48x16xf32, #tpu.memory_space<vmem>>, vector<1x48x16xf32>
    %326 = vector.shape_cast %325 : vector<1x48x16xf32> to vector<48x16xf32>
    %c1_149 = arith.constant 1 : index
    %c0_150 = arith.constant 0 : index
    %c0_151 = arith.constant 0 : index
    %327 = vector.load %arg7[%c1_149, %c0_150, %c0_151] : memref<8x1x48xf32, #tpu.memory_space<vmem>>, vector<1x1x48xf32>
    %328 = vector.shape_cast %327 : vector<1x1x48xf32> to vector<1x48xf32>
    %c1_152 = arith.constant 1 : index
    %c0_153 = arith.constant 0 : index
    %c0_154 = arith.constant 0 : index
    %329 = vector.load %arg8[%c1_152, %c0_153, %c0_154] : memref<8x16x16xf32, #tpu.memory_space<vmem>>, vector<1x16x16xf32>
    %330 = vector.shape_cast %329 : vector<1x16x16xf32> to vector<16x16xf32>
    %c1_155 = arith.constant 1 : index
    %c0_156 = arith.constant 0 : index
    %c0_157 = arith.constant 0 : index
    %331 = vector.load %arg9[%c1_155, %c0_156, %c0_157] : memref<8x1x16xf32, #tpu.memory_space<vmem>>, vector<1x1x16xf32>
    %332 = vector.shape_cast %331 : vector<1x1x16xf32> to vector<1x16xf32>
    %333 = vector.extract_strided_slice %326 {offsets = [0, 0], sizes = [16, 16], strides = [1, 1]} : vector<48x16xf32> to vector<16x16xf32>
    %cst_158 = arith.constant dense<0.000000e+00> : vector<8x16xf32>
    %334 = tpu.matmul %324, %333, %cst_158 {dimension_numbers = #tpu.dot_dimension_numbers<[1], [1], [0], [0], [0, 0, 1, 0], [], []>} : vector<8x16xf32>, vector<16x16xf32>, vector<8x16xf32> -> vector<8x16xf32>
    %335 = vector.extract_strided_slice %328 {offsets = [0, 0], sizes = [1, 16], strides = [1, 1]} : vector<1x48xf32> to vector<1x16xf32>
    %336 = vector.broadcast %335 : vector<1x16xf32> to vector<8x16xf32>
    %337 = arith.addf %334, %336 : vector<8x16xf32>
    %338 = vector.extract_strided_slice %326 {offsets = [16, 0], sizes = [32, 16], strides = [1, 1]} : vector<48x16xf32> to vector<32x16xf32>
    %cst_159 = arith.constant dense<0.000000e+00> : vector<8x32xf32>
    %339 = tpu.matmul %1, %338, %cst_159 {dimension_numbers = #tpu.dot_dimension_numbers<[1], [1], [0], [0], [0, 0, 1, 0], [], []>} : vector<8x16xf32>, vector<32x16xf32>, vector<8x32xf32> -> vector<8x32xf32>
    %340 = vector.extract_strided_slice %328 {offsets = [0, 16], sizes = [1, 32], strides = [1, 1]} : vector<1x48xf32> to vector<1x32xf32>
    %341 = vector.broadcast %340 : vector<1x32xf32> to vector<8x32xf32>
    %342 = arith.addf %339, %341 : vector<8x32xf32>
    %343 = vector.extract_strided_slice %342 {offsets = [0, 0], sizes = [8, 16], strides = [1, 1]} : vector<8x32xf32> to vector<8x16xf32>
    %344 = vector.extract_strided_slice %342 {offsets = [0, 16], sizes = [8, 16], strides = [1, 1]} : vector<8x32xf32> to vector<8x16xf32>
    %345 = arith.truncf %337 : vector<8x16xf32> to vector<8x16xbf16>
    %346 = arith.truncf %343 : vector<8x16xf32> to vector<8x16xbf16>
    %347 = arith.truncf %344 : vector<8x16xf32> to vector<8x16xbf16>
    %348 = vector.extract_strided_slice %345 {offsets = [0, 0], sizes = [8, 8], strides = [1, 1]} : vector<8x16xbf16> to vector<8x8xbf16>
    %349 = vector.extract_strided_slice %346 {offsets = [0, 0], sizes = [8, 8], strides = [1, 1]} : vector<8x16xbf16> to vector<8x8xbf16>
    %350 = vector.extract_strided_slice %347 {offsets = [0, 0], sizes = [8, 8], strides = [1, 1]} : vector<8x16xbf16> to vector<8x8xbf16>
    %cst_160 = arith.constant dense<0.000000e+00> : vector<8x8xf32>
    %351 = tpu.matmul %348, %349, %cst_160 {dimension_numbers = #tpu.dot_dimension_numbers<[1], [1], [0], [0], [0, 0, 1, 0], [], []>} : vector<8x8xbf16>, vector<8x8xbf16>, vector<8x8xf32> -> vector<8x8xf32>
    %cst_161 = arith.constant dense<0xFF800000> : vector<8xf32>
    %352 = vector.multi_reduction <maximumf>, %351, %cst_161 [1] : vector<8x8xf32> to vector<8xf32>
    %353 = vector.shape_cast %352 : vector<8xf32> to vector<8x1xf32>
    %354 = vector.broadcast %353 : vector<8x1xf32> to vector<8x8xf32>
    %355 = arith.subf %351, %354 : vector<8x8xf32>
    %356 = arith.truncf %355 : vector<8x8xf32> to vector<8x8xbf16>
    %357 = math.exp %356 : vector<8x8xbf16>
    %358 = arith.extf %357 : vector<8x8xbf16> to vector<8x8xf32>
    %cst_162 = arith.constant dense<0.000000e+00> : vector<8xf32>
    %359 = vector.multi_reduction <add>, %358, %cst_162 [1] : vector<8x8xf32> to vector<8xf32>
    %360 = vector.shape_cast %359 : vector<8xf32> to vector<8x1xf32>
    %cst_163 = arith.constant dense<0.000000e+00> : vector<8x8xf32>
    %361 = tpu.matmul %357, %350, %cst_163 {dimension_numbers = #tpu.dot_dimension_numbers<[1], [0], [0], [1], [0, 0, 1, 1], [], []>} : vector<8x8xbf16>, vector<8x8xbf16>, vector<8x8xf32> -> vector<8x8xf32>
    %362 = tpu.reciprocal %360 {approx = true} : vector<8x1xf32> -> vector<8x1xf32>
    %363 = vector.broadcast %362 : vector<8x1xf32> to vector<8x8xf32>
    %364 = arith.mulf %361, %363 : vector<8x8xf32>
    %365 = vector.extract_strided_slice %330 {offsets = [0, 0], sizes = [16, 8], strides = [1, 1]} : vector<16x16xf32> to vector<16x8xf32>
    %cst_164 = arith.constant dense<0.000000e+00> : vector<8x16xf32>
    %366 = tpu.matmul %364, %365, %cst_164 {dimension_numbers = #tpu.dot_dimension_numbers<[1], [1], [0], [0], [0, 0, 1, 0], [], []>} : vector<8x8xf32>, vector<16x8xf32>, vector<8x16xf32> -> vector<8x16xf32>
    %367 = vector.extract_strided_slice %345 {offsets = [0, 8], sizes = [8, 8], strides = [1, 1]} : vector<8x16xbf16> to vector<8x8xbf16>
    %368 = vector.extract_strided_slice %346 {offsets = [0, 8], sizes = [8, 8], strides = [1, 1]} : vector<8x16xbf16> to vector<8x8xbf16>
    %369 = vector.extract_strided_slice %347 {offsets = [0, 8], sizes = [8, 8], strides = [1, 1]} : vector<8x16xbf16> to vector<8x8xbf16>
    %cst_165 = arith.constant dense<0.000000e+00> : vector<8x8xf32>
    %370 = tpu.matmul %367, %368, %cst_165 {dimension_numbers = #tpu.dot_dimension_numbers<[1], [1], [0], [0], [0, 0, 1, 0], [], []>} : vector<8x8xbf16>, vector<8x8xbf16>, vector<8x8xf32> -> vector<8x8xf32>
    %cst_166 = arith.constant dense<0xFF800000> : vector<8xf32>
    %371 = vector.multi_reduction <maximumf>, %370, %cst_166 [1] : vector<8x8xf32> to vector<8xf32>
    %372 = vector.shape_cast %371 : vector<8xf32> to vector<8x1xf32>
    %373 = vector.broadcast %372 : vector<8x1xf32> to vector<8x8xf32>
    %374 = arith.subf %370, %373 : vector<8x8xf32>
    %375 = arith.truncf %374 : vector<8x8xf32> to vector<8x8xbf16>
    %376 = math.exp %375 : vector<8x8xbf16>
    %377 = arith.extf %376 : vector<8x8xbf16> to vector<8x8xf32>
    %cst_167 = arith.constant dense<0.000000e+00> : vector<8xf32>
    %378 = vector.multi_reduction <add>, %377, %cst_167 [1] : vector<8x8xf32> to vector<8xf32>
    %379 = vector.shape_cast %378 : vector<8xf32> to vector<8x1xf32>
    %cst_168 = arith.constant dense<0.000000e+00> : vector<8x8xf32>
    %380 = tpu.matmul %376, %369, %cst_168 {dimension_numbers = #tpu.dot_dimension_numbers<[1], [0], [0], [1], [0, 0, 1, 1], [], []>} : vector<8x8xbf16>, vector<8x8xbf16>, vector<8x8xf32> -> vector<8x8xf32>
    %381 = tpu.reciprocal %379 {approx = true} : vector<8x1xf32> -> vector<8x1xf32>
    %382 = vector.broadcast %381 : vector<8x1xf32> to vector<8x8xf32>
    %383 = arith.mulf %380, %382 : vector<8x8xf32>
    %384 = vector.extract_strided_slice %330 {offsets = [0, 8], sizes = [16, 8], strides = [1, 1]} : vector<16x16xf32> to vector<16x8xf32>
    %cst_169 = arith.constant dense<0.000000e+00> : vector<8x16xf32>
    %385 = tpu.matmul %383, %384, %cst_169 {dimension_numbers = #tpu.dot_dimension_numbers<[1], [1], [0], [0], [0, 0, 1, 0], [], []>} : vector<8x8xf32>, vector<16x8xf32>, vector<8x16xf32> -> vector<8x16xf32>
    %386 = arith.addf %366, %385 : vector<8x16xf32>
    %387 = vector.broadcast %332 : vector<1x16xf32> to vector<8x16xf32>
    %388 = arith.addf %386, %387 : vector<8x16xf32>
    %c0_170 = arith.constant 0 : index
    %c0_171 = arith.constant 0 : index
    %389 = vector.load %arg25[%c0_170, %c0_171] : memref<8x16xf32, #tpu.memory_space<vmem>>, vector<8x16xf32>
    tpu.vector_store %arg25[%c0_170, %c0_171], %388 {strides = array<i32>} : memref<8x16xf32, #tpu.memory_space<vmem>>, vector<8x16xf32>,
    %c0_172 = arith.constant 0 : index
    %c0_173 = arith.constant 0 : index
    %390 = vector.load %arg25[%c0_172, %c0_173] : memref<8x16xf32, #tpu.memory_space<vmem>>, vector<8x16xf32>
    %391 = arith.addf %324, %390 : vector<8x16xf32>
    %c1_174 = arith.constant 1 : index
    %c0_175 = arith.constant 0 : index
    %c0_176 = arith.constant 0 : index
    %392 = vector.load %arg16[%c1_174, %c0_175, %c0_176] : memref<8x1x16xf32, #tpu.memory_space<vmem>>, vector<1x1x16xf32>
    %393 = vector.shape_cast %392 : vector<1x1x16xf32> to vector<1x16xf32>
    %c1_177 = arith.constant 1 : index
    %c0_178 = arith.constant 0 : index
    %c0_179 = arith.constant 0 : index
    %394 = vector.load %arg17[%c1_177, %c0_178, %c0_179] : memref<8x1x16xf32, #tpu.memory_space<vmem>>, vector<1x1x16xf32>
    %395 = vector.shape_cast %394 : vector<1x1x16xf32> to vector<1x16xf32>
    %cst_180 = arith.constant dense<0.000000e+00> : vector<8xf32>
    %396 = vector.multi_reduction <add>, %391, %cst_180 [1] : vector<8x16xf32> to vector<8xf32>
    %397 = vector.shape_cast %396 : vector<8xf32> to vector<8x1xf32>
    %cst_181 = arith.constant 1.600000e+01 : f32
    %398 = vector.broadcast %cst_181 : f32 to vector<8x1xf32>
    %399 = arith.divf %397, %398 : vector<8x1xf32>
    %400 = vector.broadcast %399 : vector<8x1xf32> to vector<8x16xf32>
    %401 = arith.subf %391, %400 : vector<8x16xf32>
    %402 = arith.mulf %401, %401 : vector<8x16xf32>
    %cst_182 = arith.constant dense<0.000000e+00> : vector<8xf32>
    %403 = vector.multi_reduction <add>, %402, %cst_182 [1] : vector<8x16xf32> to vector<8xf32>
    %404 = vector.shape_cast %403 : vector<8xf32> to vector<8x1xf32>
    %cst_183 = arith.constant 1.600000e+01 : f32
    %405 = vector.broadcast %cst_183 : f32 to vector<8x1xf32>
    %406 = arith.divf %404, %405 : vector<8x1xf32>
    %cst_184 = arith.constant 9.99999974E-6 : f32
    %407 = vector.broadcast %cst_184 : f32 to vector<8x1xf32>
    %408 = arith.addf %406, %407 : vector<8x1xf32>
    %409 = math.rsqrt %408 : vector<8x1xf32>
    %410 = vector.broadcast %409 : vector<8x1xf32> to vector<8x16xf32>
    %411 = arith.mulf %401, %410 : vector<8x16xf32>
    %412 = vector.broadcast %393 : vector<1x16xf32> to vector<8x16xf32>
    %413 = arith.mulf %411, %412 : vector<8x16xf32>
    %414 = vector.broadcast %395 : vector<1x16xf32> to vector<8x16xf32>
    %415 = arith.addf %413, %414 : vector<8x16xf32>
    %c1_185 = arith.constant 1 : index
    %c0_186 = arith.constant 0 : index
    %c0_187 = arith.constant 0 : index
    %416 = vector.load %arg10[%c1_185, %c0_186, %c0_187] : memref<8x64x16xf32, #tpu.memory_space<vmem>>, vector<1x64x16xf32>
    %417 = vector.shape_cast %416 : vector<1x64x16xf32> to vector<64x16xf32>
    %cst_188 = arith.constant dense<0.000000e+00> : vector<8x64xf32>
    %418 = tpu.matmul %415, %417, %cst_188 {dimension_numbers = #tpu.dot_dimension_numbers<[1], [1], [0], [0], [0, 0, 1, 0], [], []>} : vector<8x16xf32>, vector<64x16xf32>, vector<8x64xf32> -> vector<8x64xf32>
    %c1_189 = arith.constant 1 : index
    %c0_190 = arith.constant 0 : index
    %c0_191 = arith.constant 0 : index
    %419 = vector.load %arg11[%c1_189, %c0_190, %c0_191] : memref<8x1x64xf32, #tpu.memory_space<vmem>>, vector<1x1x64xf32>
    %420 = vector.shape_cast %419 : vector<1x1x64xf32> to vector<1x64xf32>
    %421 = vector.broadcast %420 : vector<1x64xf32> to vector<8x64xf32>
    %422 = arith.addf %418, %421 : vector<8x64xf32>
    %cst_192 = arith.constant 5.000000e-01 : f32
    %423 = vector.broadcast %cst_192 : f32 to vector<8x64xf32>
    %424 = arith.mulf %423, %422 : vector<8x64xf32>
    %cst_193 = arith.constant 4.471500e-02 : f32
    %425 = vector.broadcast %cst_193 : f32 to vector<8x64xf32>
    %426 = arith.mulf %425, %422 : vector<8x64xf32>
    %427 = arith.mulf %426, %422 : vector<8x64xf32>
    %428 = arith.mulf %427, %422 : vector<8x64xf32>
    %429 = arith.addf %422, %428 : vector<8x64xf32>
    %cst_194 = arith.constant 0.797884583 : f32
    %430 = vector.broadcast %cst_194 : f32 to vector<8x64xf32>
    %431 = arith.mulf %430, %429 : vector<8x64xf32>
    %432 = math.tanh %431 : vector<8x64xf32>
    %cst_195 = arith.constant 1.000000e+00 : f32
    %433 = vector.broadcast %cst_195 : f32 to vector<8x64xf32>
    %434 = arith.addf %433, %432 : vector<8x64xf32>
    %435 = arith.mulf %424, %434 : vector<8x64xf32>
    %c1_196 = arith.constant 1 : index
    %c0_197 = arith.constant 0 : index
    %c0_198 = arith.constant 0 : index
    %436 = vector.load %arg12[%c1_196, %c0_197, %c0_198] : memref<8x16x64xf32, #tpu.memory_space<vmem>>, vector<1x16x64xf32>
    %437 = vector.shape_cast %436 : vector<1x16x64xf32> to vector<16x64xf32>
    %cst_199 = arith.constant dense<0.000000e+00> : vector<8x16xf32>
    %438 = tpu.matmul %435, %437, %cst_199 {dimension_numbers = #tpu.dot_dimension_numbers<[1], [1], [0], [0], [0, 0, 1, 0], [], []>} : vector<8x64xf32>, vector<16x64xf32>, vector<8x16xf32> -> vector<8x16xf32>
    %c1_200 = arith.constant 1 : index
    %c0_201 = arith.constant 0 : index
    %c0_202 = arith.constant 0 : index
    %439 = vector.load %arg13[%c1_200, %c0_201, %c0_202] : memref<8x1x16xf32, #tpu.memory_space<vmem>>, vector<1x1x16xf32>
    %440 = vector.shape_cast %439 : vector<1x1x16xf32> to vector<1x16xf32>
    %441 = vector.broadcast %440 : vector<1x16xf32> to vector<8x16xf32>
    %442 = arith.addf %438, %441 : vector<8x16xf32>
    %443 = arith.addf %415, %442 : vector<8x16xf32>
    %c1_203 = arith.constant 1 : index
    %c0_204 = arith.constant 0 : index
    %c0_205 = arith.constant 0 : index
    %444 = vector.load %arg18[%c1_203, %c0_204, %c0_205] : memref<8x1x16xf32, #tpu.memory_space<vmem>>, vector<1x1x16xf32>
    %445 = vector.shape_cast %444 : vector<1x1x16xf32> to vector<1x16xf32>
    %c1_206 = arith.constant 1 : index
    %c0_207 = arith.constant 0 : index
    %c0_208 = arith.constant 0 : index
    %446 = vector.load %arg19[%c1_206, %c0_207, %c0_208] : memref<8x1x16xf32, #tpu.memory_space<vmem>>, vector<1x1x16xf32>
    %447 = vector.shape_cast %446 : vector<1x1x16xf32> to vector<1x16xf32>
    %cst_209 = arith.constant dense<0.000000e+00> : vector<8xf32>
    %448 = vector.multi_reduction <add>, %443, %cst_209 [1] : vector<8x16xf32> to vector<8xf32>
    %449 = vector.shape_cast %448 : vector<8xf32> to vector<8x1xf32>
    %cst_210 = arith.constant 1.600000e+01 : f32
    %450 = vector.broadcast %cst_210 : f32 to vector<8x1xf32>
    %451 = arith.divf %449, %450 : vector<8x1xf32>
    %452 = vector.broadcast %451 : vector<8x1xf32> to vector<8x16xf32>
    %453 = arith.subf %443, %452 : vector<8x16xf32>
    %454 = arith.mulf %453, %453 : vector<8x16xf32>
    %cst_211 = arith.constant dense<0.000000e+00> : vector<8xf32>
    %455 = vector.multi_reduction <add>, %454, %cst_211 [1] : vector<8x16xf32> to vector<8xf32>
    %456 = vector.shape_cast %455 : vector<8xf32> to vector<8x1xf32>
    %cst_212 = arith.constant 1.600000e+01 : f32
    %457 = vector.broadcast %cst_212 : f32 to vector<8x1xf32>
    %458 = arith.divf %456, %457 : vector<8x1xf32>
    %cst_213 = arith.constant 9.99999974E-6 : f32
    %459 = vector.broadcast %cst_213 : f32 to vector<8x1xf32>
    %460 = arith.addf %458, %459 : vector<8x1xf32>
    %461 = math.rsqrt %460 : vector<8x1xf32>
    %462 = vector.broadcast %461 : vector<8x1xf32> to vector<8x16xf32>
    %463 = arith.mulf %453, %462 : vector<8x16xf32>
    %464 = vector.broadcast %445 : vector<1x16xf32> to vector<8x16xf32>
    %465 = arith.mulf %463, %464 : vector<8x16xf32>
    %466 = vector.broadcast %447 : vector<1x16xf32> to vector<8x16xf32>
    %467 = arith.addf %465, %466 : vector<8x16xf32>
    %c2 = arith.constant 2 : index
    %c0_214 = arith.constant 0 : index
    %c0_215 = arith.constant 0 : index
    %468 = vector.load %arg2[%c2, %c0_214, %c0_215] : memref<8x48x16xf32, #tpu.memory_space<vmem>>, vector<1x48x16xf32>
    %469 = vector.shape_cast %468 : vector<1x48x16xf32> to vector<48x16xf32>
    %c2_216 = arith.constant 2 : index
    %c0_217 = arith.constant 0 : index
    %c0_218 = arith.constant 0 : index
    %470 = vector.load %arg3[%c2_216, %c0_217, %c0_218] : memref<8x1x48xf32, #tpu.memory_space<vmem>>, vector<1x1x48xf32>
    %471 = vector.shape_cast %470 : vector<1x1x48xf32> to vector<1x48xf32>
    %c2_219 = arith.constant 2 : index
    %c0_220 = arith.constant 0 : index
    %c0_221 = arith.constant 0 : index
    %472 = vector.load %arg4[%c2_219, %c0_220, %c0_221] : memref<8x16x16xf32, #tpu.memory_space<vmem>>, vector<1x16x16xf32>
    %473 = vector.shape_cast %472 : vector<1x16x16xf32> to vector<16x16xf32>
    %c2_222 = arith.constant 2 : index
    %c0_223 = arith.constant 0 : index
    %c0_224 = arith.constant 0 : index
    %474 = vector.load %arg5[%c2_222, %c0_223, %c0_224] : memref<8x1x16xf32, #tpu.memory_space<vmem>>, vector<1x1x16xf32>
    %475 = vector.shape_cast %474 : vector<1x1x16xf32> to vector<1x16xf32>
    %cst_225 = arith.constant dense<0.000000e+00> : vector<8x48xf32>
    %476 = tpu.matmul %467, %469, %cst_225 {dimension_numbers = #tpu.dot_dimension_numbers<[1], [1], [0], [0], [0, 0, 1, 0], [], []>} : vector<8x16xf32>, vector<48x16xf32>, vector<8x48xf32> -> vector<8x48xf32>
    %477 = vector.broadcast %471 : vector<1x48xf32> to vector<8x48xf32>
    %478 = arith.addf %476, %477 : vector<8x48xf32>
    %479 = vector.extract_strided_slice %478 {offsets = [0, 0], sizes = [8, 16], strides = [1, 1]} : vector<8x48xf32> to vector<8x16xf32>
    %480 = vector.extract_strided_slice %478 {offsets = [0, 16], sizes = [8, 16], strides = [1, 1]} : vector<8x48xf32> to vector<8x16xf32>
    %481 = vector.extract_strided_slice %478 {offsets = [0, 32], sizes = [8, 16], strides = [1, 1]} : vector<8x48xf32> to vector<8x16xf32>
    %482 = arith.truncf %479 : vector<8x16xf32> to vector<8x16xbf16>
    %483 = arith.truncf %480 : vector<8x16xf32> to vector<8x16xbf16>
    %484 = arith.truncf %481 : vector<8x16xf32> to vector<8x16xbf16>
    %485 = vector.extract_strided_slice %482 {offsets = [0, 0], sizes = [8, 8], strides = [1, 1]} : vector<8x16xbf16> to vector<8x8xbf16>
    %486 = vector.extract_strided_slice %483 {offsets = [0, 0], sizes = [8, 8], strides = [1, 1]} : vector<8x16xbf16> to vector<8x8xbf16>
    %487 = vector.extract_strided_slice %484 {offsets = [0, 0], sizes = [8, 8], strides = [1, 1]} : vector<8x16xbf16> to vector<8x8xbf16>
    %cst_226 = arith.constant dense<0.000000e+00> : vector<8x8xf32>
    %488 = tpu.matmul %485, %486, %cst_226 {dimension_numbers = #tpu.dot_dimension_numbers<[1], [1], [0], [0], [0, 0, 1, 0], [], []>} : vector<8x8xbf16>, vector<8x8xbf16>, vector<8x8xf32> -> vector<8x8xf32>
    %489 = arith.addf %488, %7 : vector<8x8xf32>
    %cst_227 = arith.constant dense<0xFF800000> : vector<8xf32>
    %490 = vector.multi_reduction <maximumf>, %489, %cst_227 [1] : vector<8x8xf32> to vector<8xf32>
    %491 = vector.shape_cast %490 : vector<8xf32> to vector<8x1xf32>
    %492 = vector.broadcast %491 : vector<8x1xf32> to vector<8x8xf32>
    %493 = arith.subf %489, %492 : vector<8x8xf32>
    %494 = arith.truncf %493 : vector<8x8xf32> to vector<8x8xbf16>
    %495 = math.exp %494 : vector<8x8xbf16>
    %496 = arith.extf %495 : vector<8x8xbf16> to vector<8x8xf32>
    %cst_228 = arith.constant dense<0.000000e+00> : vector<8xf32>
    %497 = vector.multi_reduction <add>, %496, %cst_228 [1] : vector<8x8xf32> to vector<8xf32>
    %498 = vector.shape_cast %497 : vector<8xf32> to vector<8x1xf32>
    %cst_229 = arith.constant dense<0.000000e+00> : vector<8x8xf32>
    %499 = tpu.matmul %495, %487, %cst_229 {dimension_numbers = #tpu.dot_dimension_numbers<[1], [0], [0], [1], [0, 0, 1, 1], [], []>} : vector<8x8xbf16>, vector<8x8xbf16>, vector<8x8xf32> -> vector<8x8xf32>
    %500 = tpu.reciprocal %498 {approx = true} : vector<8x1xf32> -> vector<8x1xf32>
    %501 = vector.broadcast %500 : vector<8x1xf32> to vector<8x8xf32>
    %502 = arith.mulf %499, %501 : vector<8x8xf32>
    %503 = vector.extract_strided_slice %473 {offsets = [0, 0], sizes = [16, 8], strides = [1, 1]} : vector<16x16xf32> to vector<16x8xf32>
    %cst_230 = arith.constant dense<0.000000e+00> : vector<8x16xf32>
    %504 = tpu.matmul %502, %503, %cst_230 {dimension_numbers = #tpu.dot_dimension_numbers<[1], [1], [0], [0], [0, 0, 1, 0], [], []>} : vector<8x8xf32>, vector<16x8xf32>, vector<8x16xf32> -> vector<8x16xf32>
    %505 = vector.extract_strided_slice %482 {offsets = [0, 8], sizes = [8, 8], strides = [1, 1]} : vector<8x16xbf16> to vector<8x8xbf16>
    %506 = vector.extract_strided_slice %483 {offsets = [0, 8], sizes = [8, 8], strides = [1, 1]} : vector<8x16xbf16> to vector<8x8xbf16>
    %507 = vector.extract_strided_slice %484 {offsets = [0, 8], sizes = [8, 8], strides = [1, 1]} : vector<8x16xbf16> to vector<8x8xbf16>
    %cst_231 = arith.constant dense<0.000000e+00> : vector<8x8xf32>
    %508 = tpu.matmul %505, %506, %cst_231 {dimension_numbers = #tpu.dot_dimension_numbers<[1], [1], [0], [0], [0, 0, 1, 0], [], []>} : vector<8x8xbf16>, vector<8x8xbf16>, vector<8x8xf32> -> vector<8x8xf32>
    %509 = arith.addf %508, %7 : vector<8x8xf32>
    %cst_232 = arith.constant dense<0xFF800000> : vector<8xf32>
    %510 = vector.multi_reduction <maximumf>, %509, %cst_232 [1] : vector<8x8xf32> to vector<8xf32>
    %511 = vector.shape_cast %510 : vector<8xf32> to vector<8x1xf32>
    %512 = vector.broadcast %511 : vector<8x1xf32> to vector<8x8xf32>
    %513 = arith.subf %509, %512 : vector<8x8xf32>
    %514 = arith.truncf %513 : vector<8x8xf32> to vector<8x8xbf16>
    %515 = math.exp %514 : vector<8x8xbf16>
    %516 = arith.extf %515 : vector<8x8xbf16> to vector<8x8xf32>
    %cst_233 = arith.constant dense<0.000000e+00> : vector<8xf32>
    %517 = vector.multi_reduction <add>, %516, %cst_233 [1] : vector<8x8xf32> to vector<8xf32>
    %518 = vector.shape_cast %517 : vector<8xf32> to vector<8x1xf32>
    %cst_234 = arith.constant dense<0.000000e+00> : vector<8x8xf32>
    %519 = tpu.matmul %515, %507, %cst_234 {dimension_numbers = #tpu.dot_dimension_numbers<[1], [0], [0], [1], [0, 0, 1, 1], [], []>} : vector<8x8xbf16>, vector<8x8xbf16>, vector<8x8xf32> -> vector<8x8xf32>
    %520 = tpu.reciprocal %518 {approx = true} : vector<8x1xf32> -> vector<8x1xf32>
    %521 = vector.broadcast %520 : vector<8x1xf32> to vector<8x8xf32>
    %522 = arith.mulf %519, %521 : vector<8x8xf32>
    %523 = vector.extract_strided_slice %473 {offsets = [0, 8], sizes = [16, 8], strides = [1, 1]} : vector<16x16xf32> to vector<16x8xf32>
    %cst_235 = arith.constant dense<0.000000e+00> : vector<8x16xf32>
    %524 = tpu.matmul %522, %523, %cst_235 {dimension_numbers = #tpu.dot_dimension_numbers<[1], [1], [0], [0], [0, 0, 1, 0], [], []>} : vector<8x8xf32>, vector<16x8xf32>, vector<8x16xf32> -> vector<8x16xf32>
    %525 = arith.addf %504, %524 : vector<8x16xf32>
    %526 = vector.broadcast %475 : vector<1x16xf32> to vector<8x16xf32>
    %527 = arith.addf %525, %526 : vector<8x16xf32>
    %c0_236 = arith.constant 0 : index
    %c0_237 = arith.constant 0 : index
    %528 = vector.load %arg25[%c0_236, %c0_237] : memref<8x16xf32, #tpu.memory_space<vmem>>, vector<8x16xf32>
    tpu.vector_store %arg25[%c0_236, %c0_237], %527 {strides = array<i32>} : memref<8x16xf32, #tpu.memory_space<vmem>>, vector<8x16xf32>,
    %c0_238 = arith.constant 0 : index
    %c0_239 = arith.constant 0 : index
    %529 = vector.load %arg25[%c0_238, %c0_239] : memref<8x16xf32, #tpu.memory_space<vmem>>, vector<8x16xf32>
    %530 = arith.addf %467, %529 : vector<8x16xf32>
    %c2_240 = arith.constant 2 : index
    %c0_241 = arith.constant 0 : index
    %c0_242 = arith.constant 0 : index
    %531 = vector.load %arg14[%c2_240, %c0_241, %c0_242] : memref<8x1x16xf32, #tpu.memory_space<vmem>>, vector<1x1x16xf32>
    %532 = vector.shape_cast %531 : vector<1x1x16xf32> to vector<1x16xf32>
    %c2_243 = arith.constant 2 : index
    %c0_244 = arith.constant 0 : index
    %c0_245 = arith.constant 0 : index
    %533 = vector.load %arg15[%c2_243, %c0_244, %c0_245] : memref<8x1x16xf32, #tpu.memory_space<vmem>>, vector<1x1x16xf32>
    %534 = vector.shape_cast %533 : vector<1x1x16xf32> to vector<1x16xf32>
    %cst_246 = arith.constant dense<0.000000e+00> : vector<8xf32>
    %535 = vector.multi_reduction <add>, %530, %cst_246 [1] : vector<8x16xf32> to vector<8xf32>
    %536 = vector.shape_cast %535 : vector<8xf32> to vector<8x1xf32>
    %cst_247 = arith.constant 1.600000e+01 : f32
    %537 = vector.broadcast %cst_247 : f32 to vector<8x1xf32>
    %538 = arith.divf %536, %537 : vector<8x1xf32>
    %539 = vector.broadcast %538 : vector<8x1xf32> to vector<8x16xf32>
    %540 = arith.subf %530, %539 : vector<8x16xf32>
    %541 = arith.mulf %540, %540 : vector<8x16xf32>
    %cst_248 = arith.constant dense<0.000000e+00> : vector<8xf32>
    %542 = vector.multi_reduction <add>, %541, %cst_248 [1] : vector<8x16xf32> to vector<8xf32>
    %543 = vector.shape_cast %542 : vector<8xf32> to vector<8x1xf32>
    %cst_249 = arith.constant 1.600000e+01 : f32
    %544 = vector.broadcast %cst_249 : f32 to vector<8x1xf32>
    %545 = arith.divf %543, %544 : vector<8x1xf32>
    %cst_250 = arith.constant 9.99999974E-6 : f32
    %546 = vector.broadcast %cst_250 : f32 to vector<8x1xf32>
    %547 = arith.addf %545, %546 : vector<8x1xf32>
    %548 = math.rsqrt %547 : vector<8x1xf32>
    %549 = vector.broadcast %548 : vector<8x1xf32> to vector<8x16xf32>
    %550 = arith.mulf %540, %549 : vector<8x16xf32>
    %551 = vector.broadcast %532 : vector<1x16xf32> to vector<8x16xf32>
    %552 = arith.mulf %550, %551 : vector<8x16xf32>
    %553 = vector.broadcast %534 : vector<1x16xf32> to vector<8x16xf32>
    %554 = arith.addf %552, %553 : vector<8x16xf32>
    %c2_251 = arith.constant 2 : index
    %c0_252 = arith.constant 0 : index
    %c0_253 = arith.constant 0 : index
    %555 = vector.load %arg6[%c2_251, %c0_252, %c0_253] : memref<8x48x16xf32, #tpu.memory_space<vmem>>, vector<1x48x16xf32>
    %556 = vector.shape_cast %555 : vector<1x48x16xf32> to vector<48x16xf32>
    %c2_254 = arith.constant 2 : index
    %c0_255 = arith.constant 0 : index
    %c0_256 = arith.constant 0 : index
    %557 = vector.load %arg7[%c2_254, %c0_255, %c0_256] : memref<8x1x48xf32, #tpu.memory_space<vmem>>, vector<1x1x48xf32>
    %558 = vector.shape_cast %557 : vector<1x1x48xf32> to vector<1x48xf32>
    %c2_257 = arith.constant 2 : index
    %c0_258 = arith.constant 0 : index
    %c0_259 = arith.constant 0 : index
    %559 = vector.load %arg8[%c2_257, %c0_258, %c0_259] : memref<8x16x16xf32, #tpu.memory_space<vmem>>, vector<1x16x16xf32>
    %560 = vector.shape_cast %559 : vector<1x16x16xf32> to vector<16x16xf32>
    %c2_260 = arith.constant 2 : index
    %c0_261 = arith.constant 0 : index
    %c0_262 = arith.constant 0 : index
    %561 = vector.load %arg9[%c2_260, %c0_261, %c0_262] : memref<8x1x16xf32, #tpu.memory_space<vmem>>, vector<1x1x16xf32>
    %562 = vector.shape_cast %561 : vector<1x1x16xf32> to vector<1x16xf32>
    %563 = vector.extract_strided_slice %556 {offsets = [0, 0], sizes = [16, 16], strides = [1, 1]} : vector<48x16xf32> to vector<16x16xf32>
    %cst_263 = arith.constant dense<0.000000e+00> : vector<8x16xf32>
    %564 = tpu.matmul %554, %563, %cst_263 {dimension_numbers = #tpu.dot_dimension_numbers<[1], [1], [0], [0], [0, 0, 1, 0], [], []>} : vector<8x16xf32>, vector<16x16xf32>, vector<8x16xf32> -> vector<8x16xf32>
    %565 = vector.extract_strided_slice %558 {offsets = [0, 0], sizes = [1, 16], strides = [1, 1]} : vector<1x48xf32> to vector<1x16xf32>
    %566 = vector.broadcast %565 : vector<1x16xf32> to vector<8x16xf32>
    %567 = arith.addf %564, %566 : vector<8x16xf32>
    %568 = vector.extract_strided_slice %556 {offsets = [16, 0], sizes = [32, 16], strides = [1, 1]} : vector<48x16xf32> to vector<32x16xf32>
    %cst_264 = arith.constant dense<0.000000e+00> : vector<8x32xf32>
    %569 = tpu.matmul %1, %568, %cst_264 {dimension_numbers = #tpu.dot_dimension_numbers<[1], [1], [0], [0], [0, 0, 1, 0], [], []>} : vector<8x16xf32>, vector<32x16xf32>, vector<8x32xf32> -> vector<8x32xf32>
    %570 = vector.extract_strided_slice %558 {offsets = [0, 16], sizes = [1, 32], strides = [1, 1]} : vector<1x48xf32> to vector<1x32xf32>
    %571 = vector.broadcast %570 : vector<1x32xf32> to vector<8x32xf32>
    %572 = arith.addf %569, %571 : vector<8x32xf32>
    %573 = vector.extract_strided_slice %572 {offsets = [0, 0], sizes = [8, 16], strides = [1, 1]} : vector<8x32xf32> to vector<8x16xf32>
    %574 = vector.extract_strided_slice %572 {offsets = [0, 16], sizes = [8, 16], strides = [1, 1]} : vector<8x32xf32> to vector<8x16xf32>
    %575 = arith.truncf %567 : vector<8x16xf32> to vector<8x16xbf16>
    %576 = arith.truncf %573 : vector<8x16xf32> to vector<8x16xbf16>
    %577 = arith.truncf %574 : vector<8x16xf32> to vector<8x16xbf16>
    %578 = vector.extract_strided_slice %575 {offsets = [0, 0], sizes = [8, 8], strides = [1, 1]} : vector<8x16xbf16> to vector<8x8xbf16>
    %579 = vector.extract_strided_slice %576 {offsets = [0, 0], sizes = [8, 8], strides = [1, 1]} : vector<8x16xbf16> to vector<8x8xbf16>
    %580 = vector.extract_strided_slice %577 {offsets = [0, 0], sizes = [8, 8], strides = [1, 1]} : vector<8x16xbf16> to vector<8x8xbf16>
    %cst_265 = arith.constant dense<0.000000e+00> : vector<8x8xf32>
    %581 = tpu.matmul %578, %579, %cst_265 {dimension_numbers = #tpu.dot_dimension_numbers<[1], [1], [0], [0], [0, 0, 1, 0], [], []>} : vector<8x8xbf16>, vector<8x8xbf16>, vector<8x8xf32> -> vector<8x8xf32>
    %cst_266 = arith.constant dense<0xFF800000> : vector<8xf32>
    %582 = vector.multi_reduction <maximumf>, %581, %cst_266 [1] : vector<8x8xf32> to vector<8xf32>
    %583 = vector.shape_cast %582 : vector<8xf32> to vector<8x1xf32>
    %584 = vector.broadcast %583 : vector<8x1xf32> to vector<8x8xf32>
    %585 = arith.subf %581, %584 : vector<8x8xf32>
    %586 = arith.truncf %585 : vector<8x8xf32> to vector<8x8xbf16>
    %587 = math.exp %586 : vector<8x8xbf16>
    %588 = arith.extf %587 : vector<8x8xbf16> to vector<8x8xf32>
    %cst_267 = arith.constant dense<0.000000e+00> : vector<8xf32>
    %589 = vector.multi_reduction <add>, %588, %cst_267 [1] : vector<8x8xf32> to vector<8xf32>
    %590 = vector.shape_cast %589 : vector<8xf32> to vector<8x1xf32>
    %cst_268 = arith.constant dense<0.000000e+00> : vector<8x8xf32>
    %591 = tpu.matmul %587, %580, %cst_268 {dimension_numbers = #tpu.dot_dimension_numbers<[1], [0], [0], [1], [0, 0, 1, 1], [], []>} : vector<8x8xbf16>, vector<8x8xbf16>, vector<8x8xf32> -> vector<8x8xf32>
    %592 = tpu.reciprocal %590 {approx = true} : vector<8x1xf32> -> vector<8x1xf32>
    %593 = vector.broadcast %592 : vector<8x1xf32> to vector<8x8xf32>
    %594 = arith.mulf %591, %593 : vector<8x8xf32>
    %595 = vector.extract_strided_slice %560 {offsets = [0, 0], sizes = [16, 8], strides = [1, 1]} : vector<16x16xf32> to vector<16x8xf32>
    %cst_269 = arith.constant dense<0.000000e+00> : vector<8x16xf32>
    %596 = tpu.matmul %594, %595, %cst_269 {dimension_numbers = #tpu.dot_dimension_numbers<[1], [1], [0], [0], [0, 0, 1, 0], [], []>} : vector<8x8xf32>, vector<16x8xf32>, vector<8x16xf32> -> vector<8x16xf32>
    %597 = vector.extract_strided_slice %575 {offsets = [0, 8], sizes = [8, 8], strides = [1, 1]} : vector<8x16xbf16> to vector<8x8xbf16>
    %598 = vector.extract_strided_slice %576 {offsets = [0, 8], sizes = [8, 8], strides = [1, 1]} : vector<8x16xbf16> to vector<8x8xbf16>
    %599 = vector.extract_strided_slice %577 {offsets = [0, 8], sizes = [8, 8], strides = [1, 1]} : vector<8x16xbf16> to vector<8x8xbf16>
    %cst_270 = arith.constant dense<0.000000e+00> : vector<8x8xf32>
    %600 = tpu.matmul %597, %598, %cst_270 {dimension_numbers = #tpu.dot_dimension_numbers<[1], [1], [0], [0], [0, 0, 1, 0], [], []>} : vector<8x8xbf16>, vector<8x8xbf16>, vector<8x8xf32> -> vector<8x8xf32>
    %cst_271 = arith.constant dense<0xFF800000> : vector<8xf32>
    %601 = vector.multi_reduction <maximumf>, %600, %cst_271 [1] : vector<8x8xf32> to vector<8xf32>
    %602 = vector.shape_cast %601 : vector<8xf32> to vector<8x1xf32>
    %603 = vector.broadcast %602 : vector<8x1xf32> to vector<8x8xf32>
    %604 = arith.subf %600, %603 : vector<8x8xf32>
    %605 = arith.truncf %604 : vector<8x8xf32> to vector<8x8xbf16>
    %606 = math.exp %605 : vector<8x8xbf16>
    %607 = arith.extf %606 : vector<8x8xbf16> to vector<8x8xf32>
    %cst_272 = arith.constant dense<0.000000e+00> : vector<8xf32>
    %608 = vector.multi_reduction <add>, %607, %cst_272 [1] : vector<8x8xf32> to vector<8xf32>
    %609 = vector.shape_cast %608 : vector<8xf32> to vector<8x1xf32>
    %cst_273 = arith.constant dense<0.000000e+00> : vector<8x8xf32>
    %610 = tpu.matmul %606, %599, %cst_273 {dimension_numbers = #tpu.dot_dimension_numbers<[1], [0], [0], [1], [0, 0, 1, 1], [], []>} : vector<8x8xbf16>, vector<8x8xbf16>, vector<8x8xf32> -> vector<8x8xf32>
    %611 = tpu.reciprocal %609 {approx = true} : vector<8x1xf32> -> vector<8x1xf32>
    %612 = vector.broadcast %611 : vector<8x1xf32> to vector<8x8xf32>
    %613 = arith.mulf %610, %612 : vector<8x8xf32>
    %614 = vector.extract_strided_slice %560 {offsets = [0, 8], sizes = [16, 8], strides = [1, 1]} : vector<16x16xf32> to vector<16x8xf32>
    %cst_274 = arith.constant dense<0.000000e+00> : vector<8x16xf32>
    %615 = tpu.matmul %613, %614, %cst_274 {dimension_numbers = #tpu.dot_dimension_numbers<[1], [1], [0], [0], [0, 0, 1, 0], [], []>} : vector<8x8xf32>, vector<16x8xf32>, vector<8x16xf32> -> vector<8x16xf32>
    %616 = arith.addf %596, %615 : vector<8x16xf32>
    %617 = vector.broadcast %562 : vector<1x16xf32> to vector<8x16xf32>
    %618 = arith.addf %616, %617 : vector<8x16xf32>
    %c0_275 = arith.constant 0 : index
    %c0_276 = arith.constant 0 : index
    %619 = vector.load %arg25[%c0_275, %c0_276] : memref<8x16xf32, #tpu.memory_space<vmem>>, vector<8x16xf32>
    tpu.vector_store %arg25[%c0_275, %c0_276], %618 {strides = array<i32>} : memref<8x16xf32, #tpu.memory_space<vmem>>, vector<8x16xf32>,
    %c0_277 = arith.constant 0 : index
    %c0_278 = arith.constant 0 : index
    %620 = vector.load %arg25[%c0_277, %c0_278] : memref<8x16xf32, #tpu.memory_space<vmem>>, vector<8x16xf32>
    %621 = arith.addf %554, %620 : vector<8x16xf32>
    %c2_279 = arith.constant 2 : index
    %c0_280 = arith.constant 0 : index
    %c0_281 = arith.constant 0 : index
    %622 = vector.load %arg16[%c2_279, %c0_280, %c0_281] : memref<8x1x16xf32, #tpu.memory_space<vmem>>, vector<1x1x16xf32>
    %623 = vector.shape_cast %622 : vector<1x1x16xf32> to vector<1x16xf32>
    %c2_282 = arith.constant 2 : index
    %c0_283 = arith.constant 0 : index
    %c0_284 = arith.constant 0 : index
    %624 = vector.load %arg17[%c2_282, %c0_283, %c0_284] : memref<8x1x16xf32, #tpu.memory_space<vmem>>, vector<1x1x16xf32>
    %625 = vector.shape_cast %624 : vector<1x1x16xf32> to vector<1x16xf32>
    %cst_285 = arith.constant dense<0.000000e+00> : vector<8xf32>
    %626 = vector.multi_reduction <add>, %621, %cst_285 [1] : vector<8x16xf32> to vector<8xf32>
    %627 = vector.shape_cast %626 : vector<8xf32> to vector<8x1xf32>
    %cst_286 = arith.constant 1.600000e+01 : f32
    %628 = vector.broadcast %cst_286 : f32 to vector<8x1xf32>
    %629 = arith.divf %627, %628 : vector<8x1xf32>
    %630 = vector.broadcast %629 : vector<8x1xf32> to vector<8x16xf32>
    %631 = arith.subf %621, %630 : vector<8x16xf32>
    %632 = arith.mulf %631, %631 : vector<8x16xf32>
    %cst_287 = arith.constant dense<0.000000e+00> : vector<8xf32>
    %633 = vector.multi_reduction <add>, %632, %cst_287 [1] : vector<8x16xf32> to vector<8xf32>
    %634 = vector.shape_cast %633 : vector<8xf32> to vector<8x1xf32>
    %cst_288 = arith.constant 1.600000e+01 : f32
    %635 = vector.broadcast %cst_288 : f32 to vector<8x1xf32>
    %636 = arith.divf %634, %635 : vector<8x1xf32>
    %cst_289 = arith.constant 9.99999974E-6 : f32
    %637 = vector.broadcast %cst_289 : f32 to vector<8x1xf32>
    %638 = arith.addf %636, %637 : vector<8x1xf32>
    %639 = math.rsqrt %638 : vector<8x1xf32>
    %640 = vector.broadcast %639 : vector<8x1xf32> to vector<8x16xf32>
    %641 = arith.mulf %631, %640 : vector<8x16xf32>
    %642 = vector.broadcast %623 : vector<1x16xf32> to vector<8x16xf32>
    %643 = arith.mulf %641, %642 : vector<8x16xf32>
    %644 = vector.broadcast %625 : vector<1x16xf32> to vector<8x16xf32>
    %645 = arith.addf %643, %644 : vector<8x16xf32>
    %c2_290 = arith.constant 2 : index
    %c0_291 = arith.constant 0 : index
    %c0_292 = arith.constant 0 : index
    %646 = vector.load %arg10[%c2_290, %c0_291, %c0_292] : memref<8x64x16xf32, #tpu.memory_space<vmem>>, vector<1x64x16xf32>
    %647 = vector.shape_cast %646 : vector<1x64x16xf32> to vector<64x16xf32>
    %cst_293 = arith.constant dense<0.000000e+00> : vector<8x64xf32>
    %648 = tpu.matmul %645, %647, %cst_293 {dimension_numbers = #tpu.dot_dimension_numbers<[1], [1], [0], [0], [0, 0, 1, 0], [], []>} : vector<8x16xf32>, vector<64x16xf32>, vector<8x64xf32> -> vector<8x64xf32>
    %c2_294 = arith.constant 2 : index
    %c0_295 = arith.constant 0 : index
    %c0_296 = arith.constant 0 : index
    %649 = vector.load %arg11[%c2_294, %c0_295, %c0_296] : memref<8x1x64xf32, #tpu.memory_space<vmem>>, vector<1x1x64xf32>
    %650 = vector.shape_cast %649 : vector<1x1x64xf32> to vector<1x64xf32>
    %651 = vector.broadcast %650 : vector<1x64xf32> to vector<8x64xf32>
    %652 = arith.addf %648, %651 : vector<8x64xf32>
    %cst_297 = arith.constant 5.000000e-01 : f32
    %653 = vector.broadcast %cst_297 : f32 to vector<8x64xf32>
    %654 = arith.mulf %653, %652 : vector<8x64xf32>
    %cst_298 = arith.constant 4.471500e-02 : f32
    %655 = vector.broadcast %cst_298 : f32 to vector<8x64xf32>
    %656 = arith.mulf %655, %652 : vector<8x64xf32>
    %657 = arith.mulf %656, %652 : vector<8x64xf32>
    %658 = arith.mulf %657, %652 : vector<8x64xf32>
    %659 = arith.addf %652, %658 : vector<8x64xf32>
    %cst_299 = arith.constant 0.797884583 : f32
    %660 = vector.broadcast %cst_299 : f32 to vector<8x64xf32>
    %661 = arith.mulf %660, %659 : vector<8x64xf32>
    %662 = math.tanh %661 : vector<8x64xf32>
    %cst_300 = arith.constant 1.000000e+00 : f32
    %663 = vector.broadcast %cst_300 : f32 to vector<8x64xf32>
    %664 = arith.addf %663, %662 : vector<8x64xf32>
    %665 = arith.mulf %654, %664 : vector<8x64xf32>
    %c2_301 = arith.constant 2 : index
    %c0_302 = arith.constant 0 : index
    %c0_303 = arith.constant 0 : index
    %666 = vector.load %arg12[%c2_301, %c0_302, %c0_303] : memref<8x16x64xf32, #tpu.memory_space<vmem>>, vector<1x16x64xf32>
    %667 = vector.shape_cast %666 : vector<1x16x64xf32> to vector<16x64xf32>
    %cst_304 = arith.constant dense<0.000000e+00> : vector<8x16xf32>
    %668 = tpu.matmul %665, %667, %cst_304 {dimension_numbers = #tpu.dot_dimension_numbers<[1], [1], [0], [0], [0, 0, 1, 0], [], []>} : vector<8x64xf32>, vector<16x64xf32>, vector<8x16xf32> -> vector<8x16xf32>
    %c2_305 = arith.constant 2 : index
    %c0_306 = arith.constant 0 : index
    %c0_307 = arith.constant 0 : index
    %669 = vector.load %arg13[%c2_305, %c0_306, %c0_307] : memref<8x1x16xf32, #tpu.memory_space<vmem>>, vector<1x1x16xf32>
    %670 = vector.shape_cast %669 : vector<1x1x16xf32> to vector<1x16xf32>
    %671 = vector.broadcast %670 : vector<1x16xf32> to vector<8x16xf32>
    %672 = arith.addf %668, %671 : vector<8x16xf32>
    %673 = arith.addf %645, %672 : vector<8x16xf32>
    %c2_308 = arith.constant 2 : index
    %c0_309 = arith.constant 0 : index
    %c0_310 = arith.constant 0 : index
    %674 = vector.load %arg18[%c2_308, %c0_309, %c0_310] : memref<8x1x16xf32, #tpu.memory_space<vmem>>, vector<1x1x16xf32>
    %675 = vector.shape_cast %674 : vector<1x1x16xf32> to vector<1x16xf32>
    %c2_311 = arith.constant 2 : index
    %c0_312 = arith.constant 0 : index
    %c0_313 = arith.constant 0 : index
    %676 = vector.load %arg19[%c2_311, %c0_312, %c0_313] : memref<8x1x16xf32, #tpu.memory_space<vmem>>, vector<1x1x16xf32>
    %677 = vector.shape_cast %676 : vector<1x1x16xf32> to vector<1x16xf32>
    %cst_314 = arith.constant dense<0.000000e+00> : vector<8xf32>
    %678 = vector.multi_reduction <add>, %673, %cst_314 [1] : vector<8x16xf32> to vector<8xf32>
    %679 = vector.shape_cast %678 : vector<8xf32> to vector<8x1xf32>
    %cst_315 = arith.constant 1.600000e+01 : f32
    %680 = vector.broadcast %cst_315 : f32 to vector<8x1xf32>
    %681 = arith.divf %679, %680 : vector<8x1xf32>
    %682 = vector.broadcast %681 : vector<8x1xf32> to vector<8x16xf32>
    %683 = arith.subf %673, %682 : vector<8x16xf32>
    %684 = arith.mulf %683, %683 : vector<8x16xf32>
    %cst_316 = arith.constant dense<0.000000e+00> : vector<8xf32>
    %685 = vector.multi_reduction <add>, %684, %cst_316 [1] : vector<8x16xf32> to vector<8xf32>
    %686 = vector.shape_cast %685 : vector<8xf32> to vector<8x1xf32>
    %cst_317 = arith.constant 1.600000e+01 : f32
    %687 = vector.broadcast %cst_317 : f32 to vector<8x1xf32>
    %688 = arith.divf %686, %687 : vector<8x1xf32>
    %cst_318 = arith.constant 9.99999974E-6 : f32
    %689 = vector.broadcast %cst_318 : f32 to vector<8x1xf32>
    %690 = arith.addf %688, %689 : vector<8x1xf32>
    %691 = math.rsqrt %690 : vector<8x1xf32>
    %692 = vector.broadcast %691 : vector<8x1xf32> to vector<8x16xf32>
    %693 = arith.mulf %683, %692 : vector<8x16xf32>
    %694 = vector.broadcast %675 : vector<1x16xf32> to vector<8x16xf32>
    %695 = arith.mulf %693, %694 : vector<8x16xf32>
    %696 = vector.broadcast %677 : vector<1x16xf32> to vector<8x16xf32>
    %697 = arith.addf %695, %696 : vector<8x16xf32>
    %c3 = arith.constant 3 : index
    %c0_319 = arith.constant 0 : index
    %c0_320 = arith.constant 0 : index
    %698 = vector.load %arg2[%c3, %c0_319, %c0_320] : memref<8x48x16xf32, #tpu.memory_space<vmem>>, vector<1x48x16xf32>
    %699 = vector.shape_cast %698 : vector<1x48x16xf32> to vector<48x16xf32>
    %c3_321 = arith.constant 3 : index
    %c0_322 = arith.constant 0 : index
    %c0_323 = arith.constant 0 : index
    %700 = vector.load %arg3[%c3_321, %c0_322, %c0_323] : memref<8x1x48xf32, #tpu.memory_space<vmem>>, vector<1x1x48xf32>
    %701 = vector.shape_cast %700 : vector<1x1x48xf32> to vector<1x48xf32>
    %c3_324 = arith.constant 3 : index
    %c0_325 = arith.constant 0 : index
    %c0_326 = arith.constant 0 : index
    %702 = vector.load %arg4[%c3_324, %c0_325, %c0_326] : memref<8x16x16xf32, #tpu.memory_space<vmem>>, vector<1x16x16xf32>
    %703 = vector.shape_cast %702 : vector<1x16x16xf32> to vector<16x16xf32>
    %c3_327 = arith.constant 3 : index
    %c0_328 = arith.constant 0 : index
    %c0_329 = arith.constant 0 : index
    %704 = vector.load %arg5[%c3_327, %c0_328, %c0_329] : memref<8x1x16xf32, #tpu.memory_space<vmem>>, vector<1x1x16xf32>
    %705 = vector.shape_cast %704 : vector<1x1x16xf32> to vector<1x16xf32>
    %cst_330 = arith.constant dense<0.000000e+00> : vector<8x48xf32>
    %706 = tpu.matmul %697, %699, %cst_330 {dimension_numbers = #tpu.dot_dimension_numbers<[1], [1], [0], [0], [0, 0, 1, 0], [], []>} : vector<8x16xf32>, vector<48x16xf32>, vector<8x48xf32> -> vector<8x48xf32>
    %707 = vector.broadcast %701 : vector<1x48xf32> to vector<8x48xf32>
    %708 = arith.addf %706, %707 : vector<8x48xf32>
    %709 = vector.extract_strided_slice %708 {offsets = [0, 0], sizes = [8, 16], strides = [1, 1]} : vector<8x48xf32> to vector<8x16xf32>
    %710 = vector.extract_strided_slice %708 {offsets = [0, 16], sizes = [8, 16], strides = [1, 1]} : vector<8x48xf32> to vector<8x16xf32>
    %711 = vector.extract_strided_slice %708 {offsets = [0, 32], sizes = [8, 16], strides = [1, 1]} : vector<8x48xf32> to vector<8x16xf32>
    %712 = arith.truncf %709 : vector<8x16xf32> to vector<8x16xbf16>
    %713 = arith.truncf %710 : vector<8x16xf32> to vector<8x16xbf16>
    %714 = arith.truncf %711 : vector<8x16xf32> to vector<8x16xbf16>
    %715 = vector.extract_strided_slice %712 {offsets = [0, 0], sizes = [8, 8], strides = [1, 1]} : vector<8x16xbf16> to vector<8x8xbf16>
    %716 = vector.extract_strided_slice %713 {offsets = [0, 0], sizes = [8, 8], strides = [1, 1]} : vector<8x16xbf16> to vector<8x8xbf16>
    %717 = vector.extract_strided_slice %714 {offsets = [0, 0], sizes = [8, 8], strides = [1, 1]} : vector<8x16xbf16> to vector<8x8xbf16>
    %cst_331 = arith.constant dense<0.000000e+00> : vector<8x8xf32>
    %718 = tpu.matmul %715, %716, %cst_331 {dimension_numbers = #tpu.dot_dimension_numbers<[1], [1], [0], [0], [0, 0, 1, 0], [], []>} : vector<8x8xbf16>, vector<8x8xbf16>, vector<8x8xf32> -> vector<8x8xf32>
    %719 = arith.addf %718, %7 : vector<8x8xf32>
    %cst_332 = arith.constant dense<0xFF800000> : vector<8xf32>
    %720 = vector.multi_reduction <maximumf>, %719, %cst_332 [1] : vector<8x8xf32> to vector<8xf32>
    %721 = vector.shape_cast %720 : vector<8xf32> to vector<8x1xf32>
    %722 = vector.broadcast %721 : vector<8x1xf32> to vector<8x8xf32>
    %723 = arith.subf %719, %722 : vector<8x8xf32>
    %724 = arith.truncf %723 : vector<8x8xf32> to vector<8x8xbf16>
    %725 = math.exp %724 : vector<8x8xbf16>
    %726 = arith.extf %725 : vector<8x8xbf16> to vector<8x8xf32>
    %cst_333 = arith.constant dense<0.000000e+00> : vector<8xf32>
    %727 = vector.multi_reduction <add>, %726, %cst_333 [1] : vector<8x8xf32> to vector<8xf32>
    %728 = vector.shape_cast %727 : vector<8xf32> to vector<8x1xf32>
    %cst_334 = arith.constant dense<0.000000e+00> : vector<8x8xf32>
    %729 = tpu.matmul %725, %717, %cst_334 {dimension_numbers = #tpu.dot_dimension_numbers<[1], [0], [0], [1], [0, 0, 1, 1], [], []>} : vector<8x8xbf16>, vector<8x8xbf16>, vector<8x8xf32> -> vector<8x8xf32>
    %730 = tpu.reciprocal %728 {approx = true} : vector<8x1xf32> -> vector<8x1xf32>
    %731 = vector.broadcast %730 : vector<8x1xf32> to vector<8x8xf32>
    %732 = arith.mulf %729, %731 : vector<8x8xf32>
    %733 = vector.extract_strided_slice %703 {offsets = [0, 0], sizes = [16, 8], strides = [1, 1]} : vector<16x16xf32> to vector<16x8xf32>
    %cst_335 = arith.constant dense<0.000000e+00> : vector<8x16xf32>
    %734 = tpu.matmul %732, %733, %cst_335 {dimension_numbers = #tpu.dot_dimension_numbers<[1], [1], [0], [0], [0, 0, 1, 0], [], []>} : vector<8x8xf32>, vector<16x8xf32>, vector<8x16xf32> -> vector<8x16xf32>
    %735 = vector.extract_strided_slice %712 {offsets = [0, 8], sizes = [8, 8], strides = [1, 1]} : vector<8x16xbf16> to vector<8x8xbf16>
    %736 = vector.extract_strided_slice %713 {offsets = [0, 8], sizes = [8, 8], strides = [1, 1]} : vector<8x16xbf16> to vector<8x8xbf16>
    %737 = vector.extract_strided_slice %714 {offsets = [0, 8], sizes = [8, 8], strides = [1, 1]} : vector<8x16xbf16> to vector<8x8xbf16>
    %cst_336 = arith.constant dense<0.000000e+00> : vector<8x8xf32>
    %738 = tpu.matmul %735, %736, %cst_336 {dimension_numbers = #tpu.dot_dimension_numbers<[1], [1], [0], [0], [0, 0, 1, 0], [], []>} : vector<8x8xbf16>, vector<8x8xbf16>, vector<8x8xf32> -> vector<8x8xf32>
    %739 = arith.addf %738, %7 : vector<8x8xf32>
    %cst_337 = arith.constant dense<0xFF800000> : vector<8xf32>
    %740 = vector.multi_reduction <maximumf>, %739, %cst_337 [1] : vector<8x8xf32> to vector<8xf32>
    %741 = vector.shape_cast %740 : vector<8xf32> to vector<8x1xf32>
    %742 = vector.broadcast %741 : vector<8x1xf32> to vector<8x8xf32>
    %743 = arith.subf %739, %742 : vector<8x8xf32>
    %744 = arith.truncf %743 : vector<8x8xf32> to vector<8x8xbf16>
    %745 = math.exp %744 : vector<8x8xbf16>
    %746 = arith.extf %745 : vector<8x8xbf16> to vector<8x8xf32>
    %cst_338 = arith.constant dense<0.000000e+00> : vector<8xf32>
    %747 = vector.multi_reduction <add>, %746, %cst_338 [1] : vector<8x8xf32> to vector<8xf32>
    %748 = vector.shape_cast %747 : vector<8xf32> to vector<8x1xf32>
    %cst_339 = arith.constant dense<0.000000e+00> : vector<8x8xf32>
    %749 = tpu.matmul %745, %737, %cst_339 {dimension_numbers = #tpu.dot_dimension_numbers<[1], [0], [0], [1], [0, 0, 1, 1], [], []>} : vector<8x8xbf16>, vector<8x8xbf16>, vector<8x8xf32> -> vector<8x8xf32>
    %750 = tpu.reciprocal %748 {approx = true} : vector<8x1xf32> -> vector<8x1xf32>
    %751 = vector.broadcast %750 : vector<8x1xf32> to vector<8x8xf32>
    %752 = arith.mulf %749, %751 : vector<8x8xf32>
    %753 = vector.extract_strided_slice %703 {offsets = [0, 8], sizes = [16, 8], strides = [1, 1]} : vector<16x16xf32> to vector<16x8xf32>
    %cst_340 = arith.constant dense<0.000000e+00> : vector<8x16xf32>
    %754 = tpu.matmul %752, %753, %cst_340 {dimension_numbers = #tpu.dot_dimension_numbers<[1], [1], [0], [0], [0, 0, 1, 0], [], []>} : vector<8x8xf32>, vector<16x8xf32>, vector<8x16xf32> -> vector<8x16xf32>
    %755 = arith.addf %734, %754 : vector<8x16xf32>
    %756 = vector.broadcast %705 : vector<1x16xf32> to vector<8x16xf32>
    %757 = arith.addf %755, %756 : vector<8x16xf32>
    %c0_341 = arith.constant 0 : index
    %c0_342 = arith.constant 0 : index
    %758 = vector.load %arg25[%c0_341, %c0_342] : memref<8x16xf32, #tpu.memory_space<vmem>>, vector<8x16xf32>
    tpu.vector_store %arg25[%c0_341, %c0_342], %757 {strides = array<i32>} : memref<8x16xf32, #tpu.memory_space<vmem>>, vector<8x16xf32>,
    %c0_343 = arith.constant 0 : index
    %c0_344 = arith.constant 0 : index
    %759 = vector.load %arg25[%c0_343, %c0_344] : memref<8x16xf32, #tpu.memory_space<vmem>>, vector<8x16xf32>
    %760 = arith.addf %697, %759 : vector<8x16xf32>
    %c3_345 = arith.constant 3 : index
    %c0_346 = arith.constant 0 : index
    %c0_347 = arith.constant 0 : index
    %761 = vector.load %arg14[%c3_345, %c0_346, %c0_347] : memref<8x1x16xf32, #tpu.memory_space<vmem>>, vector<1x1x16xf32>
    %762 = vector.shape_cast %761 : vector<1x1x16xf32> to vector<1x16xf32>
    %c3_348 = arith.constant 3 : index
    %c0_349 = arith.constant 0 : index
    %c0_350 = arith.constant 0 : index
    %763 = vector.load %arg15[%c3_348, %c0_349, %c0_350] : memref<8x1x16xf32, #tpu.memory_space<vmem>>, vector<1x1x16xf32>
    %764 = vector.shape_cast %763 : vector<1x1x16xf32> to vector<1x16xf32>
    %cst_351 = arith.constant dense<0.000000e+00> : vector<8xf32>
    %765 = vector.multi_reduction <add>, %760, %cst_351 [1] : vector<8x16xf32> to vector<8xf32>
    %766 = vector.shape_cast %765 : vector<8xf32> to vector<8x1xf32>
    %cst_352 = arith.constant 1.600000e+01 : f32
    %767 = vector.broadcast %cst_352 : f32 to vector<8x1xf32>
    %768 = arith.divf %766, %767 : vector<8x1xf32>
    %769 = vector.broadcast %768 : vector<8x1xf32> to vector<8x16xf32>
    %770 = arith.subf %760, %769 : vector<8x16xf32>
    %771 = arith.mulf %770, %770 : vector<8x16xf32>
    %cst_353 = arith.constant dense<0.000000e+00> : vector<8xf32>
    %772 = vector.multi_reduction <add>, %771, %cst_353 [1] : vector<8x16xf32> to vector<8xf32>
    %773 = vector.shape_cast %772 : vector<8xf32> to vector<8x1xf32>
    %cst_354 = arith.constant 1.600000e+01 : f32
    %774 = vector.broadcast %cst_354 : f32 to vector<8x1xf32>
    %775 = arith.divf %773, %774 : vector<8x1xf32>
    %cst_355 = arith.constant 9.99999974E-6 : f32
    %776 = vector.broadcast %cst_355 : f32 to vector<8x1xf32>
    %777 = arith.addf %775, %776 : vector<8x1xf32>
    %778 = math.rsqrt %777 : vector<8x1xf32>
    %779 = vector.broadcast %778 : vector<8x1xf32> to vector<8x16xf32>
    %780 = arith.mulf %770, %779 : vector<8x16xf32>
    %781 = vector.broadcast %762 : vector<1x16xf32> to vector<8x16xf32>
    %782 = arith.mulf %780, %781 : vector<8x16xf32>
    %783 = vector.broadcast %764 : vector<1x16xf32> to vector<8x16xf32>
    %784 = arith.addf %782, %783 : vector<8x16xf32>
    %c3_356 = arith.constant 3 : index
    %c0_357 = arith.constant 0 : index
    %c0_358 = arith.constant 0 : index
    %785 = vector.load %arg6[%c3_356, %c0_357, %c0_358] : memref<8x48x16xf32, #tpu.memory_space<vmem>>, vector<1x48x16xf32>
    %786 = vector.shape_cast %785 : vector<1x48x16xf32> to vector<48x16xf32>
    %c3_359 = arith.constant 3 : index
    %c0_360 = arith.constant 0 : index
    %c0_361 = arith.constant 0 : index
    %787 = vector.load %arg7[%c3_359, %c0_360, %c0_361] : memref<8x1x48xf32, #tpu.memory_space<vmem>>, vector<1x1x48xf32>
    %788 = vector.shape_cast %787 : vector<1x1x48xf32> to vector<1x48xf32>
    %c3_362 = arith.constant 3 : index
    %c0_363 = arith.constant 0 : index
    %c0_364 = arith.constant 0 : index
    %789 = vector.load %arg8[%c3_362, %c0_363, %c0_364] : memref<8x16x16xf32, #tpu.memory_space<vmem>>, vector<1x16x16xf32>
    %790 = vector.shape_cast %789 : vector<1x16x16xf32> to vector<16x16xf32>
    %c3_365 = arith.constant 3 : index
    %c0_366 = arith.constant 0 : index
    %c0_367 = arith.constant 0 : index
    %791 = vector.load %arg9[%c3_365, %c0_366, %c0_367] : memref<8x1x16xf32, #tpu.memory_space<vmem>>, vector<1x1x16xf32>
    %792 = vector.shape_cast %791 : vector<1x1x16xf32> to vector<1x16xf32>
    %793 = vector.extract_strided_slice %786 {offsets = [0, 0], sizes = [16, 16], strides = [1, 1]} : vector<48x16xf32> to vector<16x16xf32>
    %cst_368 = arith.constant dense<0.000000e+00> : vector<8x16xf32>
    %794 = tpu.matmul %784, %793, %cst_368 {dimension_numbers = #tpu.dot_dimension_numbers<[1], [1], [0], [0], [0, 0, 1, 0], [], []>} : vector<8x16xf32>, vector<16x16xf32>, vector<8x16xf32> -> vector<8x16xf32>
    %795 = vector.extract_strided_slice %788 {offsets = [0, 0], sizes = [1, 16], strides = [1, 1]} : vector<1x48xf32> to vector<1x16xf32>
    %796 = vector.broadcast %795 : vector<1x16xf32> to vector<8x16xf32>
    %797 = arith.addf %794, %796 : vector<8x16xf32>
    %798 = vector.extract_strided_slice %786 {offsets = [16, 0], sizes = [32, 16], strides = [1, 1]} : vector<48x16xf32> to vector<32x16xf32>
    %cst_369 = arith.constant dense<0.000000e+00> : vector<8x32xf32>
    %799 = tpu.matmul %1, %798, %cst_369 {dimension_numbers = #tpu.dot_dimension_numbers<[1], [1], [0], [0], [0, 0, 1, 0], [], []>} : vector<8x16xf32>, vector<32x16xf32>, vector<8x32xf32> -> vector<8x32xf32>
    %800 = vector.extract_strided_slice %788 {offsets = [0, 16], sizes = [1, 32], strides = [1, 1]} : vector<1x48xf32> to vector<1x32xf32>
    %801 = vector.broadcast %800 : vector<1x32xf32> to vector<8x32xf32>
    %802 = arith.addf %799, %801 : vector<8x32xf32>
    %803 = vector.extract_strided_slice %802 {offsets = [0, 0], sizes = [8, 16], strides = [1, 1]} : vector<8x32xf32> to vector<8x16xf32>
    %804 = vector.extract_strided_slice %802 {offsets = [0, 16], sizes = [8, 16], strides = [1, 1]} : vector<8x32xf32> to vector<8x16xf32>
    %805 = arith.truncf %797 : vector<8x16xf32> to vector<8x16xbf16>
    %806 = arith.truncf %803 : vector<8x16xf32> to vector<8x16xbf16>
    %807 = arith.truncf %804 : vector<8x16xf32> to vector<8x16xbf16>
    %808 = vector.extract_strided_slice %805 {offsets = [0, 0], sizes = [8, 8], strides = [1, 1]} : vector<8x16xbf16> to vector<8x8xbf16>
    %809 = vector.extract_strided_slice %806 {offsets = [0, 0], sizes = [8, 8], strides = [1, 1]} : vector<8x16xbf16> to vector<8x8xbf16>
    %810 = vector.extract_strided_slice %807 {offsets = [0, 0], sizes = [8, 8], strides = [1, 1]} : vector<8x16xbf16> to vector<8x8xbf16>
    %cst_370 = arith.constant dense<0.000000e+00> : vector<8x8xf32>
    %811 = tpu.matmul %808, %809, %cst_370 {dimension_numbers = #tpu.dot_dimension_numbers<[1], [1], [0], [0], [0, 0, 1, 0], [], []>} : vector<8x8xbf16>, vector<8x8xbf16>, vector<8x8xf32> -> vector<8x8xf32>
    %cst_371 = arith.constant dense<0xFF800000> : vector<8xf32>
    %812 = vector.multi_reduction <maximumf>, %811, %cst_371 [1] : vector<8x8xf32> to vector<8xf32>
    %813 = vector.shape_cast %812 : vector<8xf32> to vector<8x1xf32>
    %814 = vector.broadcast %813 : vector<8x1xf32> to vector<8x8xf32>
    %815 = arith.subf %811, %814 : vector<8x8xf32>
    %816 = arith.truncf %815 : vector<8x8xf32> to vector<8x8xbf16>
    %817 = math.exp %816 : vector<8x8xbf16>
    %818 = arith.extf %817 : vector<8x8xbf16> to vector<8x8xf32>
    %cst_372 = arith.constant dense<0.000000e+00> : vector<8xf32>
    %819 = vector.multi_reduction <add>, %818, %cst_372 [1] : vector<8x8xf32> to vector<8xf32>
    %820 = vector.shape_cast %819 : vector<8xf32> to vector<8x1xf32>
    %cst_373 = arith.constant dense<0.000000e+00> : vector<8x8xf32>
    %821 = tpu.matmul %817, %810, %cst_373 {dimension_numbers = #tpu.dot_dimension_numbers<[1], [0], [0], [1], [0, 0, 1, 1], [], []>} : vector<8x8xbf16>, vector<8x8xbf16>, vector<8x8xf32> -> vector<8x8xf32>
    %822 = tpu.reciprocal %820 {approx = true} : vector<8x1xf32> -> vector<8x1xf32>
    %823 = vector.broadcast %822 : vector<8x1xf32> to vector<8x8xf32>
    %824 = arith.mulf %821, %823 : vector<8x8xf32>
    %825 = vector.extract_strided_slice %790 {offsets = [0, 0], sizes = [16, 8], strides = [1, 1]} : vector<16x16xf32> to vector<16x8xf32>
    %cst_374 = arith.constant dense<0.000000e+00> : vector<8x16xf32>
    %826 = tpu.matmul %824, %825, %cst_374 {dimension_numbers = #tpu.dot_dimension_numbers<[1], [1], [0], [0], [0, 0, 1, 0], [], []>} : vector<8x8xf32>, vector<16x8xf32>, vector<8x16xf32> -> vector<8x16xf32>
    %827 = vector.extract_strided_slice %805 {offsets = [0, 8], sizes = [8, 8], strides = [1, 1]} : vector<8x16xbf16> to vector<8x8xbf16>
    %828 = vector.extract_strided_slice %806 {offsets = [0, 8], sizes = [8, 8], strides = [1, 1]} : vector<8x16xbf16> to vector<8x8xbf16>
    %829 = vector.extract_strided_slice %807 {offsets = [0, 8], sizes = [8, 8], strides = [1, 1]} : vector<8x16xbf16> to vector<8x8xbf16>
    %cst_375 = arith.constant dense<0.000000e+00> : vector<8x8xf32>
    %830 = tpu.matmul %827, %828, %cst_375 {dimension_numbers = #tpu.dot_dimension_numbers<[1], [1], [0], [0], [0, 0, 1, 0], [], []>} : vector<8x8xbf16>, vector<8x8xbf16>, vector<8x8xf32> -> vector<8x8xf32>
    %cst_376 = arith.constant dense<0xFF800000> : vector<8xf32>
    %831 = vector.multi_reduction <maximumf>, %830, %cst_376 [1] : vector<8x8xf32> to vector<8xf32>
    %832 = vector.shape_cast %831 : vector<8xf32> to vector<8x1xf32>
    %833 = vector.broadcast %832 : vector<8x1xf32> to vector<8x8xf32>
    %834 = arith.subf %830, %833 : vector<8x8xf32>
    %835 = arith.truncf %834 : vector<8x8xf32> to vector<8x8xbf16>
    %836 = math.exp %835 : vector<8x8xbf16>
    %837 = arith.extf %836 : vector<8x8xbf16> to vector<8x8xf32>
    %cst_377 = arith.constant dense<0.000000e+00> : vector<8xf32>
    %838 = vector.multi_reduction <add>, %837, %cst_377 [1] : vector<8x8xf32> to vector<8xf32>
    %839 = vector.shape_cast %838 : vector<8xf32> to vector<8x1xf32>
    %cst_378 = arith.constant dense<0.000000e+00> : vector<8x8xf32>
    %840 = tpu.matmul %836, %829, %cst_378 {dimension_numbers = #tpu.dot_dimension_numbers<[1], [0], [0], [1], [0, 0, 1, 1], [], []>} : vector<8x8xbf16>, vector<8x8xbf16>, vector<8x8xf32> -> vector<8x8xf32>
    %841 = tpu.reciprocal %839 {approx = true} : vector<8x1xf32> -> vector<8x1xf32>
    %842 = vector.broadcast %841 : vector<8x1xf32> to vector<8x8xf32>
    %843 = arith.mulf %840, %842 : vector<8x8xf32>
    %844 = vector.extract_strided_slice %790 {offsets = [0, 8], sizes = [16, 8], strides = [1, 1]} : vector<16x16xf32> to vector<16x8xf32>
    %cst_379 = arith.constant dense<0.000000e+00> : vector<8x16xf32>
    %845 = tpu.matmul %843, %844, %cst_379 {dimension_numbers = #tpu.dot_dimension_numbers<[1], [1], [0], [0], [0, 0, 1, 0], [], []>} : vector<8x8xf32>, vector<16x8xf32>, vector<8x16xf32> -> vector<8x16xf32>
    %846 = arith.addf %826, %845 : vector<8x16xf32>
    %847 = vector.broadcast %792 : vector<1x16xf32> to vector<8x16xf32>
    %848 = arith.addf %846, %847 : vector<8x16xf32>
    %c0_380 = arith.constant 0 : index
    %c0_381 = arith.constant 0 : index
    %849 = vector.load %arg25[%c0_380, %c0_381] : memref<8x16xf32, #tpu.memory_space<vmem>>, vector<8x16xf32>
    tpu.vector_store %arg25[%c0_380, %c0_381], %848 {strides = array<i32>} : memref<8x16xf32, #tpu.memory_space<vmem>>, vector<8x16xf32>,
    %c0_382 = arith.constant 0 : index
    %c0_383 = arith.constant 0 : index
    %850 = vector.load %arg25[%c0_382, %c0_383] : memref<8x16xf32, #tpu.memory_space<vmem>>, vector<8x16xf32>
    %851 = arith.addf %784, %850 : vector<8x16xf32>
    %c3_384 = arith.constant 3 : index
    %c0_385 = arith.constant 0 : index
    %c0_386 = arith.constant 0 : index
    %852 = vector.load %arg16[%c3_384, %c0_385, %c0_386] : memref<8x1x16xf32, #tpu.memory_space<vmem>>, vector<1x1x16xf32>
    %853 = vector.shape_cast %852 : vector<1x1x16xf32> to vector<1x16xf32>
    %c3_387 = arith.constant 3 : index
    %c0_388 = arith.constant 0 : index
    %c0_389 = arith.constant 0 : index
    %854 = vector.load %arg17[%c3_387, %c0_388, %c0_389] : memref<8x1x16xf32, #tpu.memory_space<vmem>>, vector<1x1x16xf32>
    %855 = vector.shape_cast %854 : vector<1x1x16xf32> to vector<1x16xf32>
    %cst_390 = arith.constant dense<0.000000e+00> : vector<8xf32>
    %856 = vector.multi_reduction <add>, %851, %cst_390 [1] : vector<8x16xf32> to vector<8xf32>
    %857 = vector.shape_cast %856 : vector<8xf32> to vector<8x1xf32>
    %cst_391 = arith.constant 1.600000e+01 : f32
    %858 = vector.broadcast %cst_391 : f32 to vector<8x1xf32>
    %859 = arith.divf %857, %858 : vector<8x1xf32>
    %860 = vector.broadcast %859 : vector<8x1xf32> to vector<8x16xf32>
    %861 = arith.subf %851, %860 : vector<8x16xf32>
    %862 = arith.mulf %861, %861 : vector<8x16xf32>
    %cst_392 = arith.constant dense<0.000000e+00> : vector<8xf32>
    %863 = vector.multi_reduction <add>, %862, %cst_392 [1] : vector<8x16xf32> to vector<8xf32>
    %864 = vector.shape_cast %863 : vector<8xf32> to vector<8x1xf32>
    %cst_393 = arith.constant 1.600000e+01 : f32
    %865 = vector.broadcast %cst_393 : f32 to vector<8x1xf32>
    %866 = arith.divf %864, %865 : vector<8x1xf32>
    %cst_394 = arith.constant 9.99999974E-6 : f32
    %867 = vector.broadcast %cst_394 : f32 to vector<8x1xf32>
    %868 = arith.addf %866, %867 : vector<8x1xf32>
    %869 = math.rsqrt %868 : vector<8x1xf32>
    %870 = vector.broadcast %869 : vector<8x1xf32> to vector<8x16xf32>
    %871 = arith.mulf %861, %870 : vector<8x16xf32>
    %872 = vector.broadcast %853 : vector<1x16xf32> to vector<8x16xf32>
    %873 = arith.mulf %871, %872 : vector<8x16xf32>
    %874 = vector.broadcast %855 : vector<1x16xf32> to vector<8x16xf32>
    %875 = arith.addf %873, %874 : vector<8x16xf32>
    %c3_395 = arith.constant 3 : index
    %c0_396 = arith.constant 0 : index
    %c0_397 = arith.constant 0 : index
    %876 = vector.load %arg10[%c3_395, %c0_396, %c0_397] : memref<8x64x16xf32, #tpu.memory_space<vmem>>, vector<1x64x16xf32>
    %877 = vector.shape_cast %876 : vector<1x64x16xf32> to vector<64x16xf32>
    %cst_398 = arith.constant dense<0.000000e+00> : vector<8x64xf32>
    %878 = tpu.matmul %875, %877, %cst_398 {dimension_numbers = #tpu.dot_dimension_numbers<[1], [1], [0], [0], [0, 0, 1, 0], [], []>} : vector<8x16xf32>, vector<64x16xf32>, vector<8x64xf32> -> vector<8x64xf32>
    %c3_399 = arith.constant 3 : index
    %c0_400 = arith.constant 0 : index
    %c0_401 = arith.constant 0 : index
    %879 = vector.load %arg11[%c3_399, %c0_400, %c0_401] : memref<8x1x64xf32, #tpu.memory_space<vmem>>, vector<1x1x64xf32>
    %880 = vector.shape_cast %879 : vector<1x1x64xf32> to vector<1x64xf32>
    %881 = vector.broadcast %880 : vector<1x64xf32> to vector<8x64xf32>
    %882 = arith.addf %878, %881 : vector<8x64xf32>
    %cst_402 = arith.constant 5.000000e-01 : f32
    %883 = vector.broadcast %cst_402 : f32 to vector<8x64xf32>
    %884 = arith.mulf %883, %882 : vector<8x64xf32>
    %cst_403 = arith.constant 4.471500e-02 : f32
    %885 = vector.broadcast %cst_403 : f32 to vector<8x64xf32>
    %886 = arith.mulf %885, %882 : vector<8x64xf32>
    %887 = arith.mulf %886, %882 : vector<8x64xf32>
    %888 = arith.mulf %887, %882 : vector<8x64xf32>
    %889 = arith.addf %882, %888 : vector<8x64xf32>
    %cst_404 = arith.constant 0.797884583 : f32
    %890 = vector.broadcast %cst_404 : f32 to vector<8x64xf32>
    %891 = arith.mulf %890, %889 : vector<8x64xf32>
    %892 = math.tanh %891 : vector<8x64xf32>
    %cst_405 = arith.constant 1.000000e+00 : f32
    %893 = vector.broadcast %cst_405 : f32 to vector<8x64xf32>
    %894 = arith.addf %893, %892 : vector<8x64xf32>
    %895 = arith.mulf %884, %894 : vector<8x64xf32>
    %c3_406 = arith.constant 3 : index
    %c0_407 = arith.constant 0 : index
    %c0_408 = arith.constant 0 : index
    %896 = vector.load %arg12[%c3_406, %c0_407, %c0_408] : memref<8x16x64xf32, #tpu.memory_space<vmem>>, vector<1x16x64xf32>
    %897 = vector.shape_cast %896 : vector<1x16x64xf32> to vector<16x64xf32>
    %cst_409 = arith.constant dense<0.000000e+00> : vector<8x16xf32>
    %898 = tpu.matmul %895, %897, %cst_409 {dimension_numbers = #tpu.dot_dimension_numbers<[1], [1], [0], [0], [0, 0, 1, 0], [], []>} : vector<8x64xf32>, vector<16x64xf32>, vector<8x16xf32> -> vector<8x16xf32>
    %c3_410 = arith.constant 3 : index
    %c0_411 = arith.constant 0 : index
    %c0_412 = arith.constant 0 : index
    %899 = vector.load %arg13[%c3_410, %c0_411, %c0_412] : memref<8x1x16xf32, #tpu.memory_space<vmem>>, vector<1x1x16xf32>
    %900 = vector.shape_cast %899 : vector<1x1x16xf32> to vector<1x16xf32>
    %901 = vector.broadcast %900 : vector<1x16xf32> to vector<8x16xf32>
    %902 = arith.addf %898, %901 : vector<8x16xf32>
    %903 = arith.addf %875, %902 : vector<8x16xf32>
    %c3_413 = arith.constant 3 : index
    %c0_414 = arith.constant 0 : index
    %c0_415 = arith.constant 0 : index
    %904 = vector.load %arg18[%c3_413, %c0_414, %c0_415] : memref<8x1x16xf32, #tpu.memory_space<vmem>>, vector<1x1x16xf32>
    %905 = vector.shape_cast %904 : vector<1x1x16xf32> to vector<1x16xf32>
    %c3_416 = arith.constant 3 : index
    %c0_417 = arith.constant 0 : index
    %c0_418 = arith.constant 0 : index
    %906 = vector.load %arg19[%c3_416, %c0_417, %c0_418] : memref<8x1x16xf32, #tpu.memory_space<vmem>>, vector<1x1x16xf32>
    %907 = vector.shape_cast %906 : vector<1x1x16xf32> to vector<1x16xf32>
    %cst_419 = arith.constant dense<0.000000e+00> : vector<8xf32>
    %908 = vector.multi_reduction <add>, %903, %cst_419 [1] : vector<8x16xf32> to vector<8xf32>
    %909 = vector.shape_cast %908 : vector<8xf32> to vector<8x1xf32>
    %cst_420 = arith.constant 1.600000e+01 : f32
    %910 = vector.broadcast %cst_420 : f32 to vector<8x1xf32>
    %911 = arith.divf %909, %910 : vector<8x1xf32>
    %912 = vector.broadcast %911 : vector<8x1xf32> to vector<8x16xf32>
    %913 = arith.subf %903, %912 : vector<8x16xf32>
    %914 = arith.mulf %913, %913 : vector<8x16xf32>
    %cst_421 = arith.constant dense<0.000000e+00> : vector<8xf32>
    %915 = vector.multi_reduction <add>, %914, %cst_421 [1] : vector<8x16xf32> to vector<8xf32>
    %916 = vector.shape_cast %915 : vector<8xf32> to vector<8x1xf32>
    %cst_422 = arith.constant 1.600000e+01 : f32
    %917 = vector.broadcast %cst_422 : f32 to vector<8x1xf32>
    %918 = arith.divf %916, %917 : vector<8x1xf32>
    %cst_423 = arith.constant 9.99999974E-6 : f32
    %919 = vector.broadcast %cst_423 : f32 to vector<8x1xf32>
    %920 = arith.addf %918, %919 : vector<8x1xf32>
    %921 = math.rsqrt %920 : vector<8x1xf32>
    %922 = vector.broadcast %921 : vector<8x1xf32> to vector<8x16xf32>
    %923 = arith.mulf %913, %922 : vector<8x16xf32>
    %924 = vector.broadcast %905 : vector<1x16xf32> to vector<8x16xf32>
    %925 = arith.mulf %923, %924 : vector<8x16xf32>
    %926 = vector.broadcast %907 : vector<1x16xf32> to vector<8x16xf32>
    %927 = arith.addf %925, %926 : vector<8x16xf32>
    %c4 = arith.constant 4 : index
    %c0_424 = arith.constant 0 : index
    %c0_425 = arith.constant 0 : index
    %928 = vector.load %arg2[%c4, %c0_424, %c0_425] : memref<8x48x16xf32, #tpu.memory_space<vmem>>, vector<1x48x16xf32>
    %929 = vector.shape_cast %928 : vector<1x48x16xf32> to vector<48x16xf32>
    %c4_426 = arith.constant 4 : index
    %c0_427 = arith.constant 0 : index
    %c0_428 = arith.constant 0 : index
    %930 = vector.load %arg3[%c4_426, %c0_427, %c0_428] : memref<8x1x48xf32, #tpu.memory_space<vmem>>, vector<1x1x48xf32>
    %931 = vector.shape_cast %930 : vector<1x1x48xf32> to vector<1x48xf32>
    %c4_429 = arith.constant 4 : index
    %c0_430 = arith.constant 0 : index
    %c0_431 = arith.constant 0 : index
    %932 = vector.load %arg4[%c4_429, %c0_430, %c0_431] : memref<8x16x16xf32, #tpu.memory_space<vmem>>, vector<1x16x16xf32>
    %933 = vector.shape_cast %932 : vector<1x16x16xf32> to vector<16x16xf32>
    %c4_432 = arith.constant 4 : index
    %c0_433 = arith.constant 0 : index
    %c0_434 = arith.constant 0 : index
    %934 = vector.load %arg5[%c4_432, %c0_433, %c0_434] : memref<8x1x16xf32, #tpu.memory_space<vmem>>, vector<1x1x16xf32>
    %935 = vector.shape_cast %934 : vector<1x1x16xf32> to vector<1x16xf32>
    %cst_435 = arith.constant dense<0.000000e+00> : vector<8x48xf32>
    %936 = tpu.matmul %927, %929, %cst_435 {dimension_numbers = #tpu.dot_dimension_numbers<[1], [1], [0], [0], [0, 0, 1, 0], [], []>} : vector<8x16xf32>, vector<48x16xf32>, vector<8x48xf32> -> vector<8x48xf32>
    %937 = vector.broadcast %931 : vector<1x48xf32> to vector<8x48xf32>
    %938 = arith.addf %936, %937 : vector<8x48xf32>
    %939 = vector.extract_strided_slice %938 {offsets = [0, 0], sizes = [8, 16], strides = [1, 1]} : vector<8x48xf32> to vector<8x16xf32>
    %940 = vector.extract_strided_slice %938 {offsets = [0, 16], sizes = [8, 16], strides = [1, 1]} : vector<8x48xf32> to vector<8x16xf32>
    %941 = vector.extract_strided_slice %938 {offsets = [0, 32], sizes = [8, 16], strides = [1, 1]} : vector<8x48xf32> to vector<8x16xf32>
    %942 = arith.truncf %939 : vector<8x16xf32> to vector<8x16xbf16>
    %943 = arith.truncf %940 : vector<8x16xf32> to vector<8x16xbf16>
    %944 = arith.truncf %941 : vector<8x16xf32> to vector<8x16xbf16>
    %945 = vector.extract_strided_slice %942 {offsets = [0, 0], sizes = [8, 8], strides = [1, 1]} : vector<8x16xbf16> to vector<8x8xbf16>
    %946 = vector.extract_strided_slice %943 {offsets = [0, 0], sizes = [8, 8], strides = [1, 1]} : vector<8x16xbf16> to vector<8x8xbf16>
    %947 = vector.extract_strided_slice %944 {offsets = [0, 0], sizes = [8, 8], strides = [1, 1]} : vector<8x16xbf16> to vector<8x8xbf16>
    %cst_436 = arith.constant dense<0.000000e+00> : vector<8x8xf32>
    %948 = tpu.matmul %945, %946, %cst_436 {dimension_numbers = #tpu.dot_dimension_numbers<[1], [1], [0], [0], [0, 0, 1, 0], [], []>} : vector<8x8xbf16>, vector<8x8xbf16>, vector<8x8xf32> -> vector<8x8xf32>
    %949 = arith.addf %948, %7 : vector<8x8xf32>
    %cst_437 = arith.constant dense<0xFF800000> : vector<8xf32>
    %950 = vector.multi_reduction <maximumf>, %949, %cst_437 [1] : vector<8x8xf32> to vector<8xf32>
    %951 = vector.shape_cast %950 : vector<8xf32> to vector<8x1xf32>
    %952 = vector.broadcast %951 : vector<8x1xf32> to vector<8x8xf32>
    %953 = arith.subf %949, %952 : vector<8x8xf32>
    %954 = arith.truncf %953 : vector<8x8xf32> to vector<8x8xbf16>
    %955 = math.exp %954 : vector<8x8xbf16>
    %956 = arith.extf %955 : vector<8x8xbf16> to vector<8x8xf32>
    %cst_438 = arith.constant dense<0.000000e+00> : vector<8xf32>
    %957 = vector.multi_reduction <add>, %956, %cst_438 [1] : vector<8x8xf32> to vector<8xf32>
    %958 = vector.shape_cast %957 : vector<8xf32> to vector<8x1xf32>
    %cst_439 = arith.constant dense<0.000000e+00> : vector<8x8xf32>
    %959 = tpu.matmul %955, %947, %cst_439 {dimension_numbers = #tpu.dot_dimension_numbers<[1], [0], [0], [1], [0, 0, 1, 1], [], []>} : vector<8x8xbf16>, vector<8x8xbf16>, vector<8x8xf32> -> vector<8x8xf32>
    %960 = tpu.reciprocal %958 {approx = true} : vector<8x1xf32> -> vector<8x1xf32>
    %961 = vector.broadcast %960 : vector<8x1xf32> to vector<8x8xf32>
    %962 = arith.mulf %959, %961 : vector<8x8xf32>
    %963 = vector.extract_strided_slice %933 {offsets = [0, 0], sizes = [16, 8], strides = [1, 1]} : vector<16x16xf32> to vector<16x8xf32>
    %cst_440 = arith.constant dense<0.000000e+00> : vector<8x16xf32>
    %964 = tpu.matmul %962, %963, %cst_440 {dimension_numbers = #tpu.dot_dimension_numbers<[1], [1], [0], [0], [0, 0, 1, 0], [], []>} : vector<8x8xf32>, vector<16x8xf32>, vector<8x16xf32> -> vector<8x16xf32>
    %965 = vector.extract_strided_slice %942 {offsets = [0, 8], sizes = [8, 8], strides = [1, 1]} : vector<8x16xbf16> to vector<8x8xbf16>
    %966 = vector.extract_strided_slice %943 {offsets = [0, 8], sizes = [8, 8], strides = [1, 1]} : vector<8x16xbf16> to vector<8x8xbf16>
    %967 = vector.extract_strided_slice %944 {offsets = [0, 8], sizes = [8, 8], strides = [1, 1]} : vector<8x16xbf16> to vector<8x8xbf16>
    %cst_441 = arith.constant dense<0.000000e+00> : vector<8x8xf32>
    %968 = tpu.matmul %965, %966, %cst_441 {dimension_numbers = #tpu.dot_dimension_numbers<[1], [1], [0], [0], [0, 0, 1, 0], [], []>} : vector<8x8xbf16>, vector<8x8xbf16>, vector<8x8xf32> -> vector<8x8xf32>
    %969 = arith.addf %968, %7 : vector<8x8xf32>
    %cst_442 = arith.constant dense<0xFF800000> : vector<8xf32>
    %970 = vector.multi_reduction <maximumf>, %969, %cst_442 [1] : vector<8x8xf32> to vector<8xf32>
    %971 = vector.shape_cast %970 : vector<8xf32> to vector<8x1xf32>
    %972 = vector.broadcast %971 : vector<8x1xf32> to vector<8x8xf32>
    %973 = arith.subf %969, %972 : vector<8x8xf32>
    %974 = arith.truncf %973 : vector<8x8xf32> to vector<8x8xbf16>
    %975 = math.exp %974 : vector<8x8xbf16>
    %976 = arith.extf %975 : vector<8x8xbf16> to vector<8x8xf32>
    %cst_443 = arith.constant dense<0.000000e+00> : vector<8xf32>
    %977 = vector.multi_reduction <add>, %976, %cst_443 [1] : vector<8x8xf32> to vector<8xf32>
    %978 = vector.shape_cast %977 : vector<8xf32> to vector<8x1xf32>
    %cst_444 = arith.constant dense<0.000000e+00> : vector<8x8xf32>
    %979 = tpu.matmul %975, %967, %cst_444 {dimension_numbers = #tpu.dot_dimension_numbers<[1], [0], [0], [1], [0, 0, 1, 1], [], []>} : vector<8x8xbf16>, vector<8x8xbf16>, vector<8x8xf32> -> vector<8x8xf32>
    %980 = tpu.reciprocal %978 {approx = true} : vector<8x1xf32> -> vector<8x1xf32>
    %981 = vector.broadcast %980 : vector<8x1xf32> to vector<8x8xf32>
    %982 = arith.mulf %979, %981 : vector<8x8xf32>
    %983 = vector.extract_strided_slice %933 {offsets = [0, 8], sizes = [16, 8], strides = [1, 1]} : vector<16x16xf32> to vector<16x8xf32>
    %cst_445 = arith.constant dense<0.000000e+00> : vector<8x16xf32>
    %984 = tpu.matmul %982, %983, %cst_445 {dimension_numbers = #tpu.dot_dimension_numbers<[1], [1], [0], [0], [0, 0, 1, 0], [], []>} : vector<8x8xf32>, vector<16x8xf32>, vector<8x16xf32> -> vector<8x16xf32>
    %985 = arith.addf %964, %984 : vector<8x16xf32>
    %986 = vector.broadcast %935 : vector<1x16xf32> to vector<8x16xf32>
    %987 = arith.addf %985, %986 : vector<8x16xf32>
    %c0_446 = arith.constant 0 : index
    %c0_447 = arith.constant 0 : index
    %988 = vector.load %arg25[%c0_446, %c0_447] : memref<8x16xf32, #tpu.memory_space<vmem>>, vector<8x16xf32>
    tpu.vector_store %arg25[%c0_446, %c0_447], %987 {strides = array<i32>} : memref<8x16xf32, #tpu.memory_space<vmem>>, vector<8x16xf32>,
    %c0_448 = arith.constant 0 : index
    %c0_449 = arith.constant 0 : index
    %989 = vector.load %arg25[%c0_448, %c0_449] : memref<8x16xf32, #tpu.memory_space<vmem>>, vector<8x16xf32>
    %990 = arith.addf %927, %989 : vector<8x16xf32>
    %c4_450 = arith.constant 4 : index
    %c0_451 = arith.constant 0 : index
    %c0_452 = arith.constant 0 : index
    %991 = vector.load %arg14[%c4_450, %c0_451, %c0_452] : memref<8x1x16xf32, #tpu.memory_space<vmem>>, vector<1x1x16xf32>
    %992 = vector.shape_cast %991 : vector<1x1x16xf32> to vector<1x16xf32>
    %c4_453 = arith.constant 4 : index
    %c0_454 = arith.constant 0 : index
    %c0_455 = arith.constant 0 : index
    %993 = vector.load %arg15[%c4_453, %c0_454, %c0_455] : memref<8x1x16xf32, #tpu.memory_space<vmem>>, vector<1x1x16xf32>
    %994 = vector.shape_cast %993 : vector<1x1x16xf32> to vector<1x16xf32>
    %cst_456 = arith.constant dense<0.000000e+00> : vector<8xf32>
    %995 = vector.multi_reduction <add>, %990, %cst_456 [1] : vector<8x16xf32> to vector<8xf32>
    %996 = vector.shape_cast %995 : vector<8xf32> to vector<8x1xf32>
    %cst_457 = arith.constant 1.600000e+01 : f32
    %997 = vector.broadcast %cst_457 : f32 to vector<8x1xf32>
    %998 = arith.divf %996, %997 : vector<8x1xf32>
    %999 = vector.broadcast %998 : vector<8x1xf32> to vector<8x16xf32>
    %1000 = arith.subf %990, %999 : vector<8x16xf32>
    %1001 = arith.mulf %1000, %1000 : vector<8x16xf32>
    %cst_458 = arith.constant dense<0.000000e+00> : vector<8xf32>
    %1002 = vector.multi_reduction <add>, %1001, %cst_458 [1] : vector<8x16xf32> to vector<8xf32>
    %1003 = vector.shape_cast %1002 : vector<8xf32> to vector<8x1xf32>
    %cst_459 = arith.constant 1.600000e+01 : f32
    %1004 = vector.broadcast %cst_459 : f32 to vector<8x1xf32>
    %1005 = arith.divf %1003, %1004 : vector<8x1xf32>
    %cst_460 = arith.constant 9.99999974E-6 : f32
    %1006 = vector.broadcast %cst_460 : f32 to vector<8x1xf32>
    %1007 = arith.addf %1005, %1006 : vector<8x1xf32>
    %1008 = math.rsqrt %1007 : vector<8x1xf32>
    %1009 = vector.broadcast %1008 : vector<8x1xf32> to vector<8x16xf32>
    %1010 = arith.mulf %1000, %1009 : vector<8x16xf32>
    %1011 = vector.broadcast %992 : vector<1x16xf32> to vector<8x16xf32>
    %1012 = arith.mulf %1010, %1011 : vector<8x16xf32>
    %1013 = vector.broadcast %994 : vector<1x16xf32> to vector<8x16xf32>
    %1014 = arith.addf %1012, %1013 : vector<8x16xf32>
    %c4_461 = arith.constant 4 : index
    %c0_462 = arith.constant 0 : index
    %c0_463 = arith.constant 0 : index
    %1015 = vector.load %arg6[%c4_461, %c0_462, %c0_463] : memref<8x48x16xf32, #tpu.memory_space<vmem>>, vector<1x48x16xf32>
    %1016 = vector.shape_cast %1015 : vector<1x48x16xf32> to vector<48x16xf32>
    %c4_464 = arith.constant 4 : index
    %c0_465 = arith.constant 0 : index
    %c0_466 = arith.constant 0 : index
    %1017 = vector.load %arg7[%c4_464, %c0_465, %c0_466] : memref<8x1x48xf32, #tpu.memory_space<vmem>>, vector<1x1x48xf32>
    %1018 = vector.shape_cast %1017 : vector<1x1x48xf32> to vector<1x48xf32>
    %c4_467 = arith.constant 4 : index
    %c0_468 = arith.constant 0 : index
    %c0_469 = arith.constant 0 : index
    %1019 = vector.load %arg8[%c4_467, %c0_468, %c0_469] : memref<8x16x16xf32, #tpu.memory_space<vmem>>, vector<1x16x16xf32>
    %1020 = vector.shape_cast %1019 : vector<1x16x16xf32> to vector<16x16xf32>
    %c4_470 = arith.constant 4 : index
    %c0_471 = arith.constant 0 : index
    %c0_472 = arith.constant 0 : index
    %1021 = vector.load %arg9[%c4_470, %c0_471, %c0_472] : memref<8x1x16xf32, #tpu.memory_space<vmem>>, vector<1x1x16xf32>
    %1022 = vector.shape_cast %1021 : vector<1x1x16xf32> to vector<1x16xf32>
    %1023 = vector.extract_strided_slice %1016 {offsets = [0, 0], sizes = [16, 16], strides = [1, 1]} : vector<48x16xf32> to vector<16x16xf32>
    %cst_473 = arith.constant dense<0.000000e+00> : vector<8x16xf32>
    %1024 = tpu.matmul %1014, %1023, %cst_473 {dimension_numbers = #tpu.dot_dimension_numbers<[1], [1], [0], [0], [0, 0, 1, 0], [], []>} : vector<8x16xf32>, vector<16x16xf32>, vector<8x16xf32> -> vector<8x16xf32>
    %1025 = vector.extract_strided_slice %1018 {offsets = [0, 0], sizes = [1, 16], strides = [1, 1]} : vector<1x48xf32> to vector<1x16xf32>
    %1026 = vector.broadcast %1025 : vector<1x16xf32> to vector<8x16xf32>
    %1027 = arith.addf %1024, %1026 : vector<8x16xf32>
    %1028 = vector.extract_strided_slice %1016 {offsets = [16, 0], sizes = [32, 16], strides = [1, 1]} : vector<48x16xf32> to vector<32x16xf32>
    %cst_474 = arith.constant dense<0.000000e+00> : vector<8x32xf32>
    %1029 = tpu.matmul %1, %1028, %cst_474 {dimension_numbers = #tpu.dot_dimension_numbers<[1], [1], [0], [0], [0, 0, 1, 0], [], []>} : vector<8x16xf32>, vector<32x16xf32>, vector<8x32xf32> -> vector<8x32xf32>
    %1030 = vector.extract_strided_slice %1018 {offsets = [0, 16], sizes = [1, 32], strides = [1, 1]} : vector<1x48xf32> to vector<1x32xf32>
    %1031 = vector.broadcast %1030 : vector<1x32xf32> to vector<8x32xf32>
    %1032 = arith.addf %1029, %1031 : vector<8x32xf32>
    %1033 = vector.extract_strided_slice %1032 {offsets = [0, 0], sizes = [8, 16], strides = [1, 1]} : vector<8x32xf32> to vector<8x16xf32>
    %1034 = vector.extract_strided_slice %1032 {offsets = [0, 16], sizes = [8, 16], strides = [1, 1]} : vector<8x32xf32> to vector<8x16xf32>
    %1035 = arith.truncf %1027 : vector<8x16xf32> to vector<8x16xbf16>
    %1036 = arith.truncf %1033 : vector<8x16xf32> to vector<8x16xbf16>
    %1037 = arith.truncf %1034 : vector<8x16xf32> to vector<8x16xbf16>
    %1038 = vector.extract_strided_slice %1035 {offsets = [0, 0], sizes = [8, 8], strides = [1, 1]} : vector<8x16xbf16> to vector<8x8xbf16>
    %1039 = vector.extract_strided_slice %1036 {offsets = [0, 0], sizes = [8, 8], strides = [1, 1]} : vector<8x16xbf16> to vector<8x8xbf16>
    %1040 = vector.extract_strided_slice %1037 {offsets = [0, 0], sizes = [8, 8], strides = [1, 1]} : vector<8x16xbf16> to vector<8x8xbf16>
    %cst_475 = arith.constant dense<0.000000e+00> : vector<8x8xf32>
    %1041 = tpu.matmul %1038, %1039, %cst_475 {dimension_numbers = #tpu.dot_dimension_numbers<[1], [1], [0], [0], [0, 0, 1, 0], [], []>} : vector<8x8xbf16>, vector<8x8xbf16>, vector<8x8xf32> -> vector<8x8xf32>
    %cst_476 = arith.constant dense<0xFF800000> : vector<8xf32>
    %1042 = vector.multi_reduction <maximumf>, %1041, %cst_476 [1] : vector<8x8xf32> to vector<8xf32>
    %1043 = vector.shape_cast %1042 : vector<8xf32> to vector<8x1xf32>
    %1044 = vector.broadcast %1043 : vector<8x1xf32> to vector<8x8xf32>
    %1045 = arith.subf %1041, %1044 : vector<8x8xf32>
    %1046 = arith.truncf %1045 : vector<8x8xf32> to vector<8x8xbf16>
    %1047 = math.exp %1046 : vector<8x8xbf16>
    %1048 = arith.extf %1047 : vector<8x8xbf16> to vector<8x8xf32>
    %cst_477 = arith.constant dense<0.000000e+00> : vector<8xf32>
    %1049 = vector.multi_reduction <add>, %1048, %cst_477 [1] : vector<8x8xf32> to vector<8xf32>
    %1050 = vector.shape_cast %1049 : vector<8xf32> to vector<8x1xf32>
    %cst_478 = arith.constant dense<0.000000e+00> : vector<8x8xf32>
    %1051 = tpu.matmul %1047, %1040, %cst_478 {dimension_numbers = #tpu.dot_dimension_numbers<[1], [0], [0], [1], [0, 0, 1, 1], [], []>} : vector<8x8xbf16>, vector<8x8xbf16>, vector<8x8xf32> -> vector<8x8xf32>
    %1052 = tpu.reciprocal %1050 {approx = true} : vector<8x1xf32> -> vector<8x1xf32>
    %1053 = vector.broadcast %1052 : vector<8x1xf32> to vector<8x8xf32>
    %1054 = arith.mulf %1051, %1053 : vector<8x8xf32>
    %1055 = vector.extract_strided_slice %1020 {offsets = [0, 0], sizes = [16, 8], strides = [1, 1]} : vector<16x16xf32> to vector<16x8xf32>
    %cst_479 = arith.constant dense<0.000000e+00> : vector<8x16xf32>
    %1056 = tpu.matmul %1054, %1055, %cst_479 {dimension_numbers = #tpu.dot_dimension_numbers<[1], [1], [0], [0], [0, 0, 1, 0], [], []>} : vector<8x8xf32>, vector<16x8xf32>, vector<8x16xf32> -> vector<8x16xf32>
    %1057 = vector.extract_strided_slice %1035 {offsets = [0, 8], sizes = [8, 8], strides = [1, 1]} : vector<8x16xbf16> to vector<8x8xbf16>
    %1058 = vector.extract_strided_slice %1036 {offsets = [0, 8], sizes = [8, 8], strides = [1, 1]} : vector<8x16xbf16> to vector<8x8xbf16>
    %1059 = vector.extract_strided_slice %1037 {offsets = [0, 8], sizes = [8, 8], strides = [1, 1]} : vector<8x16xbf16> to vector<8x8xbf16>
    %cst_480 = arith.constant dense<0.000000e+00> : vector<8x8xf32>
    %1060 = tpu.matmul %1057, %1058, %cst_480 {dimension_numbers = #tpu.dot_dimension_numbers<[1], [1], [0], [0], [0, 0, 1, 0], [], []>} : vector<8x8xbf16>, vector<8x8xbf16>, vector<8x8xf32> -> vector<8x8xf32>
    %cst_481 = arith.constant dense<0xFF800000> : vector<8xf32>
    %1061 = vector.multi_reduction <maximumf>, %1060, %cst_481 [1] : vector<8x8xf32> to vector<8xf32>
    %1062 = vector.shape_cast %1061 : vector<8xf32> to vector<8x1xf32>
    %1063 = vector.broadcast %1062 : vector<8x1xf32> to vector<8x8xf32>
    %1064 = arith.subf %1060, %1063 : vector<8x8xf32>
    %1065 = arith.truncf %1064 : vector<8x8xf32> to vector<8x8xbf16>
    %1066 = math.exp %1065 : vector<8x8xbf16>
    %1067 = arith.extf %1066 : vector<8x8xbf16> to vector<8x8xf32>
    %cst_482 = arith.constant dense<0.000000e+00> : vector<8xf32>
    %1068 = vector.multi_reduction <add>, %1067, %cst_482 [1] : vector<8x8xf32> to vector<8xf32>
    %1069 = vector.shape_cast %1068 : vector<8xf32> to vector<8x1xf32>
    %cst_483 = arith.constant dense<0.000000e+00> : vector<8x8xf32>
    %1070 = tpu.matmul %1066, %1059, %cst_483 {dimension_numbers = #tpu.dot_dimension_numbers<[1], [0], [0], [1], [0, 0, 1, 1], [], []>} : vector<8x8xbf16>, vector<8x8xbf16>, vector<8x8xf32> -> vector<8x8xf32>
    %1071 = tpu.reciprocal %1069 {approx = true} : vector<8x1xf32> -> vector<8x1xf32>
    %1072 = vector.broadcast %1071 : vector<8x1xf32> to vector<8x8xf32>
    %1073 = arith.mulf %1070, %1072 : vector<8x8xf32>
    %1074 = vector.extract_strided_slice %1020 {offsets = [0, 8], sizes = [16, 8], strides = [1, 1]} : vector<16x16xf32> to vector<16x8xf32>
    %cst_484 = arith.constant dense<0.000000e+00> : vector<8x16xf32>
    %1075 = tpu.matmul %1073, %1074, %cst_484 {dimension_numbers = #tpu.dot_dimension_numbers<[1], [1], [0], [0], [0, 0, 1, 0], [], []>} : vector<8x8xf32>, vector<16x8xf32>, vector<8x16xf32> -> vector<8x16xf32>
    %1076 = arith.addf %1056, %1075 : vector<8x16xf32>
    %1077 = vector.broadcast %1022 : vector<1x16xf32> to vector<8x16xf32>
    %1078 = arith.addf %1076, %1077 : vector<8x16xf32>
    %c0_485 = arith.constant 0 : index
    %c0_486 = arith.constant 0 : index
    %1079 = vector.load %arg25[%c0_485, %c0_486] : memref<8x16xf32, #tpu.memory_space<vmem>>, vector<8x16xf32>
    tpu.vector_store %arg25[%c0_485, %c0_486], %1078 {strides = array<i32>} : memref<8x16xf32, #tpu.memory_space<vmem>>, vector<8x16xf32>,
    %c0_487 = arith.constant 0 : index
    %c0_488 = arith.constant 0 : index
    %1080 = vector.load %arg25[%c0_487, %c0_488] : memref<8x16xf32, #tpu.memory_space<vmem>>, vector<8x16xf32>
    %1081 = arith.addf %1014, %1080 : vector<8x16xf32>
    %c4_489 = arith.constant 4 : index
    %c0_490 = arith.constant 0 : index
    %c0_491 = arith.constant 0 : index
    %1082 = vector.load %arg16[%c4_489, %c0_490, %c0_491] : memref<8x1x16xf32, #tpu.memory_space<vmem>>, vector<1x1x16xf32>
    %1083 = vector.shape_cast %1082 : vector<1x1x16xf32> to vector<1x16xf32>
    %c4_492 = arith.constant 4 : index
    %c0_493 = arith.constant 0 : index
    %c0_494 = arith.constant 0 : index
    %1084 = vector.load %arg17[%c4_492, %c0_493, %c0_494] : memref<8x1x16xf32, #tpu.memory_space<vmem>>, vector<1x1x16xf32>
    %1085 = vector.shape_cast %1084 : vector<1x1x16xf32> to vector<1x16xf32>
    %cst_495 = arith.constant dense<0.000000e+00> : vector<8xf32>
    %1086 = vector.multi_reduction <add>, %1081, %cst_495 [1] : vector<8x16xf32> to vector<8xf32>
    %1087 = vector.shape_cast %1086 : vector<8xf32> to vector<8x1xf32>
    %cst_496 = arith.constant 1.600000e+01 : f32
    %1088 = vector.broadcast %cst_496 : f32 to vector<8x1xf32>
    %1089 = arith.divf %1087, %1088 : vector<8x1xf32>
    %1090 = vector.broadcast %1089 : vector<8x1xf32> to vector<8x16xf32>
    %1091 = arith.subf %1081, %1090 : vector<8x16xf32>
    %1092 = arith.mulf %1091, %1091 : vector<8x16xf32>
    %cst_497 = arith.constant dense<0.000000e+00> : vector<8xf32>
    %1093 = vector.multi_reduction <add>, %1092, %cst_497 [1] : vector<8x16xf32> to vector<8xf32>
    %1094 = vector.shape_cast %1093 : vector<8xf32> to vector<8x1xf32>
    %cst_498 = arith.constant 1.600000e+01 : f32
    %1095 = vector.broadcast %cst_498 : f32 to vector<8x1xf32>
    %1096 = arith.divf %1094, %1095 : vector<8x1xf32>
    %cst_499 = arith.constant 9.99999974E-6 : f32
    %1097 = vector.broadcast %cst_499 : f32 to vector<8x1xf32>
    %1098 = arith.addf %1096, %1097 : vector<8x1xf32>
    %1099 = math.rsqrt %1098 : vector<8x1xf32>
    %1100 = vector.broadcast %1099 : vector<8x1xf32> to vector<8x16xf32>
    %1101 = arith.mulf %1091, %1100 : vector<8x16xf32>
    %1102 = vector.broadcast %1083 : vector<1x16xf32> to vector<8x16xf32>
    %1103 = arith.mulf %1101, %1102 : vector<8x16xf32>
    %1104 = vector.broadcast %1085 : vector<1x16xf32> to vector<8x16xf32>
    %1105 = arith.addf %1103, %1104 : vector<8x16xf32>
    %c4_500 = arith.constant 4 : index
    %c0_501 = arith.constant 0 : index
    %c0_502 = arith.constant 0 : index
    %1106 = vector.load %arg10[%c4_500, %c0_501, %c0_502] : memref<8x64x16xf32, #tpu.memory_space<vmem>>, vector<1x64x16xf32>
    %1107 = vector.shape_cast %1106 : vector<1x64x16xf32> to vector<64x16xf32>
    %cst_503 = arith.constant dense<0.000000e+00> : vector<8x64xf32>
    %1108 = tpu.matmul %1105, %1107, %cst_503 {dimension_numbers = #tpu.dot_dimension_numbers<[1], [1], [0], [0], [0, 0, 1, 0], [], []>} : vector<8x16xf32>, vector<64x16xf32>, vector<8x64xf32> -> vector<8x64xf32>
    %c4_504 = arith.constant 4 : index
    %c0_505 = arith.constant 0 : index
    %c0_506 = arith.constant 0 : index
    %1109 = vector.load %arg11[%c4_504, %c0_505, %c0_506] : memref<8x1x64xf32, #tpu.memory_space<vmem>>, vector<1x1x64xf32>
    %1110 = vector.shape_cast %1109 : vector<1x1x64xf32> to vector<1x64xf32>
    %1111 = vector.broadcast %1110 : vector<1x64xf32> to vector<8x64xf32>
    %1112 = arith.addf %1108, %1111 : vector<8x64xf32>
    %cst_507 = arith.constant 5.000000e-01 : f32
    %1113 = vector.broadcast %cst_507 : f32 to vector<8x64xf32>
    %1114 = arith.mulf %1113, %1112 : vector<8x64xf32>
    %cst_508 = arith.constant 4.471500e-02 : f32
    %1115 = vector.broadcast %cst_508 : f32 to vector<8x64xf32>
    %1116 = arith.mulf %1115, %1112 : vector<8x64xf32>
    %1117 = arith.mulf %1116, %1112 : vector<8x64xf32>
    %1118 = arith.mulf %1117, %1112 : vector<8x64xf32>
    %1119 = arith.addf %1112, %1118 : vector<8x64xf32>
    %cst_509 = arith.constant 0.797884583 : f32
    %1120 = vector.broadcast %cst_509 : f32 to vector<8x64xf32>
    %1121 = arith.mulf %1120, %1119 : vector<8x64xf32>
    %1122 = math.tanh %1121 : vector<8x64xf32>
    %cst_510 = arith.constant 1.000000e+00 : f32
    %1123 = vector.broadcast %cst_510 : f32 to vector<8x64xf32>
    %1124 = arith.addf %1123, %1122 : vector<8x64xf32>
    %1125 = arith.mulf %1114, %1124 : vector<8x64xf32>
    %c4_511 = arith.constant 4 : index
    %c0_512 = arith.constant 0 : index
    %c0_513 = arith.constant 0 : index
    %1126 = vector.load %arg12[%c4_511, %c0_512, %c0_513] : memref<8x16x64xf32, #tpu.memory_space<vmem>>, vector<1x16x64xf32>
    %1127 = vector.shape_cast %1126 : vector<1x16x64xf32> to vector<16x64xf32>
    %cst_514 = arith.constant dense<0.000000e+00> : vector<8x16xf32>
    %1128 = tpu.matmul %1125, %1127, %cst_514 {dimension_numbers = #tpu.dot_dimension_numbers<[1], [1], [0], [0], [0, 0, 1, 0], [], []>} : vector<8x64xf32>, vector<16x64xf32>, vector<8x16xf32> -> vector<8x16xf32>
    %c4_515 = arith.constant 4 : index
    %c0_516 = arith.constant 0 : index
    %c0_517 = arith.constant 0 : index
    %1129 = vector.load %arg13[%c4_515, %c0_516, %c0_517] : memref<8x1x16xf32, #tpu.memory_space<vmem>>, vector<1x1x16xf32>
    %1130 = vector.shape_cast %1129 : vector<1x1x16xf32> to vector<1x16xf32>
    %1131 = vector.broadcast %1130 : vector<1x16xf32> to vector<8x16xf32>
    %1132 = arith.addf %1128, %1131 : vector<8x16xf32>
    %1133 = arith.addf %1105, %1132 : vector<8x16xf32>
    %c4_518 = arith.constant 4 : index
    %c0_519 = arith.constant 0 : index
    %c0_520 = arith.constant 0 : index
    %1134 = vector.load %arg18[%c4_518, %c0_519, %c0_520] : memref<8x1x16xf32, #tpu.memory_space<vmem>>, vector<1x1x16xf32>
    %1135 = vector.shape_cast %1134 : vector<1x1x16xf32> to vector<1x16xf32>
    %c4_521 = arith.constant 4 : index
    %c0_522 = arith.constant 0 : index
    %c0_523 = arith.constant 0 : index
    %1136 = vector.load %arg19[%c4_521, %c0_522, %c0_523] : memref<8x1x16xf32, #tpu.memory_space<vmem>>, vector<1x1x16xf32>
    %1137 = vector.shape_cast %1136 : vector<1x1x16xf32> to vector<1x16xf32>
    %cst_524 = arith.constant dense<0.000000e+00> : vector<8xf32>
    %1138 = vector.multi_reduction <add>, %1133, %cst_524 [1] : vector<8x16xf32> to vector<8xf32>
    %1139 = vector.shape_cast %1138 : vector<8xf32> to vector<8x1xf32>
    %cst_525 = arith.constant 1.600000e+01 : f32
    %1140 = vector.broadcast %cst_525 : f32 to vector<8x1xf32>
    %1141 = arith.divf %1139, %1140 : vector<8x1xf32>
    %1142 = vector.broadcast %1141 : vector<8x1xf32> to vector<8x16xf32>
    %1143 = arith.subf %1133, %1142 : vector<8x16xf32>
    %1144 = arith.mulf %1143, %1143 : vector<8x16xf32>
    %cst_526 = arith.constant dense<0.000000e+00> : vector<8xf32>
    %1145 = vector.multi_reduction <add>, %1144, %cst_526 [1] : vector<8x16xf32> to vector<8xf32>
    %1146 = vector.shape_cast %1145 : vector<8xf32> to vector<8x1xf32>
    %cst_527 = arith.constant 1.600000e+01 : f32
    %1147 = vector.broadcast %cst_527 : f32 to vector<8x1xf32>
    %1148 = arith.divf %1146, %1147 : vector<8x1xf32>
    %cst_528 = arith.constant 9.99999974E-6 : f32
    %1149 = vector.broadcast %cst_528 : f32 to vector<8x1xf32>
    %1150 = arith.addf %1148, %1149 : vector<8x1xf32>
    %1151 = math.rsqrt %1150 : vector<8x1xf32>
    %1152 = vector.broadcast %1151 : vector<8x1xf32> to vector<8x16xf32>
    %1153 = arith.mulf %1143, %1152 : vector<8x16xf32>
    %1154 = vector.broadcast %1135 : vector<1x16xf32> to vector<8x16xf32>
    %1155 = arith.mulf %1153, %1154 : vector<8x16xf32>
    %1156 = vector.broadcast %1137 : vector<1x16xf32> to vector<8x16xf32>
    %1157 = arith.addf %1155, %1156 : vector<8x16xf32>
    %c5 = arith.constant 5 : index
    %c0_529 = arith.constant 0 : index
    %c0_530 = arith.constant 0 : index
    %1158 = vector.load %arg2[%c5, %c0_529, %c0_530] : memref<8x48x16xf32, #tpu.memory_space<vmem>>, vector<1x48x16xf32>
    %1159 = vector.shape_cast %1158 : vector<1x48x16xf32> to vector<48x16xf32>
    %c5_531 = arith.constant 5 : index
    %c0_532 = arith.constant 0 : index
    %c0_533 = arith.constant 0 : index
    %1160 = vector.load %arg3[%c5_531, %c0_532, %c0_533] : memref<8x1x48xf32, #tpu.memory_space<vmem>>, vector<1x1x48xf32>
    %1161 = vector.shape_cast %1160 : vector<1x1x48xf32> to vector<1x48xf32>
    %c5_534 = arith.constant 5 : index
    %c0_535 = arith.constant 0 : index
    %c0_536 = arith.constant 0 : index
    %1162 = vector.load %arg4[%c5_534, %c0_535, %c0_536] : memref<8x16x16xf32, #tpu.memory_space<vmem>>, vector<1x16x16xf32>
    %1163 = vector.shape_cast %1162 : vector<1x16x16xf32> to vector<16x16xf32>
    %c5_537 = arith.constant 5 : index
    %c0_538 = arith.constant 0 : index
    %c0_539 = arith.constant 0 : index
    %1164 = vector.load %arg5[%c5_537, %c0_538, %c0_539] : memref<8x1x16xf32, #tpu.memory_space<vmem>>, vector<1x1x16xf32>
    %1165 = vector.shape_cast %1164 : vector<1x1x16xf32> to vector<1x16xf32>
    %cst_540 = arith.constant dense<0.000000e+00> : vector<8x48xf32>
    %1166 = tpu.matmul %1157, %1159, %cst_540 {dimension_numbers = #tpu.dot_dimension_numbers<[1], [1], [0], [0], [0, 0, 1, 0], [], []>} : vector<8x16xf32>, vector<48x16xf32>, vector<8x48xf32> -> vector<8x48xf32>
    %1167 = vector.broadcast %1161 : vector<1x48xf32> to vector<8x48xf32>
    %1168 = arith.addf %1166, %1167 : vector<8x48xf32>
    %1169 = vector.extract_strided_slice %1168 {offsets = [0, 0], sizes = [8, 16], strides = [1, 1]} : vector<8x48xf32> to vector<8x16xf32>
    %1170 = vector.extract_strided_slice %1168 {offsets = [0, 16], sizes = [8, 16], strides = [1, 1]} : vector<8x48xf32> to vector<8x16xf32>
    %1171 = vector.extract_strided_slice %1168 {offsets = [0, 32], sizes = [8, 16], strides = [1, 1]} : vector<8x48xf32> to vector<8x16xf32>
    %1172 = arith.truncf %1169 : vector<8x16xf32> to vector<8x16xbf16>
    %1173 = arith.truncf %1170 : vector<8x16xf32> to vector<8x16xbf16>
    %1174 = arith.truncf %1171 : vector<8x16xf32> to vector<8x16xbf16>
    %1175 = vector.extract_strided_slice %1172 {offsets = [0, 0], sizes = [8, 8], strides = [1, 1]} : vector<8x16xbf16> to vector<8x8xbf16>
    %1176 = vector.extract_strided_slice %1173 {offsets = [0, 0], sizes = [8, 8], strides = [1, 1]} : vector<8x16xbf16> to vector<8x8xbf16>
    %1177 = vector.extract_strided_slice %1174 {offsets = [0, 0], sizes = [8, 8], strides = [1, 1]} : vector<8x16xbf16> to vector<8x8xbf16>
    %cst_541 = arith.constant dense<0.000000e+00> : vector<8x8xf32>
    %1178 = tpu.matmul %1175, %1176, %cst_541 {dimension_numbers = #tpu.dot_dimension_numbers<[1], [1], [0], [0], [0, 0, 1, 0], [], []>} : vector<8x8xbf16>, vector<8x8xbf16>, vector<8x8xf32> -> vector<8x8xf32>
    %1179 = arith.addf %1178, %7 : vector<8x8xf32>
    %cst_542 = arith.constant dense<0xFF800000> : vector<8xf32>
    %1180 = vector.multi_reduction <maximumf>, %1179, %cst_542 [1] : vector<8x8xf32> to vector<8xf32>
    %1181 = vector.shape_cast %1180 : vector<8xf32> to vector<8x1xf32>
    %1182 = vector.broadcast %1181 : vector<8x1xf32> to vector<8x8xf32>
    %1183 = arith.subf %1179, %1182 : vector<8x8xf32>
    %1184 = arith.truncf %1183 : vector<8x8xf32> to vector<8x8xbf16>
    %1185 = math.exp %1184 : vector<8x8xbf16>
    %1186 = arith.extf %1185 : vector<8x8xbf16> to vector<8x8xf32>
    %cst_543 = arith.constant dense<0.000000e+00> : vector<8xf32>
    %1187 = vector.multi_reduction <add>, %1186, %cst_543 [1] : vector<8x8xf32> to vector<8xf32>
    %1188 = vector.shape_cast %1187 : vector<8xf32> to vector<8x1xf32>
    %cst_544 = arith.constant dense<0.000000e+00> : vector<8x8xf32>
    %1189 = tpu.matmul %1185, %1177, %cst_544 {dimension_numbers = #tpu.dot_dimension_numbers<[1], [0], [0], [1], [0, 0, 1, 1], [], []>} : vector<8x8xbf16>, vector<8x8xbf16>, vector<8x8xf32> -> vector<8x8xf32>
    %1190 = tpu.reciprocal %1188 {approx = true} : vector<8x1xf32> -> vector<8x1xf32>
    %1191 = vector.broadcast %1190 : vector<8x1xf32> to vector<8x8xf32>
    %1192 = arith.mulf %1189, %1191 : vector<8x8xf32>
    %1193 = vector.extract_strided_slice %1163 {offsets = [0, 0], sizes = [16, 8], strides = [1, 1]} : vector<16x16xf32> to vector<16x8xf32>
    %cst_545 = arith.constant dense<0.000000e+00> : vector<8x16xf32>
    %1194 = tpu.matmul %1192, %1193, %cst_545 {dimension_numbers = #tpu.dot_dimension_numbers<[1], [1], [0], [0], [0, 0, 1, 0], [], []>} : vector<8x8xf32>, vector<16x8xf32>, vector<8x16xf32> -> vector<8x16xf32>
    %1195 = vector.extract_strided_slice %1172 {offsets = [0, 8], sizes = [8, 8], strides = [1, 1]} : vector<8x16xbf16> to vector<8x8xbf16>
    %1196 = vector.extract_strided_slice %1173 {offsets = [0, 8], sizes = [8, 8], strides = [1, 1]} : vector<8x16xbf16> to vector<8x8xbf16>
    %1197 = vector.extract_strided_slice %1174 {offsets = [0, 8], sizes = [8, 8], strides = [1, 1]} : vector<8x16xbf16> to vector<8x8xbf16>
    %cst_546 = arith.constant dense<0.000000e+00> : vector<8x8xf32>
    %1198 = tpu.matmul %1195, %1196, %cst_546 {dimension_numbers = #tpu.dot_dimension_numbers<[1], [1], [0], [0], [0, 0, 1, 0], [], []>} : vector<8x8xbf16>, vector<8x8xbf16>, vector<8x8xf32> -> vector<8x8xf32>
    %1199 = arith.addf %1198, %7 : vector<8x8xf32>
    %cst_547 = arith.constant dense<0xFF800000> : vector<8xf32>
    %1200 = vector.multi_reduction <maximumf>, %1199, %cst_547 [1] : vector<8x8xf32> to vector<8xf32>
    %1201 = vector.shape_cast %1200 : vector<8xf32> to vector<8x1xf32>
    %1202 = vector.broadcast %1201 : vector<8x1xf32> to vector<8x8xf32>
    %1203 = arith.subf %1199, %1202 : vector<8x8xf32>
    %1204 = arith.truncf %1203 : vector<8x8xf32> to vector<8x8xbf16>
    %1205 = math.exp %1204 : vector<8x8xbf16>
    %1206 = arith.extf %1205 : vector<8x8xbf16> to vector<8x8xf32>
    %cst_548 = arith.constant dense<0.000000e+00> : vector<8xf32>
    %1207 = vector.multi_reduction <add>, %1206, %cst_548 [1] : vector<8x8xf32> to vector<8xf32>
    %1208 = vector.shape_cast %1207 : vector<8xf32> to vector<8x1xf32>
    %cst_549 = arith.constant dense<0.000000e+00> : vector<8x8xf32>
    %1209 = tpu.matmul %1205, %1197, %cst_549 {dimension_numbers = #tpu.dot_dimension_numbers<[1], [0], [0], [1], [0, 0, 1, 1], [], []>} : vector<8x8xbf16>, vector<8x8xbf16>, vector<8x8xf32> -> vector<8x8xf32>
    %1210 = tpu.reciprocal %1208 {approx = true} : vector<8x1xf32> -> vector<8x1xf32>
    %1211 = vector.broadcast %1210 : vector<8x1xf32> to vector<8x8xf32>
    %1212 = arith.mulf %1209, %1211 : vector<8x8xf32>
    %1213 = vector.extract_strided_slice %1163 {offsets = [0, 8], sizes = [16, 8], strides = [1, 1]} : vector<16x16xf32> to vector<16x8xf32>
    %cst_550 = arith.constant dense<0.000000e+00> : vector<8x16xf32>
    %1214 = tpu.matmul %1212, %1213, %cst_550 {dimension_numbers = #tpu.dot_dimension_numbers<[1], [1], [0], [0], [0, 0, 1, 0], [], []>} : vector<8x8xf32>, vector<16x8xf32>, vector<8x16xf32> -> vector<8x16xf32>
    %1215 = arith.addf %1194, %1214 : vector<8x16xf32>
    %1216 = vector.broadcast %1165 : vector<1x16xf32> to vector<8x16xf32>
    %1217 = arith.addf %1215, %1216 : vector<8x16xf32>
    %c0_551 = arith.constant 0 : index
    %c0_552 = arith.constant 0 : index
    %1218 = vector.load %arg25[%c0_551, %c0_552] : memref<8x16xf32, #tpu.memory_space<vmem>>, vector<8x16xf32>
    tpu.vector_store %arg25[%c0_551, %c0_552], %1217 {strides = array<i32>} : memref<8x16xf32, #tpu.memory_space<vmem>>, vector<8x16xf32>,
    %c0_553 = arith.constant 0 : index
    %c0_554 = arith.constant 0 : index
    %1219 = vector.load %arg25[%c0_553, %c0_554] : memref<8x16xf32, #tpu.memory_space<vmem>>, vector<8x16xf32>
    %1220 = arith.addf %1157, %1219 : vector<8x16xf32>
    %c5_555 = arith.constant 5 : index
    %c0_556 = arith.constant 0 : index
    %c0_557 = arith.constant 0 : index
    %1221 = vector.load %arg14[%c5_555, %c0_556, %c0_557] : memref<8x1x16xf32, #tpu.memory_space<vmem>>, vector<1x1x16xf32>
    %1222 = vector.shape_cast %1221 : vector<1x1x16xf32> to vector<1x16xf32>
    %c5_558 = arith.constant 5 : index
    %c0_559 = arith.constant 0 : index
    %c0_560 = arith.constant 0 : index
    %1223 = vector.load %arg15[%c5_558, %c0_559, %c0_560] : memref<8x1x16xf32, #tpu.memory_space<vmem>>, vector<1x1x16xf32>
    %1224 = vector.shape_cast %1223 : vector<1x1x16xf32> to vector<1x16xf32>
    %cst_561 = arith.constant dense<0.000000e+00> : vector<8xf32>
    %1225 = vector.multi_reduction <add>, %1220, %cst_561 [1] : vector<8x16xf32> to vector<8xf32>
    %1226 = vector.shape_cast %1225 : vector<8xf32> to vector<8x1xf32>
    %cst_562 = arith.constant 1.600000e+01 : f32
    %1227 = vector.broadcast %cst_562 : f32 to vector<8x1xf32>
    %1228 = arith.divf %1226, %1227 : vector<8x1xf32>
    %1229 = vector.broadcast %1228 : vector<8x1xf32> to vector<8x16xf32>
    %1230 = arith.subf %1220, %1229 : vector<8x16xf32>
    %1231 = arith.mulf %1230, %1230 : vector<8x16xf32>
    %cst_563 = arith.constant dense<0.000000e+00> : vector<8xf32>
    %1232 = vector.multi_reduction <add>, %1231, %cst_563 [1] : vector<8x16xf32> to vector<8xf32>
    %1233 = vector.shape_cast %1232 : vector<8xf32> to vector<8x1xf32>
    %cst_564 = arith.constant 1.600000e+01 : f32
    %1234 = vector.broadcast %cst_564 : f32 to vector<8x1xf32>
    %1235 = arith.divf %1233, %1234 : vector<8x1xf32>
    %cst_565 = arith.constant 9.99999974E-6 : f32
    %1236 = vector.broadcast %cst_565 : f32 to vector<8x1xf32>
    %1237 = arith.addf %1235, %1236 : vector<8x1xf32>
    %1238 = math.rsqrt %1237 : vector<8x1xf32>
    %1239 = vector.broadcast %1238 : vector<8x1xf32> to vector<8x16xf32>
    %1240 = arith.mulf %1230, %1239 : vector<8x16xf32>
    %1241 = vector.broadcast %1222 : vector<1x16xf32> to vector<8x16xf32>
    %1242 = arith.mulf %1240, %1241 : vector<8x16xf32>
    %1243 = vector.broadcast %1224 : vector<1x16xf32> to vector<8x16xf32>
    %1244 = arith.addf %1242, %1243 : vector<8x16xf32>
    %c5_566 = arith.constant 5 : index
    %c0_567 = arith.constant 0 : index
    %c0_568 = arith.constant 0 : index
    %1245 = vector.load %arg6[%c5_566, %c0_567, %c0_568] : memref<8x48x16xf32, #tpu.memory_space<vmem>>, vector<1x48x16xf32>
    %1246 = vector.shape_cast %1245 : vector<1x48x16xf32> to vector<48x16xf32>
    %c5_569 = arith.constant 5 : index
    %c0_570 = arith.constant 0 : index
    %c0_571 = arith.constant 0 : index
    %1247 = vector.load %arg7[%c5_569, %c0_570, %c0_571] : memref<8x1x48xf32, #tpu.memory_space<vmem>>, vector<1x1x48xf32>
    %1248 = vector.shape_cast %1247 : vector<1x1x48xf32> to vector<1x48xf32>
    %c5_572 = arith.constant 5 : index
    %c0_573 = arith.constant 0 : index
    %c0_574 = arith.constant 0 : index
    %1249 = vector.load %arg8[%c5_572, %c0_573, %c0_574] : memref<8x16x16xf32, #tpu.memory_space<vmem>>, vector<1x16x16xf32>
    %1250 = vector.shape_cast %1249 : vector<1x16x16xf32> to vector<16x16xf32>
    %c5_575 = arith.constant 5 : index
    %c0_576 = arith.constant 0 : index
    %c0_577 = arith.constant 0 : index
    %1251 = vector.load %arg9[%c5_575, %c0_576, %c0_577] : memref<8x1x16xf32, #tpu.memory_space<vmem>>, vector<1x1x16xf32>
    %1252 = vector.shape_cast %1251 : vector<1x1x16xf32> to vector<1x16xf32>
    %1253 = vector.extract_strided_slice %1246 {offsets = [0, 0], sizes = [16, 16], strides = [1, 1]} : vector<48x16xf32> to vector<16x16xf32>
    %cst_578 = arith.constant dense<0.000000e+00> : vector<8x16xf32>
    %1254 = tpu.matmul %1244, %1253, %cst_578 {dimension_numbers = #tpu.dot_dimension_numbers<[1], [1], [0], [0], [0, 0, 1, 0], [], []>} : vector<8x16xf32>, vector<16x16xf32>, vector<8x16xf32> -> vector<8x16xf32>
    %1255 = vector.extract_strided_slice %1248 {offsets = [0, 0], sizes = [1, 16], strides = [1, 1]} : vector<1x48xf32> to vector<1x16xf32>
    %1256 = vector.broadcast %1255 : vector<1x16xf32> to vector<8x16xf32>
    %1257 = arith.addf %1254, %1256 : vector<8x16xf32>
    %1258 = vector.extract_strided_slice %1246 {offsets = [16, 0], sizes = [32, 16], strides = [1, 1]} : vector<48x16xf32> to vector<32x16xf32>
    %cst_579 = arith.constant dense<0.000000e+00> : vector<8x32xf32>
    %1259 = tpu.matmul %1, %1258, %cst_579 {dimension_numbers = #tpu.dot_dimension_numbers<[1], [1], [0], [0], [0, 0, 1, 0], [], []>} : vector<8x16xf32>, vector<32x16xf32>, vector<8x32xf32> -> vector<8x32xf32>
    %1260 = vector.extract_strided_slice %1248 {offsets = [0, 16], sizes = [1, 32], strides = [1, 1]} : vector<1x48xf32> to vector<1x32xf32>
    %1261 = vector.broadcast %1260 : vector<1x32xf32> to vector<8x32xf32>
    %1262 = arith.addf %1259, %1261 : vector<8x32xf32>
    %1263 = vector.extract_strided_slice %1262 {offsets = [0, 0], sizes = [8, 16], strides = [1, 1]} : vector<8x32xf32> to vector<8x16xf32>
    %1264 = vector.extract_strided_slice %1262 {offsets = [0, 16], sizes = [8, 16], strides = [1, 1]} : vector<8x32xf32> to vector<8x16xf32>
    %1265 = arith.truncf %1257 : vector<8x16xf32> to vector<8x16xbf16>
    %1266 = arith.truncf %1263 : vector<8x16xf32> to vector<8x16xbf16>
    %1267 = arith.truncf %1264 : vector<8x16xf32> to vector<8x16xbf16>
    %1268 = vector.extract_strided_slice %1265 {offsets = [0, 0], sizes = [8, 8], strides = [1, 1]} : vector<8x16xbf16> to vector<8x8xbf16>
    %1269 = vector.extract_strided_slice %1266 {offsets = [0, 0], sizes = [8, 8], strides = [1, 1]} : vector<8x16xbf16> to vector<8x8xbf16>
    %1270 = vector.extract_strided_slice %1267 {offsets = [0, 0], sizes = [8, 8], strides = [1, 1]} : vector<8x16xbf16> to vector<8x8xbf16>
    %cst_580 = arith.constant dense<0.000000e+00> : vector<8x8xf32>
    %1271 = tpu.matmul %1268, %1269, %cst_580 {dimension_numbers = #tpu.dot_dimension_numbers<[1], [1], [0], [0], [0, 0, 1, 0], [], []>} : vector<8x8xbf16>, vector<8x8xbf16>, vector<8x8xf32> -> vector<8x8xf32>
    %cst_581 = arith.constant dense<0xFF800000> : vector<8xf32>
    %1272 = vector.multi_reduction <maximumf>, %1271, %cst_581 [1] : vector<8x8xf32> to vector<8xf32>
    %1273 = vector.shape_cast %1272 : vector<8xf32> to vector<8x1xf32>
    %1274 = vector.broadcast %1273 : vector<8x1xf32> to vector<8x8xf32>
    %1275 = arith.subf %1271, %1274 : vector<8x8xf32>
    %1276 = arith.truncf %1275 : vector<8x8xf32> to vector<8x8xbf16>
    %1277 = math.exp %1276 : vector<8x8xbf16>
    %1278 = arith.extf %1277 : vector<8x8xbf16> to vector<8x8xf32>
    %cst_582 = arith.constant dense<0.000000e+00> : vector<8xf32>
    %1279 = vector.multi_reduction <add>, %1278, %cst_582 [1] : vector<8x8xf32> to vector<8xf32>
    %1280 = vector.shape_cast %1279 : vector<8xf32> to vector<8x1xf32>
    %cst_583 = arith.constant dense<0.000000e+00> : vector<8x8xf32>
    %1281 = tpu.matmul %1277, %1270, %cst_583 {dimension_numbers = #tpu.dot_dimension_numbers<[1], [0], [0], [1], [0, 0, 1, 1], [], []>} : vector<8x8xbf16>, vector<8x8xbf16>, vector<8x8xf32> -> vector<8x8xf32>
    %1282 = tpu.reciprocal %1280 {approx = true} : vector<8x1xf32> -> vector<8x1xf32>
    %1283 = vector.broadcast %1282 : vector<8x1xf32> to vector<8x8xf32>
    %1284 = arith.mulf %1281, %1283 : vector<8x8xf32>
    %1285 = vector.extract_strided_slice %1250 {offsets = [0, 0], sizes = [16, 8], strides = [1, 1]} : vector<16x16xf32> to vector<16x8xf32>
    %cst_584 = arith.constant dense<0.000000e+00> : vector<8x16xf32>
    %1286 = tpu.matmul %1284, %1285, %cst_584 {dimension_numbers = #tpu.dot_dimension_numbers<[1], [1], [0], [0], [0, 0, 1, 0], [], []>} : vector<8x8xf32>, vector<16x8xf32>, vector<8x16xf32> -> vector<8x16xf32>
    %1287 = vector.extract_strided_slice %1265 {offsets = [0, 8], sizes = [8, 8], strides = [1, 1]} : vector<8x16xbf16> to vector<8x8xbf16>
    %1288 = vector.extract_strided_slice %1266 {offsets = [0, 8], sizes = [8, 8], strides = [1, 1]} : vector<8x16xbf16> to vector<8x8xbf16>
    %1289 = vector.extract_strided_slice %1267 {offsets = [0, 8], sizes = [8, 8], strides = [1, 1]} : vector<8x16xbf16> to vector<8x8xbf16>
    %cst_585 = arith.constant dense<0.000000e+00> : vector<8x8xf32>
    %1290 = tpu.matmul %1287, %1288, %cst_585 {dimension_numbers = #tpu.dot_dimension_numbers<[1], [1], [0], [0], [0, 0, 1, 0], [], []>} : vector<8x8xbf16>, vector<8x8xbf16>, vector<8x8xf32> -> vector<8x8xf32>
    %cst_586 = arith.constant dense<0xFF800000> : vector<8xf32>
    %1291 = vector.multi_reduction <maximumf>, %1290, %cst_586 [1] : vector<8x8xf32> to vector<8xf32>
    %1292 = vector.shape_cast %1291 : vector<8xf32> to vector<8x1xf32>
    %1293 = vector.broadcast %1292 : vector<8x1xf32> to vector<8x8xf32>
    %1294 = arith.subf %1290, %1293 : vector<8x8xf32>
    %1295 = arith.truncf %1294 : vector<8x8xf32> to vector<8x8xbf16>
    %1296 = math.exp %1295 : vector<8x8xbf16>
    %1297 = arith.extf %1296 : vector<8x8xbf16> to vector<8x8xf32>
    %cst_587 = arith.constant dense<0.000000e+00> : vector<8xf32>
    %1298 = vector.multi_reduction <add>, %1297, %cst_587 [1] : vector<8x8xf32> to vector<8xf32>
    %1299 = vector.shape_cast %1298 : vector<8xf32> to vector<8x1xf32>
    %cst_588 = arith.constant dense<0.000000e+00> : vector<8x8xf32>
    %1300 = tpu.matmul %1296, %1289, %cst_588 {dimension_numbers = #tpu.dot_dimension_numbers<[1], [0], [0], [1], [0, 0, 1, 1], [], []>} : vector<8x8xbf16>, vector<8x8xbf16>, vector<8x8xf32> -> vector<8x8xf32>
    %1301 = tpu.reciprocal %1299 {approx = true} : vector<8x1xf32> -> vector<8x1xf32>
    %1302 = vector.broadcast %1301 : vector<8x1xf32> to vector<8x8xf32>
    %1303 = arith.mulf %1300, %1302 : vector<8x8xf32>
    %1304 = vector.extract_strided_slice %1250 {offsets = [0, 8], sizes = [16, 8], strides = [1, 1]} : vector<16x16xf32> to vector<16x8xf32>
    %cst_589 = arith.constant dense<0.000000e+00> : vector<8x16xf32>
    %1305 = tpu.matmul %1303, %1304, %cst_589 {dimension_numbers = #tpu.dot_dimension_numbers<[1], [1], [0], [0], [0, 0, 1, 0], [], []>} : vector<8x8xf32>, vector<16x8xf32>, vector<8x16xf32> -> vector<8x16xf32>
    %1306 = arith.addf %1286, %1305 : vector<8x16xf32>
    %1307 = vector.broadcast %1252 : vector<1x16xf32> to vector<8x16xf32>
    %1308 = arith.addf %1306, %1307 : vector<8x16xf32>
    %c0_590 = arith.constant 0 : index
    %c0_591 = arith.constant 0 : index
    %1309 = vector.load %arg25[%c0_590, %c0_591] : memref<8x16xf32, #tpu.memory_space<vmem>>, vector<8x16xf32>
    tpu.vector_store %arg25[%c0_590, %c0_591], %1308 {strides = array<i32>} : memref<8x16xf32, #tpu.memory_space<vmem>>, vector<8x16xf32>,
    %c0_592 = arith.constant 0 : index
    %c0_593 = arith.constant 0 : index
    %1310 = vector.load %arg25[%c0_592, %c0_593] : memref<8x16xf32, #tpu.memory_space<vmem>>, vector<8x16xf32>
    %1311 = arith.addf %1244, %1310 : vector<8x16xf32>
    %c5_594 = arith.constant 5 : index
    %c0_595 = arith.constant 0 : index
    %c0_596 = arith.constant 0 : index
    %1312 = vector.load %arg16[%c5_594, %c0_595, %c0_596] : memref<8x1x16xf32, #tpu.memory_space<vmem>>, vector<1x1x16xf32>
    %1313 = vector.shape_cast %1312 : vector<1x1x16xf32> to vector<1x16xf32>
    %c5_597 = arith.constant 5 : index
    %c0_598 = arith.constant 0 : index
    %c0_599 = arith.constant 0 : index
    %1314 = vector.load %arg17[%c5_597, %c0_598, %c0_599] : memref<8x1x16xf32, #tpu.memory_space<vmem>>, vector<1x1x16xf32>
    %1315 = vector.shape_cast %1314 : vector<1x1x16xf32> to vector<1x16xf32>
    %cst_600 = arith.constant dense<0.000000e+00> : vector<8xf32>
    %1316 = vector.multi_reduction <add>, %1311, %cst_600 [1] : vector<8x16xf32> to vector<8xf32>
    %1317 = vector.shape_cast %1316 : vector<8xf32> to vector<8x1xf32>
    %cst_601 = arith.constant 1.600000e+01 : f32
    %1318 = vector.broadcast %cst_601 : f32 to vector<8x1xf32>
    %1319 = arith.divf %1317, %1318 : vector<8x1xf32>
    %1320 = vector.broadcast %1319 : vector<8x1xf32> to vector<8x16xf32>
    %1321 = arith.subf %1311, %1320 : vector<8x16xf32>
    %1322 = arith.mulf %1321, %1321 : vector<8x16xf32>
    %cst_602 = arith.constant dense<0.000000e+00> : vector<8xf32>
    %1323 = vector.multi_reduction <add>, %1322, %cst_602 [1] : vector<8x16xf32> to vector<8xf32>
    %1324 = vector.shape_cast %1323 : vector<8xf32> to vector<8x1xf32>
    %cst_603 = arith.constant 1.600000e+01 : f32
    %1325 = vector.broadcast %cst_603 : f32 to vector<8x1xf32>
    %1326 = arith.divf %1324, %1325 : vector<8x1xf32>
    %cst_604 = arith.constant 9.99999974E-6 : f32
    %1327 = vector.broadcast %cst_604 : f32 to vector<8x1xf32>
    %1328 = arith.addf %1326, %1327 : vector<8x1xf32>
    %1329 = math.rsqrt %1328 : vector<8x1xf32>
    %1330 = vector.broadcast %1329 : vector<8x1xf32> to vector<8x16xf32>
    %1331 = arith.mulf %1321, %1330 : vector<8x16xf32>
    %1332 = vector.broadcast %1313 : vector<1x16xf32> to vector<8x16xf32>
    %1333 = arith.mulf %1331, %1332 : vector<8x16xf32>
    %1334 = vector.broadcast %1315 : vector<1x16xf32> to vector<8x16xf32>
    %1335 = arith.addf %1333, %1334 : vector<8x16xf32>
    %c5_605 = arith.constant 5 : index
    %c0_606 = arith.constant 0 : index
    %c0_607 = arith.constant 0 : index
    %1336 = vector.load %arg10[%c5_605, %c0_606, %c0_607] : memref<8x64x16xf32, #tpu.memory_space<vmem>>, vector<1x64x16xf32>
    %1337 = vector.shape_cast %1336 : vector<1x64x16xf32> to vector<64x16xf32>
    %cst_608 = arith.constant dense<0.000000e+00> : vector<8x64xf32>
    %1338 = tpu.matmul %1335, %1337, %cst_608 {dimension_numbers = #tpu.dot_dimension_numbers<[1], [1], [0], [0], [0, 0, 1, 0], [], []>} : vector<8x16xf32>, vector<64x16xf32>, vector<8x64xf32> -> vector<8x64xf32>
    %c5_609 = arith.constant 5 : index
    %c0_610 = arith.constant 0 : index
    %c0_611 = arith.constant 0 : index
    %1339 = vector.load %arg11[%c5_609, %c0_610, %c0_611] : memref<8x1x64xf32, #tpu.memory_space<vmem>>, vector<1x1x64xf32>
    %1340 = vector.shape_cast %1339 : vector<1x1x64xf32> to vector<1x64xf32>
    %1341 = vector.broadcast %1340 : vector<1x64xf32> to vector<8x64xf32>
    %1342 = arith.addf %1338, %1341 : vector<8x64xf32>
    %cst_612 = arith.constant 5.000000e-01 : f32
    %1343 = vector.broadcast %cst_612 : f32 to vector<8x64xf32>
    %1344 = arith.mulf %1343, %1342 : vector<8x64xf32>
    %cst_613 = arith.constant 4.471500e-02 : f32
    %1345 = vector.broadcast %cst_613 : f32 to vector<8x64xf32>
    %1346 = arith.mulf %1345, %1342 : vector<8x64xf32>
    %1347 = arith.mulf %1346, %1342 : vector<8x64xf32>
    %1348 = arith.mulf %1347, %1342 : vector<8x64xf32>
    %1349 = arith.addf %1342, %1348 : vector<8x64xf32>
    %cst_614 = arith.constant 0.797884583 : f32
    %1350 = vector.broadcast %cst_614 : f32 to vector<8x64xf32>
    %1351 = arith.mulf %1350, %1349 : vector<8x64xf32>
    %1352 = math.tanh %1351 : vector<8x64xf32>
    %cst_615 = arith.constant 1.000000e+00 : f32
    %1353 = vector.broadcast %cst_615 : f32 to vector<8x64xf32>
    %1354 = arith.addf %1353, %1352 : vector<8x64xf32>
    %1355 = arith.mulf %1344, %1354 : vector<8x64xf32>
    %c5_616 = arith.constant 5 : index
    %c0_617 = arith.constant 0 : index
    %c0_618 = arith.constant 0 : index
    %1356 = vector.load %arg12[%c5_616, %c0_617, %c0_618] : memref<8x16x64xf32, #tpu.memory_space<vmem>>, vector<1x16x64xf32>
    %1357 = vector.shape_cast %1356 : vector<1x16x64xf32> to vector<16x64xf32>
    %cst_619 = arith.constant dense<0.000000e+00> : vector<8x16xf32>
    %1358 = tpu.matmul %1355, %1357, %cst_619 {dimension_numbers = #tpu.dot_dimension_numbers<[1], [1], [0], [0], [0, 0, 1, 0], [], []>} : vector<8x64xf32>, vector<16x64xf32>, vector<8x16xf32> -> vector<8x16xf32>
    %c5_620 = arith.constant 5 : index
    %c0_621 = arith.constant 0 : index
    %c0_622 = arith.constant 0 : index
    %1359 = vector.load %arg13[%c5_620, %c0_621, %c0_622] : memref<8x1x16xf32, #tpu.memory_space<vmem>>, vector<1x1x16xf32>
    %1360 = vector.shape_cast %1359 : vector<1x1x16xf32> to vector<1x16xf32>
    %1361 = vector.broadcast %1360 : vector<1x16xf32> to vector<8x16xf32>
    %1362 = arith.addf %1358, %1361 : vector<8x16xf32>
    %1363 = arith.addf %1335, %1362 : vector<8x16xf32>
    %c5_623 = arith.constant 5 : index
    %c0_624 = arith.constant 0 : index
    %c0_625 = arith.constant 0 : index
    %1364 = vector.load %arg18[%c5_623, %c0_624, %c0_625] : memref<8x1x16xf32, #tpu.memory_space<vmem>>, vector<1x1x16xf32>
    %1365 = vector.shape_cast %1364 : vector<1x1x16xf32> to vector<1x16xf32>
    %c5_626 = arith.constant 5 : index
    %c0_627 = arith.constant 0 : index
    %c0_628 = arith.constant 0 : index
    %1366 = vector.load %arg19[%c5_626, %c0_627, %c0_628] : memref<8x1x16xf32, #tpu.memory_space<vmem>>, vector<1x1x16xf32>
    %1367 = vector.shape_cast %1366 : vector<1x1x16xf32> to vector<1x16xf32>
    %cst_629 = arith.constant dense<0.000000e+00> : vector<8xf32>
    %1368 = vector.multi_reduction <add>, %1363, %cst_629 [1] : vector<8x16xf32> to vector<8xf32>
    %1369 = vector.shape_cast %1368 : vector<8xf32> to vector<8x1xf32>
    %cst_630 = arith.constant 1.600000e+01 : f32
    %1370 = vector.broadcast %cst_630 : f32 to vector<8x1xf32>
    %1371 = arith.divf %1369, %1370 : vector<8x1xf32>
    %1372 = vector.broadcast %1371 : vector<8x1xf32> to vector<8x16xf32>
    %1373 = arith.subf %1363, %1372 : vector<8x16xf32>
    %1374 = arith.mulf %1373, %1373 : vector<8x16xf32>
    %cst_631 = arith.constant dense<0.000000e+00> : vector<8xf32>
    %1375 = vector.multi_reduction <add>, %1374, %cst_631 [1] : vector<8x16xf32> to vector<8xf32>
    %1376 = vector.shape_cast %1375 : vector<8xf32> to vector<8x1xf32>
    %cst_632 = arith.constant 1.600000e+01 : f32
    %1377 = vector.broadcast %cst_632 : f32 to vector<8x1xf32>
    %1378 = arith.divf %1376, %1377 : vector<8x1xf32>
    %cst_633 = arith.constant 9.99999974E-6 : f32
    %1379 = vector.broadcast %cst_633 : f32 to vector<8x1xf32>
    %1380 = arith.addf %1378, %1379 : vector<8x1xf32>
    %1381 = math.rsqrt %1380 : vector<8x1xf32>
    %1382 = vector.broadcast %1381 : vector<8x1xf32> to vector<8x16xf32>
    %1383 = arith.mulf %1373, %1382 : vector<8x16xf32>
    %1384 = vector.broadcast %1365 : vector<1x16xf32> to vector<8x16xf32>
    %1385 = arith.mulf %1383, %1384 : vector<8x16xf32>
    %1386 = vector.broadcast %1367 : vector<1x16xf32> to vector<8x16xf32>
    %1387 = arith.addf %1385, %1386 : vector<8x16xf32>
    %c6 = arith.constant 6 : index
    %c0_634 = arith.constant 0 : index
    %c0_635 = arith.constant 0 : index
    %1388 = vector.load %arg2[%c6, %c0_634, %c0_635] : memref<8x48x16xf32, #tpu.memory_space<vmem>>, vector<1x48x16xf32>
    %1389 = vector.shape_cast %1388 : vector<1x48x16xf32> to vector<48x16xf32>
    %c6_636 = arith.constant 6 : index
    %c0_637 = arith.constant 0 : index
    %c0_638 = arith.constant 0 : index
    %1390 = vector.load %arg3[%c6_636, %c0_637, %c0_638] : memref<8x1x48xf32, #tpu.memory_space<vmem>>, vector<1x1x48xf32>
    %1391 = vector.shape_cast %1390 : vector<1x1x48xf32> to vector<1x48xf32>
    %c6_639 = arith.constant 6 : index
    %c0_640 = arith.constant 0 : index
    %c0_641 = arith.constant 0 : index
    %1392 = vector.load %arg4[%c6_639, %c0_640, %c0_641] : memref<8x16x16xf32, #tpu.memory_space<vmem>>, vector<1x16x16xf32>
    %1393 = vector.shape_cast %1392 : vector<1x16x16xf32> to vector<16x16xf32>
    %c6_642 = arith.constant 6 : index
    %c0_643 = arith.constant 0 : index
    %c0_644 = arith.constant 0 : index
    %1394 = vector.load %arg5[%c6_642, %c0_643, %c0_644] : memref<8x1x16xf32, #tpu.memory_space<vmem>>, vector<1x1x16xf32>
    %1395 = vector.shape_cast %1394 : vector<1x1x16xf32> to vector<1x16xf32>
    %cst_645 = arith.constant dense<0.000000e+00> : vector<8x48xf32>
    %1396 = tpu.matmul %1387, %1389, %cst_645 {dimension_numbers = #tpu.dot_dimension_numbers<[1], [1], [0], [0], [0, 0, 1, 0], [], []>} : vector<8x16xf32>, vector<48x16xf32>, vector<8x48xf32> -> vector<8x48xf32>
    %1397 = vector.broadcast %1391 : vector<1x48xf32> to vector<8x48xf32>
    %1398 = arith.addf %1396, %1397 : vector<8x48xf32>
    %1399 = vector.extract_strided_slice %1398 {offsets = [0, 0], sizes = [8, 16], strides = [1, 1]} : vector<8x48xf32> to vector<8x16xf32>
    %1400 = vector.extract_strided_slice %1398 {offsets = [0, 16], sizes = [8, 16], strides = [1, 1]} : vector<8x48xf32> to vector<8x16xf32>
    %1401 = vector.extract_strided_slice %1398 {offsets = [0, 32], sizes = [8, 16], strides = [1, 1]} : vector<8x48xf32> to vector<8x16xf32>
    %1402 = arith.truncf %1399 : vector<8x16xf32> to vector<8x16xbf16>
    %1403 = arith.truncf %1400 : vector<8x16xf32> to vector<8x16xbf16>
    %1404 = arith.truncf %1401 : vector<8x16xf32> to vector<8x16xbf16>
    %1405 = vector.extract_strided_slice %1402 {offsets = [0, 0], sizes = [8, 8], strides = [1, 1]} : vector<8x16xbf16> to vector<8x8xbf16>
    %1406 = vector.extract_strided_slice %1403 {offsets = [0, 0], sizes = [8, 8], strides = [1, 1]} : vector<8x16xbf16> to vector<8x8xbf16>
    %1407 = vector.extract_strided_slice %1404 {offsets = [0, 0], sizes = [8, 8], strides = [1, 1]} : vector<8x16xbf16> to vector<8x8xbf16>
    %cst_646 = arith.constant dense<0.000000e+00> : vector<8x8xf32>
    %1408 = tpu.matmul %1405, %1406, %cst_646 {dimension_numbers = #tpu.dot_dimension_numbers<[1], [1], [0], [0], [0, 0, 1, 0], [], []>} : vector<8x8xbf16>, vector<8x8xbf16>, vector<8x8xf32> -> vector<8x8xf32>
    %1409 = arith.addf %1408, %7 : vector<8x8xf32>
    %cst_647 = arith.constant dense<0xFF800000> : vector<8xf32>
    %1410 = vector.multi_reduction <maximumf>, %1409, %cst_647 [1] : vector<8x8xf32> to vector<8xf32>
    %1411 = vector.shape_cast %1410 : vector<8xf32> to vector<8x1xf32>
    %1412 = vector.broadcast %1411 : vector<8x1xf32> to vector<8x8xf32>
    %1413 = arith.subf %1409, %1412 : vector<8x8xf32>
    %1414 = arith.truncf %1413 : vector<8x8xf32> to vector<8x8xbf16>
    %1415 = math.exp %1414 : vector<8x8xbf16>
    %1416 = arith.extf %1415 : vector<8x8xbf16> to vector<8x8xf32>
    %cst_648 = arith.constant dense<0.000000e+00> : vector<8xf32>
    %1417 = vector.multi_reduction <add>, %1416, %cst_648 [1] : vector<8x8xf32> to vector<8xf32>
    %1418 = vector.shape_cast %1417 : vector<8xf32> to vector<8x1xf32>
    %cst_649 = arith.constant dense<0.000000e+00> : vector<8x8xf32>
    %1419 = tpu.matmul %1415, %1407, %cst_649 {dimension_numbers = #tpu.dot_dimension_numbers<[1], [0], [0], [1], [0, 0, 1, 1], [], []>} : vector<8x8xbf16>, vector<8x8xbf16>, vector<8x8xf32> -> vector<8x8xf32>
    %1420 = tpu.reciprocal %1418 {approx = true} : vector<8x1xf32> -> vector<8x1xf32>
    %1421 = vector.broadcast %1420 : vector<8x1xf32> to vector<8x8xf32>
    %1422 = arith.mulf %1419, %1421 : vector<8x8xf32>
    %1423 = vector.extract_strided_slice %1393 {offsets = [0, 0], sizes = [16, 8], strides = [1, 1]} : vector<16x16xf32> to vector<16x8xf32>
    %cst_650 = arith.constant dense<0.000000e+00> : vector<8x16xf32>
    %1424 = tpu.matmul %1422, %1423, %cst_650 {dimension_numbers = #tpu.dot_dimension_numbers<[1], [1], [0], [0], [0, 0, 1, 0], [], []>} : vector<8x8xf32>, vector<16x8xf32>, vector<8x16xf32> -> vector<8x16xf32>
    %1425 = vector.extract_strided_slice %1402 {offsets = [0, 8], sizes = [8, 8], strides = [1, 1]} : vector<8x16xbf16> to vector<8x8xbf16>
    %1426 = vector.extract_strided_slice %1403 {offsets = [0, 8], sizes = [8, 8], strides = [1, 1]} : vector<8x16xbf16> to vector<8x8xbf16>
    %1427 = vector.extract_strided_slice %1404 {offsets = [0, 8], sizes = [8, 8], strides = [1, 1]} : vector<8x16xbf16> to vector<8x8xbf16>
    %cst_651 = arith.constant dense<0.000000e+00> : vector<8x8xf32>
    %1428 = tpu.matmul %1425, %1426, %cst_651 {dimension_numbers = #tpu.dot_dimension_numbers<[1], [1], [0], [0], [0, 0, 1, 0], [], []>} : vector<8x8xbf16>, vector<8x8xbf16>, vector<8x8xf32> -> vector<8x8xf32>
    %1429 = arith.addf %1428, %7 : vector<8x8xf32>
    %cst_652 = arith.constant dense<0xFF800000> : vector<8xf32>
    %1430 = vector.multi_reduction <maximumf>, %1429, %cst_652 [1] : vector<8x8xf32> to vector<8xf32>
    %1431 = vector.shape_cast %1430 : vector<8xf32> to vector<8x1xf32>
    %1432 = vector.broadcast %1431 : vector<8x1xf32> to vector<8x8xf32>
    %1433 = arith.subf %1429, %1432 : vector<8x8xf32>
    %1434 = arith.truncf %1433 : vector<8x8xf32> to vector<8x8xbf16>
    %1435 = math.exp %1434 : vector<8x8xbf16>
    %1436 = arith.extf %1435 : vector<8x8xbf16> to vector<8x8xf32>
    %cst_653 = arith.constant dense<0.000000e+00> : vector<8xf32>
    %1437 = vector.multi_reduction <add>, %1436, %cst_653 [1] : vector<8x8xf32> to vector<8xf32>
    %1438 = vector.shape_cast %1437 : vector<8xf32> to vector<8x1xf32>
    %cst_654 = arith.constant dense<0.000000e+00> : vector<8x8xf32>
    %1439 = tpu.matmul %1435, %1427, %cst_654 {dimension_numbers = #tpu.dot_dimension_numbers<[1], [0], [0], [1], [0, 0, 1, 1], [], []>} : vector<8x8xbf16>, vector<8x8xbf16>, vector<8x8xf32> -> vector<8x8xf32>
    %1440 = tpu.reciprocal %1438 {approx = true} : vector<8x1xf32> -> vector<8x1xf32>
    %1441 = vector.broadcast %1440 : vector<8x1xf32> to vector<8x8xf32>
    %1442 = arith.mulf %1439, %1441 : vector<8x8xf32>
    %1443 = vector.extract_strided_slice %1393 {offsets = [0, 8], sizes = [16, 8], strides = [1, 1]} : vector<16x16xf32> to vector<16x8xf32>
    %cst_655 = arith.constant dense<0.000000e+00> : vector<8x16xf32>
    %1444 = tpu.matmul %1442, %1443, %cst_655 {dimension_numbers = #tpu.dot_dimension_numbers<[1], [1], [0], [0], [0, 0, 1, 0], [], []>} : vector<8x8xf32>, vector<16x8xf32>, vector<8x16xf32> -> vector<8x16xf32>
    %1445 = arith.addf %1424, %1444 : vector<8x16xf32>
    %1446 = vector.broadcast %1395 : vector<1x16xf32> to vector<8x16xf32>
    %1447 = arith.addf %1445, %1446 : vector<8x16xf32>
    %c0_656 = arith.constant 0 : index
    %c0_657 = arith.constant 0 : index
    %1448 = vector.load %arg25[%c0_656, %c0_657] : memref<8x16xf32, #tpu.memory_space<vmem>>, vector<8x16xf32>
    tpu.vector_store %arg25[%c0_656, %c0_657], %1447 {strides = array<i32>} : memref<8x16xf32, #tpu.memory_space<vmem>>, vector<8x16xf32>,
    %c0_658 = arith.constant 0 : index
    %c0_659 = arith.constant 0 : index
    %1449 = vector.load %arg25[%c0_658, %c0_659] : memref<8x16xf32, #tpu.memory_space<vmem>>, vector<8x16xf32>
    %1450 = arith.addf %1387, %1449 : vector<8x16xf32>
    %c6_660 = arith.constant 6 : index
    %c0_661 = arith.constant 0 : index
    %c0_662 = arith.constant 0 : index
    %1451 = vector.load %arg14[%c6_660, %c0_661, %c0_662] : memref<8x1x16xf32, #tpu.memory_space<vmem>>, vector<1x1x16xf32>
    %1452 = vector.shape_cast %1451 : vector<1x1x16xf32> to vector<1x16xf32>
    %c6_663 = arith.constant 6 : index
    %c0_664 = arith.constant 0 : index
    %c0_665 = arith.constant 0 : index
    %1453 = vector.load %arg15[%c6_663, %c0_664, %c0_665] : memref<8x1x16xf32, #tpu.memory_space<vmem>>, vector<1x1x16xf32>
    %1454 = vector.shape_cast %1453 : vector<1x1x16xf32> to vector<1x16xf32>
    %cst_666 = arith.constant dense<0.000000e+00> : vector<8xf32>
    %1455 = vector.multi_reduction <add>, %1450, %cst_666 [1] : vector<8x16xf32> to vector<8xf32>
    %1456 = vector.shape_cast %1455 : vector<8xf32> to vector<8x1xf32>
    %cst_667 = arith.constant 1.600000e+01 : f32
    %1457 = vector.broadcast %cst_667 : f32 to vector<8x1xf32>
    %1458 = arith.divf %1456, %1457 : vector<8x1xf32>
    %1459 = vector.broadcast %1458 : vector<8x1xf32> to vector<8x16xf32>
    %1460 = arith.subf %1450, %1459 : vector<8x16xf32>
    %1461 = arith.mulf %1460, %1460 : vector<8x16xf32>
    %cst_668 = arith.constant dense<0.000000e+00> : vector<8xf32>
    %1462 = vector.multi_reduction <add>, %1461, %cst_668 [1] : vector<8x16xf32> to vector<8xf32>
    %1463 = vector.shape_cast %1462 : vector<8xf32> to vector<8x1xf32>
    %cst_669 = arith.constant 1.600000e+01 : f32
    %1464 = vector.broadcast %cst_669 : f32 to vector<8x1xf32>
    %1465 = arith.divf %1463, %1464 : vector<8x1xf32>
    %cst_670 = arith.constant 9.99999974E-6 : f32
    %1466 = vector.broadcast %cst_670 : f32 to vector<8x1xf32>
    %1467 = arith.addf %1465, %1466 : vector<8x1xf32>
    %1468 = math.rsqrt %1467 : vector<8x1xf32>
    %1469 = vector.broadcast %1468 : vector<8x1xf32> to vector<8x16xf32>
    %1470 = arith.mulf %1460, %1469 : vector<8x16xf32>
    %1471 = vector.broadcast %1452 : vector<1x16xf32> to vector<8x16xf32>
    %1472 = arith.mulf %1470, %1471 : vector<8x16xf32>
    %1473 = vector.broadcast %1454 : vector<1x16xf32> to vector<8x16xf32>
    %1474 = arith.addf %1472, %1473 : vector<8x16xf32>
    %c6_671 = arith.constant 6 : index
    %c0_672 = arith.constant 0 : index
    %c0_673 = arith.constant 0 : index
    %1475 = vector.load %arg6[%c6_671, %c0_672, %c0_673] : memref<8x48x16xf32, #tpu.memory_space<vmem>>, vector<1x48x16xf32>
    %1476 = vector.shape_cast %1475 : vector<1x48x16xf32> to vector<48x16xf32>
    %c6_674 = arith.constant 6 : index
    %c0_675 = arith.constant 0 : index
    %c0_676 = arith.constant 0 : index
    %1477 = vector.load %arg7[%c6_674, %c0_675, %c0_676] : memref<8x1x48xf32, #tpu.memory_space<vmem>>, vector<1x1x48xf32>
    %1478 = vector.shape_cast %1477 : vector<1x1x48xf32> to vector<1x48xf32>
    %c6_677 = arith.constant 6 : index
    %c0_678 = arith.constant 0 : index
    %c0_679 = arith.constant 0 : index
    %1479 = vector.load %arg8[%c6_677, %c0_678, %c0_679] : memref<8x16x16xf32, #tpu.memory_space<vmem>>, vector<1x16x16xf32>
    %1480 = vector.shape_cast %1479 : vector<1x16x16xf32> to vector<16x16xf32>
    %c6_680 = arith.constant 6 : index
    %c0_681 = arith.constant 0 : index
    %c0_682 = arith.constant 0 : index
    %1481 = vector.load %arg9[%c6_680, %c0_681, %c0_682] : memref<8x1x16xf32, #tpu.memory_space<vmem>>, vector<1x1x16xf32>
    %1482 = vector.shape_cast %1481 : vector<1x1x16xf32> to vector<1x16xf32>
    %1483 = vector.extract_strided_slice %1476 {offsets = [0, 0], sizes = [16, 16], strides = [1, 1]} : vector<48x16xf32> to vector<16x16xf32>
    %cst_683 = arith.constant dense<0.000000e+00> : vector<8x16xf32>
    %1484 = tpu.matmul %1474, %1483, %cst_683 {dimension_numbers = #tpu.dot_dimension_numbers<[1], [1], [0], [0], [0, 0, 1, 0], [], []>} : vector<8x16xf32>, vector<16x16xf32>, vector<8x16xf32> -> vector<8x16xf32>
    %1485 = vector.extract_strided_slice %1478 {offsets = [0, 0], sizes = [1, 16], strides = [1, 1]} : vector<1x48xf32> to vector<1x16xf32>
    %1486 = vector.broadcast %1485 : vector<1x16xf32> to vector<8x16xf32>
    %1487 = arith.addf %1484, %1486 : vector<8x16xf32>
    %1488 = vector.extract_strided_slice %1476 {offsets = [16, 0], sizes = [32, 16], strides = [1, 1]} : vector<48x16xf32> to vector<32x16xf32>
    %cst_684 = arith.constant dense<0.000000e+00> : vector<8x32xf32>
    %1489 = tpu.matmul %1, %1488, %cst_684 {dimension_numbers = #tpu.dot_dimension_numbers<[1], [1], [0], [0], [0, 0, 1, 0], [], []>} : vector<8x16xf32>, vector<32x16xf32>, vector<8x32xf32> -> vector<8x32xf32>
    %1490 = vector.extract_strided_slice %1478 {offsets = [0, 16], sizes = [1, 32], strides = [1, 1]} : vector<1x48xf32> to vector<1x32xf32>
    %1491 = vector.broadcast %1490 : vector<1x32xf32> to vector<8x32xf32>
    %1492 = arith.addf %1489, %1491 : vector<8x32xf32>
    %1493 = vector.extract_strided_slice %1492 {offsets = [0, 0], sizes = [8, 16], strides = [1, 1]} : vector<8x32xf32> to vector<8x16xf32>
    %1494 = vector.extract_strided_slice %1492 {offsets = [0, 16], sizes = [8, 16], strides = [1, 1]} : vector<8x32xf32> to vector<8x16xf32>
    %1495 = arith.truncf %1487 : vector<8x16xf32> to vector<8x16xbf16>
    %1496 = arith.truncf %1493 : vector<8x16xf32> to vector<8x16xbf16>
    %1497 = arith.truncf %1494 : vector<8x16xf32> to vector<8x16xbf16>
    %1498 = vector.extract_strided_slice %1495 {offsets = [0, 0], sizes = [8, 8], strides = [1, 1]} : vector<8x16xbf16> to vector<8x8xbf16>
    %1499 = vector.extract_strided_slice %1496 {offsets = [0, 0], sizes = [8, 8], strides = [1, 1]} : vector<8x16xbf16> to vector<8x8xbf16>
    %1500 = vector.extract_strided_slice %1497 {offsets = [0, 0], sizes = [8, 8], strides = [1, 1]} : vector<8x16xbf16> to vector<8x8xbf16>
    %cst_685 = arith.constant dense<0.000000e+00> : vector<8x8xf32>
    %1501 = tpu.matmul %1498, %1499, %cst_685 {dimension_numbers = #tpu.dot_dimension_numbers<[1], [1], [0], [0], [0, 0, 1, 0], [], []>} : vector<8x8xbf16>, vector<8x8xbf16>, vector<8x8xf32> -> vector<8x8xf32>
    %cst_686 = arith.constant dense<0xFF800000> : vector<8xf32>
    %1502 = vector.multi_reduction <maximumf>, %1501, %cst_686 [1] : vector<8x8xf32> to vector<8xf32>
    %1503 = vector.shape_cast %1502 : vector<8xf32> to vector<8x1xf32>
    %1504 = vector.broadcast %1503 : vector<8x1xf32> to vector<8x8xf32>
    %1505 = arith.subf %1501, %1504 : vector<8x8xf32>
    %1506 = arith.truncf %1505 : vector<8x8xf32> to vector<8x8xbf16>
    %1507 = math.exp %1506 : vector<8x8xbf16>
    %1508 = arith.extf %1507 : vector<8x8xbf16> to vector<8x8xf32>
    %cst_687 = arith.constant dense<0.000000e+00> : vector<8xf32>
    %1509 = vector.multi_reduction <add>, %1508, %cst_687 [1] : vector<8x8xf32> to vector<8xf32>
    %1510 = vector.shape_cast %1509 : vector<8xf32> to vector<8x1xf32>
    %cst_688 = arith.constant dense<0.000000e+00> : vector<8x8xf32>
    %1511 = tpu.matmul %1507, %1500, %cst_688 {dimension_numbers = #tpu.dot_dimension_numbers<[1], [0], [0], [1], [0, 0, 1, 1], [], []>} : vector<8x8xbf16>, vector<8x8xbf16>, vector<8x8xf32> -> vector<8x8xf32>
    %1512 = tpu.reciprocal %1510 {approx = true} : vector<8x1xf32> -> vector<8x1xf32>
    %1513 = vector.broadcast %1512 : vector<8x1xf32> to vector<8x8xf32>
    %1514 = arith.mulf %1511, %1513 : vector<8x8xf32>
    %1515 = vector.extract_strided_slice %1480 {offsets = [0, 0], sizes = [16, 8], strides = [1, 1]} : vector<16x16xf32> to vector<16x8xf32>
    %cst_689 = arith.constant dense<0.000000e+00> : vector<8x16xf32>
    %1516 = tpu.matmul %1514, %1515, %cst_689 {dimension_numbers = #tpu.dot_dimension_numbers<[1], [1], [0], [0], [0, 0, 1, 0], [], []>} : vector<8x8xf32>, vector<16x8xf32>, vector<8x16xf32> -> vector<8x16xf32>
    %1517 = vector.extract_strided_slice %1495 {offsets = [0, 8], sizes = [8, 8], strides = [1, 1]} : vector<8x16xbf16> to vector<8x8xbf16>
    %1518 = vector.extract_strided_slice %1496 {offsets = [0, 8], sizes = [8, 8], strides = [1, 1]} : vector<8x16xbf16> to vector<8x8xbf16>
    %1519 = vector.extract_strided_slice %1497 {offsets = [0, 8], sizes = [8, 8], strides = [1, 1]} : vector<8x16xbf16> to vector<8x8xbf16>
    %cst_690 = arith.constant dense<0.000000e+00> : vector<8x8xf32>
    %1520 = tpu.matmul %1517, %1518, %cst_690 {dimension_numbers = #tpu.dot_dimension_numbers<[1], [1], [0], [0], [0, 0, 1, 0], [], []>} : vector<8x8xbf16>, vector<8x8xbf16>, vector<8x8xf32> -> vector<8x8xf32>
    %cst_691 = arith.constant dense<0xFF800000> : vector<8xf32>
    %1521 = vector.multi_reduction <maximumf>, %1520, %cst_691 [1] : vector<8x8xf32> to vector<8xf32>
    %1522 = vector.shape_cast %1521 : vector<8xf32> to vector<8x1xf32>
    %1523 = vector.broadcast %1522 : vector<8x1xf32> to vector<8x8xf32>
    %1524 = arith.subf %1520, %1523 : vector<8x8xf32>
    %1525 = arith.truncf %1524 : vector<8x8xf32> to vector<8x8xbf16>
    %1526 = math.exp %1525 : vector<8x8xbf16>
    %1527 = arith.extf %1526 : vector<8x8xbf16> to vector<8x8xf32>
    %cst_692 = arith.constant dense<0.000000e+00> : vector<8xf32>
    %1528 = vector.multi_reduction <add>, %1527, %cst_692 [1] : vector<8x8xf32> to vector<8xf32>
    %1529 = vector.shape_cast %1528 : vector<8xf32> to vector<8x1xf32>
    %cst_693 = arith.constant dense<0.000000e+00> : vector<8x8xf32>
    %1530 = tpu.matmul %1526, %1519, %cst_693 {dimension_numbers = #tpu.dot_dimension_numbers<[1], [0], [0], [1], [0, 0, 1, 1], [], []>} : vector<8x8xbf16>, vector<8x8xbf16>, vector<8x8xf32> -> vector<8x8xf32>
    %1531 = tpu.reciprocal %1529 {approx = true} : vector<8x1xf32> -> vector<8x1xf32>
    %1532 = vector.broadcast %1531 : vector<8x1xf32> to vector<8x8xf32>
    %1533 = arith.mulf %1530, %1532 : vector<8x8xf32>
    %1534 = vector.extract_strided_slice %1480 {offsets = [0, 8], sizes = [16, 8], strides = [1, 1]} : vector<16x16xf32> to vector<16x8xf32>
    %cst_694 = arith.constant dense<0.000000e+00> : vector<8x16xf32>
    %1535 = tpu.matmul %1533, %1534, %cst_694 {dimension_numbers = #tpu.dot_dimension_numbers<[1], [1], [0], [0], [0, 0, 1, 0], [], []>} : vector<8x8xf32>, vector<16x8xf32>, vector<8x16xf32> -> vector<8x16xf32>
    %1536 = arith.addf %1516, %1535 : vector<8x16xf32>
    %1537 = vector.broadcast %1482 : vector<1x16xf32> to vector<8x16xf32>
    %1538 = arith.addf %1536, %1537 : vector<8x16xf32>
    %c0_695 = arith.constant 0 : index
    %c0_696 = arith.constant 0 : index
    %1539 = vector.load %arg25[%c0_695, %c0_696] : memref<8x16xf32, #tpu.memory_space<vmem>>, vector<8x16xf32>
    tpu.vector_store %arg25[%c0_695, %c0_696], %1538 {strides = array<i32>} : memref<8x16xf32, #tpu.memory_space<vmem>>, vector<8x16xf32>,
    %c0_697 = arith.constant 0 : index
    %c0_698 = arith.constant 0 : index
    %1540 = vector.load %arg25[%c0_697, %c0_698] : memref<8x16xf32, #tpu.memory_space<vmem>>, vector<8x16xf32>
    %1541 = arith.addf %1474, %1540 : vector<8x16xf32>
    %c6_699 = arith.constant 6 : index
    %c0_700 = arith.constant 0 : index
    %c0_701 = arith.constant 0 : index
    %1542 = vector.load %arg16[%c6_699, %c0_700, %c0_701] : memref<8x1x16xf32, #tpu.memory_space<vmem>>, vector<1x1x16xf32>
    %1543 = vector.shape_cast %1542 : vector<1x1x16xf32> to vector<1x16xf32>
    %c6_702 = arith.constant 6 : index
    %c0_703 = arith.constant 0 : index
    %c0_704 = arith.constant 0 : index
    %1544 = vector.load %arg17[%c6_702, %c0_703, %c0_704] : memref<8x1x16xf32, #tpu.memory_space<vmem>>, vector<1x1x16xf32>
    %1545 = vector.shape_cast %1544 : vector<1x1x16xf32> to vector<1x16xf32>
    %cst_705 = arith.constant dense<0.000000e+00> : vector<8xf32>
    %1546 = vector.multi_reduction <add>, %1541, %cst_705 [1] : vector<8x16xf32> to vector<8xf32>
    %1547 = vector.shape_cast %1546 : vector<8xf32> to vector<8x1xf32>
    %cst_706 = arith.constant 1.600000e+01 : f32
    %1548 = vector.broadcast %cst_706 : f32 to vector<8x1xf32>
    %1549 = arith.divf %1547, %1548 : vector<8x1xf32>
    %1550 = vector.broadcast %1549 : vector<8x1xf32> to vector<8x16xf32>
    %1551 = arith.subf %1541, %1550 : vector<8x16xf32>
    %1552 = arith.mulf %1551, %1551 : vector<8x16xf32>
    %cst_707 = arith.constant dense<0.000000e+00> : vector<8xf32>
    %1553 = vector.multi_reduction <add>, %1552, %cst_707 [1] : vector<8x16xf32> to vector<8xf32>
    %1554 = vector.shape_cast %1553 : vector<8xf32> to vector<8x1xf32>
    %cst_708 = arith.constant 1.600000e+01 : f32
    %1555 = vector.broadcast %cst_708 : f32 to vector<8x1xf32>
    %1556 = arith.divf %1554, %1555 : vector<8x1xf32>
    %cst_709 = arith.constant 9.99999974E-6 : f32
    %1557 = vector.broadcast %cst_709 : f32 to vector<8x1xf32>
    %1558 = arith.addf %1556, %1557 : vector<8x1xf32>
    %1559 = math.rsqrt %1558 : vector<8x1xf32>
    %1560 = vector.broadcast %1559 : vector<8x1xf32> to vector<8x16xf32>
    %1561 = arith.mulf %1551, %1560 : vector<8x16xf32>
    %1562 = vector.broadcast %1543 : vector<1x16xf32> to vector<8x16xf32>
    %1563 = arith.mulf %1561, %1562 : vector<8x16xf32>
    %1564 = vector.broadcast %1545 : vector<1x16xf32> to vector<8x16xf32>
    %1565 = arith.addf %1563, %1564 : vector<8x16xf32>
    %c6_710 = arith.constant 6 : index
    %c0_711 = arith.constant 0 : index
    %c0_712 = arith.constant 0 : index
    %1566 = vector.load %arg10[%c6_710, %c0_711, %c0_712] : memref<8x64x16xf32, #tpu.memory_space<vmem>>, vector<1x64x16xf32>
    %1567 = vector.shape_cast %1566 : vector<1x64x16xf32> to vector<64x16xf32>
    %cst_713 = arith.constant dense<0.000000e+00> : vector<8x64xf32>
    %1568 = tpu.matmul %1565, %1567, %cst_713 {dimension_numbers = #tpu.dot_dimension_numbers<[1], [1], [0], [0], [0, 0, 1, 0], [], []>} : vector<8x16xf32>, vector<64x16xf32>, vector<8x64xf32> -> vector<8x64xf32>
    %c6_714 = arith.constant 6 : index
    %c0_715 = arith.constant 0 : index
    %c0_716 = arith.constant 0 : index
    %1569 = vector.load %arg11[%c6_714, %c0_715, %c0_716] : memref<8x1x64xf32, #tpu.memory_space<vmem>>, vector<1x1x64xf32>
    %1570 = vector.shape_cast %1569 : vector<1x1x64xf32> to vector<1x64xf32>
    %1571 = vector.broadcast %1570 : vector<1x64xf32> to vector<8x64xf32>
    %1572 = arith.addf %1568, %1571 : vector<8x64xf32>
    %cst_717 = arith.constant 5.000000e-01 : f32
    %1573 = vector.broadcast %cst_717 : f32 to vector<8x64xf32>
    %1574 = arith.mulf %1573, %1572 : vector<8x64xf32>
    %cst_718 = arith.constant 4.471500e-02 : f32
    %1575 = vector.broadcast %cst_718 : f32 to vector<8x64xf32>
    %1576 = arith.mulf %1575, %1572 : vector<8x64xf32>
    %1577 = arith.mulf %1576, %1572 : vector<8x64xf32>
    %1578 = arith.mulf %1577, %1572 : vector<8x64xf32>
    %1579 = arith.addf %1572, %1578 : vector<8x64xf32>
    %cst_719 = arith.constant 0.797884583 : f32
    %1580 = vector.broadcast %cst_719 : f32 to vector<8x64xf32>
    %1581 = arith.mulf %1580, %1579 : vector<8x64xf32>
    %1582 = math.tanh %1581 : vector<8x64xf32>
    %cst_720 = arith.constant 1.000000e+00 : f32
    %1583 = vector.broadcast %cst_720 : f32 to vector<8x64xf32>
    %1584 = arith.addf %1583, %1582 : vector<8x64xf32>
    %1585 = arith.mulf %1574, %1584 : vector<8x64xf32>
    %c6_721 = arith.constant 6 : index
    %c0_722 = arith.constant 0 : index
    %c0_723 = arith.constant 0 : index
    %1586 = vector.load %arg12[%c6_721, %c0_722, %c0_723] : memref<8x16x64xf32, #tpu.memory_space<vmem>>, vector<1x16x64xf32>
    %1587 = vector.shape_cast %1586 : vector<1x16x64xf32> to vector<16x64xf32>
    %cst_724 = arith.constant dense<0.000000e+00> : vector<8x16xf32>
    %1588 = tpu.matmul %1585, %1587, %cst_724 {dimension_numbers = #tpu.dot_dimension_numbers<[1], [1], [0], [0], [0, 0, 1, 0], [], []>} : vector<8x64xf32>, vector<16x64xf32>, vector<8x16xf32> -> vector<8x16xf32>
    %c6_725 = arith.constant 6 : index
    %c0_726 = arith.constant 0 : index
    %c0_727 = arith.constant 0 : index
    %1589 = vector.load %arg13[%c6_725, %c0_726, %c0_727] : memref<8x1x16xf32, #tpu.memory_space<vmem>>, vector<1x1x16xf32>
    %1590 = vector.shape_cast %1589 : vector<1x1x16xf32> to vector<1x16xf32>
    %1591 = vector.broadcast %1590 : vector<1x16xf32> to vector<8x16xf32>
    %1592 = arith.addf %1588, %1591 : vector<8x16xf32>
    %1593 = arith.addf %1565, %1592 : vector<8x16xf32>
    %c6_728 = arith.constant 6 : index
    %c0_729 = arith.constant 0 : index
    %c0_730 = arith.constant 0 : index
    %1594 = vector.load %arg18[%c6_728, %c0_729, %c0_730] : memref<8x1x16xf32, #tpu.memory_space<vmem>>, vector<1x1x16xf32>
    %1595 = vector.shape_cast %1594 : vector<1x1x16xf32> to vector<1x16xf32>
    %c6_731 = arith.constant 6 : index
    %c0_732 = arith.constant 0 : index
    %c0_733 = arith.constant 0 : index
    %1596 = vector.load %arg19[%c6_731, %c0_732, %c0_733] : memref<8x1x16xf32, #tpu.memory_space<vmem>>, vector<1x1x16xf32>
    %1597 = vector.shape_cast %1596 : vector<1x1x16xf32> to vector<1x16xf32>
    %cst_734 = arith.constant dense<0.000000e+00> : vector<8xf32>
    %1598 = vector.multi_reduction <add>, %1593, %cst_734 [1] : vector<8x16xf32> to vector<8xf32>
    %1599 = vector.shape_cast %1598 : vector<8xf32> to vector<8x1xf32>
    %cst_735 = arith.constant 1.600000e+01 : f32
    %1600 = vector.broadcast %cst_735 : f32 to vector<8x1xf32>
    %1601 = arith.divf %1599, %1600 : vector<8x1xf32>
    %1602 = vector.broadcast %1601 : vector<8x1xf32> to vector<8x16xf32>
    %1603 = arith.subf %1593, %1602 : vector<8x16xf32>
    %1604 = arith.mulf %1603, %1603 : vector<8x16xf32>
    %cst_736 = arith.constant dense<0.000000e+00> : vector<8xf32>
    %1605 = vector.multi_reduction <add>, %1604, %cst_736 [1] : vector<8x16xf32> to vector<8xf32>
    %1606 = vector.shape_cast %1605 : vector<8xf32> to vector<8x1xf32>
    %cst_737 = arith.constant 1.600000e+01 : f32
    %1607 = vector.broadcast %cst_737 : f32 to vector<8x1xf32>
    %1608 = arith.divf %1606, %1607 : vector<8x1xf32>
    %cst_738 = arith.constant 9.99999974E-6 : f32
    %1609 = vector.broadcast %cst_738 : f32 to vector<8x1xf32>
    %1610 = arith.addf %1608, %1609 : vector<8x1xf32>
    %1611 = math.rsqrt %1610 : vector<8x1xf32>
    %1612 = vector.broadcast %1611 : vector<8x1xf32> to vector<8x16xf32>
    %1613 = arith.mulf %1603, %1612 : vector<8x16xf32>
    %1614 = vector.broadcast %1595 : vector<1x16xf32> to vector<8x16xf32>
    %1615 = arith.mulf %1613, %1614 : vector<8x16xf32>
    %1616 = vector.broadcast %1597 : vector<1x16xf32> to vector<8x16xf32>
    %1617 = arith.addf %1615, %1616 : vector<8x16xf32>
    %c7 = arith.constant 7 : index
    %c0_739 = arith.constant 0 : index
    %c0_740 = arith.constant 0 : index
    %1618 = vector.load %arg2[%c7, %c0_739, %c0_740] : memref<8x48x16xf32, #tpu.memory_space<vmem>>, vector<1x48x16xf32>
    %1619 = vector.shape_cast %1618 : vector<1x48x16xf32> to vector<48x16xf32>
    %c7_741 = arith.constant 7 : index
    %c0_742 = arith.constant 0 : index
    %c0_743 = arith.constant 0 : index
    %1620 = vector.load %arg3[%c7_741, %c0_742, %c0_743] : memref<8x1x48xf32, #tpu.memory_space<vmem>>, vector<1x1x48xf32>
    %1621 = vector.shape_cast %1620 : vector<1x1x48xf32> to vector<1x48xf32>
    %c7_744 = arith.constant 7 : index
    %c0_745 = arith.constant 0 : index
    %c0_746 = arith.constant 0 : index
    %1622 = vector.load %arg4[%c7_744, %c0_745, %c0_746] : memref<8x16x16xf32, #tpu.memory_space<vmem>>, vector<1x16x16xf32>
    %1623 = vector.shape_cast %1622 : vector<1x16x16xf32> to vector<16x16xf32>
    %c7_747 = arith.constant 7 : index
    %c0_748 = arith.constant 0 : index
    %c0_749 = arith.constant 0 : index
    %1624 = vector.load %arg5[%c7_747, %c0_748, %c0_749] : memref<8x1x16xf32, #tpu.memory_space<vmem>>, vector<1x1x16xf32>
    %1625 = vector.shape_cast %1624 : vector<1x1x16xf32> to vector<1x16xf32>
    %cst_750 = arith.constant dense<0.000000e+00> : vector<8x48xf32>
    %1626 = tpu.matmul %1617, %1619, %cst_750 {dimension_numbers = #tpu.dot_dimension_numbers<[1], [1], [0], [0], [0, 0, 1, 0], [], []>} : vector<8x16xf32>, vector<48x16xf32>, vector<8x48xf32> -> vector<8x48xf32>
    %1627 = vector.broadcast %1621 : vector<1x48xf32> to vector<8x48xf32>
    %1628 = arith.addf %1626, %1627 : vector<8x48xf32>
    %1629 = vector.extract_strided_slice %1628 {offsets = [0, 0], sizes = [8, 16], strides = [1, 1]} : vector<8x48xf32> to vector<8x16xf32>
    %1630 = vector.extract_strided_slice %1628 {offsets = [0, 16], sizes = [8, 16], strides = [1, 1]} : vector<8x48xf32> to vector<8x16xf32>
    %1631 = vector.extract_strided_slice %1628 {offsets = [0, 32], sizes = [8, 16], strides = [1, 1]} : vector<8x48xf32> to vector<8x16xf32>
    %1632 = arith.truncf %1629 : vector<8x16xf32> to vector<8x16xbf16>
    %1633 = arith.truncf %1630 : vector<8x16xf32> to vector<8x16xbf16>
    %1634 = arith.truncf %1631 : vector<8x16xf32> to vector<8x16xbf16>
    %1635 = vector.extract_strided_slice %1632 {offsets = [0, 0], sizes = [8, 8], strides = [1, 1]} : vector<8x16xbf16> to vector<8x8xbf16>
    %1636 = vector.extract_strided_slice %1633 {offsets = [0, 0], sizes = [8, 8], strides = [1, 1]} : vector<8x16xbf16> to vector<8x8xbf16>
    %1637 = vector.extract_strided_slice %1634 {offsets = [0, 0], sizes = [8, 8], strides = [1, 1]} : vector<8x16xbf16> to vector<8x8xbf16>
    %cst_751 = arith.constant dense<0.000000e+00> : vector<8x8xf32>
    %1638 = tpu.matmul %1635, %1636, %cst_751 {dimension_numbers = #tpu.dot_dimension_numbers<[1], [1], [0], [0], [0, 0, 1, 0], [], []>} : vector<8x8xbf16>, vector<8x8xbf16>, vector<8x8xf32> -> vector<8x8xf32>
    %1639 = arith.addf %1638, %7 : vector<8x8xf32>
    %cst_752 = arith.constant dense<0xFF800000> : vector<8xf32>
    %1640 = vector.multi_reduction <maximumf>, %1639, %cst_752 [1] : vector<8x8xf32> to vector<8xf32>
    %1641 = vector.shape_cast %1640 : vector<8xf32> to vector<8x1xf32>
    %1642 = vector.broadcast %1641 : vector<8x1xf32> to vector<8x8xf32>
    %1643 = arith.subf %1639, %1642 : vector<8x8xf32>
    %1644 = arith.truncf %1643 : vector<8x8xf32> to vector<8x8xbf16>
    %1645 = math.exp %1644 : vector<8x8xbf16>
    %1646 = arith.extf %1645 : vector<8x8xbf16> to vector<8x8xf32>
    %cst_753 = arith.constant dense<0.000000e+00> : vector<8xf32>
    %1647 = vector.multi_reduction <add>, %1646, %cst_753 [1] : vector<8x8xf32> to vector<8xf32>
    %1648 = vector.shape_cast %1647 : vector<8xf32> to vector<8x1xf32>
    %cst_754 = arith.constant dense<0.000000e+00> : vector<8x8xf32>
    %1649 = tpu.matmul %1645, %1637, %cst_754 {dimension_numbers = #tpu.dot_dimension_numbers<[1], [0], [0], [1], [0, 0, 1, 1], [], []>} : vector<8x8xbf16>, vector<8x8xbf16>, vector<8x8xf32> -> vector<8x8xf32>
    %1650 = tpu.reciprocal %1648 {approx = true} : vector<8x1xf32> -> vector<8x1xf32>
    %1651 = vector.broadcast %1650 : vector<8x1xf32> to vector<8x8xf32>
    %1652 = arith.mulf %1649, %1651 : vector<8x8xf32>
    %1653 = vector.extract_strided_slice %1623 {offsets = [0, 0], sizes = [16, 8], strides = [1, 1]} : vector<16x16xf32> to vector<16x8xf32>
    %cst_755 = arith.constant dense<0.000000e+00> : vector<8x16xf32>
    %1654 = tpu.matmul %1652, %1653, %cst_755 {dimension_numbers = #tpu.dot_dimension_numbers<[1], [1], [0], [0], [0, 0, 1, 0], [], []>} : vector<8x8xf32>, vector<16x8xf32>, vector<8x16xf32> -> vector<8x16xf32>
    %1655 = vector.extract_strided_slice %1632 {offsets = [0, 8], sizes = [8, 8], strides = [1, 1]} : vector<8x16xbf16> to vector<8x8xbf16>
    %1656 = vector.extract_strided_slice %1633 {offsets = [0, 8], sizes = [8, 8], strides = [1, 1]} : vector<8x16xbf16> to vector<8x8xbf16>
    %1657 = vector.extract_strided_slice %1634 {offsets = [0, 8], sizes = [8, 8], strides = [1, 1]} : vector<8x16xbf16> to vector<8x8xbf16>
    %cst_756 = arith.constant dense<0.000000e+00> : vector<8x8xf32>
    %1658 = tpu.matmul %1655, %1656, %cst_756 {dimension_numbers = #tpu.dot_dimension_numbers<[1], [1], [0], [0], [0, 0, 1, 0], [], []>} : vector<8x8xbf16>, vector<8x8xbf16>, vector<8x8xf32> -> vector<8x8xf32>
    %1659 = arith.addf %1658, %7 : vector<8x8xf32>
    %cst_757 = arith.constant dense<0xFF800000> : vector<8xf32>
    %1660 = vector.multi_reduction <maximumf>, %1659, %cst_757 [1] : vector<8x8xf32> to vector<8xf32>
    %1661 = vector.shape_cast %1660 : vector<8xf32> to vector<8x1xf32>
    %1662 = vector.broadcast %1661 : vector<8x1xf32> to vector<8x8xf32>
    %1663 = arith.subf %1659, %1662 : vector<8x8xf32>
    %1664 = arith.truncf %1663 : vector<8x8xf32> to vector<8x8xbf16>
    %1665 = math.exp %1664 : vector<8x8xbf16>
    %1666 = arith.extf %1665 : vector<8x8xbf16> to vector<8x8xf32>
    %cst_758 = arith.constant dense<0.000000e+00> : vector<8xf32>
    %1667 = vector.multi_reduction <add>, %1666, %cst_758 [1] : vector<8x8xf32> to vector<8xf32>
    %1668 = vector.shape_cast %1667 : vector<8xf32> to vector<8x1xf32>
    %cst_759 = arith.constant dense<0.000000e+00> : vector<8x8xf32>
    %1669 = tpu.matmul %1665, %1657, %cst_759 {dimension_numbers = #tpu.dot_dimension_numbers<[1], [0], [0], [1], [0, 0, 1, 1], [], []>} : vector<8x8xbf16>, vector<8x8xbf16>, vector<8x8xf32> -> vector<8x8xf32>
    %1670 = tpu.reciprocal %1668 {approx = true} : vector<8x1xf32> -> vector<8x1xf32>
    %1671 = vector.broadcast %1670 : vector<8x1xf32> to vector<8x8xf32>
    %1672 = arith.mulf %1669, %1671 : vector<8x8xf32>
    %1673 = vector.extract_strided_slice %1623 {offsets = [0, 8], sizes = [16, 8], strides = [1, 1]} : vector<16x16xf32> to vector<16x8xf32>
    %cst_760 = arith.constant dense<0.000000e+00> : vector<8x16xf32>
    %1674 = tpu.matmul %1672, %1673, %cst_760 {dimension_numbers = #tpu.dot_dimension_numbers<[1], [1], [0], [0], [0, 0, 1, 0], [], []>} : vector<8x8xf32>, vector<16x8xf32>, vector<8x16xf32> -> vector<8x16xf32>
    %1675 = arith.addf %1654, %1674 : vector<8x16xf32>
    %1676 = vector.broadcast %1625 : vector<1x16xf32> to vector<8x16xf32>
    %1677 = arith.addf %1675, %1676 : vector<8x16xf32>
    %c0_761 = arith.constant 0 : index
    %c0_762 = arith.constant 0 : index
    %1678 = vector.load %arg25[%c0_761, %c0_762] : memref<8x16xf32, #tpu.memory_space<vmem>>, vector<8x16xf32>
    tpu.vector_store %arg25[%c0_761, %c0_762], %1677 {strides = array<i32>} : memref<8x16xf32, #tpu.memory_space<vmem>>, vector<8x16xf32>,
    %c0_763 = arith.constant 0 : index
    %c0_764 = arith.constant 0 : index
    %1679 = vector.load %arg25[%c0_763, %c0_764] : memref<8x16xf32, #tpu.memory_space<vmem>>, vector<8x16xf32>
    %1680 = arith.addf %1617, %1679 : vector<8x16xf32>
    %c7_765 = arith.constant 7 : index
    %c0_766 = arith.constant 0 : index
    %c0_767 = arith.constant 0 : index
    %1681 = vector.load %arg14[%c7_765, %c0_766, %c0_767] : memref<8x1x16xf32, #tpu.memory_space<vmem>>, vector<1x1x16xf32>
    %1682 = vector.shape_cast %1681 : vector<1x1x16xf32> to vector<1x16xf32>
    %c7_768 = arith.constant 7 : index
    %c0_769 = arith.constant 0 : index
    %c0_770 = arith.constant 0 : index
    %1683 = vector.load %arg15[%c7_768, %c0_769, %c0_770] : memref<8x1x16xf32, #tpu.memory_space<vmem>>, vector<1x1x16xf32>
    %1684 = vector.shape_cast %1683 : vector<1x1x16xf32> to vector<1x16xf32>
    %cst_771 = arith.constant dense<0.000000e+00> : vector<8xf32>
    %1685 = vector.multi_reduction <add>, %1680, %cst_771 [1] : vector<8x16xf32> to vector<8xf32>
    %1686 = vector.shape_cast %1685 : vector<8xf32> to vector<8x1xf32>
    %cst_772 = arith.constant 1.600000e+01 : f32
    %1687 = vector.broadcast %cst_772 : f32 to vector<8x1xf32>
    %1688 = arith.divf %1686, %1687 : vector<8x1xf32>
    %1689 = vector.broadcast %1688 : vector<8x1xf32> to vector<8x16xf32>
    %1690 = arith.subf %1680, %1689 : vector<8x16xf32>
    %1691 = arith.mulf %1690, %1690 : vector<8x16xf32>
    %cst_773 = arith.constant dense<0.000000e+00> : vector<8xf32>
    %1692 = vector.multi_reduction <add>, %1691, %cst_773 [1] : vector<8x16xf32> to vector<8xf32>
    %1693 = vector.shape_cast %1692 : vector<8xf32> to vector<8x1xf32>
    %cst_774 = arith.constant 1.600000e+01 : f32
    %1694 = vector.broadcast %cst_774 : f32 to vector<8x1xf32>
    %1695 = arith.divf %1693, %1694 : vector<8x1xf32>
    %cst_775 = arith.constant 9.99999974E-6 : f32
    %1696 = vector.broadcast %cst_775 : f32 to vector<8x1xf32>
    %1697 = arith.addf %1695, %1696 : vector<8x1xf32>
    %1698 = math.rsqrt %1697 : vector<8x1xf32>
    %1699 = vector.broadcast %1698 : vector<8x1xf32> to vector<8x16xf32>
    %1700 = arith.mulf %1690, %1699 : vector<8x16xf32>
    %1701 = vector.broadcast %1682 : vector<1x16xf32> to vector<8x16xf32>
    %1702 = arith.mulf %1700, %1701 : vector<8x16xf32>
    %1703 = vector.broadcast %1684 : vector<1x16xf32> to vector<8x16xf32>
    %1704 = arith.addf %1702, %1703 : vector<8x16xf32>
    %c7_776 = arith.constant 7 : index
    %c0_777 = arith.constant 0 : index
    %c0_778 = arith.constant 0 : index
    %1705 = vector.load %arg6[%c7_776, %c0_777, %c0_778] : memref<8x48x16xf32, #tpu.memory_space<vmem>>, vector<1x48x16xf32>
    %1706 = vector.shape_cast %1705 : vector<1x48x16xf32> to vector<48x16xf32>
    %c7_779 = arith.constant 7 : index
    %c0_780 = arith.constant 0 : index
    %c0_781 = arith.constant 0 : index
    %1707 = vector.load %arg7[%c7_779, %c0_780, %c0_781] : memref<8x1x48xf32, #tpu.memory_space<vmem>>, vector<1x1x48xf32>
    %1708 = vector.shape_cast %1707 : vector<1x1x48xf32> to vector<1x48xf32>
    %c7_782 = arith.constant 7 : index
    %c0_783 = arith.constant 0 : index
    %c0_784 = arith.constant 0 : index
    %1709 = vector.load %arg8[%c7_782, %c0_783, %c0_784] : memref<8x16x16xf32, #tpu.memory_space<vmem>>, vector<1x16x16xf32>
    %1710 = vector.shape_cast %1709 : vector<1x16x16xf32> to vector<16x16xf32>
    %c7_785 = arith.constant 7 : index
    %c0_786 = arith.constant 0 : index
    %c0_787 = arith.constant 0 : index
    %1711 = vector.load %arg9[%c7_785, %c0_786, %c0_787] : memref<8x1x16xf32, #tpu.memory_space<vmem>>, vector<1x1x16xf32>
    %1712 = vector.shape_cast %1711 : vector<1x1x16xf32> to vector<1x16xf32>
    %1713 = vector.extract_strided_slice %1706 {offsets = [0, 0], sizes = [16, 16], strides = [1, 1]} : vector<48x16xf32> to vector<16x16xf32>
    %cst_788 = arith.constant dense<0.000000e+00> : vector<8x16xf32>
    %1714 = tpu.matmul %1704, %1713, %cst_788 {dimension_numbers = #tpu.dot_dimension_numbers<[1], [1], [0], [0], [0, 0, 1, 0], [], []>} : vector<8x16xf32>, vector<16x16xf32>, vector<8x16xf32> -> vector<8x16xf32>
    %1715 = vector.extract_strided_slice %1708 {offsets = [0, 0], sizes = [1, 16], strides = [1, 1]} : vector<1x48xf32> to vector<1x16xf32>
    %1716 = vector.broadcast %1715 : vector<1x16xf32> to vector<8x16xf32>
    %1717 = arith.addf %1714, %1716 : vector<8x16xf32>
    %1718 = vector.extract_strided_slice %1706 {offsets = [16, 0], sizes = [32, 16], strides = [1, 1]} : vector<48x16xf32> to vector<32x16xf32>
    %cst_789 = arith.constant dense<0.000000e+00> : vector<8x32xf32>
    %1719 = tpu.matmul %1, %1718, %cst_789 {dimension_numbers = #tpu.dot_dimension_numbers<[1], [1], [0], [0], [0, 0, 1, 0], [], []>} : vector<8x16xf32>, vector<32x16xf32>, vector<8x32xf32> -> vector<8x32xf32>
    %1720 = vector.extract_strided_slice %1708 {offsets = [0, 16], sizes = [1, 32], strides = [1, 1]} : vector<1x48xf32> to vector<1x32xf32>
    %1721 = vector.broadcast %1720 : vector<1x32xf32> to vector<8x32xf32>
    %1722 = arith.addf %1719, %1721 : vector<8x32xf32>
    %1723 = vector.extract_strided_slice %1722 {offsets = [0, 0], sizes = [8, 16], strides = [1, 1]} : vector<8x32xf32> to vector<8x16xf32>
    %1724 = vector.extract_strided_slice %1722 {offsets = [0, 16], sizes = [8, 16], strides = [1, 1]} : vector<8x32xf32> to vector<8x16xf32>
    %1725 = arith.truncf %1717 : vector<8x16xf32> to vector<8x16xbf16>
    %1726 = arith.truncf %1723 : vector<8x16xf32> to vector<8x16xbf16>
    %1727 = arith.truncf %1724 : vector<8x16xf32> to vector<8x16xbf16>
    %1728 = vector.extract_strided_slice %1725 {offsets = [0, 0], sizes = [8, 8], strides = [1, 1]} : vector<8x16xbf16> to vector<8x8xbf16>
    %1729 = vector.extract_strided_slice %1726 {offsets = [0, 0], sizes = [8, 8], strides = [1, 1]} : vector<8x16xbf16> to vector<8x8xbf16>
    %1730 = vector.extract_strided_slice %1727 {offsets = [0, 0], sizes = [8, 8], strides = [1, 1]} : vector<8x16xbf16> to vector<8x8xbf16>
    %cst_790 = arith.constant dense<0.000000e+00> : vector<8x8xf32>
    %1731 = tpu.matmul %1728, %1729, %cst_790 {dimension_numbers = #tpu.dot_dimension_numbers<[1], [1], [0], [0], [0, 0, 1, 0], [], []>} : vector<8x8xbf16>, vector<8x8xbf16>, vector<8x8xf32> -> vector<8x8xf32>
    %cst_791 = arith.constant dense<0xFF800000> : vector<8xf32>
    %1732 = vector.multi_reduction <maximumf>, %1731, %cst_791 [1] : vector<8x8xf32> to vector<8xf32>
    %1733 = vector.shape_cast %1732 : vector<8xf32> to vector<8x1xf32>
    %1734 = vector.broadcast %1733 : vector<8x1xf32> to vector<8x8xf32>
    %1735 = arith.subf %1731, %1734 : vector<8x8xf32>
    %1736 = arith.truncf %1735 : vector<8x8xf32> to vector<8x8xbf16>
    %1737 = math.exp %1736 : vector<8x8xbf16>
    %1738 = arith.extf %1737 : vector<8x8xbf16> to vector<8x8xf32>
    %cst_792 = arith.constant dense<0.000000e+00> : vector<8xf32>
    %1739 = vector.multi_reduction <add>, %1738, %cst_792 [1] : vector<8x8xf32> to vector<8xf32>
    %1740 = vector.shape_cast %1739 : vector<8xf32> to vector<8x1xf32>
    %cst_793 = arith.constant dense<0.000000e+00> : vector<8x8xf32>
    %1741 = tpu.matmul %1737, %1730, %cst_793 {dimension_numbers = #tpu.dot_dimension_numbers<[1], [0], [0], [1], [0, 0, 1, 1], [], []>} : vector<8x8xbf16>, vector<8x8xbf16>, vector<8x8xf32> -> vector<8x8xf32>
    %1742 = tpu.reciprocal %1740 {approx = true} : vector<8x1xf32> -> vector<8x1xf32>
    %1743 = vector.broadcast %1742 : vector<8x1xf32> to vector<8x8xf32>
    %1744 = arith.mulf %1741, %1743 : vector<8x8xf32>
    %1745 = vector.extract_strided_slice %1710 {offsets = [0, 0], sizes = [16, 8], strides = [1, 1]} : vector<16x16xf32> to vector<16x8xf32>
    %cst_794 = arith.constant dense<0.000000e+00> : vector<8x16xf32>
    %1746 = tpu.matmul %1744, %1745, %cst_794 {dimension_numbers = #tpu.dot_dimension_numbers<[1], [1], [0], [0], [0, 0, 1, 0], [], []>} : vector<8x8xf32>, vector<16x8xf32>, vector<8x16xf32> -> vector<8x16xf32>
    %1747 = vector.extract_strided_slice %1725 {offsets = [0, 8], sizes = [8, 8], strides = [1, 1]} : vector<8x16xbf16> to vector<8x8xbf16>
    %1748 = vector.extract_strided_slice %1726 {offsets = [0, 8], sizes = [8, 8], strides = [1, 1]} : vector<8x16xbf16> to vector<8x8xbf16>
    %1749 = vector.extract_strided_slice %1727 {offsets = [0, 8], sizes = [8, 8], strides = [1, 1]} : vector<8x16xbf16> to vector<8x8xbf16>
    %cst_795 = arith.constant dense<0.000000e+00> : vector<8x8xf32>
    %1750 = tpu.matmul %1747, %1748, %cst_795 {dimension_numbers = #tpu.dot_dimension_numbers<[1], [1], [0], [0], [0, 0, 1, 0], [], []>} : vector<8x8xbf16>, vector<8x8xbf16>, vector<8x8xf32> -> vector<8x8xf32>
    %cst_796 = arith.constant dense<0xFF800000> : vector<8xf32>
    %1751 = vector.multi_reduction <maximumf>, %1750, %cst_796 [1] : vector<8x8xf32> to vector<8xf32>
    %1752 = vector.shape_cast %1751 : vector<8xf32> to vector<8x1xf32>
    %1753 = vector.broadcast %1752 : vector<8x1xf32> to vector<8x8xf32>
    %1754 = arith.subf %1750, %1753 : vector<8x8xf32>
    %1755 = arith.truncf %1754 : vector<8x8xf32> to vector<8x8xbf16>
    %1756 = math.exp %1755 : vector<8x8xbf16>
    %1757 = arith.extf %1756 : vector<8x8xbf16> to vector<8x8xf32>
    %cst_797 = arith.constant dense<0.000000e+00> : vector<8xf32>
    %1758 = vector.multi_reduction <add>, %1757, %cst_797 [1] : vector<8x8xf32> to vector<8xf32>
    %1759 = vector.shape_cast %1758 : vector<8xf32> to vector<8x1xf32>
    %cst_798 = arith.constant dense<0.000000e+00> : vector<8x8xf32>
    %1760 = tpu.matmul %1756, %1749, %cst_798 {dimension_numbers = #tpu.dot_dimension_numbers<[1], [0], [0], [1], [0, 0, 1, 1], [], []>} : vector<8x8xbf16>, vector<8x8xbf16>, vector<8x8xf32> -> vector<8x8xf32>
    %1761 = tpu.reciprocal %1759 {approx = true} : vector<8x1xf32> -> vector<8x1xf32>
    %1762 = vector.broadcast %1761 : vector<8x1xf32> to vector<8x8xf32>
    %1763 = arith.mulf %1760, %1762 : vector<8x8xf32>
    %1764 = vector.extract_strided_slice %1710 {offsets = [0, 8], sizes = [16, 8], strides = [1, 1]} : vector<16x16xf32> to vector<16x8xf32>
    %cst_799 = arith.constant dense<0.000000e+00> : vector<8x16xf32>
    %1765 = tpu.matmul %1763, %1764, %cst_799 {dimension_numbers = #tpu.dot_dimension_numbers<[1], [1], [0], [0], [0, 0, 1, 0], [], []>} : vector<8x8xf32>, vector<16x8xf32>, vector<8x16xf32> -> vector<8x16xf32>
    %1766 = arith.addf %1746, %1765 : vector<8x16xf32>
    %1767 = vector.broadcast %1712 : vector<1x16xf32> to vector<8x16xf32>
    %1768 = arith.addf %1766, %1767 : vector<8x16xf32>
    %c0_800 = arith.constant 0 : index
    %c0_801 = arith.constant 0 : index
    %1769 = vector.load %arg25[%c0_800, %c0_801] : memref<8x16xf32, #tpu.memory_space<vmem>>, vector<8x16xf32>
    tpu.vector_store %arg25[%c0_800, %c0_801], %1768 {strides = array<i32>} : memref<8x16xf32, #tpu.memory_space<vmem>>, vector<8x16xf32>,
    %c0_802 = arith.constant 0 : index
    %c0_803 = arith.constant 0 : index
    %1770 = vector.load %arg25[%c0_802, %c0_803] : memref<8x16xf32, #tpu.memory_space<vmem>>, vector<8x16xf32>
    %1771 = arith.addf %1704, %1770 : vector<8x16xf32>
    %c7_804 = arith.constant 7 : index
    %c0_805 = arith.constant 0 : index
    %c0_806 = arith.constant 0 : index
    %1772 = vector.load %arg16[%c7_804, %c0_805, %c0_806] : memref<8x1x16xf32, #tpu.memory_space<vmem>>, vector<1x1x16xf32>
    %1773 = vector.shape_cast %1772 : vector<1x1x16xf32> to vector<1x16xf32>
    %c7_807 = arith.constant 7 : index
    %c0_808 = arith.constant 0 : index
    %c0_809 = arith.constant 0 : index
    %1774 = vector.load %arg17[%c7_807, %c0_808, %c0_809] : memref<8x1x16xf32, #tpu.memory_space<vmem>>, vector<1x1x16xf32>
    %1775 = vector.shape_cast %1774 : vector<1x1x16xf32> to vector<1x16xf32>
    %cst_810 = arith.constant dense<0.000000e+00> : vector<8xf32>
    %1776 = vector.multi_reduction <add>, %1771, %cst_810 [1] : vector<8x16xf32> to vector<8xf32>
    %1777 = vector.shape_cast %1776 : vector<8xf32> to vector<8x1xf32>
    %cst_811 = arith.constant 1.600000e+01 : f32
    %1778 = vector.broadcast %cst_811 : f32 to vector<8x1xf32>
    %1779 = arith.divf %1777, %1778 : vector<8x1xf32>
    %1780 = vector.broadcast %1779 : vector<8x1xf32> to vector<8x16xf32>
    %1781 = arith.subf %1771, %1780 : vector<8x16xf32>
    %1782 = arith.mulf %1781, %1781 : vector<8x16xf32>
    %cst_812 = arith.constant dense<0.000000e+00> : vector<8xf32>
    %1783 = vector.multi_reduction <add>, %1782, %cst_812 [1] : vector<8x16xf32> to vector<8xf32>
    %1784 = vector.shape_cast %1783 : vector<8xf32> to vector<8x1xf32>
    %cst_813 = arith.constant 1.600000e+01 : f32
    %1785 = vector.broadcast %cst_813 : f32 to vector<8x1xf32>
    %1786 = arith.divf %1784, %1785 : vector<8x1xf32>
    %cst_814 = arith.constant 9.99999974E-6 : f32
    %1787 = vector.broadcast %cst_814 : f32 to vector<8x1xf32>
    %1788 = arith.addf %1786, %1787 : vector<8x1xf32>
    %1789 = math.rsqrt %1788 : vector<8x1xf32>
    %1790 = vector.broadcast %1789 : vector<8x1xf32> to vector<8x16xf32>
    %1791 = arith.mulf %1781, %1790 : vector<8x16xf32>
    %1792 = vector.broadcast %1773 : vector<1x16xf32> to vector<8x16xf32>
    %1793 = arith.mulf %1791, %1792 : vector<8x16xf32>
    %1794 = vector.broadcast %1775 : vector<1x16xf32> to vector<8x16xf32>
    %1795 = arith.addf %1793, %1794 : vector<8x16xf32>
    %c7_815 = arith.constant 7 : index
    %c0_816 = arith.constant 0 : index
    %c0_817 = arith.constant 0 : index
    %1796 = vector.load %arg10[%c7_815, %c0_816, %c0_817] : memref<8x64x16xf32, #tpu.memory_space<vmem>>, vector<1x64x16xf32>
    %1797 = vector.shape_cast %1796 : vector<1x64x16xf32> to vector<64x16xf32>
    %cst_818 = arith.constant dense<0.000000e+00> : vector<8x64xf32>
    %1798 = tpu.matmul %1795, %1797, %cst_818 {dimension_numbers = #tpu.dot_dimension_numbers<[1], [1], [0], [0], [0, 0, 1, 0], [], []>} : vector<8x16xf32>, vector<64x16xf32>, vector<8x64xf32> -> vector<8x64xf32>
    %c7_819 = arith.constant 7 : index
    %c0_820 = arith.constant 0 : index
    %c0_821 = arith.constant 0 : index
    %1799 = vector.load %arg11[%c7_819, %c0_820, %c0_821] : memref<8x1x64xf32, #tpu.memory_space<vmem>>, vector<1x1x64xf32>
    %1800 = vector.shape_cast %1799 : vector<1x1x64xf32> to vector<1x64xf32>
    %1801 = vector.broadcast %1800 : vector<1x64xf32> to vector<8x64xf32>
    %1802 = arith.addf %1798, %1801 : vector<8x64xf32>
    %cst_822 = arith.constant 5.000000e-01 : f32
    %1803 = vector.broadcast %cst_822 : f32 to vector<8x64xf32>
    %1804 = arith.mulf %1803, %1802 : vector<8x64xf32>
    %cst_823 = arith.constant 4.471500e-02 : f32
    %1805 = vector.broadcast %cst_823 : f32 to vector<8x64xf32>
    %1806 = arith.mulf %1805, %1802 : vector<8x64xf32>
    %1807 = arith.mulf %1806, %1802 : vector<8x64xf32>
    %1808 = arith.mulf %1807, %1802 : vector<8x64xf32>
    %1809 = arith.addf %1802, %1808 : vector<8x64xf32>
    %cst_824 = arith.constant 0.797884583 : f32
    %1810 = vector.broadcast %cst_824 : f32 to vector<8x64xf32>
    %1811 = arith.mulf %1810, %1809 : vector<8x64xf32>
    %1812 = math.tanh %1811 : vector<8x64xf32>
    %cst_825 = arith.constant 1.000000e+00 : f32
    %1813 = vector.broadcast %cst_825 : f32 to vector<8x64xf32>
    %1814 = arith.addf %1813, %1812 : vector<8x64xf32>
    %1815 = arith.mulf %1804, %1814 : vector<8x64xf32>
    %c7_826 = arith.constant 7 : index
    %c0_827 = arith.constant 0 : index
    %c0_828 = arith.constant 0 : index
    %1816 = vector.load %arg12[%c7_826, %c0_827, %c0_828] : memref<8x16x64xf32, #tpu.memory_space<vmem>>, vector<1x16x64xf32>
    %1817 = vector.shape_cast %1816 : vector<1x16x64xf32> to vector<16x64xf32>
    %cst_829 = arith.constant dense<0.000000e+00> : vector<8x16xf32>
    %1818 = tpu.matmul %1815, %1817, %cst_829 {dimension_numbers = #tpu.dot_dimension_numbers<[1], [1], [0], [0], [0, 0, 1, 0], [], []>} : vector<8x64xf32>, vector<16x64xf32>, vector<8x16xf32> -> vector<8x16xf32>
    %c7_830 = arith.constant 7 : index
    %c0_831 = arith.constant 0 : index
    %c0_832 = arith.constant 0 : index
    %1819 = vector.load %arg13[%c7_830, %c0_831, %c0_832] : memref<8x1x16xf32, #tpu.memory_space<vmem>>, vector<1x1x16xf32>
    %1820 = vector.shape_cast %1819 : vector<1x1x16xf32> to vector<1x16xf32>
    %1821 = vector.broadcast %1820 : vector<1x16xf32> to vector<8x16xf32>
    %1822 = arith.addf %1818, %1821 : vector<8x16xf32>
    %1823 = arith.addf %1795, %1822 : vector<8x16xf32>
    %c7_833 = arith.constant 7 : index
    %c0_834 = arith.constant 0 : index
    %c0_835 = arith.constant 0 : index
    %1824 = vector.load %arg18[%c7_833, %c0_834, %c0_835] : memref<8x1x16xf32, #tpu.memory_space<vmem>>, vector<1x1x16xf32>
    %1825 = vector.shape_cast %1824 : vector<1x1x16xf32> to vector<1x16xf32>
    %c7_836 = arith.constant 7 : index
    %c0_837 = arith.constant 0 : index
    %c0_838 = arith.constant 0 : index
    %1826 = vector.load %arg19[%c7_836, %c0_837, %c0_838] : memref<8x1x16xf32, #tpu.memory_space<vmem>>, vector<1x1x16xf32>
    %1827 = vector.shape_cast %1826 : vector<1x1x16xf32> to vector<1x16xf32>
    %cst_839 = arith.constant dense<0.000000e+00> : vector<8xf32>
    %1828 = vector.multi_reduction <add>, %1823, %cst_839 [1] : vector<8x16xf32> to vector<8xf32>
    %1829 = vector.shape_cast %1828 : vector<8xf32> to vector<8x1xf32>
    %cst_840 = arith.constant 1.600000e+01 : f32
    %1830 = vector.broadcast %cst_840 : f32 to vector<8x1xf32>
    %1831 = arith.divf %1829, %1830 : vector<8x1xf32>
    %1832 = vector.broadcast %1831 : vector<8x1xf32> to vector<8x16xf32>
    %1833 = arith.subf %1823, %1832 : vector<8x16xf32>
    %1834 = arith.mulf %1833, %1833 : vector<8x16xf32>
    %cst_841 = arith.constant dense<0.000000e+00> : vector<8xf32>
    %1835 = vector.multi_reduction <add>, %1834, %cst_841 [1] : vector<8x16xf32> to vector<8xf32>
    %1836 = vector.shape_cast %1835 : vector<8xf32> to vector<8x1xf32>
    %cst_842 = arith.constant 1.600000e+01 : f32
    %1837 = vector.broadcast %cst_842 : f32 to vector<8x1xf32>
    %1838 = arith.divf %1836, %1837 : vector<8x1xf32>
    %cst_843 = arith.constant 9.99999974E-6 : f32
    %1839 = vector.broadcast %cst_843 : f32 to vector<8x1xf32>
    %1840 = arith.addf %1838, %1839 : vector<8x1xf32>
    %1841 = math.rsqrt %1840 : vector<8x1xf32>
    %1842 = vector.broadcast %1841 : vector<8x1xf32> to vector<8x16xf32>
    %1843 = arith.mulf %1833, %1842 : vector<8x16xf32>
    %1844 = vector.broadcast %1825 : vector<1x16xf32> to vector<8x16xf32>
    %1845 = arith.mulf %1843, %1844 : vector<8x16xf32>
    %1846 = vector.broadcast %1827 : vector<1x16xf32> to vector<8x16xf32>
    %1847 = arith.addf %1845, %1846 : vector<8x16xf32>
    %c0_844 = arith.constant 0 : index
    %c0_845 = arith.constant 0 : index
    %1848 = vector.load %arg20[%c0_844, %c0_845] : memref<1x16xf32, #tpu.memory_space<vmem>>, vector<1x16xf32>
    %c0_846 = arith.constant 0 : index
    %c0_847 = arith.constant 0 : index
    %1849 = vector.load %arg21[%c0_846, %c0_847] : memref<1x16xf32, #tpu.memory_space<vmem>>, vector<1x16xf32>
    %cst_848 = arith.constant dense<0.000000e+00> : vector<8xf32>
    %1850 = vector.multi_reduction <add>, %1847, %cst_848 [1] : vector<8x16xf32> to vector<8xf32>
    %1851 = vector.shape_cast %1850 : vector<8xf32> to vector<8x1xf32>
    %cst_849 = arith.constant 1.600000e+01 : f32
    %1852 = vector.broadcast %cst_849 : f32 to vector<8x1xf32>
    %1853 = arith.divf %1851, %1852 : vector<8x1xf32>
    %1854 = vector.broadcast %1853 : vector<8x1xf32> to vector<8x16xf32>
    %1855 = arith.subf %1847, %1854 : vector<8x16xf32>
    %1856 = arith.mulf %1855, %1855 : vector<8x16xf32>
    %cst_850 = arith.constant dense<0.000000e+00> : vector<8xf32>
    %1857 = vector.multi_reduction <add>, %1856, %cst_850 [1] : vector<8x16xf32> to vector<8xf32>
    %1858 = vector.shape_cast %1857 : vector<8xf32> to vector<8x1xf32>
    %cst_851 = arith.constant 1.600000e+01 : f32
    %1859 = vector.broadcast %cst_851 : f32 to vector<8x1xf32>
    %1860 = arith.divf %1858, %1859 : vector<8x1xf32>
    %cst_852 = arith.constant 9.99999974E-6 : f32
    %1861 = vector.broadcast %cst_852 : f32 to vector<8x1xf32>
    %1862 = arith.addf %1860, %1861 : vector<8x1xf32>
    %1863 = math.rsqrt %1862 : vector<8x1xf32>
    %1864 = vector.broadcast %1863 : vector<8x1xf32> to vector<8x16xf32>
    %1865 = arith.mulf %1855, %1864 : vector<8x16xf32>
    %1866 = vector.broadcast %1848 : vector<1x16xf32> to vector<8x16xf32>
    %1867 = arith.mulf %1865, %1866 : vector<8x16xf32>
    %1868 = vector.broadcast %1849 : vector<1x16xf32> to vector<8x16xf32>
    %1869 = arith.addf %1867, %1868 : vector<8x16xf32>
    %c0_853 = arith.constant 0 : index
    %c0_854 = arith.constant 0 : index
    %1870 = vector.load %arg22[%c0_853, %c0_854] : memref<16x16xf32, #tpu.memory_space<vmem>>, vector<16x16xf32>
    %cst_855 = arith.constant dense<0.000000e+00> : vector<16x8xf32>
    %1871 = tpu.matmul %1870, %1869, %cst_855 {dimension_numbers = #tpu.dot_dimension_numbers<[1], [1], [0], [0], [0, 0, 1, 0], [], []>} : vector<16x16xf32>, vector<8x16xf32>, vector<16x8xf32> -> vector<16x8xf32>
    %c0_856 = arith.constant 0 : index
    %c0_857 = arith.constant 0 : index
    %1872 = vector.load %arg23[%c0_856, %c0_857] : memref<16x1xf32, #tpu.memory_space<vmem>>, vector<16x1xf32>
    %1873 = vector.broadcast %1872 : vector<16x1xf32> to vector<16x8xf32>
    %1874 = arith.addf %1871, %1873 : vector<16x8xf32>
    %c0_858 = arith.constant 0 : index
    %c0_859 = arith.constant 0 : index
    %c0_860 = arith.constant 0 : index
    %1875 = vector.load %arg24[%c0_858, %c0_859, %c0_860] : memref<1x16x8xf32, #tpu.memory_space<vmem>>, vector<1x16x8xf32>
    %1876 = vector.shape_cast %1875 : vector<1x16x8xf32> to vector<16x8xf32>
    %1877 = vector.shape_cast %1874 : vector<16x8xf32> to vector<1x16x8xf32>
    tpu.vector_store %arg24[%c0_858, %c0_859, %c0_860], %1877 {strides = array<i32>} : memref<1x16x8xf32, #tpu.memory_space<vmem>>, vector<1x16x8xf32>,
    return
  }
  func.func @transform_0(%arg0: i32) -> (i32, i32, i32) {
    %c0_i32 = arith.constant 0 : i32
    %c0_i32_0 = arith.constant 0 : i32
    %c0_i32_1 = arith.constant 0 : i32
    return %arg0, %c0_i32, %c0_i32_0 : i32, i32, i32
  }
  func.func @transform_1(%arg0: i32) -> (i32, i32, i32) {
    %c0_i32 = arith.constant 0 : i32
    %c0_i32_0 = arith.constant 0 : i32
    %c0_i32_1 = arith.constant 0 : i32
    %c0_i32_2 = arith.constant 0 : i32
    return %c0_i32, %c0_i32_0, %c0_i32_1 : i32, i32, i32
  }
  func.func @transform_2(%arg0: i32) -> (i32, i32, i32) {
    %c0_i32 = arith.constant 0 : i32
    %c0_i32_0 = arith.constant 0 : i32
    %c0_i32_1 = arith.constant 0 : i32
    %c0_i32_2 = arith.constant 0 : i32
    return %c0_i32, %c0_i32_0, %c0_i32_1 : i32, i32, i32
  }
  func.func @transform_3(%arg0: i32) -> (i32, i32, i32) {
    %c0_i32 = arith.constant 0 : i32
    %c0_i32_0 = arith.constant 0 : i32
    %c0_i32_1 = arith.constant 0 : i32
    %c0_i32_2 = arith.constant 0 : i32
    return %c0_i32, %c0_i32_0, %c0_i32_1 : i32, i32, i32
  }
  func.func @transform_4(%arg0: i32) -> (i32, i32, i32) {
    %c0_i32 = arith.constant 0 : i32
    %c0_i32_0 = arith.constant 0 : i32
    %c0_i32_1 = arith.constant 0 : i32
    %c0_i32_2 = arith.constant 0 : i32
    return %c0_i32, %c0_i32_0, %c0_i32_1 : i32, i32, i32
  }
  func.func @transform_5(%arg0: i32) -> (i32, i32, i32) {
    %c0_i32 = arith.constant 0 : i32
    %c0_i32_0 = arith.constant 0 : i32
    %c0_i32_1 = arith.constant 0 : i32
    %c0_i32_2 = arith.constant 0 : i32
    return %c0_i32, %c0_i32_0, %c0_i32_1 : i32, i32, i32
  }
  func.func @transform_6(%arg0: i32) -> (i32, i32, i32) {
    %c0_i32 = arith.constant 0 : i32
    %c0_i32_0 = arith.constant 0 : i32
    %c0_i32_1 = arith.constant 0 : i32
    %c0_i32_2 = arith.constant 0 : i32
    return %c0_i32, %c0_i32_0, %c0_i32_1 : i32, i32, i32
  }
  func.func @transform_7(%arg0: i32) -> (i32, i32, i32) {
    %c0_i32 = arith.constant 0 : i32
    %c0_i32_0 = arith.constant 0 : i32
    %c0_i32_1 = arith.constant 0 : i32
    %c0_i32_2 = arith.constant 0 : i32
    return %c0_i32, %c0_i32_0, %c0_i32_1 : i32, i32, i32
  }
  func.func @transform_8(%arg0: i32) -> (i32, i32, i32) {
    %c0_i32 = arith.constant 0 : i32
    %c0_i32_0 = arith.constant 0 : i32
    %c0_i32_1 = arith.constant 0 : i32
    %c0_i32_2 = arith.constant 0 : i32
    return %c0_i32, %c0_i32_0, %c0_i32_1 : i32, i32, i32
  }
  func.func @transform_9(%arg0: i32) -> (i32, i32, i32) {
    %c0_i32 = arith.constant 0 : i32
    %c0_i32_0 = arith.constant 0 : i32
    %c0_i32_1 = arith.constant 0 : i32
    %c0_i32_2 = arith.constant 0 : i32
    return %c0_i32, %c0_i32_0, %c0_i32_1 : i32, i32, i32
  }
  func.func @transform_10(%arg0: i32) -> (i32, i32, i32) {
    %c0_i32 = arith.constant 0 : i32
    %c0_i32_0 = arith.constant 0 : i32
    %c0_i32_1 = arith.constant 0 : i32
    %c0_i32_2 = arith.constant 0 : i32
    return %c0_i32, %c0_i32_0, %c0_i32_1 : i32, i32, i32
  }
  func.func @transform_11(%arg0: i32) -> (i32, i32, i32) {
    %c0_i32 = arith.constant 0 : i32
    %c0_i32_0 = arith.constant 0 : i32
    %c0_i32_1 = arith.constant 0 : i32
    %c0_i32_2 = arith.constant 0 : i32
    return %c0_i32, %c0_i32_0, %c0_i32_1 : i32, i32, i32
  }
  func.func @transform_12(%arg0: i32) -> (i32, i32, i32) {
    %c0_i32 = arith.constant 0 : i32
    %c0_i32_0 = arith.constant 0 : i32
    %c0_i32_1 = arith.constant 0 : i32
    %c0_i32_2 = arith.constant 0 : i32
    return %c0_i32, %c0_i32_0, %c0_i32_1 : i32, i32, i32
  }
  func.func @transform_13(%arg0: i32) -> (i32, i32, i32) {
    %c0_i32 = arith.constant 0 : i32
    %c0_i32_0 = arith.constant 0 : i32
    %c0_i32_1 = arith.constant 0 : i32
    %c0_i32_2 = arith.constant 0 : i32
    return %c0_i32, %c0_i32_0, %c0_i32_1 : i32, i32, i32
  }
  func.func @transform_14(%arg0: i32) -> (i32, i32, i32) {
    %c0_i32 = arith.constant 0 : i32
    %c0_i32_0 = arith.constant 0 : i32
    %c0_i32_1 = arith.constant 0 : i32
    %c0_i32_2 = arith.constant 0 : i32
    return %c0_i32, %c0_i32_0, %c0_i32_1 : i32, i32, i32
  }
  func.func @transform_15(%arg0: i32) -> (i32, i32, i32) {
    %c0_i32 = arith.constant 0 : i32
    %c0_i32_0 = arith.constant 0 : i32
    %c0_i32_1 = arith.constant 0 : i32
    %c0_i32_2 = arith.constant 0 : i32
    return %c0_i32, %c0_i32_0, %c0_i32_1 : i32, i32, i32
  }
  func.func @transform_16(%arg0: i32) -> (i32, i32, i32) {
    %c0_i32 = arith.constant 0 : i32
    %c0_i32_0 = arith.constant 0 : i32
    %c0_i32_1 = arith.constant 0 : i32
    %c0_i32_2 = arith.constant 0 : i32
    return %c0_i32, %c0_i32_0, %c0_i32_1 : i32, i32, i32
  }
  func.func @transform_17(%arg0: i32) -> (i32, i32, i32) {
    %c0_i32 = arith.constant 0 : i32
    %c0_i32_0 = arith.constant 0 : i32
    %c0_i32_1 = arith.constant 0 : i32
    %c0_i32_2 = arith.constant 0 : i32
    return %c0_i32, %c0_i32_0, %c0_i32_1 : i32, i32, i32
  }
  func.func @transform_18(%arg0: i32) -> (i32, i32, i32) {
    %c0_i32 = arith.constant 0 : i32
    %c0_i32_0 = arith.constant 0 : i32
    %c0_i32_1 = arith.constant 0 : i32
    %c0_i32_2 = arith.constant 0 : i32
    return %c0_i32, %c0_i32_0, %c0_i32_1 : i32, i32, i32
  }
  func.func @transform_19(%arg0: i32) -> (i32, i32) {
    %c0_i32 = arith.constant 0 : i32
    %c0_i32_0 = arith.constant 0 : i32
    %c0_i32_1 = arith.constant 0 : i32
    return %c0_i32, %c0_i32_0 : i32, i32
  }
  func.func @transform_20(%arg0: i32) -> (i32, i32) {
    %c0_i32 = arith.constant 0 : i32
    %c0_i32_0 = arith.constant 0 : i32
    %c0_i32_1 = arith.constant 0 : i32
    return %c0_i32, %c0_i32_0 : i32, i32
  }
  func.func @transform_21(%arg0: i32) -> (i32, i32) {
    %c0_i32 = arith.constant 0 : i32
    %c0_i32_0 = arith.constant 0 : i32
    %c0_i32_1 = arith.constant 0 : i32
    return %c0_i32, %c0_i32_0 : i32, i32
  }
  func.func @transform_22(%arg0: i32) -> (i32, i32) {
    %c0_i32 = arith.constant 0 : i32
    %c0_i32_0 = arith.constant 0 : i32
    %c0_i32_1 = arith.constant 0 : i32
    return %c0_i32, %c0_i32_0 : i32, i32
  }
  func.func @transform_23(%arg0: i32) -> (i32, i32, i32) {
    %c0_i32 = arith.constant 0 : i32
    %c0_i32_0 = arith.constant 0 : i32
    %c0_i32_1 = arith.constant 0 : i32
    return %arg0, %c0_i32, %c0_i32_0 : i32, i32, i32
  }
}

</mosaic_0001>

<bundles_post_ra>
// kernel: tpu_custom_call.1
= control target key start
LH: loop header
LB: loop body
LE: loop exit
PB: predicated region body
PF: predicated region fallthrough
CT: control target
= control target key end

     0   :  { %s17403_s0 = inlined_call_operand.vmem [shape: f32[2,8,16], index: 0, kind: input, shape index: {}]   ;;  %s17404_s1 = inlined_call_operand.vmem [shape: f32[8,48,16], index: 1, kind: input, shape index: {}]   ;;  %s17405_s2 = inlined_call_operand.vmem [shape: f32[8,1,48], index: 2, kind: input, shape index: {}]   ;;  %s17406_s3 = inlined_call_operand.vmem [shape: f32[8,16,16], index: 3, kind: input, shape index: {}]   ;;  %s17407_s4 = inlined_call_operand.vmem [shape: f32[8,1,16], index: 4, kind: input, shape index: {}]   ;;  %s17408_s5 = inlined_call_operand.vmem [shape: f32[8,48,16], index: 5, kind: input, shape index: {}]   ;;  %s17409_s6 = inlined_call_operand.vmem [shape: f32[8,1,48], index: 6, kind: input, shape index: {}]   ;;  %s17410_s7 = inlined_call_operand.vmem [shape: f32[8,16,16], index: 7, kind: input, shape index: {}]   ;;  %s17411_s8 = inlined_call_operand.vmem [shape: f32[8,1,16], index: 8, kind: input, shape index: {}]   ;;  %s17412_s9 = inlined_call_operand.vmem [shape: f32[8,64,16], index: 9, kind: input, shape index: {}]   ;;  %s17413_s10 = inlined_call_operand.vmem [shape: f32[8,1,64], index: 10, kind: input, shape index: {}]   ;;  %s17414_s11 = inlined_call_operand.vmem [shape: f32[8,16,64], index: 11, kind: input, shape index: {}]   ;;  %s17415_s12 = inlined_call_operand.vmem [shape: f32[8,1,16], index: 12, kind: input, shape index: {}]   ;;  %s17416_s13 = inlined_call_operand.vmem [shape: f32[8,1,16], index: 13, kind: input, shape index: {}]   ;;  %s17417_s14 = inlined_call_operand.vmem [shape: f32[8,1,16], index: 14, kind: input, shape index: {}]   ;;  %s17418_s15 = inlined_call_operand.vmem [shape: f32[8,1,16], index: 15, kind: input, shape index: {}]   ;;  %s17419_s16 = inlined_call_operand.vmem [shape: f32[8,1,16], index: 16, kind: input, shape index: {}]   ;;  %s17420_s17 = inlined_call_operand.vmem [shape: f32[8,1,16], index: 17, kind: input, shape index: {}]   ;;  %s17421_s18 = inlined_call_operand.vmem [shape: f32[8,1,16], index: 18, kind: input, shape index: {}]   ;;  %s17422_s19 = inlined_call_operand.vmem [shape: f32[1,16], index: 19, kind: input, shape index: {}]   ;;  %s17423_s20 = inlined_call_operand.vmem [shape: f32[1,16], index: 20, kind: input, shape index: {}]   ;;  %s17424_s21 = inlined_call_operand.vmem [shape: f32[16,16], index: 21, kind: input, shape index: {}]   ;;  %s17425_s22 = inlined_call_operand.vmem [shape: f32[16,1], index: 22, kind: input, shape index: {}]   ;;  %s17426_s23 = inlined_call_operand.vmem [shape: f32[2,16,8], index: 23, kind: output, shape index: {}]  }
   0x1   :  { %17453 = sst [smem:[#allocation6_spill]] %s17403_s0 }
   0x2   :  { %17454 = sst [smem:[#allocation7_spill]] %s17404_s1 }
   0x3   :  { %17455 = sst [smem:[#allocation8_spill]] %s17405_s2 }
   0x4   :  { %17456 = sst [smem:[#allocation9_spill]] %s17406_s3 }
   0x5   :  { %17457 = sst [smem:[#allocation10_spill]] %s17407_s4  ;;  %s15204_s4 = smov 0  }
   0x6   :  { %17458 = sst [smem:[#allocation11_spill]] %s17408_s5 }
   0x7   :  { %17459 = sst [smem:[#allocation12_spill]] %s17409_s6 }
   0x8   :  { %17460 = sst [smem:[#allocation13_spill]] %s17410_s7 }
   0x9   :  { %17461 = sst [smem:[#allocation14_spill]] %s17422_s19 }
   0xa   :  { %17462 = sst [smem:[#allocation15_spill]] %s17423_s20 }
   0xb   :  { %17463 = sst [smem:[#allocation16_spill]] %s17424_s21 }
   0xc   :  { %17464 = sst [smem:[#allocation17_spill]] %s17425_s22 }
   0xd   :  { %17465 = sst [smem:[#allocation18_spill]] %s17426_s23 }
   0xe LB: > { %17466 = sst [smem:[#allocation3_spill]] %s15072_s4  ;;  %s12007_s30 = sadd.s32 4294967295, %s15072_s4   ;;  %s15072_s4 = sphi %s15204_s4, %s33_s4  }
   0xf   : > { %p12011_p0 = scmp.ge.s32.totalorder %s15072_s4, 1  ;;  %p636_p1 = scmp.lt.s32.totalorder %s15072_s4, 3 }
  0x11   : > { %p637_p2 = pnand %p12011_p0, %p636_p1 }
  0x13   : > { %640 = sbr.rel (%p637_p2) target bundleno = 30191 (0x75ef), region = 112 }
  0x1a   : > { %s17467_s5 = sld [smem:[#allocation7_spill]]  ;;  %vm732_vm0 = vcmask 130048   ;;  %v15074_v2 = vmov 0.0|0.0   ;;  %vm15075_vm2 = vmmov 0   ;;  %v15076_v5 = vmov 0.0   ;;  %p699_p3 = scmp.lt.s32.totalorder %s12007_s30, 1 }
  0x1b   : > { %14289 = vmatprep.subr.bf16.mxu0 %v15074_v2  ;;  %vm15221_vm1 = vmpackc.low %vm732_vm0, %vm732_vm0  ;;  %13216 = vmatprep.mubr.msk.f32.mxu0 %vm15075_vm2, %v15076_v5  ;;  %s17471_s26 = sld [smem:[#allocation6_spill]]  ;;  %s17473_s7 = sld [smem:[#allocation8_spill]]  ;;  %vm828_vm3 = vcmask 64512   ;;  %v710_v23 = vlaneseq  ;;  %v15080_v26 = vmov -1e+30   ;;  %vm892_vm5 = vcmask 1043456  }
  0x1c   : > { %13219 = vmatprep.subr.bf16.mxu1 %v15076_v5  ;;  %13221 = vmatprep.mubr.msk.bf16.mxu1 %vm15075_vm2, %v15076_v5  ;;  %s17503_s30 = smov (!%p699_p3, %s12007_s30), 1  ;;  %s17440_s28 = smov 120   ;;  %vm15310_vm6 = vmpackc.low %vm828_vm3, %vm828_vm3  ;;  %vm1983_vm7 = vcmask 523264   ;;  %v12718_v61 = vld [vmem:[%s17411_s8 + $0x7] ss:$0 sm:$0xff]  ;;  %v12742_v4 = vld [vmem:[%s17414_s11 + $0x70] sm:$0xff] }
  0x1d   : > { %17470 = sst [smem:[#allocation4_spill]] %s17503_s30  ;;  %s12012_s24 = sshll.u32 %s17503_s30, 3  ;;  %v711_v24 = vshrl.u32 %v710_v23, 7  ;;  %v713_v25 = vand.u32 127, %v710_v23  ;;  %vm15488_vm8 = vmpackc.low %vm1983_vm7, %vm1983_vm7 }
  0x1e   : > { %s17442_s29 = smov 112   ;;  %s17438_s3 = smov 104  }
  0x1f   : > { %vm714_vm4 = vcmp.le.s32.totalorder %v713_v25, %v711_v24  ;;  %s17434_s0 = smov 88   ;;  %s17477_s6 = sld [smem:[#allocation10_spill]] }
  0x20   : > { %v716_v0 = vld [vmem:[%s17467_s5] sm:$0xff]  ;;  %v717_v1 = vld [vmem:[%s17467_s5 + $0x8] sm:$0xff]  ;;  %v718_v6 = vld [vmem:[%s17467_s5 + $0x10] sm:$0xff]  ;;  %v15282_v27 = vsel %vm714_vm4, 0.0, %v15080_v26  ;;  %s17479_s1 = sld [smem:[#allocation12_spill]]  ;;  %s17481_s25 = smov 120  }
  0x21   : > { %v14290_v3 = vpack.c.bf16 %v717_v1, %v716_v0  ;;  %v719_v7 = vld [vmem:[%s17467_s5 + $0x18] sm:$0xff]  ;;  %v720_v9 = vld [vmem:[%s17467_s5 + $0x20] sm:$0xff]  ;;  %v721_v10 = vld [vmem:[%s17467_s5 + $0x28] sm:$0xff]  ;;  %s15256_s2 = scalar_lea.vmem %s17471_s26, %s12012_s24  ;;  %s17436_s24 = smov 96  }
  0x22   : > { %v14294_v8 = vpack.c.bf16 %v719_v7, %v718_v6  ;;  %v14298_v11 = vpack.c.bf16 %v721_v10, %v720_v9  ;;  %17472 = sst [smem:[#allocation5_spill]] %s15256_s2  ;;  %v15260_v12 = vld [vmem:[%s15256_s2] sm:$0xff]  ;;  %s17474_s26 = sld [smem:[#allocation9_spill]] }
  0x23   : > { %14292 = vmatpush3.bf16.xpose.msk.msra.mxu0 %vm15221_vm1, %v14290_v3  ;;  %v12015_v13 = vld [vmem:[%s17473_s7] ss:$0 sm:$0xff]  ;;  %s17486_s23 = smov 96   ;;  %s17487_s4 = smov 88  }
  0x24   : > { %14293 = vmatprep.subr.bf16.mxu0 %v15074_v2  ;;  %s17488_s19 = sld [smem:[#allocation5_spill]]  ;;  %s17489_s20 = sld [smem:[#allocation10_spill]] }
  0x25   : > { %v12033_v23 = vld [vmem:[%s17477_s6] ss:$0 sm:$0xff]  ;;  %s17492_s22 = sld [smem:[#allocation5_spill]]  ;;  %s17493_s2 = sld [smem:[#allocation10_spill]] }
  0x26   : > { %s17496_s21 = sld [smem:[#allocation17_spill]]  ;;  %s17498_s30 = sld [smem:[#allocation14_spill]] }
  0x28   : > { %v723_v58 = vld [vmem:[%s17474_s26] sm:$0xff]  ;;  %v724_v59 = vld [vmem:[%s17474_s26 + $0x8] sm:$0xff] }
  0x29   : > { %v14306_v60 = vpack.c.bf16 %v724_v59, %v723_v58  ;;  %v14787_v62 = vpack.i.bf16 %v724_v59, %v723_v58 }
  0x2b   : > { %14296 = vmatpush3.bf16.xpose.msk.msra.mxu0 %vm15221_vm1, %v14294_v8 }
  0x2c   : > { %14297 = vmatprep.subr.bf16.mxu0 %v15074_v2 }
  0x33   : > { %14300 = vmatpush3.bf16.xpose.msk.msra.mxu0 %vm15221_vm1, %v14298_v11 }
  0x34   : > { %13225 = vmatprep.subr.bf16.mxu0 %v15076_v5 }
  0x3a   : > { %13217 = vmatmul.mubr.msk.f32.vlgmr.msra.gmra.mrb[0].mxu0 %vm732_vm0, %v15260_v12 }
  0x3b   : > { %13227 = vmatprep.mubr.msk.bf16.mxu0 %vm15075_vm2, %v15076_v5 }
 0x10d   : > { %v820_v14 = vpop.f32.mrb[0].mxu0 }
 0x10e   : > { %v821_v15 = vadd.f32 %v12015_v13, %v820_v14  ;;  %v13218_v16 = vpop.f32.mrb[1].mxu0 }
 0x110   : > { %v824_v17 = vpack.c.bf16 %v821_v15, %v821_v15 }
 0x112   : > { %938 = vrot.lane.b32.xlu1 %v824_v17, %s17440_s28  ;;  %826 = vrot.lane.b32.xlu0 %v824_v17, %s17442_s29  ;;  %s17490_s29 = sld [smem:[#allocation5_spill]] }
 0x116   : > { %940 = vrot.lane.b32.xlu0 %v824_v17, %s17438_s3  ;;  %s17483_s3 = sld [smem:[#allocation13_spill]] }
 0x184   : > { %v827_v18 = vpop.permute.xlu0 %826  ;;  %v939_v22 = vpop.permute.xlu1 %938 }
 0x185   : > { %v833_v19 = vsel %vm828_vm3, %v827_v18, 0 }
 0x186   : > { %13220 = vmatpush3.bf16.xpose.msra.mxu1 %v833_v19 }
 0x187   : > { %13231 = vmatprep.subr.bf16.mxu1 %v15076_v5 }
 0x188   : > { %v941_v20 = vpop.permute.xlu0 %940 }
 0x189   : > { %v946_v21 = vsel %vm828_vm3, %v941_v20, 0 }
 0x18d   : > { %13222 = vmatmul.mubr.msk.bf16.vlgmr.msra.gmra.mrb[0].mxu1 %vm828_vm3, %v824_v17 }
 0x18e   : > { %13232 = vmatpush3.bf16.xpose.msra.mxu1 %v946_v21  ;;  %13233 = vmatprep.mubr.msk.bf16.mxu1 %vm15075_vm2, %v15076_v5 }
 0x18f   : > { %14301 = vmatprep.subr.bf16.mxu1 %v15074_v2 }
 0x195   : > { %13234 = vmatmul.mubr.msk.bf16.vlgmr.msra.gmra.mrb[4].mxu1 %vm828_vm3, %v939_v22 }
 0x196   : > { %13247 = vmatprep.mubr.msk.f32.mxu1 %vm15075_vm2, %v15076_v5 }
 0x260   : > { %v869_v28 = vpop.f32.mrb[0].mxu1 }
 0x261   : > { %v870_v29 = vadd.f32 %v869_v28, %v15282_v27  ;;  %v13223_v30 = vpop.f32.mrb[1].mxu1 }
 0x262   : > { %v872_v31 = vpop.f32.mrb[2].mxu1 }
 0x263   : > { %v13224_v32 = vpop.f32.mrb[3].mxu1  ;;  %v875_v33 = vsel %vm828_vm3, %v870_v29, -inf }
 0x264   : > { %876 = vmax.xlane.f32.xlu1 %v875_v33 }
 0x268   : > { %v982_v34 = vpop.f32.mrb[4].mxu1 }
 0x269   : > { %v983_v35 = vadd.f32 %v982_v34, %v15282_v27  ;;  %v13235_v36 = vpop.f32.mrb[5].mxu1 }
 0x26a   : > { %v985_v37 = vpop.f32.mrb[6].mxu1 }
 0x26b   : > { %v13236_v38 = vpop.f32.mrb[7].mxu1  ;;  %v988_v39 = vsel %vm828_vm3, %v983_v35, -inf }
 0x26c   : > { %989 = vmax.xlane.f32.xlu0 %v988_v39 }
 0x275   : > { %1000 = vrot.lane.b32.xlu1 %v824_v17, %s17434_s0  ;;  %s17482_s0 = smov 104  }
 0x282   : > { %887 = vrot.lane.b32.xlu0 %v824_v17, %s17436_s24  ;;  %s17478_s24 = sld [smem:[#allocation11_spill]] }
 0x288   : > { %v1252_v32 = vld [vmem:[%s17478_s24 + $0x10] sm:$0xff]  ;;  %v1253_v33 = vld [vmem:[%s17478_s24 + $0x18] sm:$0xff] }
 0x289   : > { %v14314_v34 = vpack.c.bf16 %v1253_v33, %v1252_v32 }
 0x2f1   : > { %v877_v40 = vpop.xlane.xlu1 %876 }
 0x2f2   : > { %v878_v41 = vsub.f32 %v870_v29, %v877_v40  ;;  %v1254_v40 = vld [vmem:[%s17478_s24 + $0x20] sm:$0xff] }
 0x2f4   : > { %v879_v42 = vpack.c.bf16 %v878_v41, %v878_v41  ;;  %v1255_v41 = vld [vmem:[%s17478_s24 + $0x28] sm:$0xff] }
 0x2f5   : > { %v1001_v50 = vpop.permute.xlu1 %1000 }
 0x2f6   : > { %v881_v43 = vmul.bf16 1069105081, %v879_v42  ;;  %v1006_v52 = vsel %vm892_vm5, %v1001_v50, 0  ;;  %v14318_v42 = vpack.c.bf16 %v1255_v41, %v1254_v40 }
 0x2f8   : > { %14869 = vpow.bf16 %v881_v43  ;;  %v1250_v43 = vld [vmem:[%s17478_s24] sm:$0xff] }
 0x2f9   : > { %v990_v44 = vpop.xlane.xlu0 %989 }
 0x2fa   : > { %v991_v45 = vsub.f32 %v983_v35, %v990_v44  ;;  %v1251_v44 = vld [vmem:[%s17478_s24 + $0x8] sm:$0xff] }
 0x2fc   : > { %v992_v46 = vpack.c.bf16 %v991_v45, %v991_v45  ;;  %v14310_v45 = vpack.c.bf16 %v1251_v44, %v1250_v43 }
 0x2fd   : > { %v888_v47 = vpop.permute.xlu0 %887 }
 0x2fe   : > { %v994_v48 = vmul.bf16 1069105081, %v992_v46  ;;  %v894_v49 = vsel %vm892_vm5, %v888_v47, 0  ;;  %v12036_v46 = vld [vmem:[%s17479_s1] ss:$0 sm:$0xff] }
 0x2ff   : > { %13226 = vmatpush3.bf16.msra.mxu0 %v894_v49 }
 0x300   : > { %14871 = vpow.bf16 %v994_v48  ;;  %13237 = vmatprep.subr.bf16.mxu0 %v15076_v5 }
 0x303   : > { %v14870_v51 = vpop.eup %14869 }
 0x304   : > { %13228 = vmatmul.mubr.msk.bf16.vlgmr.msra.gmra.mrb[4].mxu0 %vm828_vm3, %v14870_v51  ;;  %v883_v53 = vunpack.c.l.bf16 %v14870_v51  ;;  %v12034_v51 = vld [vmem:[%s17416_s13] ss:$0 sm:$0xff] }
 0x305   : > { %13238 = vmatpush3.bf16.msra.mxu0 %v1006_v52  ;;  %13239 = vmatprep.mubr.msk.bf16.mxu0 %vm15075_vm2, %v15076_v5 }
 0x306   : > { %v884_v54 = vsel %vm828_vm3, %v883_v53, 0.0  ;;  %14305 = vmatprep.subr.bf16.mxu0 %v15074_v2  ;;  %v12035_v53 = vld [vmem:[%s17417_s14] ss:$0 sm:$0xff] }
 0x307   : > { %885 = vadd.xlane.f32.xlu1 %v884_v54 }
 0x30b   : > { %v14872_v55 = vpop.eup %14871 }
 0x30c   : > { %13240 = vmatmul.mubr.msk.bf16.vlgmr.msra.gmra.mrb[8].mxu0 %vm828_vm3, %v14872_v55  ;;  %v996_v56 = vunpack.c.l.bf16 %v14872_v55 }
 0x30d   : > { %13254 = vmatprep.mubr.msk.f32.mxu0 %vm15075_vm2, %v15076_v5 }
 0x30e   : > { %v997_v57 = vsel %vm828_vm3, %v996_v56, 0.0  ;;  %14308 = vmatpush3.bf16.xpose.msk.msra.mxu0 %vm15310_vm6, %v14306_v60 }
 0x30f   : > { %998 = vadd.xlane.f32.xlu0 %v997_v57  ;;  %14313 = vmatprep.subr.bf16.mxu0 %v15074_v2 }
 0x325   : > { %14788 = vrot.lane.b32.xlu0 %v14787_v62, %s17440_s28  ;;  %s17480_s28 = smov 112  }
 0x394   : > { %v886_v7 = vpop.xlane.xlu1 %885 }
 0x395   : > { %14873 = vrcp.f32 %v886_v7 }
 0x39c   : > { %v999_v63 = vpop.xlane.xlu0 %998 }
 0x39d   : > { %14875 = vrcp.f32 %v999_v63 }
 0x39f   : > { %v14874_v8 = vpop.eup %14873 }
 0x3a0   : > { %v14789_v0 = vpop.permute.xlu0 %14788 }
 0x3a1   : > { %v14791_v1 = vunpack.i.h.bf16 %v14789_v0  ;;  %v14790_v3 = vunpack.i.l.bf16 %v14789_v0 }
 0x3a3   : > { %v14302_v6 = vpack.c.bf16 %v14791_v1, %v14790_v3 }
 0x3a5   : > { %14304 = vmatpush3.bf16.xpose.msk.msra.mxu1 %vm15310_vm6, %v14302_v6 }
 0x3a6   : > { %14309 = vmatprep.subr.bf16.mxu1 %v15074_v2 }
 0x3a7   : > { %v14876_v15 = vpop.eup %14875 }
 0x3d7   : > { %v930_v9 = vpop.f32.mrb[4].mxu0 }
 0x3d8   : > { %v937_v10 = vmul.f32 %v14874_v8, %v930_v9  ;;  %v13229_v11 = vpop.f32.mrb[5].mxu0 }
 0x3d9   : > { %v933_v13 = vpop.f32.mrb[6].mxu0 }
 0x3da   : > { %v13230_v14 = vpop.f32.mrb[7].mxu0  ;;  %13255 = vmatmul.mubr.msk.f32.vlgmr.msra.gmra.mrb[2].mxu0 %vm828_vm3, %v937_v10 }
 0x3db   : > { %13272 = vmatprep.mubr.msk.f32.mxu0 %vm15075_vm2, %v15076_v5  ;;  %14316 = vmatpush3.bf16.xpose.msk.msra.mxu0 %vm15221_vm1, %v14314_v34 }
 0x3dc   : > { %14317 = vmatprep.subr.bf16.mxu0 %v15074_v2 }
 0x3df   : > { %v1042_v16 = vpop.f32.mrb[8].mxu0 }
 0x3e0   : > { %v1049_v17 = vmul.f32 %v14876_v15, %v1042_v16  ;;  %v13241_v18 = vpop.f32.mrb[9].mxu0 }
 0x3e1   : > { %v1045_v19 = vpop.f32.mrb[10].mxu0 }
 0x3e2   : > { %v13242_v20 = vpop.f32.mrb[11].mxu0  ;;  %13248 = vmatmul.mubr.msk.f32.vlgmr.msra.gmra.mrb[8].mxu1 %vm828_vm3, %v1049_v17 }
 0x3e3   : > { %13261 = vmatprep.mubr.msk.f32.mxu1 %vm15075_vm2, %v15076_v5  ;;  %14320 = vmatpush3.bf16.xpose.msk.msra.mxu0 %vm15221_vm1, %v14318_v42 }
 0x3e4   : > { %13281 = vmatprep.subr.bf16.mxu0 %v15076_v5  ;;  %14312 = vmatpush3.bf16.xpose.msk.msra.mxu1 %vm15221_vm1, %v14310_v45 }
 0x3e5   : > { %13275 = vmatprep.subr.bf16.mxu1 %v15076_v5 }
 0x3ea   : > { %13273 = vmatmul.mubr.msk.f32.vlgmr.msra.gmra.mrb[12].mxu0 %vm732_vm0, %v15260_v12 }
 0x3eb   : > { %13283 = vmatprep.mubr.msk.bf16.mxu0 %vm15075_vm2, %v15076_v5 }
 0x4ad   : > { %v1206_v21 = vpop.f32.mrb[2].mxu0 }
 0x4ae   : > { %v13256_v22 = vpop.f32.mrb[3].mxu0 }
 0x4b5   : > { %v1129_v24 = vpop.f32.mrb[8].mxu1 }
 0x4b6   : > { %v1207_v25 = vadd.f32 %v1206_v21, %v1129_v24  ;;  %v13249_v26 = vpop.f32.mrb[9].mxu1 }
 0x4b8   : > { %v1216_v28 = vadd.f32 %v12033_v23, %v1207_v25 }
 0x4ba   : > { %1217 = vst.msk [vmem:[#allocation2] sm:$0xff] %vm732_vm0, %v1216_v28 }
 0x4bd   : > { %v1426_v57 = vpop.f32.mrb[12].mxu0 }
 0x4be   : > { %v13274_v59 = vpop.f32.mrb[13].mxu0 }
 0x4c1   : > { %v1218_v29 = vld [vmem:[#allocation2] sm:$0xff] }
 0x4c2   : > { %v1219_v30 = vadd.f32 %v1218_v29, %v15260_v12 }
 0x4c4   : > { %v1222_v31 = vsel %vm732_vm0, %v1219_v30, 0.0 }
 0x4c5   : > { %1223 = vadd.xlane.f32.xlu1 %v1222_v31 }
 0x552   : > { %v1224_v35 = vpop.xlane.xlu1 %1223 }
 0x553   : > { %v1226_v36 = vmul.f32 0.0625, %v1224_v35 }
 0x555   : > { %v1227_v37 = vsub.f32 %v1219_v30, %v1226_v36  ;;  %v1257_v36 = vld [vmem:[%s17483_s3] sm:$0xff] }
 0x557   : > { %v1228_v38 = vmul.f32 %v1227_v37, %v1227_v37 }
 0x559   : > { %v1229_v39 = vsel %vm732_vm0, %v1228_v38, 0.0 }
 0x55a   : > { %1230 = vadd.xlane.f32.xlu1 %v1229_v39 }
 0x56b   : > { %1345 = vrot.lane.b32.xlu1 %v12036_v46, %s17480_s28 }
 0x5e7   : > { %v1231_v47 = vpop.xlane.xlu1 %1230 }
 0x5e8   : > { %v1232_v48 = vmul.f32 0.0625, %v1231_v47 }
 0x5ea   : > { %v1233_v49 = vadd.f32 1e-05, %v1232_v48 }
 0x5eb   : > { %v1346_v56 = vpop.permute.xlu1 %1345 }
 0x5ec   : > { %14877 = vrsqrt.f32 %v1233_v49  ;;  %v1427_v58 = vadd.f32 %v1426_v57, %v1346_v56 }
 0x5ee   : > { %v1431_v60 = vpack.c.bf16 %v1427_v58, %v1427_v58 }
 0x5f0   : > { %1544 = vrot.lane.b32.xlu0 %v1431_v60, %s17481_s25  ;;  %v1436_v62 = vsel %vm828_vm3, %v1431_v60, 0 }
 0x5f6   : > { %v14878_v50 = vpop.eup %14877 }
 0x5f7   : > { %v1235_v52 = vmul.f32 %v14878_v50, %v1227_v37  ;;  %v1258_v37 = vld [vmem:[%s17483_s3 + $0x8] sm:$0xff] }
 0x5f8   : > { %v14326_v38 = vpack.c.bf16 %v1258_v37, %v1257_v36  ;;  %v14792_v42 = vpack.i.bf16 %v1258_v37, %v1257_v36  ;;  %v12057_v36 = vld [vmem:[%s17419_s16] ss:$0 sm:$0xff] }
 0x5f9   : > { %v1242_v54 = vmul.f32 %v12034_v51, %v1235_v52 }
 0x5fb   : > { %v15375_v55 = vadd.f32 %v12035_v53, %v1242_v54 }
 0x5fd   : > { %13262 = vmatmul.mubr.msk.f32.vlgmr.msra.gmra.mrb[10].mxu1 %vm732_vm0, %v15375_v55 }
 0x5fe   : > { %13277 = vmatprep.mubr.msk.bf16.mxu1 %vm15075_vm2, %v15076_v5  ;;  %13276 = vmatpush3.bf16.xpose.msra.mxu1 %v1436_v62 }
 0x5ff   : > { %13287 = vmatprep.subr.bf16.mxu1 %v15076_v5 }
 0x662   : > { %v1545_v0 = vpop.permute.xlu0 %1544 }
 0x663   : > { %v1550_v7 = vsel %vm828_vm3, %v1545_v0, 0 }
 0x6d0   : > { %v1341_v63 = vpop.f32.mrb[10].mxu1 }
 0x6d1   : > { %v1342_v1 = vadd.f32 %v12036_v46, %v1341_v63  ;;  %v13263_v3 = vpop.f32.mrb[11].mxu1 }
 0x6d3   : > { %v1430_v6 = vpack.c.bf16 %v1342_v1, %v1342_v1  ;;  %v12055_v1 = vld [vmem:[%s17411_s8] ss:$0 sm:$0xff] }
 0x6d5   : > { %1542 = vrot.lane.b32.xlu0 %v1430_v6, %s17481_s25  ;;  %13278 = vmatmul.mubr.msk.bf16.vlgmr.msra.gmra.mrb[12].mxu1 %vm828_vm3, %v1430_v6 }
 0x6d6   : > { %13288 = vmatpush3.bf16.xpose.msra.mxu1 %v1550_v7  ;;  %13289 = vmatprep.mubr.msk.bf16.mxu1 %vm15075_vm2, %v15076_v5 }
 0x6d7   : > { %14321 = vmatprep.subr.bf16.mxu1 %v15074_v2 }
 0x747   : > { %v1543_v8 = vpop.permute.xlu0 %1542 }
 0x748   : > { %13290 = vmatmul.mubr.msk.bf16.vlgmr.msra.gmra.mrb[16].mxu1 %vm828_vm3, %v1543_v8 }
 0x749   : > { %13303 = vmatprep.mubr.msk.f32.mxu1 %vm15075_vm2, %v15076_v5 }
 0x7a8   : > { %v1472_v9 = vpop.f32.mrb[12].mxu1 }
 0x7a9   : > { %v13279_v10 = vpop.f32.mrb[13].mxu1  ;;  %v1478_v11 = vsel %vm828_vm3, %v1472_v9, -inf }
 0x7aa   : > { %1479 = vmax.xlane.f32.xlu1 %v1478_v11  ;;  %v1475_v13 = vpop.f32.mrb[14].mxu1 }
 0x7ab   : > { %v13280_v14 = vpop.f32.mrb[15].mxu1  ;;  %v1853_v13 = vld [vmem:[%s17412_s9] sm:$0xff] }
 0x7ac   : > { %v1854_v14 = vld [vmem:[%s17412_s9 + $0x8] sm:$0xff] }
 0x7bb   : > { %1604 = vrot.lane.b32.xlu1 %v1431_v60, %s17482_s0 }
 0x81b   : > { %v1586_v15 = vpop.f32.mrb[16].mxu1 }
 0x81c   : > { %v13291_v16 = vpop.f32.mrb[17].mxu1  ;;  %v1592_v17 = vsel %vm828_vm3, %v1586_v15, -inf }
 0x81d   : > { %1593 = vmax.xlane.f32.xlu0 %v1592_v17  ;;  %v1589_v18 = vpop.f32.mrb[18].mxu1  ;;  %v1856_v16 = vld [vmem:[%s17412_s9 + $0x18] sm:$0xff] }
 0x81e   : > { %v13292_v19 = vpop.f32.mrb[19].mxu1 }
 0x833   : > { %1491 = vrot.lane.b32.xlu0 %v1431_v60, %s17480_s28 }
 0x837   : > { %v1480_v20 = vpop.xlane.xlu1 %1479 }
 0x838   : > { %v1481_v21 = vsub.f32 %v1472_v9, %v1480_v20 }
 0x83a   : > { %v1482_v22 = vpack.c.bf16 %v1481_v21, %v1481_v21 }
 0x83b   : > { %v1605_v34 = vpop.permute.xlu1 %1604 }
 0x83c   : > { %v1484_v23 = vmul.bf16 1069105081, %v1482_v22  ;;  %v1610_v35 = vsel %vm892_vm5, %v1605_v34, 0  ;;  %v12056_v34 = vld [vmem:[%s17418_s15] ss:$0 sm:$0xff] }
 0x83e   : > { %14879 = vpow.bf16 %v1484_v23  ;;  %v1857_v23 = vld [vmem:[%s17412_s9 + $0x20] sm:$0xff] }
 0x849   : > { %v14880_v24 = vpop.eup %14879 }
 0x84a   : > { %v1486_v25 = vunpack.c.l.bf16 %v14880_v24 }
 0x84c   : > { %v1487_v26 = vsel %vm828_vm3, %v1486_v25, 0.0 }
 0x84d   : > { %1488 = vadd.xlane.f32.xlu1 %v1487_v26  ;;  %v1859_v26 = vld [vmem:[%s17412_s9 + $0x30] sm:$0xff] }
 0x8aa   : > { %v1594_v28 = vpop.xlane.xlu0 %1593 }
 0x8ab   : > { %v1595_v29 = vsub.f32 %v1586_v15, %v1594_v28  ;;  %v14330_v15 = vpack.c.bf16 %v1854_v14, %v1853_v13  ;;  %v1860_v28 = vld [vmem:[%s17412_s9 + $0x38] sm:$0xff]  ;;  %v12077_v13 = vld [vmem:[%s17467_s5 + $0x48] sm:$0xff] }
 0x8ad   : > { %v1596_v30 = vpack.c.bf16 %v1595_v29, %v1595_v29  ;;  %v14342_v29 = vpack.c.bf16 %v1860_v28, %v1859_v26  ;;  %v12084_v26 = vld [vmem:[%s17473_s7 + $0x1] ss:$0 sm:$0xff] }
 0x8ae   : > { %v1492_v31 = vpop.permute.xlu0 %1491 }
 0x8af   : > { %v1598_v32 = vmul.bf16 1069105081, %v1596_v30  ;;  %v1497_v33 = vsel %vm892_vm5, %v1492_v31, 0 }
 0x8b0   : > { %13282 = vmatpush3.bf16.msra.mxu0 %v1497_v33 }
 0x8b1   : > { %14881 = vpow.bf16 %v1598_v32  ;;  %13293 = vmatprep.subr.bf16.mxu0 %v15076_v5 }
 0x8b3   : > { %13284 = vmatmul.mubr.msk.bf16.vlgmr.msra.gmra.mrb[16].mxu0 %vm828_vm3, %v14880_v24  ;;  %v1858_v24 = vld [vmem:[%s17412_s9 + $0x28] sm:$0xff] }
 0x8b4   : > { %13294 = vmatpush3.bf16.msra.mxu0 %v1610_v35  ;;  %13295 = vmatprep.mubr.msk.bf16.mxu0 %vm15075_vm2, %v15076_v5  ;;  %v14338_v25 = vpack.c.bf16 %v1858_v24, %v1857_v23  ;;  %v12073_v23 = vld [vmem:[%s17421_s18] ss:$0 sm:$0xff] }
 0x8b5   : > { %14325 = vmatprep.subr.bf16.mxu0 %v15074_v2 }
 0x8bc   : > { %v14882_v39 = vpop.eup %14881 }
 0x8bd   : > { %13296 = vmatmul.mubr.msk.bf16.vlgmr.msra.gmra.mrb[20].mxu0 %vm828_vm3, %v14882_v39  ;;  %v1600_v40 = vunpack.c.l.bf16 %v14882_v39  ;;  %v1974_v39 = vld [vmem:[%s17414_s11] sm:$0xff] }
 0x8be   : > { %14328 = vmatpush3.bf16.xpose.msk.msra.mxu0 %vm15310_vm6, %v14326_v38  ;;  %13310 = vmatprep.mubr.msk.f32.mxu0 %vm15075_vm2, %v15076_v5 }
 0x8bf   : > { %v1601_v41 = vsel %vm828_vm3, %v1600_v40, 0.0  ;;  %14345 = vmatprep.subr.bf16.mxu0 %v15074_v2  ;;  %v1975_v40 = vld [vmem:[%s17414_s11 + $0x8] sm:$0xff] }
 0x8c0   : > { %1602 = vadd.xlane.f32.xlu0 %v1601_v41  ;;  %v14346_v41 = vpack.c.bf16 %v1975_v40, %v1974_v39 }
 0x8d6   : > { %14793 = vrot.lane.b32.xlu0 %v14792_v42, %s17481_s25  ;;  %v12745_v42 = vld [vmem:[%s17415_s12 + $0x7] ss:$0 sm:$0xff] }
 0x8da   : > { %v1489_v48 = vpop.xlane.xlu1 %1488 }
 0x8db   : > { %14883 = vrcp.f32 %v1489_v48 }
 0x8e5   : > { %v14884_v49 = vpop.eup %14883 }
 0x94d   : > { %v1603_v43 = vpop.xlane.xlu0 %1602 }
 0x94e   : > { %14885 = vrcp.f32 %v1603_v43  ;;  %v12058_v43 = vld [vmem:[%s17413_s10] ss:$0 sm:$0xff] }
 0x951   : > { %v14794_v44 = vpop.permute.xlu0 %14793 }
 0x952   : > { %v14796_v45 = vunpack.i.h.bf16 %v14794_v44  ;;  %v14795_v46 = vunpack.i.l.bf16 %v14794_v44 }
 0x954   : > { %v14322_v47 = vpack.c.bf16 %v14796_v45, %v14795_v46 }
 0x956   : > { %14324 = vmatpush3.bf16.xpose.msk.msra.mxu1 %vm15310_vm6, %v14322_v47 }
 0x957   : > { %14329 = vmatprep.subr.bf16.mxu1 %v15074_v2 }
 0x958   : > { %v14886_v56 = vpop.eup %14885 }
 0x986   : > { %v1533_v50 = vpop.f32.mrb[16].mxu0 }
 0x987   : > { %v1540_v51 = vmul.f32 %v14884_v49, %v1533_v50  ;;  %v13285_v52 = vpop.f32.mrb[17].mxu0 }
 0x988   : > { %v1536_v53 = vpop.f32.mrb[18].mxu0 }
 0x989   : > { %v13286_v54 = vpop.f32.mrb[19].mxu0  ;;  %13311 = vmatmul.mubr.msk.f32.vlgmr.msra.gmra.mrb[14].mxu0 %vm828_vm3, %v1540_v51 }
 0x98a   : > { %13336 = vmatprep.mubr.msk.f32.mxu0 %vm15075_vm2, %v15076_v5  ;;  %14348 = vmatpush3.bf16.xpose.msk.msra.mxu0 %vm15488_vm8, %v14346_v41 }
 0x98b   : > { %14349 = vmatprep.subr.bf16.mxu0 %v15074_v2 }
 0x990   : > { %v1646_v57 = vpop.f32.mrb[20].mxu0 }
 0x991   : > { %v1653_v58 = vmul.f32 %v14886_v56, %v1646_v57  ;;  %v13297_v59 = vpop.f32.mrb[21].mxu0  ;;  %v12068_v57 = vld [vmem:[%s17415_s12] ss:$0 sm:$0xff] }
 0x992   : > { %v1649_v60 = vpop.f32.mrb[22].mxu0 }
 0x993   : > { %v13298_v62 = vpop.f32.mrb[23].mxu0  ;;  %13304 = vmatmul.mubr.msk.f32.vlgmr.msra.gmra.mrb[20].mxu1 %vm828_vm3, %v1653_v58 }
 0x994   : > { %13329 = vmatprep.mubr.msk.f32.mxu1 %vm15075_vm2, %v15076_v5  ;;  %14332 = vmatpush3.bf16.xpose.msk.msra.mxu1 %vm15221_vm1, %v14330_v15  ;;  %v12078_v15 = vld [vmem:[%s17467_s5 + $0x50] sm:$0xff] }
 0x995   : > { %14333 = vmatprep.subr.bf16.mxu1 %v15074_v2 }
 0xa5c   : > { %v1810_v63 = vpop.f32.mrb[14].mxu0 }
 0xa5d   : > { %v13312_v0 = vpop.f32.mrb[15].mxu0 }
 0xa5e   : > { %v12074_v0 = vld [vmem:[%s17467_s5 + $0x30] sm:$0xff] }
 0xa66   : > { %v1733_v3 = vpop.f32.mrb[20].mxu1 }
 0xa67   : > { %v1811_v6 = vadd.f32 %v1810_v63, %v1733_v3  ;;  %v13305_v7 = vpop.f32.mrb[21].mxu1 }
 0xa69   : > { %v1820_v8 = vadd.f32 %v12055_v1, %v1811_v6  ;;  %v12075_v1 = vld [vmem:[%s17467_s5 + $0x38] sm:$0xff] }
 0xa6a   : > { %v14350_v3 = vpack.c.bf16 %v12075_v1, %v12074_v0 }
 0xa6b   : > { %1821 = vst.msk [vmem:[#allocation2] sm:$0xff] %vm732_vm0, %v1820_v8 }
 0xa72   : > { %v1822_v9 = vld [vmem:[#allocation2] sm:$0xff] }
 0xa73   : > { %v1823_v10 = vadd.f32 %v1822_v9, %v15375_v55  ;;  %v1855_v55 = vld [vmem:[%s17412_s9 + $0x10] sm:$0xff] }
 0xa74   : > { %v14334_v17 = vpack.c.bf16 %v1856_v16, %v1855_v55  ;;  %v12079_v55 = vld [vmem:[%s17467_s5 + $0x58] sm:$0xff] }
 0xa75   : > { %v1826_v11 = vsel %vm732_vm0, %v1823_v10, 0.0  ;;  %v14358_v16 = vpack.c.bf16 %v12079_v55, %v12078_v15 }
 0xa76   : > { %1827 = vadd.xlane.f32.xlu1 %v1826_v11  ;;  %14336 = vmatpush3.bf16.xpose.msk.msra.mxu1 %vm15221_vm1, %v14334_v17  ;;  %v12076_v11 = vld [vmem:[%s17467_s5 + $0x40] sm:$0xff] }
 0xa77   : > { %14337 = vmatprep.subr.bf16.mxu1 %v15074_v2  ;;  %v14354_v14 = vpack.c.bf16 %v12077_v13, %v12076_v11 }
 0xa7e   : > { %14340 = vmatpush3.bf16.xpose.msk.msra.mxu1 %vm15221_vm1, %v14338_v25 }
 0xa7f   : > { %14341 = vmatprep.subr.bf16.mxu1 %v15074_v2 }
 0xa86   : > { %14344 = vmatpush3.bf16.xpose.msk.msra.mxu1 %vm15221_vm1, %v14342_v29 }
 0xa87   : > { %13354 = vmatprep.subr.bf16.mxu1 %v15076_v5 }
 0xb03   : > { %v1828_v18 = vpop.xlane.xlu1 %1827 }
 0xb04   : > { %v1829_v19 = vmul.f32 0.0625, %v1828_v18 }
 0xb06   : > { %v1830_v20 = vsub.f32 %v1823_v10, %v1829_v19 }
 0xb08   : > { %v1831_v21 = vmul.f32 %v1830_v20, %v1830_v20 }
 0xb0a   : > { %v1832_v22 = vsel %vm732_vm0, %v1831_v21, 0.0  ;;  %v12072_v21 = vld [vmem:[%s17420_s17] ss:$0 sm:$0xff] }
 0xb0b   : > { %1833 = vadd.xlane.f32.xlu1 %v1832_v22 }
 0xb98   : > { %v1834_v30 = vpop.xlane.xlu1 %1833 }
 0xb99   : > { %v1835_v31 = vmul.f32 0.0625, %v1834_v30 }
 0xb9b   : > { %v1836_v32 = vadd.f32 1e-05, %v1835_v31 }
 0xb9d   : > { %14887 = vrsqrt.f32 %v1836_v32 }
 0xba7   : > { %v14888_v33 = vpop.eup %14887 }
 0xba8   : > { %v1838_v35 = vmul.f32 %v14888_v33, %v1830_v20 }
 0xbaa   : > { %v1845_v37 = vmul.f32 %v12056_v34, %v1838_v35 }
 0xbac   : > { %v1852_v38 = vadd.f32 %v12057_v36, %v1845_v37 }
 0xbae   : > { %13330 = vmatmul.mubr.msk.f32.vlgmr.msra.gmra.mrb[22].mxu1 %vm732_vm0, %v1852_v38 }
 0xbaf   : > { %13356 = vmatprep.mubr.msk.bf16.mxu1 %vm15075_vm2, %v15076_v5 }
 0xc81   : > { %v1961_v44 = vpop.f32.mrb[22].mxu1 }
 0xc82   : > { %v1962_v45 = vadd.f32 %v12058_v43, %v1961_v44  ;;  %v13331_v46 = vpop.f32.mrb[23].mxu1 }
 0xc84   : > { %v1966_v47 = vmul.f32 0.044715, %v1962_v45  ;;  %v1965_v53 = vmul.f32 0.5, %v1962_v45 }
 0xc86   : > { %v1967_v48 = vmul.f32 %v1966_v47, %v1962_v45 }
 0xc88   : > { %v1968_v49 = vmul.f32 %v1967_v48, %v1962_v45 }
 0xc8a   : > { %v1969_v50 = vadd.f32 %v1968_v49, %v1962_v45 }
 0xc8c   : > { %v1970_v51 = vmul.f32 0.7978846, %v1969_v50 }
 0xc8e   : > { %14889 = vtanh.f32 %v1970_v51 }
 0xc98   : > { %v14890_v52 = vpop.eup %14889 }
 0xc99   : > { %v1972_v54 = vadd.f32 1.0, %v14890_v52 }
 0xc9b   : > { %v1973_v56 = vmul.f32 %v1972_v54, %v1965_v53 }
 0xc9d   : > { %13337 = vmatmul.mubr.msk.f32.vlgmr.msra.gmra.mrb[24].mxu0 %vm1983_vm7, %v1973_v56 }
 0xc9e   : > { %13351 = vmatprep.mubr.msk.f32.mxu0 %vm15075_vm2, %v15076_v5  ;;  %14352 = vmatpush3.bf16.xpose.msk.msra.mxu0 %vm15221_vm1, %v14350_v3 }
 0xc9f   : > { %14353 = vmatprep.subr.bf16.mxu0 %v15074_v2 }
 0xca6   : > { %14356 = vmatpush3.bf16.xpose.msk.msra.mxu0 %vm15221_vm1, %v14354_v14 }
 0xca7   : > { %14357 = vmatprep.subr.bf16.mxu0 %v15074_v2 }
 0xcae   : > { %14360 = vmatpush3.bf16.xpose.msk.msra.mxu0 %vm15221_vm1, %v14358_v16 }
 0xcaf   : > { %13360 = vmatprep.subr.bf16.mxu0 %v15076_v5 }
 0xd70   : > { %v2059_v58 = vpop.f32.mrb[24].mxu0 }
 0xd71   : > { %v2060_v59 = vadd.f32 %v12068_v57, %v2059_v58  ;;  %v13338_v60 = vpop.f32.mrb[25].mxu0 }
 0xd73   : > { %v2063_v62 = vadd.f32 %v2060_v59, %v1852_v38 }
 0xd75   : > { %v2066_v63 = vsel %vm732_vm0, %v2063_v62, 0.0 }
 0xd76   : > { %2067 = vadd.xlane.f32.xlu1 %v2066_v63 }
 0xe03   : > { %v2068_v6 = vpop.xlane.xlu1 %2067 }
 0xe04   : > { %v2069_v7 = vmul.f32 0.0625, %v2068_v6  ;;  %v12081_v6 = vld [vmem:[%s17474_s26 + $0x10] sm:$0xff] }
 0xe06   : > { %v2070_v8 = vsub.f32 %v2063_v62, %v2069_v7  ;;  %v12082_v7 = vld [vmem:[%s17474_s26 + $0x18] sm:$0xff] }
 0xe07   : > { %v14797_v13 = vpack.i.bf16 %v12082_v7, %v12081_v6 }
 0xe08   : > { %v2071_v9 = vmul.f32 %v2070_v8, %v2070_v8 }
 0xe0a   : > { %v2072_v10 = vsel %vm732_vm0, %v2071_v9, 0.0 }
 0xe0b   : > { %2073 = vadd.xlane.f32.xlu1 %v2072_v10 }
 0xe98   : > { %v2074_v17 = vpop.xlane.xlu1 %2073 }
 0xe99   : > { %v2075_v18 = vmul.f32 0.0625, %v2074_v17 }
 0xe9b   : > { %v2076_v19 = vadd.f32 1e-05, %v2075_v18 }
 0xe9d   : > { %14891 = vrsqrt.f32 %v2076_v19 }
 0xea7   : > { %v14892_v20 = vpop.eup %14891 }
 0xea8   : > { %v2078_v22 = vmul.f32 %v14892_v20, %v2070_v8  ;;  %v14366_v8 = vpack.c.bf16 %v12082_v7, %v12081_v6 }
 0xeaa   : > { %v2085_v24 = vmul.f32 %v12072_v21, %v2078_v22 }
 0xeac   : > { %v15539_v25 = vadd.f32 %v12073_v23, %v2085_v24 }
 0xeae   : > { %13352 = vmatmul.mubr.msk.f32.vlgmr.msra.gmra.mrb[26].mxu0 %vm732_vm0, %v15539_v25 }
 0xeaf   : > { %13362 = vmatprep.mubr.msk.bf16.mxu0 %vm15075_vm2, %v15076_v5 }
 0xf81   : > { %v2200_v28 = vpop.f32.mrb[26].mxu0 }
 0xf82   : > { %v2201_v29 = vadd.f32 %v12084_v26, %v2200_v28  ;;  %v13353_v30 = vpop.f32.mrb[27].mxu0 }
 0xf84   : > { %v2204_v31 = vpack.c.bf16 %v2201_v29, %v2201_v29 }
 0xf86   : > { %2318 = vrot.lane.b32.xlu0 %v2204_v31, %s17482_s0  ;;  %2206 = vrot.lane.b32.xlu1 %v2204_v31, %s17480_s28 }
 0xf8a   : > { %2316 = vrot.lane.b32.xlu0 %v2204_v31, %s17481_s25 }
 0xff8   : > { %v2207_v32 = vpop.permute.xlu1 %2206  ;;  %v2319_v34 = vpop.permute.xlu0 %2318 }
 0xff9   : > { %v2212_v33 = vsel %vm828_vm3, %v2207_v32, 0  ;;  %v2324_v35 = vsel %vm828_vm3, %v2319_v34, 0 }
 0xffa   : > { %13355 = vmatpush3.bf16.xpose.msra.mxu1 %v2212_v33 }
 0xffb   : > { %13366 = vmatprep.subr.bf16.mxu1 %v15076_v5 }
 0xffc   : > { %v2317_v36 = vpop.permute.xlu0 %2316 }
0x1001   : > { %13357 = vmatmul.mubr.msk.bf16.vlgmr.msra.gmra.mrb[24].mxu1 %vm828_vm3, %v2204_v31 }
0x1002   : > { %13367 = vmatpush3.bf16.xpose.msra.mxu1 %v2324_v35  ;;  %13368 = vmatprep.mubr.msk.bf16.mxu1 %vm15075_vm2, %v15076_v5  ;;  %v12102_v35 = vld [vmem:[%s17477_s6 + $0x1] ss:$0 sm:$0xff] }
0x1003   : > { %14361 = vmatprep.subr.bf16.mxu1 %v15074_v2 }
0x1009   : > { %13369 = vmatmul.mubr.msk.bf16.vlgmr.msra.gmra.mrb[28].mxu1 %vm828_vm3, %v2317_v36 }
0x100a   : > { %13382 = vmatprep.mubr.msk.f32.mxu1 %vm15075_vm2, %v15076_v5 }
0x10d4   : > { %v2248_v37 = vpop.f32.mrb[24].mxu1 }
0x10d5   : > { %v2249_v38 = vadd.f32 %v2248_v37, %v15282_v27  ;;  %v13358_v39 = vpop.f32.mrb[25].mxu1 }
0x10d6   : > { %v2251_v40 = vpop.f32.mrb[26].mxu1 }
0x10d7   : > { %v13359_v41 = vpop.f32.mrb[27].mxu1  ;;  %v2254_v43 = vsel %vm828_vm3, %v2249_v38, -inf }
0x10d8   : > { %2255 = vmax.xlane.f32.xlu0 %v2254_v43 }
0x10dc   : > { %v2360_v44 = vpop.f32.mrb[28].mxu1 }
0x10dd   : > { %v2361_v45 = vadd.f32 %v2360_v44, %v15282_v27  ;;  %v13370_v46 = vpop.f32.mrb[29].mxu1  ;;  %v12109_v44 = vld [vmem:[%s17478_s24 + $0x40] sm:$0xff] }
0x10de   : > { %v2363_v47 = vpop.f32.mrb[30].mxu1 }
0x10df   : > { %v13371_v48 = vpop.f32.mrb[31].mxu1  ;;  %v2366_v49 = vsel %vm828_vm3, %v2361_v45, -inf }
0x10e0   : > { %2367 = vmax.xlane.f32.xlu1 %v2366_v49 }
0x10ee   : > { %2266 = vrot.lane.b32.xlu0 %v2204_v31, %s17486_s23 }
0x10f1   : > { %2378 = vrot.lane.b32.xlu1 %v2204_v31, %s17487_s4 }
0x1165   : > { %v2256_v50 = vpop.xlane.xlu0 %2255 }
0x1166   : > { %v2257_v51 = vsub.f32 %v2249_v38, %v2256_v50 }
0x1168   : > { %v2258_v52 = vpack.c.bf16 %v2257_v51, %v2257_v51  ;;  %v12111_v51 = vld [vmem:[%s17478_s24 + $0x50] sm:$0xff] }
0x1169   : > { %v2267_v53 = vpop.permute.xlu0 %2266 }
0x116a   : > { %v2260_v54 = vmul.bf16 1069105081, %v2258_v52  ;;  %v2272_v56 = vsel %vm892_vm5, %v2267_v53, 0  ;;  %v12112_v52 = vld [vmem:[%s17478_s24 + $0x58] sm:$0xff] }
0x116b   : > { %13361 = vmatpush3.bf16.msra.mxu0 %v2272_v56  ;;  %v14378_v53 = vpack.c.bf16 %v12112_v52, %v12111_v51  ;;  %v12108_v56 = vld [vmem:[%s17478_s24 + $0x38] sm:$0xff] }
0x116c   : > { %14893 = vpow.bf16 %v2260_v54  ;;  %13372 = vmatprep.subr.bf16.mxu0 %v15076_v5  ;;  %v12107_v54 = vld [vmem:[%s17478_s24 + $0x30] sm:$0xff] }
0x116d   : > { %v2368_v57 = vpop.xlane.xlu1 %2367 }
0x116e   : > { %v2369_v58 = vsub.f32 %v2361_v45, %v2368_v57  ;;  %v12110_v45 = vld [vmem:[%s17478_s24 + $0x48] sm:$0xff]  ;;  %v14370_v57 = vpack.c.bf16 %v12108_v56, %v12107_v54 }
0x116f   : > { %v14374_v46 = vpack.c.bf16 %v12110_v45, %v12109_v44 }
0x1170   : > { %v2370_v59 = vpack.c.bf16 %v2369_v58, %v2369_v58  ;;  %v12117_v58 = vld [vmem:[%s17479_s1 + $0x1] ss:$0 sm:$0xff] }
0x1171   : > { %v2379_v62 = vpop.permute.xlu1 %2378 }
0x1172   : > { %v2372_v60 = vmul.bf16 1069105081, %v2370_v59  ;;  %v2384_v0 = vsel %vm892_vm5, %v2379_v62, 0 }
0x1174   : > { %14895 = vpow.bf16 %v2372_v60 }
0x1177   : > { %v14894_v63 = vpop.eup %14893 }
0x1178   : > { %13363 = vmatmul.mubr.msk.bf16.vlgmr.msra.gmra.mrb[28].mxu0 %vm828_vm3, %v14894_v63  ;;  %v2262_v1 = vunpack.c.l.bf16 %v14894_v63  ;;  %v12105_v63 = vld [vmem:[%s17416_s13 + $0x1] ss:$0 sm:$0xff] }
0x1179   : > { %13373 = vmatpush3.bf16.msra.mxu0 %v2384_v0  ;;  %13374 = vmatprep.mubr.msk.bf16.mxu0 %vm15075_vm2, %v15076_v5 }
0x117a   : > { %v2263_v3 = vsel %vm828_vm3, %v2262_v1, 0.0  ;;  %14365 = vmatprep.subr.bf16.mxu0 %v15074_v2  ;;  %v12106_v1 = vld [vmem:[%s17417_s14 + $0x1] ss:$0 sm:$0xff] }
0x117b   : > { %2264 = vadd.xlane.f32.xlu0 %v2263_v3 }
0x117f   : > { %v14896_v9 = vpop.eup %14895 }
0x1180   : > { %13375 = vmatmul.mubr.msk.bf16.vlgmr.msra.gmra.mrb[32].mxu0 %vm828_vm3, %v14896_v9  ;;  %v2374_v10 = vunpack.c.l.bf16 %v14896_v9 }
0x1181   : > { %13389 = vmatprep.mubr.msk.f32.mxu0 %vm15075_vm2, %v15076_v5 }
0x1182   : > { %v2375_v11 = vsel %vm828_vm3, %v2374_v10, 0.0  ;;  %14368 = vmatpush3.bf16.xpose.msk.msra.mxu0 %vm15310_vm6, %v14366_v8 }
0x1183   : > { %2376 = vadd.xlane.f32.xlu1 %v2375_v11  ;;  %14373 = vmatprep.subr.bf16.mxu0 %v15074_v2 }
0x1191   : > { %14798 = vrot.lane.b32.xlu0 %v14797_v13, %s17481_s25 }
0x1208   : > { %v2265_v14 = vpop.xlane.xlu0 %2264 }
0x1209   : > { %14897 = vrcp.f32 %v2265_v14 }
0x120c   : > { %v14799_v15 = vpop.permute.xlu0 %14798 }
0x120d   : > { %v14801_v55 = vunpack.i.h.bf16 %v14799_v15  ;;  %v14800_v16 = vunpack.i.l.bf16 %v14799_v15 }
0x120f   : > { %v14362_v17 = vpack.c.bf16 %v14801_v55, %v14800_v16 }
0x1210   : > { %v2377_v18 = vpop.xlane.xlu1 %2376 }
0x1211   : > { %14364 = vmatpush3.bf16.xpose.msk.msra.mxu1 %vm15310_vm6, %v14362_v17  ;;  %14899 = vrcp.f32 %v2377_v18 }
0x1212   : > { %14369 = vmatprep.subr.bf16.mxu1 %v15074_v2 }
0x1213   : > { %v14898_v19 = vpop.eup %14897 }
0x121b   : > { %v14900_v26 = vpop.eup %14899 }
0x124b   : > { %v2308_v20 = vpop.f32.mrb[28].mxu0 }
0x124c   : > { %v2315_v21 = vmul.f32 %v14898_v19, %v2308_v20  ;;  %v13364_v22 = vpop.f32.mrb[29].mxu0 }
0x124d   : > { %v2311_v23 = vpop.f32.mrb[30].mxu0 }
0x124e   : > { %v13365_v24 = vpop.f32.mrb[31].mxu0  ;;  %13390 = vmatmul.mubr.msk.f32.vlgmr.msra.gmra.mrb[36].mxu0 %vm828_vm3, %v2315_v21 }
0x124f   : > { %13407 = vmatprep.mubr.msk.f32.mxu0 %vm15075_vm2, %v15076_v5  ;;  %14376 = vmatpush3.bf16.xpose.msk.msra.mxu0 %vm15221_vm1, %v14374_v46 }
0x1250   : > { %14377 = vmatprep.subr.bf16.mxu0 %v15074_v2 }
0x1253   : > { %v2420_v28 = vpop.f32.mrb[32].mxu0 }
0x1254   : > { %v2427_v29 = vmul.f32 %v14900_v26, %v2420_v28  ;;  %v13376_v30 = vpop.f32.mrb[33].mxu0 }
0x1255   : > { %v2423_v31 = vpop.f32.mrb[34].mxu0 }
0x1256   : > { %v13377_v32 = vpop.f32.mrb[35].mxu0  ;;  %13383 = vmatmul.mubr.msk.f32.vlgmr.msra.gmra.mrb[32].mxu1 %vm828_vm3, %v2427_v29 }
0x1257   : > { %13396 = vmatprep.mubr.msk.f32.mxu1 %vm15075_vm2, %v15076_v5  ;;  %14380 = vmatpush3.bf16.xpose.msk.msra.mxu0 %vm15221_vm1, %v14378_v53 }
0x1258   : > { %13416 = vmatprep.subr.bf16.mxu0 %v15076_v5  ;;  %14372 = vmatpush3.bf16.xpose.msk.msra.mxu1 %vm15221_vm1, %v14370_v57 }
0x1259   : > { %13410 = vmatprep.subr.bf16.mxu1 %v15076_v5 }
0x125e   : > { %13408 = vmatmul.mubr.msk.f32.vlgmr.msra.gmra.mrb[38].mxu0 %vm732_vm0, %v15260_v12 }
0x125f   : > { %13418 = vmatprep.mubr.msk.bf16.mxu0 %vm15075_vm2, %v15076_v5 }
0x1321   : > { %v2584_v33 = vpop.f32.mrb[36].mxu0 }
0x1322   : > { %v13391_v34 = vpop.f32.mrb[37].mxu0 }
0x1329   : > { %v2507_v36 = vpop.f32.mrb[32].mxu1 }
0x132a   : > { %v2585_v37 = vadd.f32 %v2584_v33, %v2507_v36  ;;  %v13384_v38 = vpop.f32.mrb[33].mxu1 }
0x132c   : > { %v2594_v39 = vadd.f32 %v12102_v35, %v2585_v37 }
0x132e   : > { %2595 = vst.msk [vmem:[#allocation2] sm:$0xff] %vm732_vm0, %v2594_v39 }
0x1331   : > { %v2809_v8 = vpop.f32.mrb[38].mxu0 }
0x1332   : > { %v13409_v10 = vpop.f32.mrb[39].mxu0 }
0x1335   : > { %v2596_v40 = vld [vmem:[#allocation2] sm:$0xff] }
0x1336   : > { %v2597_v41 = vadd.f32 %v2596_v40, %v15539_v25 }
0x1338   : > { %v2602_v43 = vsel %vm732_vm0, %v2597_v41, 0.0 }
0x1339   : > { %2603 = vadd.xlane.f32.xlu1 %v2602_v43  ;;  %v12115_v43 = vld [vmem:[%s17483_s3 + $0x18] sm:$0xff] }
0x13c6   : > { %v2604_v47 = vpop.xlane.xlu1 %2603 }
0x13c7   : > { %v2605_v48 = vmul.f32 0.0625, %v2604_v47 }
0x13c9   : > { %v2606_v25 = vsub.f32 %v2597_v41, %v2605_v48  ;;  %v12114_v41 = vld [vmem:[%s17483_s3 + $0x10] sm:$0xff] }
0x13ca   : > { %v14386_v44 = vpack.c.bf16 %v12115_v43, %v12114_v41  ;;  %v14802_v45 = vpack.i.bf16 %v12115_v43, %v12114_v41 }
0x13cb   : > { %v2607_v49 = vmul.f32 %v2606_v25, %v2606_v25 }
0x13cd   : > { %v2608_v50 = vsel %vm732_vm0, %v2607_v49, 0.0 }
0x13ce   : > { %2609 = vadd.xlane.f32.xlu1 %v2608_v50 }
0x13df   : > { %2728 = vrot.lane.b32.xlu1 %v12117_v58, %s17480_s28 }
0x145b   : > { %v2610_v59 = vpop.xlane.xlu1 %2609 }
0x145c   : > { %v2611_v60 = vmul.f32 0.0625, %v2610_v59 }
0x145e   : > { %v2612_v62 = vadd.f32 1e-05, %v2611_v60 }
0x145f   : > { %v2729_v7 = vpop.permute.xlu1 %2728 }
0x1460   : > { %14901 = vrsqrt.f32 %v2612_v62  ;;  %v2810_v9 = vadd.f32 %v2809_v8, %v2729_v7 }
0x1462   : > { %v2814_v11 = vpack.c.bf16 %v2810_v9, %v2810_v9 }
0x1464   : > { %2927 = vrot.lane.b32.xlu0 %v2814_v11, %s17481_s25  ;;  %v2819_v13 = vsel %vm828_vm3, %v2814_v11, 0 }
0x146a   : > { %v14902_v12 = vpop.eup %14901 }
0x146b   : > { %v2614_v0 = vmul.f32 %v14902_v12, %v2606_v25 }
0x146d   : > { %v2621_v3 = vmul.f32 %v12105_v63, %v2614_v0 }
0x146f   : > { %v15646_v6 = vadd.f32 %v12106_v1, %v2621_v3 }
0x1471   : > { %13397 = vmatmul.mubr.msk.f32.vlgmr.msra.gmra.mrb[34].mxu1 %vm732_vm0, %v15646_v6 }
0x1472   : > { %13412 = vmatprep.mubr.msk.bf16.mxu1 %vm15075_vm2, %v15076_v5  ;;  %13411 = vmatpush3.bf16.xpose.msra.mxu1 %v2819_v13 }
0x1473   : > { %13422 = vmatprep.subr.bf16.mxu1 %v15076_v5 }
0x14d6   : > { %v2928_v15 = vpop.permute.xlu0 %2927 }
0x14d7   : > { %v2933_v18 = vsel %vm828_vm3, %v2928_v15, 0 }
0x1544   : > { %v2724_v14 = vpop.f32.mrb[34].mxu1 }
0x1545   : > { %v2725_v55 = vadd.f32 %v12117_v58, %v2724_v14  ;;  %v13398_v16 = vpop.f32.mrb[35].mxu1 }
0x1547   : > { %v2813_v17 = vpack.c.bf16 %v2725_v55, %v2725_v55  ;;  %v12136_v55 = vld [vmem:[%s17411_s8 + $0x1] ss:$0 sm:$0xff] }
0x1549   : > { %2925 = vrot.lane.b32.xlu0 %v2813_v17, %s17481_s25  ;;  %13413 = vmatmul.mubr.msk.bf16.vlgmr.msra.gmra.mrb[36].mxu1 %vm828_vm3, %v2813_v17 }
0x154a   : > { %13423 = vmatpush3.bf16.xpose.msra.mxu1 %v2933_v18  ;;  %13424 = vmatprep.mubr.msk.bf16.mxu1 %vm15075_vm2, %v15076_v5 }
0x154b   : > { %14381 = vmatprep.subr.bf16.mxu1 %v15074_v2 }
0x15bb   : > { %v2926_v19 = vpop.permute.xlu0 %2925 }
0x15bc   : > { %13425 = vmatmul.mubr.msk.bf16.vlgmr.msra.gmra.mrb[40].mxu1 %vm828_vm3, %v2926_v19 }
0x15bd   : > { %13438 = vmatprep.mubr.msk.f32.mxu1 %vm15075_vm2, %v15076_v5 }
0x161c   : > { %v2855_v20 = vpop.f32.mrb[36].mxu1 }
0x161d   : > { %v13414_v21 = vpop.f32.mrb[37].mxu1  ;;  %v2861_v22 = vsel %vm828_vm3, %v2855_v20, -inf }
0x161e   : > { %2862 = vmax.xlane.f32.xlu0 %v2861_v22  ;;  %v2858_v23 = vpop.f32.mrb[38].mxu1 }
0x161f   : > { %v13415_v24 = vpop.f32.mrb[39].mxu1  ;;  %v12141_v23 = vld [vmem:[%s17412_s9 + $0x40] sm:$0xff] }
0x1620   : > { %v12142_v24 = vld [vmem:[%s17412_s9 + $0x48] sm:$0xff] }
0x1634   : > { %2874 = vrot.lane.b32.xlu0 %v2814_v11, %s17480_s28 }
0x168f   : > { %v2969_v26 = vpop.f32.mrb[40].mxu1 }
0x1690   : > { %v13426_v28 = vpop.f32.mrb[41].mxu1  ;;  %v2975_v29 = vsel %vm828_vm3, %v2969_v26, -inf }
0x1691   : > { %2976 = vmax.xlane.f32.xlu1 %v2975_v29  ;;  %v2972_v30 = vpop.f32.mrb[42].mxu1  ;;  %v12144_v28 = vld [vmem:[%s17412_s9 + $0x58] sm:$0xff] }
0x1692   : > { %v13427_v31 = vpop.f32.mrb[43].mxu1 }
0x16a2   : > { %2987 = vrot.lane.b32.xlu1 %v2814_v11, %s17482_s0 }
0x16ab   : > { %v2863_v32 = vpop.xlane.xlu0 %2862 }
0x16ac   : > { %v2864_v33 = vsub.f32 %v2855_v20, %v2863_v32 }
0x16ae   : > { %v2865_v34 = vpack.c.bf16 %v2864_v33, %v2864_v33 }
0x16af   : > { %v2875_v35 = vpop.permute.xlu0 %2874 }
0x16b0   : > { %v2867_v36 = vmul.bf16 1069105081, %v2865_v34  ;;  %v2880_v37 = vsel %vm892_vm5, %v2875_v35, 0  ;;  %v12145_v35 = vld [vmem:[%s17412_s9 + $0x60] sm:$0xff] }
0x16b1   : > { %13417 = vmatpush3.bf16.msra.mxu0 %v2880_v37 }
0x16b2   : > { %14903 = vpow.bf16 %v2867_v36  ;;  %13428 = vmatprep.subr.bf16.mxu0 %v15076_v5  ;;  %v12146_v36 = vld [vmem:[%s17412_s9 + $0x68] sm:$0xff] }
0x16b3   : > { %v14398_v37 = vpack.c.bf16 %v12146_v36, %v12145_v35 }
0x16bd   : > { %v14904_v38 = vpop.eup %14903 }
0x16be   : > { %13419 = vmatmul.mubr.msk.bf16.vlgmr.msra.gmra.mrb[40].mxu0 %vm828_vm3, %v14904_v38  ;;  %v2869_v39 = vunpack.c.l.bf16 %v14904_v38  ;;  %v12147_v38 = vld [vmem:[%s17412_s9 + $0x70] sm:$0xff] }
0x16bf   : > { %13430 = vmatprep.mubr.msk.bf16.mxu0 %vm15075_vm2, %v15076_v5 }
0x16c0   : > { %v2870_v40 = vsel %vm828_vm3, %v2869_v39, 0.0  ;;  %v12148_v39 = vld [vmem:[%s17412_s9 + $0x78] sm:$0xff] }
0x16c1   : > { %2871 = vadd.xlane.f32.xlu0 %v2870_v40  ;;  %v14402_v40 = vpack.c.bf16 %v12148_v39, %v12147_v38 }
0x16d7   : > { %14803 = vrot.lane.b32.xlu0 %v14802_v45, %s17481_s25 }
0x171e   : > { %v2977_v46 = vpop.xlane.xlu1 %2976 }
0x171f   : > { %v2978_v47 = vsub.f32 %v2969_v26, %v2977_v46  ;;  %v14390_v26 = vpack.c.bf16 %v12142_v24, %v12141_v23  ;;  %v12139_v46 = vld [vmem:[%s17418_s15 + $0x1] ss:$0 sm:$0xff] }
0x1720   : > { %v12175_v24 = vld [vmem:[%s17467_s5 + $0x80] sm:$0xff] }
0x1721   : > { %v2979_v48 = vpack.c.bf16 %v2978_v47, %v2978_v47 }
0x1722   : > { %v2988_v25 = vpop.permute.xlu1 %2987 }
0x1723   : > { %v2981_v49 = vmul.bf16 1069105081, %v2979_v48  ;;  %v2993_v50 = vsel %vm892_vm5, %v2988_v25, 0  ;;  %v12140_v48 = vld [vmem:[%s17419_s16 + $0x1] ss:$0 sm:$0xff] }
0x1724   : > { %13429 = vmatpush3.bf16.msra.mxu0 %v2993_v50  ;;  %v12160_v50 = vld [vmem:[%s17414_s11 + $0x10] sm:$0xff] }
0x1725   : > { %14905 = vpow.bf16 %v2981_v49  ;;  %14385 = vmatprep.subr.bf16.mxu0 %v15074_v2 }
0x1730   : > { %v14906_v51 = vpop.eup %14905 }
0x1731   : > { %13431 = vmatmul.mubr.msk.bf16.vlgmr.msra.gmra.mrb[44].mxu0 %vm828_vm3, %v14906_v51  ;;  %v2983_v52 = vunpack.c.l.bf16 %v14906_v51  ;;  %v12161_v51 = vld [vmem:[%s17414_s11 + $0x18] sm:$0xff] }
0x1732   : > { %14388 = vmatpush3.bf16.xpose.msk.msra.mxu0 %vm15310_vm6, %v14386_v44  ;;  %13445 = vmatprep.mubr.msk.f32.mxu0 %vm15075_vm2, %v15076_v5 }
0x1733   : > { %v2984_v53 = vsel %vm828_vm3, %v2983_v52, 0.0  ;;  %14405 = vmatprep.subr.bf16.mxu0 %v15074_v2  ;;  %v14406_v52 = vpack.c.bf16 %v12161_v51, %v12160_v50 }
0x1734   : > { %2985 = vadd.xlane.f32.xlu1 %v2984_v53  ;;  %v12150_v53 = vld [vmem:[%s17413_s10 + $0x1] ss:$0 sm:$0xff] }
0x174e   : > { %v2872_v54 = vpop.xlane.xlu0 %2871 }
0x174f   : > { %14907 = vrcp.f32 %v2872_v54 }
0x1752   : > { %v14804_v56 = vpop.permute.xlu0 %14803 }
0x1753   : > { %v14806_v57 = vunpack.i.h.bf16 %v14804_v56  ;;  %v14805_v58 = vunpack.i.l.bf16 %v14804_v56 }
0x1755   : > { %v14382_v59 = vpack.c.bf16 %v14806_v57, %v14805_v58 }
0x1757   : > { %14384 = vmatpush3.bf16.xpose.msk.msra.mxu1 %vm15310_vm6, %v14382_v59 }
0x1758   : > { %14389 = vmatprep.subr.bf16.mxu1 %v15074_v2 }
0x1759   : > { %v14908_v60 = vpop.eup %14907 }
0x1791   : > { %v2916_v62 = vpop.f32.mrb[40].mxu0 }
0x1792   : > { %v2923_v12 = vmul.f32 %v14908_v60, %v2916_v62  ;;  %v13420_v63 = vpop.f32.mrb[41].mxu0 }
0x1793   : > { %v2919_v0 = vpop.f32.mrb[42].mxu0 }
0x1794   : > { %v13421_v1 = vpop.f32.mrb[43].mxu0  ;;  %13446 = vmatmul.mubr.msk.f32.vlgmr.msra.gmra.mrb[48].mxu0 %vm828_vm3, %v2923_v12 }
0x1795   : > { %13471 = vmatprep.mubr.msk.f32.mxu0 %vm15075_vm2, %v15076_v5  ;;  %14408 = vmatpush3.bf16.xpose.msk.msra.mxu0 %vm15488_vm8, %v14406_v52 }
0x1796   : > { %14409 = vmatprep.subr.bf16.mxu0 %v15074_v2 }
0x17c1   : > { %v2986_v3 = vpop.xlane.xlu1 %2985 }
0x17c2   : > { %14909 = vrcp.f32 %v2986_v3 }
0x17cc   : > { %v14910_v7 = vpop.eup %14909 }
0x1804   : > { %v3029_v8 = vpop.f32.mrb[44].mxu0 }
0x1805   : > { %v3036_v9 = vmul.f32 %v14910_v7, %v3029_v8  ;;  %v13432_v10 = vpop.f32.mrb[45].mxu0  ;;  %v12163_v7 = vld [vmem:[%s17415_s12 + $0x1] ss:$0 sm:$0xff] }
0x1806   : > { %v3032_v11 = vpop.f32.mrb[46].mxu0 }
0x1807   : > { %v13433_v13 = vpop.f32.mrb[47].mxu0  ;;  %13439 = vmatmul.mubr.msk.f32.vlgmr.msra.gmra.mrb[44].mxu1 %vm828_vm3, %v3036_v9 }
0x1808   : > { %13464 = vmatprep.mubr.msk.f32.mxu1 %vm15075_vm2, %v15076_v5  ;;  %14392 = vmatpush3.bf16.xpose.msk.msra.mxu1 %vm15221_vm1, %v14390_v26  ;;  %v12176_v26 = vld [vmem:[%s17467_s5 + $0x88] sm:$0xff] }
0x1809   : > { %14393 = vmatprep.subr.bf16.mxu1 %v15074_v2 }
0x1867   : > { %v3193_v14 = vpop.f32.mrb[48].mxu0 }
0x1868   : > { %v13447_v15 = vpop.f32.mrb[49].mxu0 }
0x1869   : > { %v12172_v15 = vld [vmem:[%s17467_s5 + $0x68] sm:$0xff] }
0x18da   : > { %v3116_v16 = vpop.f32.mrb[44].mxu1 }
0x18db   : > { %v3194_v17 = vadd.f32 %v3193_v14, %v3116_v16  ;;  %v13440_v18 = vpop.f32.mrb[45].mxu1  ;;  %v12171_v14 = vld [vmem:[%s17467_s5 + $0x60] sm:$0xff] }
0x18dd   : > { %v3203_v19 = vadd.f32 %v12136_v55, %v3194_v17  ;;  %v14410_v55 = vpack.c.bf16 %v12172_v15, %v12171_v14 }
0x18df   : > { %3204 = vst.msk [vmem:[#allocation2] sm:$0xff] %vm732_vm0, %v3203_v19 }
0x18e6   : > { %v3205_v20 = vld [vmem:[#allocation2] sm:$0xff] }
0x18e7   : > { %v3206_v21 = vadd.f32 %v3205_v20, %v15646_v6  ;;  %v12143_v6 = vld [vmem:[%s17412_s9 + $0x50] sm:$0xff] }
0x18e8   : > { %v14394_v29 = vpack.c.bf16 %v12144_v28, %v12143_v6  ;;  %v14418_v6 = vpack.c.bf16 %v12176_v26, %v12175_v24 }
0x18e9   : > { %v3211_v22 = vsel %vm732_vm0, %v3206_v21, 0.0 }
0x18ea   : > { %3212 = vadd.xlane.f32.xlu1 %v3211_v22  ;;  %14396 = vmatpush3.bf16.xpose.msk.msra.mxu1 %vm15221_vm1, %v14394_v29  ;;  %v12174_v22 = vld [vmem:[%s17467_s5 + $0x78] sm:$0xff] }
0x18eb   : > { %14397 = vmatprep.subr.bf16.mxu1 %v15074_v2 }
0x18f2   : > { %14400 = vmatpush3.bf16.xpose.msk.msra.mxu1 %vm15221_vm1, %v14398_v37  ;;  %v12181_v37 = vld [vmem:[%s17473_s7 + $0x2] ss:$0 sm:$0xff] }
0x18f3   : > { %14401 = vmatprep.subr.bf16.mxu1 %v15074_v2 }
0x18fa   : > { %14404 = vmatpush3.bf16.xpose.msk.msra.mxu1 %vm15221_vm1, %v14402_v40 }
0x18fb   : > { %13489 = vmatprep.subr.bf16.mxu1 %v15076_v5 }
0x1977   : > { %v3213_v30 = vpop.xlane.xlu1 %3212 }
0x1978   : > { %v3214_v31 = vmul.f32 0.0625, %v3213_v30 }
0x197a   : > { %v3215_v32 = vsub.f32 %v3206_v21, %v3214_v31  ;;  %v12173_v21 = vld [vmem:[%s17467_s5 + $0x70] sm:$0xff] }
0x197b   : > { %v14414_v23 = vpack.c.bf16 %v12174_v22, %v12173_v21 }
0x197c   : > { %v3216_v33 = vmul.f32 %v3215_v32, %v3215_v32 }
0x197e   : > { %v3217_v34 = vsel %vm732_vm0, %v3216_v33, 0.0 }
0x197f   : > { %3218 = vadd.xlane.f32.xlu1 %v3217_v34  ;;  %v12170_v34 = vld [vmem:[%s17421_s18 + $0x1] ss:$0 sm:$0xff] }
0x1a0c   : > { %v3219_v41 = vpop.xlane.xlu1 %3218 }
0x1a0d   : > { %v3220_v43 = vmul.f32 0.0625, %v3219_v41 }
0x1a0f   : > { %v3221_v44 = vadd.f32 1e-05, %v3220_v43 }
0x1a11   : > { %14911 = vrsqrt.f32 %v3221_v44 }
0x1a1b   : > { %v14912_v45 = vpop.eup %14911 }
0x1a1c   : > { %v3223_v47 = vmul.f32 %v14912_v45, %v3215_v32  ;;  %v12169_v32 = vld [vmem:[%s17420_s17 + $0x1] ss:$0 sm:$0xff] }
0x1a1e   : > { %v3230_v25 = vmul.f32 %v12139_v46, %v3223_v47 }
0x1a20   : > { %v3237_v49 = vadd.f32 %v12140_v48, %v3230_v25 }
0x1a22   : > { %13465 = vmatmul.mubr.msk.f32.vlgmr.msra.gmra.mrb[46].mxu1 %vm732_vm0, %v3237_v49 }
0x1a23   : > { %13491 = vmatprep.mubr.msk.bf16.mxu1 %vm15075_vm2, %v15076_v5 }
0x1af5   : > { %v3348_v54 = vpop.f32.mrb[46].mxu1 }
0x1af6   : > { %v3349_v56 = vadd.f32 %v12150_v53, %v3348_v54  ;;  %v13466_v57 = vpop.f32.mrb[47].mxu1 }
0x1af8   : > { %v3353_v58 = vmul.f32 0.044715, %v3349_v56  ;;  %v3352_v0 = vmul.f32 0.5, %v3349_v56 }
0x1afa   : > { %v3354_v59 = vmul.f32 %v3353_v58, %v3349_v56 }
0x1afc   : > { %v3355_v60 = vmul.f32 %v3354_v59, %v3349_v56 }
0x1afe   : > { %v3356_v62 = vadd.f32 %v3355_v60, %v3349_v56 }
0x1b00   : > { %v3357_v12 = vmul.f32 0.7978846, %v3356_v62 }
0x1b02   : > { %14913 = vtanh.f32 %v3357_v12 }
0x1b0c   : > { %v14914_v63 = vpop.eup %14913 }
0x1b0d   : > { %v3359_v1 = vadd.f32 1.0, %v14914_v63 }
0x1b0f   : > { %v3360_v3 = vmul.f32 %v3359_v1, %v3352_v0 }
0x1b11   : > { %13472 = vmatmul.mubr.msk.f32.vlgmr.msra.gmra.mrb[50].mxu0 %vm1983_vm7, %v3360_v3 }
0x1b12   : > { %13486 = vmatprep.mubr.msk.f32.mxu0 %vm15075_vm2, %v15076_v5  ;;  %14412 = vmatpush3.bf16.xpose.msk.msra.mxu0 %vm15221_vm1, %v14410_v55  ;;  %v12178_v55 = vld [vmem:[%s17474_s26 + $0x20] sm:$0xff] }
0x1b13   : > { %14413 = vmatprep.subr.bf16.mxu0 %v15074_v2 }
0x1b1a   : > { %14416 = vmatpush3.bf16.xpose.msk.msra.mxu0 %vm15221_vm1, %v14414_v23 }
0x1b1b   : > { %14417 = vmatprep.subr.bf16.mxu0 %v15074_v2 }
0x1b22   : > { %14420 = vmatpush3.bf16.xpose.msk.msra.mxu0 %vm15221_vm1, %v14418_v6 }
0x1b23   : > { %13495 = vmatprep.subr.bf16.mxu0 %v15076_v5 }
0x1be4   : > { %v3447_v8 = vpop.f32.mrb[50].mxu0 }
0x1be5   : > { %v3448_v9 = vadd.f32 %v12163_v7, %v3447_v8  ;;  %v13473_v10 = vpop.f32.mrb[51].mxu0 }
0x1be7   : > { %v3451_v11 = vadd.f32 %v3448_v9, %v3237_v49 }
0x1be9   : > { %v3456_v13 = vsel %vm732_vm0, %v3451_v11, 0.0 }
0x1bea   : > { %3457 = vadd.xlane.f32.xlu1 %v3456_v13 }
0x1c77   : > { %v3458_v16 = vpop.xlane.xlu1 %3457 }
0x1c78   : > { %v3459_v17 = vmul.f32 0.0625, %v3458_v16  ;;  %v12179_v16 = vld [vmem:[%s17474_s26 + $0x28] sm:$0xff] }
0x1c79   : > { %v14807_v21 = vpack.i.bf16 %v12179_v16, %v12178_v55 }
0x1c7a   : > { %v3460_v18 = vsub.f32 %v3451_v11, %v3459_v17  ;;  %v14426_v17 = vpack.c.bf16 %v12179_v16, %v12178_v55 }
0x1c7c   : > { %v3461_v19 = vmul.f32 %v3460_v18, %v3460_v18 }
0x1c7e   : > { %v3462_v20 = vsel %vm732_vm0, %v3461_v19, 0.0 }
0x1c7f   : > { %3463 = vadd.xlane.f32.xlu1 %v3462_v20 }
0x1d0c   : > { %v3464_v28 = vpop.xlane.xlu1 %3463 }
0x1d0d   : > { %v3465_v29 = vmul.f32 0.0625, %v3464_v28 }
0x1d0f   : > { %v3466_v30 = vadd.f32 1e-05, %v3465_v29 }
0x1d11   : > { %14915 = vrsqrt.f32 %v3466_v30 }
0x1d1b   : > { %v14916_v31 = vpop.eup %14915 }
0x1d1c   : > { %v3468_v33 = vmul.f32 %v14916_v31, %v3460_v18 }
0x1d1e   : > { %v3475_v35 = vmul.f32 %v12169_v32, %v3468_v33 }
0x1d20   : > { %v15804_v36 = vadd.f32 %v12170_v34, %v3475_v35 }
0x1d22   : > { %13487 = vmatmul.mubr.msk.f32.vlgmr.msra.gmra.mrb[52].mxu0 %vm732_vm0, %v15804_v36 }
0x1d23   : > { %13497 = vmatprep.mubr.msk.bf16.mxu0 %vm15075_vm2, %v15076_v5 }
0x1df5   : > { %v3590_v38 = vpop.f32.mrb[52].mxu0 }
0x1df6   : > { %v3591_v39 = vadd.f32 %v12181_v37, %v3590_v38  ;;  %v13488_v40 = vpop.f32.mrb[53].mxu0 }
0x1df8   : > { %v3594_v41 = vpack.c.bf16 %v3591_v39, %v3591_v39 }
0x1dfa   : > { %3708 = vrot.lane.b32.xlu1 %v3594_v41, %s17482_s0  ;;  %3596 = vrot.lane.b32.xlu0 %v3594_v41, %s17480_s28 }
0x1dfe   : > { %3706 = vrot.lane.b32.xlu0 %v3594_v41, %s17481_s25 }
0x1e6c   : > { %v3597_v43 = vpop.permute.xlu0 %3596  ;;  %v3709_v45 = vpop.permute.xlu1 %3708 }
0x1e6d   : > { %v3602_v44 = vsel %vm828_vm3, %v3597_v43, 0  ;;  %v3714_v46 = vsel %vm828_vm3, %v3709_v45, 0  ;;  %v12199_v45 = vld [vmem:[%s17477_s6 + $0x2] ss:$0 sm:$0xff]  ;;  %s17491_s6 = sld [smem:[#allocation10_spill]] }
0x1e6e   : > { %13490 = vmatpush3.bf16.xpose.msra.mxu1 %v3602_v44 }
0x1e6f   : > { %13501 = vmatprep.subr.bf16.mxu1 %v15076_v5 }
0x1e70   : > { %v3707_v47 = vpop.permute.xlu0 %3706 }
0x1e75   : > { %13492 = vmatmul.mubr.msk.bf16.vlgmr.msra.gmra.mrb[48].mxu1 %vm828_vm3, %v3594_v41 }
0x1e76   : > { %13502 = vmatpush3.bf16.xpose.msra.mxu1 %v3714_v46  ;;  %13503 = vmatprep.mubr.msk.bf16.mxu1 %vm15075_vm2, %v15076_v5 }
0x1e77   : > { %14421 = vmatprep.subr.bf16.mxu1 %v15074_v2 }
0x1e7d   : > { %13504 = vmatmul.mubr.msk.bf16.vlgmr.msra.gmra.mrb[52].mxu1 %vm828_vm3, %v3707_v47 }
0x1e7e   : > { %13517 = vmatprep.mubr.msk.f32.mxu1 %vm15075_vm2, %v15076_v5 }
0x1f48   : > { %v3638_v48 = vpop.f32.mrb[48].mxu1 }
0x1f49   : > { %v3639_v25 = vadd.f32 %v3638_v48, %v15282_v27  ;;  %v13493_v49 = vpop.f32.mrb[49].mxu1 }
0x1f4a   : > { %v3641_v50 = vpop.f32.mrb[50].mxu1 }
0x1f4b   : > { %v13494_v51 = vpop.f32.mrb[51].mxu1  ;;  %v3644_v52 = vsel %vm828_vm3, %v3639_v25, -inf }
0x1f4c   : > { %3645 = vmax.xlane.f32.xlu0 %v3644_v52  ;;  %v12206_v52 = vld [vmem:[%s17478_s24 + $0x70] sm:$0xff] }
0x1f50   : > { %v3750_v53 = vpop.f32.mrb[52].mxu1 }
0x1f51   : > { %v3751_v54 = vadd.f32 %v3750_v53, %v15282_v27  ;;  %v13505_v56 = vpop.f32.mrb[53].mxu1  ;;  %v12207_v53 = vld [vmem:[%s17478_s24 + $0x78] sm:$0xff] }
0x1f52   : > { %v3753_v57 = vpop.f32.mrb[54].mxu1 }
0x1f53   : > { %v13506_v58 = vpop.f32.mrb[55].mxu1  ;;  %v3756_v59 = vsel %vm828_vm3, %v3751_v54, -inf }
0x1f54   : > { %3757 = vmax.xlane.f32.xlu1 %v3756_v59 }
0x1f62   : > { %3656 = vrot.lane.b32.xlu0 %v3594_v41, %s17486_s23 }
0x1f65   : > { %3768 = vrot.lane.b32.xlu1 %v3594_v41, %s17487_s4 }
0x1fd9   : > { %v3646_v60 = vpop.xlane.xlu0 %3645 }
0x1fda   : > { %v3647_v62 = vsub.f32 %v3639_v25, %v3646_v60  ;;  %v12208_v60 = vld [vmem:[%s17478_s24 + $0x80] sm:$0xff] }
0x1fdc   : > { %v3648_v12 = vpack.c.bf16 %v3647_v62, %v3647_v62  ;;  %v12209_v62 = vld [vmem:[%s17478_s24 + $0x88] sm:$0xff] }
0x1fdd   : > { %v3657_v63 = vpop.permute.xlu0 %3656 }
0x1fde   : > { %v3650_v0 = vmul.bf16 1069105081, %v3648_v12  ;;  %v3662_v1 = vsel %vm892_vm5, %v3657_v63, 0  ;;  %v14438_v12 = vpack.c.bf16 %v12209_v62, %v12208_v60  ;;  %v12204_v63 = vld [vmem:[%s17478_s24 + $0x60] sm:$0xff] }
0x1fdf   : > { %13496 = vmatpush3.bf16.msra.mxu0 %v3662_v1  ;;  %v15895_v1 = vld [vmem:[%s17488_s19] sm:$0xff] }
0x1fe0   : > { %14917 = vpow.bf16 %v3650_v0  ;;  %13507 = vmatprep.subr.bf16.mxu0 %v15076_v5  ;;  %v12205_v0 = vld [vmem:[%s17478_s24 + $0x68] sm:$0xff] }
0x1fe1   : > { %v3758_v3 = vpop.xlane.xlu1 %3757 }
0x1fe2   : > { %v3759_v7 = vsub.f32 %v3751_v54, %v3758_v3  ;;  %v14434_v54 = vpack.c.bf16 %v12207_v53, %v12206_v52  ;;  %v14430_v3 = vpack.c.bf16 %v12205_v0, %v12204_v63  ;;  %v12212_v52 = vld [vmem:[%s17483_s3 + $0x28] sm:$0xff] }
0x1fe4   : > { %v3760_v8 = vpack.c.bf16 %v3759_v7, %v3759_v7  ;;  %v12214_v7 = vld [vmem:[%s17479_s1 + $0x2] ss:$0 sm:$0xff] }
0x1fe5   : > { %v3769_v10 = vpop.permute.xlu1 %3768 }
0x1fe6   : > { %v3762_v9 = vmul.bf16 1069105081, %v3760_v8  ;;  %v3774_v13 = vsel %vm892_vm5, %v3769_v10, 0 }
0x1fe8   : > { %14919 = vpow.bf16 %v3762_v9 }
0x1feb   : > { %v14918_v11 = vpop.eup %14917 }
0x1fec   : > { %13498 = vmatmul.mubr.msk.bf16.vlgmr.msra.gmra.mrb[56].mxu0 %vm828_vm3, %v14918_v11  ;;  %v3652_v14 = vunpack.c.l.bf16 %v14918_v11 }
0x1fed   : > { %13508 = vmatpush3.bf16.msra.mxu0 %v3774_v13  ;;  %13509 = vmatprep.mubr.msk.bf16.mxu0 %vm15075_vm2, %v15076_v5  ;;  %v12202_v13 = vld [vmem:[%s17416_s13 + $0x2] ss:$0 sm:$0xff] }
0x1fee   : > { %v3653_v15 = vsel %vm828_vm3, %v3652_v14, 0.0  ;;  %14425 = vmatprep.subr.bf16.mxu0 %v15074_v2 }
0x1fef   : > { %3654 = vadd.xlane.f32.xlu0 %v3653_v15  ;;  %v12203_v15 = vld [vmem:[%s17417_s14 + $0x2] ss:$0 sm:$0xff] }
0x1ff3   : > { %v14920_v18 = vpop.eup %14919 }
0x1ff4   : > { %13510 = vmatmul.mubr.msk.bf16.vlgmr.msra.gmra.mrb[60].mxu0 %vm828_vm3, %v14920_v18  ;;  %v3764_v19 = vunpack.c.l.bf16 %v14920_v18 }
0x1ff5   : > { %13524 = vmatprep.mubr.msk.f32.mxu0 %vm15075_vm2, %v15076_v5 }
0x1ff6   : > { %v3765_v20 = vsel %vm828_vm3, %v3764_v19, 0.0  ;;  %14428 = vmatpush3.bf16.xpose.msk.msra.mxu0 %vm15310_vm6, %v14426_v17 }
0x1ff7   : > { %3766 = vadd.xlane.f32.xlu1 %v3765_v20  ;;  %14433 = vmatprep.subr.bf16.mxu0 %v15074_v2 }
0x2005   : > { %14808 = vrot.lane.b32.xlu0 %v14807_v21, %s17481_s25 }
0x2009   : > { %4118 = vrot.lane.b32.xlu0 %v12214_v7, %s17480_s28 }
0x207c   : > { %v3655_v22 = vpop.xlane.xlu0 %3654 }
0x207d   : > { %14921 = vrcp.f32 %v3655_v22 }
0x2080   : > { %v14809_v23 = vpop.permute.xlu0 %14808 }
0x2081   : > { %v14811_v24 = vunpack.i.h.bf16 %v14809_v23  ;;  %v14810_v26 = vunpack.i.l.bf16 %v14809_v23 }
0x2083   : > { %v14422_v6 = vpack.c.bf16 %v14811_v24, %v14810_v26 }
0x2084   : > { %v3767_v28 = vpop.xlane.xlu1 %3766  ;;  %v4119_v17 = vpop.permute.xlu0 %4118 }
0x2085   : > { %14424 = vmatpush3.bf16.xpose.msk.msra.mxu1 %vm15310_vm6, %v14422_v6  ;;  %14923 = vrcp.f32 %v3767_v28 }
0x2086   : > { %14429 = vmatprep.subr.bf16.mxu1 %v15074_v2 }
0x2087   : > { %v14922_v29 = vpop.eup %14921 }
0x208f   : > { %v14924_v35 = vpop.eup %14923 }
0x20bf   : > { %v3698_v30 = vpop.f32.mrb[56].mxu0 }
0x20c0   : > { %v3705_v31 = vmul.f32 %v14922_v29, %v3698_v30  ;;  %v13499_v32 = vpop.f32.mrb[57].mxu0 }
0x20c1   : > { %v3701_v33 = vpop.f32.mrb[58].mxu0 }
0x20c2   : > { %v13500_v34 = vpop.f32.mrb[59].mxu0  ;;  %13525 = vmatmul.mubr.msk.f32.vlgmr.msra.gmra.mrb[54].mxu0 %vm828_vm3, %v3705_v31 }
0x20c3   : > { %13542 = vmatprep.mubr.msk.f32.mxu0 %vm15075_vm2, %v15076_v5  ;;  %14436 = vmatpush3.bf16.xpose.msk.msra.mxu0 %vm15221_vm1, %v14434_v54 }
0x20c4   : > { %14437 = vmatprep.subr.bf16.mxu0 %v15074_v2 }
0x20c7   : > { %v3810_v37 = vpop.f32.mrb[60].mxu0 }
0x20c8   : > { %v3817_v38 = vmul.f32 %v14924_v35, %v3810_v37  ;;  %v13511_v39 = vpop.f32.mrb[61].mxu0 }
0x20c9   : > { %v3813_v40 = vpop.f32.mrb[62].mxu0 }
0x20ca   : > { %v13512_v41 = vpop.f32.mrb[63].mxu0  ;;  %13518 = vmatmul.mubr.msk.f32.vlgmr.msra.gmra.mrb[56].mxu1 %vm828_vm3, %v3817_v38 }
0x20cb   : > { %13531 = vmatprep.mubr.msk.f32.mxu1 %vm15075_vm2, %v15076_v5  ;;  %14440 = vmatpush3.bf16.xpose.msk.msra.mxu0 %vm15221_vm1, %v14438_v12 }
0x20cc   : > { %13551 = vmatprep.subr.bf16.mxu0 %v15076_v5  ;;  %14432 = vmatpush3.bf16.xpose.msk.msra.mxu1 %vm15221_vm1, %v14430_v3 }
0x20cd   : > { %13545 = vmatprep.subr.bf16.mxu1 %v15076_v5 }
0x20d2   : > { %13543 = vmatmul.mubr.msk.f32.vlgmr.msra.gmra.mrb[64].mxu0 %vm732_vm0, %v15895_v1 }
0x20d3   : > { %13553 = vmatprep.mubr.msk.bf16.mxu0 %vm15075_vm2, %v15076_v5 }
0x2195   : > { %v3974_v43 = vpop.f32.mrb[54].mxu0 }
0x2196   : > { %v13526_v44 = vpop.f32.mrb[55].mxu0 }
0x219d   : > { %v3897_v46 = vpop.f32.mrb[56].mxu1 }
0x219e   : > { %v3975_v47 = vadd.f32 %v3974_v43, %v3897_v46  ;;  %v13519_v48 = vpop.f32.mrb[57].mxu1 }
0x21a0   : > { %v3984_v25 = vadd.f32 %v12199_v45, %v3975_v47 }
0x21a2   : > { %3985 = vst.msk [vmem:[#allocation2] sm:$0xff] %vm732_vm0, %v3984_v25 }
0x21a5   : > { %v4199_v18 = vpop.f32.mrb[64].mxu0 }
0x21a6   : > { %v4200_v19 = vadd.f32 %v4199_v18, %v4119_v17  ;;  %v13544_v20 = vpop.f32.mrb[65].mxu0 }
0x21a8   : > { %v4204_v21 = vpack.c.bf16 %v4200_v19, %v4200_v19 }
0x21a9   : > { %v3986_v49 = vld [vmem:[#allocation2] sm:$0xff] }
0x21aa   : > { %v3987_v50 = vadd.f32 %v3986_v49, %v15804_v36  ;;  %v4209_v22 = vsel %vm828_vm3, %v4204_v21, 0 }
0x21ac   : > { %v3992_v51 = vsel %vm732_vm0, %v3987_v50, 0.0 }
0x21ad   : > { %3993 = vadd.xlane.f32.xlu1 %v3992_v51  ;;  %v12211_v51 = vld [vmem:[%s17483_s3 + $0x20] sm:$0xff] }
0x21ae   : > { %v14446_v53 = vpack.c.bf16 %v12212_v52, %v12211_v51  ;;  %v14812_v54 = vpack.i.bf16 %v12212_v52, %v12211_v51 }
0x223a   : > { %v3994_v56 = vpop.xlane.xlu1 %3993 }
0x223b   : > { %v3995_v36 = vmul.f32 0.0625, %v3994_v56 }
0x223d   : > { %v3996_v57 = vsub.f32 %v3987_v50, %v3995_v36 }
0x223f   : > { %v3997_v58 = vmul.f32 %v3996_v57, %v3996_v57 }
0x2241   : > { %v3998_v59 = vsel %vm732_vm0, %v3997_v58, 0.0 }
0x2242   : > { %3999 = vadd.xlane.f32.xlu1 %v3998_v59 }
0x2253   : > { %4317 = vrot.lane.b32.xlu1 %v4204_v21, %s17481_s25 }
0x22cf   : > { %v4000_v8 = vpop.xlane.xlu1 %3999 }
0x22d0   : > { %v4001_v9 = vmul.f32 0.0625, %v4000_v8 }
0x22d2   : > { %v4002_v10 = vadd.f32 1e-05, %v4001_v9 }
0x22d3   : > { %v4318_v24 = vpop.permute.xlu1 %4317 }
0x22d4   : > { %14925 = vrsqrt.f32 %v4002_v10  ;;  %v4323_v29 = vsel %vm828_vm3, %v4318_v24, 0 }
0x22de   : > { %v14926_v11 = vpop.eup %14925 }
0x22df   : > { %v4004_v14 = vmul.f32 %v14926_v11, %v3996_v57 }
0x22e1   : > { %v4011_v55 = vmul.f32 %v12202_v13, %v4004_v14 }
0x22e3   : > { %v15914_v16 = vadd.f32 %v12203_v15, %v4011_v55 }
0x22e5   : > { %13532 = vmatmul.mubr.msk.f32.vlgmr.msra.gmra.mrb[58].mxu1 %vm732_vm0, %v15914_v16 }
0x22e6   : > { %13547 = vmatprep.mubr.msk.bf16.mxu1 %vm15075_vm2, %v15076_v5  ;;  %13546 = vmatpush3.bf16.xpose.msra.mxu1 %v4209_v22 }
0x22e7   : > { %13557 = vmatprep.subr.bf16.mxu1 %v15076_v5 }
0x23b8   : > { %v4114_v23 = vpop.f32.mrb[58].mxu1 }
0x23b9   : > { %v4115_v26 = vadd.f32 %v12214_v7, %v4114_v23  ;;  %v13533_v6 = vpop.f32.mrb[59].mxu1 }
0x23ba   : > { %v12233_v6 = vld [vmem:[%s17411_s8 + $0x2] ss:$0 sm:$0xff] }
0x23bb   : > { %v4203_v28 = vpack.c.bf16 %v4115_v26, %v4115_v26 }
0x23bd   : > { %4315 = vrot.lane.b32.xlu0 %v4203_v28, %s17481_s25  ;;  %13548 = vmatmul.mubr.msk.bf16.vlgmr.msra.gmra.mrb[60].mxu1 %vm828_vm3, %v4203_v28 }
0x23be   : > { %13558 = vmatpush3.bf16.xpose.msra.mxu1 %v4323_v29  ;;  %13559 = vmatprep.mubr.msk.bf16.mxu1 %vm15075_vm2, %v15076_v5 }
0x23bf   : > { %14441 = vmatprep.subr.bf16.mxu1 %v15074_v2 }
0x242f   : > { %v4316_v30 = vpop.permute.xlu0 %4315 }
0x2430   : > { %13560 = vmatmul.mubr.msk.bf16.vlgmr.msra.gmra.mrb[64].mxu1 %vm828_vm3, %v4316_v30 }
0x2431   : > { %13573 = vmatprep.mubr.msk.f32.mxu1 %vm15075_vm2, %v15076_v5 }
0x2490   : > { %v4245_v31 = vpop.f32.mrb[60].mxu1 }
0x2491   : > { %v13549_v32 = vpop.f32.mrb[61].mxu1  ;;  %v4251_v33 = vsel %vm828_vm3, %v4245_v31, -inf }
0x2492   : > { %4252 = vmax.xlane.f32.xlu0 %v4251_v33  ;;  %v4248_v34 = vpop.f32.mrb[62].mxu1 }
0x2493   : > { %v13550_v35 = vpop.f32.mrb[63].mxu1 }
0x2494   : > { %v12238_v35 = vld [vmem:[%s17412_s9 + $0x80] sm:$0xff] }
0x24a8   : > { %4264 = vrot.lane.b32.xlu0 %v4204_v21, %s17480_s28 }
0x2503   : > { %v4359_v37 = vpop.f32.mrb[64].mxu1 }
0x2504   : > { %v13561_v38 = vpop.f32.mrb[65].mxu1  ;;  %v4365_v39 = vsel %vm828_vm3, %v4359_v37, -inf }
0x2505   : > { %4366 = vmax.xlane.f32.xlu1 %v4365_v39  ;;  %v4362_v40 = vpop.f32.mrb[66].mxu1  ;;  %v12241_v39 = vld [vmem:[%s17412_s9 + $0x98] sm:$0xff] }
0x2506   : > { %v13562_v41 = vpop.f32.mrb[67].mxu1 }
0x2516   : > { %4377 = vrot.lane.b32.xlu1 %v4204_v21, %s17482_s0 }
0x251f   : > { %v4253_v43 = vpop.xlane.xlu0 %4252 }
0x2520   : > { %v4254_v44 = vsub.f32 %v4245_v31, %v4253_v43 }
0x2522   : > { %v4255_v45 = vpack.c.bf16 %v4254_v44, %v4254_v44 }
0x2523   : > { %v4265_v46 = vpop.permute.xlu0 %4264 }
0x2524   : > { %v4257_v47 = vmul.bf16 1069105081, %v4255_v45  ;;  %v4270_v48 = vsel %vm892_vm5, %v4265_v46, 0 }
0x2525   : > { %13552 = vmatpush3.bf16.msra.mxu0 %v4270_v48  ;;  %v12243_v48 = vld [vmem:[%s17412_s9 + $0xa8] sm:$0xff] }
0x2526   : > { %14927 = vpow.bf16 %v4257_v47  ;;  %13563 = vmatprep.subr.bf16.mxu0 %v15076_v5  ;;  %v12242_v47 = vld [vmem:[%s17412_s9 + $0xa0] sm:$0xff] }
0x2531   : > { %v14928_v25 = vpop.eup %14927 }
0x2532   : > { %13554 = vmatmul.mubr.msk.bf16.vlgmr.msra.gmra.mrb[68].mxu0 %vm828_vm3, %v14928_v25  ;;  %v4259_v49 = vunpack.c.l.bf16 %v14928_v25  ;;  %v14458_v25 = vpack.c.bf16 %v12243_v48, %v12242_v47  ;;  %v12267_v47 = vld [vmem:[%s17421_s18 + $0x2] ss:$0 sm:$0xff] }
0x2533   : > { %13565 = vmatprep.mubr.msk.bf16.mxu0 %vm15075_vm2, %v15076_v5 }
0x2534   : > { %v4260_v50 = vsel %vm828_vm3, %v4259_v49, 0.0  ;;  %v12244_v49 = vld [vmem:[%s17412_s9 + $0xb0] sm:$0xff] }
0x2535   : > { %4261 = vadd.xlane.f32.xlu0 %v4260_v50  ;;  %v12245_v50 = vld [vmem:[%s17412_s9 + $0xb8] sm:$0xff] }
0x2536   : > { %v14462_v51 = vpack.c.bf16 %v12245_v50, %v12244_v49  ;;  %v12278_v49 = vld [vmem:[%s17473_s7 + $0x3] ss:$0 sm:$0xff] }
0x254b   : > { %14813 = vrot.lane.b32.xlu0 %v14812_v54, %s17481_s25 }
0x2592   : > { %v4367_v56 = vpop.xlane.xlu1 %4366 }
0x2593   : > { %v4368_v36 = vsub.f32 %v4359_v37, %v4367_v56  ;;  %v12239_v37 = vld [vmem:[%s17412_s9 + $0x88] sm:$0xff] }
0x2594   : > { %v14450_v38 = vpack.c.bf16 %v12239_v37, %v12238_v35  ;;  %v12271_v35 = vld [vmem:[%s17467_s5 + $0xa8] sm:$0xff] }
0x2595   : > { %v4369_v57 = vpack.c.bf16 %v4368_v36, %v4368_v36  ;;  %v12236_v36 = vld [vmem:[%s17418_s15 + $0x2] ss:$0 sm:$0xff] }
0x2596   : > { %v4378_v58 = vpop.permute.xlu1 %4377 }
0x2597   : > { %v4371_v59 = vmul.bf16 1069105081, %v4369_v57  ;;  %v4383_v60 = vsel %vm892_vm5, %v4378_v58, 0  ;;  %v12237_v58 = vld [vmem:[%s17419_s16 + $0x2] ss:$0 sm:$0xff] }
0x2598   : > { %13564 = vmatpush3.bf16.msra.mxu0 %v4383_v60 }
0x2599   : > { %14929 = vpow.bf16 %v4371_v59  ;;  %14445 = vmatprep.subr.bf16.mxu0 %v15074_v2 }
0x25a4   : > { %v14930_v62 = vpop.eup %14929 }
0x25a5   : > { %13566 = vmatmul.mubr.msk.bf16.vlgmr.msra.gmra.mrb[72].mxu0 %vm828_vm3, %v14930_v62  ;;  %v4373_v12 = vunpack.c.l.bf16 %v14930_v62  ;;  %v12257_v62 = vld [vmem:[%s17414_s11 + $0x20] sm:$0xff] }
0x25a6   : > { %14448 = vmatpush3.bf16.xpose.msk.msra.mxu0 %vm15310_vm6, %v14446_v53  ;;  %13580 = vmatprep.mubr.msk.f32.mxu0 %vm15075_vm2, %v15076_v5 }
0x25a7   : > { %v4374_v63 = vsel %vm828_vm3, %v4373_v12, 0.0  ;;  %14465 = vmatprep.subr.bf16.mxu0 %v15074_v2  ;;  %v12258_v12 = vld [vmem:[%s17414_s11 + $0x28] sm:$0xff] }
0x25a8   : > { %4375 = vadd.xlane.f32.xlu1 %v4374_v63  ;;  %v14466_v63 = vpack.c.bf16 %v12258_v12, %v12257_v62 }
0x25c2   : > { %v4262_v0 = vpop.xlane.xlu0 %4261 }
0x25c3   : > { %14931 = vrcp.f32 %v4262_v0  ;;  %v12247_v0 = vld [vmem:[%s17413_s10 + $0x2] ss:$0 sm:$0xff] }
0x25c6   : > { %v14814_v3 = vpop.permute.xlu0 %14813 }
0x25c7   : > { %v14816_v7 = vunpack.i.h.bf16 %v14814_v3  ;;  %v14815_v8 = vunpack.i.l.bf16 %v14814_v3 }
0x25c9   : > { %v14442_v9 = vpack.c.bf16 %v14816_v7, %v14815_v8 }
0x25cb   : > { %14444 = vmatpush3.bf16.xpose.msk.msra.mxu1 %vm15310_vm6, %v14442_v9 }
0x25cc   : > { %14449 = vmatprep.subr.bf16.mxu1 %v15074_v2 }
0x25cd   : > { %v14932_v10 = vpop.eup %14931 }
0x2605   : > { %v4306_v11 = vpop.f32.mrb[68].mxu0 }
0x2606   : > { %v4313_v13 = vmul.f32 %v14932_v10, %v4306_v11  ;;  %v13555_v14 = vpop.f32.mrb[69].mxu0 }
0x2607   : > { %v4309_v15 = vpop.f32.mrb[70].mxu0 }
0x2608   : > { %v13556_v55 = vpop.f32.mrb[71].mxu0  ;;  %13581 = vmatmul.mubr.msk.f32.vlgmr.msra.gmra.mrb[66].mxu0 %vm828_vm3, %v4313_v13 }
0x2609   : > { %13606 = vmatprep.mubr.msk.f32.mxu0 %vm15075_vm2, %v15076_v5  ;;  %14468 = vmatpush3.bf16.xpose.msk.msra.mxu0 %vm15488_vm8, %v14466_v63 }
0x260a   : > { %14469 = vmatprep.subr.bf16.mxu0 %v15074_v2 }
0x2635   : > { %v4376_v17 = vpop.xlane.xlu1 %4375 }
0x2636   : > { %14933 = vrcp.f32 %v4376_v17 }
0x2640   : > { %v14934_v18 = vpop.eup %14933 }
0x2678   : > { %v4419_v19 = vpop.f32.mrb[72].mxu0 }
0x2679   : > { %v4426_v20 = vmul.f32 %v14934_v18, %v4419_v19  ;;  %v13567_v21 = vpop.f32.mrb[73].mxu0  ;;  %v12260_v19 = vld [vmem:[%s17415_s12 + $0x2] ss:$0 sm:$0xff] }
0x267a   : > { %v4422_v22 = vpop.f32.mrb[74].mxu0 }
0x267b   : > { %v13568_v23 = vpop.f32.mrb[75].mxu0  ;;  %13574 = vmatmul.mubr.msk.f32.vlgmr.msra.gmra.mrb[68].mxu1 %vm828_vm3, %v4426_v20 }
0x267c   : > { %13599 = vmatprep.mubr.msk.f32.mxu1 %vm15075_vm2, %v15076_v5  ;;  %14452 = vmatpush3.bf16.xpose.msk.msra.mxu1 %vm15221_vm1, %v14450_v38  ;;  %v12272_v38 = vld [vmem:[%s17467_s5 + $0xb0] sm:$0xff] }
0x267d   : > { %14453 = vmatprep.subr.bf16.mxu1 %v15074_v2 }
0x26db   : > { %v4583_v24 = vpop.f32.mrb[66].mxu0 }
0x26dc   : > { %v13582_v26 = vpop.f32.mrb[67].mxu0 }
0x26dd   : > { %v12268_v26 = vld [vmem:[%s17467_s5 + $0x90] sm:$0xff] }
0x274e   : > { %v4506_v28 = vpop.f32.mrb[68].mxu1 }
0x274f   : > { %v4584_v29 = vadd.f32 %v4583_v24, %v4506_v28  ;;  %v13575_v30 = vpop.f32.mrb[69].mxu1 }
0x2751   : > { %v4593_v31 = vadd.f32 %v12233_v6, %v4584_v29  ;;  %v12269_v6 = vld [vmem:[%s17467_s5 + $0x98] sm:$0xff] }
0x2752   : > { %v14470_v28 = vpack.c.bf16 %v12269_v6, %v12268_v26 }
0x2753   : > { %4594 = vst.msk [vmem:[#allocation2] sm:$0xff] %vm732_vm0, %v4593_v31 }
0x275a   : > { %v4595_v32 = vld [vmem:[#allocation2] sm:$0xff] }
0x275b   : > { %v4596_v33 = vadd.f32 %v4595_v32, %v15914_v16  ;;  %v12240_v16 = vld [vmem:[%s17412_s9 + $0x90] sm:$0xff] }
0x275c   : > { %v14454_v40 = vpack.c.bf16 %v12241_v39, %v12240_v16  ;;  %v12273_v16 = vld [vmem:[%s17467_s5 + $0xb8] sm:$0xff] }
0x275d   : > { %v4601_v34 = vsel %vm732_vm0, %v4596_v33, 0.0  ;;  %v14478_v39 = vpack.c.bf16 %v12273_v16, %v12272_v38 }
0x275e   : > { %4602 = vadd.xlane.f32.xlu1 %v4601_v34  ;;  %14456 = vmatpush3.bf16.xpose.msk.msra.mxu1 %vm15221_vm1, %v14454_v40  ;;  %v12270_v34 = vld [vmem:[%s17467_s5 + $0xa0] sm:$0xff] }
0x275f   : > { %14457 = vmatprep.subr.bf16.mxu1 %v15074_v2  ;;  %v14474_v37 = vpack.c.bf16 %v12271_v35, %v12270_v34 }
0x2766   : > { %14460 = vmatpush3.bf16.xpose.msk.msra.mxu1 %vm15221_vm1, %v14458_v25 }
0x2767   : > { %14461 = vmatprep.subr.bf16.mxu1 %v15074_v2 }
0x276e   : > { %14464 = vmatpush3.bf16.xpose.msk.msra.mxu1 %vm15221_vm1, %v14462_v51 }
0x276f   : > { %13624 = vmatprep.subr.bf16.mxu1 %v15076_v5 }
0x27eb   : > { %v4603_v41 = vpop.xlane.xlu1 %4602 }
0x27ec   : > { %v4604_v43 = vmul.f32 0.0625, %v4603_v41 }
0x27ee   : > { %v4605_v44 = vsub.f32 %v4596_v33, %v4604_v43 }
0x27f0   : > { %v4606_v45 = vmul.f32 %v4605_v44, %v4605_v44 }
0x27f2   : > { %v4607_v46 = vsel %vm732_vm0, %v4606_v45, 0.0  ;;  %v12266_v45 = vld [vmem:[%s17420_s17 + $0x2] ss:$0 sm:$0xff] }
0x27f3   : > { %4608 = vadd.xlane.f32.xlu1 %v4607_v46 }
0x2880   : > { %v4609_v52 = vpop.xlane.xlu1 %4608 }
0x2881   : > { %v4610_v53 = vmul.f32 0.0625, %v4609_v52 }
0x2883   : > { %v4611_v54 = vadd.f32 1e-05, %v4610_v53 }
0x2885   : > { %14935 = vrsqrt.f32 %v4611_v54 }
0x288f   : > { %v14936_v56 = vpop.eup %14935 }
0x2890   : > { %v4613_v57 = vmul.f32 %v14936_v56, %v4605_v44 }
0x2892   : > { %v4620_v59 = vmul.f32 %v12236_v36, %v4613_v57 }
0x2894   : > { %v4627_v60 = vadd.f32 %v12237_v58, %v4620_v59 }
0x2896   : > { %13600 = vmatmul.mubr.msk.f32.vlgmr.msra.gmra.mrb[70].mxu1 %vm732_vm0, %v4627_v60 }
0x2897   : > { %13626 = vmatprep.mubr.msk.bf16.mxu1 %vm15075_vm2, %v15076_v5 }
0x2969   : > { %v4738_v3 = vpop.f32.mrb[70].mxu1 }
0x296a   : > { %v4739_v7 = vadd.f32 %v12247_v0, %v4738_v3  ;;  %v13601_v8 = vpop.f32.mrb[71].mxu1 }
0x296c   : > { %v4743_v9 = vmul.f32 0.044715, %v4739_v7  ;;  %v4742_v55 = vmul.f32 0.5, %v4739_v7 }
0x296e   : > { %v4744_v10 = vmul.f32 %v4743_v9, %v4739_v7 }
0x2970   : > { %v4745_v11 = vmul.f32 %v4744_v10, %v4739_v7 }
0x2972   : > { %v4746_v13 = vadd.f32 %v4745_v11, %v4739_v7 }
0x2974   : > { %v4747_v14 = vmul.f32 0.7978846, %v4746_v13 }
0x2976   : > { %14937 = vtanh.f32 %v4747_v14 }
0x2980   : > { %v14938_v15 = vpop.eup %14937 }
0x2981   : > { %v4749_v17 = vadd.f32 1.0, %v14938_v15 }
0x2983   : > { %v4750_v18 = vmul.f32 %v4749_v17, %v4742_v55 }
0x2985   : > { %13607 = vmatmul.mubr.msk.f32.vlgmr.msra.gmra.mrb[76].mxu0 %vm1983_vm7, %v4750_v18 }
0x2986   : > { %13621 = vmatprep.mubr.msk.f32.mxu0 %vm15075_vm2, %v15076_v5  ;;  %14472 = vmatpush3.bf16.xpose.msk.msra.mxu0 %vm15221_vm1, %v14470_v28 }
0x2987   : > { %14473 = vmatprep.subr.bf16.mxu0 %v15074_v2 }
0x298e   : > { %14476 = vmatpush3.bf16.xpose.msk.msra.mxu0 %vm15221_vm1, %v14474_v37 }
0x298f   : > { %14477 = vmatprep.subr.bf16.mxu0 %v15074_v2 }
0x2996   : > { %14480 = vmatpush3.bf16.xpose.msk.msra.mxu0 %vm15221_vm1, %v14478_v39 }
0x2997   : > { %13630 = vmatprep.subr.bf16.mxu0 %v15076_v5 }
0x2a58   : > { %v4837_v20 = vpop.f32.mrb[76].mxu0 }
0x2a59   : > { %v4838_v21 = vadd.f32 %v12260_v19, %v4837_v20  ;;  %v13608_v22 = vpop.f32.mrb[77].mxu0 }
0x2a5b   : > { %v4841_v23 = vadd.f32 %v4838_v21, %v4627_v60 }
0x2a5d   : > { %v4846_v24 = vsel %vm732_vm0, %v4841_v23, 0.0 }
0x2a5e   : > { %4847 = vadd.xlane.f32.xlu0 %v4846_v24 }
0x2aeb   : > { %v4848_v29 = vpop.xlane.xlu0 %4847 }
0x2aec   : > { %v4849_v30 = vmul.f32 0.0625, %v4848_v29  ;;  %v12275_v29 = vld [vmem:[%s17474_s26 + $0x30] sm:$0xff] }
0x2aee   : > { %v4850_v31 = vsub.f32 %v4841_v23, %v4849_v30  ;;  %v12276_v30 = vld [vmem:[%s17474_s26 + $0x38] sm:$0xff] }
0x2aef   : > { %v14817_v35 = vpack.i.bf16 %v12276_v30, %v12275_v29 }
0x2af0   : > { %v4851_v32 = vmul.f32 %v4850_v31, %v4850_v31 }
0x2af2   : > { %v4852_v33 = vsel %vm732_vm0, %v4851_v32, 0.0 }
0x2af3   : > { %4853 = vadd.xlane.f32.xlu1 %v4852_v33 }
0x2b80   : > { %v4854_v40 = vpop.xlane.xlu1 %4853 }
0x2b81   : > { %v4855_v41 = vmul.f32 0.0625, %v4854_v40 }
0x2b83   : > { %v4856_v43 = vadd.f32 1e-05, %v4855_v41 }
0x2b85   : > { %14939 = vrsqrt.f32 %v4856_v43 }
0x2b8f   : > { %v14940_v44 = vpop.eup %14939 }
0x2b90   : > { %v4858_v46 = vmul.f32 %v14940_v44, %v4850_v31  ;;  %v14486_v31 = vpack.c.bf16 %v12276_v30, %v12275_v29 }
0x2b92   : > { %v4865_v48 = vmul.f32 %v12266_v45, %v4858_v46 }
0x2b94   : > { %v16072_v25 = vadd.f32 %v12267_v47, %v4865_v48 }
0x2b96   : > { %13622 = vmatmul.mubr.msk.f32.vlgmr.msra.gmra.mrb[78].mxu0 %vm732_vm0, %v16072_v25 }
0x2b97   : > { %13632 = vmatprep.mubr.msk.bf16.mxu0 %vm15075_vm2, %v15076_v5 }
0x2c69   : > { %v4980_v50 = vpop.f32.mrb[78].mxu0 }
0x2c6a   : > { %v4981_v51 = vadd.f32 %v12278_v49, %v4980_v50  ;;  %v13623_v52 = vpop.f32.mrb[79].mxu0 }
0x2c6c   : > { %v4984_v53 = vpack.c.bf16 %v4981_v51, %v4981_v51 }
0x2c6e   : > { %4986 = vrot.lane.b32.xlu1 %v4984_v53, %s17480_s28 }
0x2c72   : > { %5098 = vrot.lane.b32.xlu1 %v4984_v53, %s17482_s0 }
0x2c76   : > { %5096 = vrot.lane.b32.xlu1 %v4984_v53, %s17481_s25 }
0x2ce0   : > { %v4987_v54 = vpop.permute.xlu1 %4986 }
0x2ce1   : > { %v4992_v56 = vsel %vm828_vm3, %v4987_v54, 0 }
0x2ce2   : > { %13625 = vmatpush3.bf16.xpose.msra.mxu1 %v4992_v56 }
0x2ce3   : > { %13636 = vmatprep.subr.bf16.mxu1 %v15076_v5 }
0x2ce4   : > { %v5099_v36 = vpop.permute.xlu1 %5098 }
0x2ce5   : > { %v5104_v57 = vsel %vm828_vm3, %v5099_v36, 0 }
0x2ce8   : > { %v5097_v58 = vpop.permute.xlu1 %5096 }
0x2ce9   : > { %13627 = vmatmul.mubr.msk.bf16.vlgmr.msra.gmra.mrb[72].mxu1 %vm828_vm3, %v4984_v53 }
0x2cea   : > { %13637 = vmatpush3.bf16.xpose.msra.mxu1 %v5104_v57  ;;  %13638 = vmatprep.mubr.msk.bf16.mxu1 %vm15075_vm2, %v15076_v5  ;;  %v12296_v57 = vld [vmem:[%s17489_s20 + $0x3] ss:$0 sm:$0xff] }
0x2ceb   : > { %14481 = vmatprep.subr.bf16.mxu1 %v15074_v2 }
0x2cf1   : > { %13639 = vmatmul.mubr.msk.bf16.vlgmr.msra.gmra.mrb[76].mxu1 %vm828_vm3, %v5097_v58 }
0x2cf2   : > { %13652 = vmatprep.mubr.msk.f32.mxu1 %vm15075_vm2, %v15076_v5 }
0x2dbc   : > { %v5028_v59 = vpop.f32.mrb[72].mxu1 }
0x2dbd   : > { %v5029_v60 = vadd.f32 %v5028_v59, %v15282_v27  ;;  %v13628_v62 = vpop.f32.mrb[73].mxu1 }
0x2dbe   : > { %v5031_v12 = vpop.f32.mrb[74].mxu1 }
0x2dbf   : > { %v13629_v63 = vpop.f32.mrb[75].mxu1  ;;  %v5034_v0 = vsel %vm828_vm3, %v5029_v60, -inf }
0x2dc0   : > { %5035 = vmax.xlane.f32.xlu0 %v5034_v0 }
0x2dc4   : > { %v5140_v3 = vpop.f32.mrb[76].mxu1 }
0x2dc5   : > { %v5141_v7 = vadd.f32 %v5140_v3, %v15282_v27  ;;  %v13640_v8 = vpop.f32.mrb[77].mxu1  ;;  %v12303_v3 = vld [vmem:[%s17478_s24 + $0xa0] sm:$0xff] }
0x2dc6   : > { %v5143_v9 = vpop.f32.mrb[78].mxu1 }
0x2dc7   : > { %v13641_v10 = vpop.f32.mrb[79].mxu1  ;;  %v5146_v11 = vsel %vm828_vm3, %v5141_v7, -inf }
0x2dc8   : > { %5147 = vmax.xlane.f32.xlu1 %v5146_v11 }
0x2dd6   : > { %5046 = vrot.lane.b32.xlu0 %v4984_v53, %s17486_s23 }
0x2dda   : > { %5158 = vrot.lane.b32.xlu0 %v4984_v53, %s17487_s4 }
0x2e4d   : > { %v5036_v13 = vpop.xlane.xlu0 %5035 }
0x2e4e   : > { %v5037_v14 = vsub.f32 %v5029_v60, %v5036_v13 }
0x2e50   : > { %v5038_v15 = vpack.c.bf16 %v5037_v14, %v5037_v14  ;;  %v12305_v14 = vld [vmem:[%s17478_s24 + $0xb0] sm:$0xff] }
0x2e51   : > { %v5047_v55 = vpop.permute.xlu0 %5046 }
0x2e52   : > { %v5040_v17 = vmul.bf16 1069105081, %v5038_v15  ;;  %v5052_v18 = vsel %vm892_vm5, %v5047_v55, 0  ;;  %v12306_v15 = vld [vmem:[%s17478_s24 + $0xb8] sm:$0xff] }
0x2e53   : > { %13631 = vmatpush3.bf16.msra.mxu0 %v5052_v18  ;;  %v14498_v55 = vpack.c.bf16 %v12306_v15, %v12305_v14  ;;  %v12302_v18 = vld [vmem:[%s17478_s24 + $0x98] sm:$0xff] }
0x2e54   : > { %14941 = vpow.bf16 %v5040_v17  ;;  %13642 = vmatprep.subr.bf16.mxu0 %v15076_v5  ;;  %v12301_v17 = vld [vmem:[%s17478_s24 + $0x90] sm:$0xff] }
0x2e55   : > { %v5148_v19 = vpop.xlane.xlu1 %5147  ;;  %v5159_v23 = vpop.permute.xlu0 %5158 }
0x2e56   : > { %v5149_v20 = vsub.f32 %v5141_v7, %v5148_v19  ;;  %v5164_v26 = vsel %vm892_vm5, %v5159_v23, 0  ;;  %v12304_v7 = vld [vmem:[%s17478_s24 + $0xa8] sm:$0xff]  ;;  %v14490_v19 = vpack.c.bf16 %v12302_v18, %v12301_v17 }
0x2e57   : > { %v14494_v8 = vpack.c.bf16 %v12304_v7, %v12303_v3 }
0x2e58   : > { %v5150_v21 = vpack.c.bf16 %v5149_v20, %v5149_v20  ;;  %v12311_v20 = vld [vmem:[%s17479_s1 + $0x3] ss:$0 sm:$0xff] }
0x2e5a   : > { %v5152_v22 = vmul.bf16 1069105081, %v5150_v21 }
0x2e5c   : > { %14943 = vpow.bf16 %v5152_v22 }
0x2e5f   : > { %v14942_v24 = vpop.eup %14941 }
0x2e60   : > { %13633 = vmatmul.mubr.msk.bf16.vlgmr.msra.gmra.mrb[80].mxu0 %vm828_vm3, %v14942_v24  ;;  %v5042_v6 = vunpack.c.l.bf16 %v14942_v24  ;;  %v12299_v24 = vld [vmem:[%s17416_s13 + $0x3] ss:$0 sm:$0xff] }
0x2e61   : > { %13643 = vmatpush3.bf16.msra.mxu0 %v5164_v26  ;;  %13644 = vmatprep.mubr.msk.bf16.mxu0 %vm15075_vm2, %v15076_v5 }
0x2e62   : > { %v5043_v28 = vsel %vm828_vm3, %v5042_v6, 0.0  ;;  %14485 = vmatprep.subr.bf16.mxu0 %v15074_v2  ;;  %v12300_v6 = vld [vmem:[%s17417_s14 + $0x3] ss:$0 sm:$0xff] }
0x2e63   : > { %5044 = vadd.xlane.f32.xlu0 %v5043_v28 }
0x2e67   : > { %v14944_v32 = vpop.eup %14943 }
0x2e68   : > { %13645 = vmatmul.mubr.msk.bf16.vlgmr.msra.gmra.mrb[84].mxu0 %vm828_vm3, %v14944_v32  ;;  %v5154_v33 = vunpack.c.l.bf16 %v14944_v32 }
0x2e69   : > { %13659 = vmatprep.mubr.msk.f32.mxu0 %vm15075_vm2, %v15076_v5 }
0x2e6a   : > { %v5155_v34 = vsel %vm828_vm3, %v5154_v33, 0.0  ;;  %14488 = vmatpush3.bf16.xpose.msk.msra.mxu0 %vm15310_vm6, %v14486_v31 }
0x2e6b   : > { %5156 = vadd.xlane.f32.xlu1 %v5155_v34  ;;  %14493 = vmatprep.subr.bf16.mxu0 %v15074_v2 }
0x2e7c   : > { %14818 = vrot.lane.b32.xlu1 %v14817_v35, %s17481_s25 }
0x2ef0   : > { %v5045_v41 = vpop.xlane.xlu0 %5044 }
0x2ef1   : > { %14945 = vrcp.f32 %v5045_v41 }
0x2ef8   : > { %v5157_v37 = vpop.xlane.xlu1 %5156 }
0x2ef9   : > { %14947 = vrcp.f32 %v5157_v37 }
0x2efb   : > { %v14946_v43 = vpop.eup %14945 }
0x2efc   : > { %v14819_v38 = vpop.permute.xlu1 %14818 }
0x2efd   : > { %v14821_v16 = vunpack.i.h.bf16 %v14819_v38  ;;  %v14820_v39 = vunpack.i.l.bf16 %v14819_v38 }
0x2eff   : > { %v14482_v40 = vpack.c.bf16 %v14821_v16, %v14820_v39 }
0x2f01   : > { %14484 = vmatpush3.bf16.xpose.msk.msra.mxu1 %vm15310_vm6, %v14482_v40 }
0x2f02   : > { %14489 = vmatprep.subr.bf16.mxu1 %v15074_v2 }
0x2f03   : > { %v14948_v49 = vpop.eup %14947 }
0x2f33   : > { %v5088_v44 = vpop.f32.mrb[80].mxu0 }
0x2f34   : > { %v5095_v45 = vmul.f32 %v14946_v43, %v5088_v44  ;;  %v13634_v46 = vpop.f32.mrb[81].mxu0 }
0x2f35   : > { %v5091_v47 = vpop.f32.mrb[82].mxu0 }
0x2f36   : > { %v13635_v48 = vpop.f32.mrb[83].mxu0  ;;  %13660 = vmatmul.mubr.msk.f32.vlgmr.msra.gmra.mrb[88].mxu0 %vm828_vm3, %v5095_v45 }
0x2f37   : > { %13677 = vmatprep.mubr.msk.f32.mxu0 %vm15075_vm2, %v15076_v5  ;;  %14496 = vmatpush3.bf16.xpose.msk.msra.mxu0 %vm15221_vm1, %v14494_v8 }
0x2f38   : > { %14497 = vmatprep.subr.bf16.mxu0 %v15074_v2 }
0x2f3b   : > { %v5200_v50 = vpop.f32.mrb[84].mxu0 }
0x2f3c   : > { %v5207_v51 = vmul.f32 %v14948_v49, %v5200_v50  ;;  %v13646_v52 = vpop.f32.mrb[85].mxu0 }
0x2f3d   : > { %v5203_v53 = vpop.f32.mrb[86].mxu0 }
0x2f3e   : > { %v13647_v54 = vpop.f32.mrb[87].mxu0  ;;  %13653 = vmatmul.mubr.msk.f32.vlgmr.msra.gmra.mrb[80].mxu1 %vm828_vm3, %v5207_v51 }
0x2f3f   : > { %13666 = vmatprep.mubr.msk.f32.mxu1 %vm15075_vm2, %v15076_v5  ;;  %14500 = vmatpush3.bf16.xpose.msk.msra.mxu0 %vm15221_vm1, %v14498_v55 }
0x2f40   : > { %13686 = vmatprep.subr.bf16.mxu0 %v15076_v5  ;;  %14492 = vmatpush3.bf16.xpose.msk.msra.mxu1 %vm15221_vm1, %v14490_v19 }
0x2f41   : > { %13680 = vmatprep.subr.bf16.mxu1 %v15076_v5 }
0x2f46   : > { %13678 = vmatmul.mubr.msk.f32.vlgmr.msra.gmra.mrb[90].mxu0 %vm732_vm0, %v15895_v1 }
0x2f47   : > { %13688 = vmatprep.mubr.msk.bf16.mxu0 %vm15075_vm2, %v15076_v5 }
0x3009   : > { %v5364_v56 = vpop.f32.mrb[88].mxu0 }
0x300a   : > { %v13661_v36 = vpop.f32.mrb[89].mxu0 }
0x3011   : > { %v5287_v58 = vpop.f32.mrb[80].mxu1 }
0x3012   : > { %v5365_v59 = vadd.f32 %v5364_v56, %v5287_v58  ;;  %v13654_v60 = vpop.f32.mrb[81].mxu1 }
0x3014   : > { %v5374_v62 = vadd.f32 %v12296_v57, %v5365_v59 }
0x3016   : > { %5375 = vst.msk [vmem:[#allocation2] sm:$0xff] %vm732_vm0, %v5374_v62 }
0x3019   : > { %v5589_v31 = vpop.f32.mrb[90].mxu0 }
0x301a   : > { %v13679_v33 = vpop.f32.mrb[91].mxu0 }
0x301d   : > { %v5376_v12 = vld [vmem:[#allocation2] sm:$0xff] }
0x301e   : > { %v5377_v63 = vadd.f32 %v5376_v12, %v16072_v25 }
0x3020   : > { %v5382_v0 = vsel %vm732_vm0, %v5377_v63, 0.0 }
0x3021   : > { %5383 = vadd.xlane.f32.xlu1 %v5382_v0 }
0x30ae   : > { %v5384_v9 = vpop.xlane.xlu1 %5383 }
0x30af   : > { %v5385_v10 = vmul.f32 0.0625, %v5384_v9 }
0x30b1   : > { %v5386_v25 = vsub.f32 %v5377_v63, %v5385_v10  ;;  %v12308_v10 = vld [vmem:[%s17483_s3 + $0x30] sm:$0xff] }
0x30b3   : > { %v5387_v11 = vmul.f32 %v5386_v25, %v5386_v25 }
0x30b5   : > { %v5388_v13 = vsel %vm732_vm0, %v5387_v11, 0.0 }
0x30b6   : > { %5389 = vadd.xlane.f32.xlu0 %v5388_v13 }
0x30cc   : > { %5508 = vrot.lane.b32.xlu0 %v12311_v20, %s17480_s28 }
0x3143   : > { %v5390_v21 = vpop.xlane.xlu0 %5389 }
0x3144   : > { %v5391_v22 = vmul.f32 0.0625, %v5390_v21 }
0x3146   : > { %v5392_v23 = vadd.f32 1e-05, %v5391_v22 }
0x3147   : > { %v5509_v30 = vpop.permute.xlu0 %5508 }
0x3148   : > { %14949 = vrsqrt.f32 %v5392_v23  ;;  %v5590_v32 = vadd.f32 %v5589_v31, %v5509_v30 }
0x314a   : > { %v5594_v34 = vpack.c.bf16 %v5590_v32, %v5590_v32 }
0x314c   : > { %5707 = vrot.lane.b32.xlu0 %v5594_v34, %s17481_s25  ;;  %v5599_v35 = vsel %vm828_vm3, %v5594_v34, 0 }
0x3152   : > { %v14950_v1 = vpop.eup %14949 }
0x3153   : > { %v5394_v26 = vmul.f32 %v14950_v1, %v5386_v25  ;;  %v12309_v25 = vld [vmem:[%s17483_s3 + $0x38] sm:$0xff] }
0x3154   : > { %v14506_v11 = vpack.c.bf16 %v12309_v25, %v12308_v10  ;;  %v14822_v55 = vpack.i.bf16 %v12309_v25, %v12308_v10  ;;  %v12334_v10 = vld [vmem:[%s17419_s16 + $0x3] ss:$0 sm:$0xff] }
0x3155   : > { %v5401_v28 = vmul.f32 %v12299_v24, %v5394_v26 }
0x3157   : > { %v16179_v29 = vadd.f32 %v12300_v6, %v5401_v28 }
0x3159   : > { %13667 = vmatmul.mubr.msk.f32.vlgmr.msra.gmra.mrb[82].mxu1 %vm732_vm0, %v16179_v29 }
0x315a   : > { %13682 = vmatprep.mubr.msk.bf16.mxu1 %vm15075_vm2, %v15076_v5  ;;  %13681 = vmatpush3.bf16.xpose.msra.mxu1 %v5599_v35 }
0x315b   : > { %13692 = vmatprep.subr.bf16.mxu1 %v15076_v5 }
0x31be   : > { %v5708_v38 = vpop.permute.xlu0 %5707 }
0x31bf   : > { %v5713_v41 = vsel %vm828_vm3, %v5708_v38, 0 }
0x322c   : > { %v5504_v37 = vpop.f32.mrb[82].mxu1 }
0x322d   : > { %v5505_v16 = vadd.f32 %v12311_v20, %v5504_v37  ;;  %v13668_v39 = vpop.f32.mrb[83].mxu1 }
0x322f   : > { %v5593_v40 = vpack.c.bf16 %v5505_v16, %v5505_v16  ;;  %v12330_v16 = vld [vmem:[%s17411_s8 + $0x3] ss:$0 sm:$0xff] }
0x3231   : > { %5705 = vrot.lane.b32.xlu0 %v5593_v40, %s17481_s25  ;;  %13683 = vmatmul.mubr.msk.bf16.vlgmr.msra.gmra.mrb[84].mxu1 %vm828_vm3, %v5593_v40 }
0x3232   : > { %13693 = vmatpush3.bf16.xpose.msra.mxu1 %v5713_v41  ;;  %13694 = vmatprep.mubr.msk.bf16.mxu1 %vm15075_vm2, %v15076_v5 }
0x3233   : > { %14501 = vmatprep.subr.bf16.mxu1 %v15074_v2 }
0x32a3   : > { %v5706_v43 = vpop.permute.xlu0 %5705 }
0x32a4   : > { %13695 = vmatmul.mubr.msk.bf16.vlgmr.msra.gmra.mrb[88].mxu1 %vm828_vm3, %v5706_v43 }
0x32a5   : > { %13708 = vmatprep.mubr.msk.f32.mxu1 %vm15075_vm2, %v15076_v5 }
0x3304   : > { %v5635_v44 = vpop.f32.mrb[84].mxu1 }
0x3305   : > { %v13684_v45 = vpop.f32.mrb[85].mxu1  ;;  %v5641_v46 = vsel %vm828_vm3, %v5635_v44, -inf }
0x3306   : > { %5642 = vmax.xlane.f32.xlu1 %v5641_v46  ;;  %v5638_v47 = vpop.f32.mrb[86].mxu1 }
0x3307   : > { %v13685_v48 = vpop.f32.mrb[87].mxu1  ;;  %v12335_v47 = vld [vmem:[%s17412_s9 + $0xc0] sm:$0xff] }
0x3308   : > { %v12336_v48 = vld [vmem:[%s17412_s9 + $0xc8] sm:$0xff] }
0x3317   : > { %5654 = vrot.lane.b32.xlu1 %v5594_v34, %s17480_s28 }
0x331b   : > { %5767 = vrot.lane.b32.xlu1 %v5594_v34, %s17482_s0 }
0x3377   : > { %v5749_v49 = vpop.f32.mrb[88].mxu1 }
0x3378   : > { %v13696_v50 = vpop.f32.mrb[89].mxu1  ;;  %v5755_v51 = vsel %vm828_vm3, %v5749_v49, -inf }
0x3379   : > { %5756 = vmax.xlane.f32.xlu0 %v5755_v51  ;;  %v5752_v52 = vpop.f32.mrb[90].mxu1  ;;  %v12338_v50 = vld [vmem:[%s17412_s9 + $0xd8] sm:$0xff] }
0x337a   : > { %v13697_v53 = vpop.f32.mrb[91].mxu1 }
0x3393   : > { %v5643_v54 = vpop.xlane.xlu1 %5642 }
0x3394   : > { %v5644_v56 = vsub.f32 %v5635_v44, %v5643_v54 }
0x3396   : > { %v5645_v36 = vpack.c.bf16 %v5644_v56, %v5644_v56 }
0x3397   : > { %v5655_v57 = vpop.permute.xlu1 %5654 }
0x3398   : > { %v5647_v58 = vmul.bf16 1069105081, %v5645_v36  ;;  %v5660_v59 = vsel %vm892_vm5, %v5655_v57, 0  ;;  %v12339_v57 = vld [vmem:[%s17412_s9 + $0xe0] sm:$0xff] }
0x3399   : > { %13687 = vmatpush3.bf16.msra.mxu0 %v5660_v59 }
0x339a   : > { %14951 = vpow.bf16 %v5647_v58  ;;  %13698 = vmatprep.subr.bf16.mxu0 %v15076_v5  ;;  %v12340_v58 = vld [vmem:[%s17412_s9 + $0xe8] sm:$0xff] }
0x339b   : > { %v5768_v60 = vpop.permute.xlu1 %5767  ;;  %v14518_v59 = vpack.c.bf16 %v12340_v58, %v12339_v57 }
0x339c   : > { %v5773_v12 = vsel %vm892_vm5, %v5768_v60, 0  ;;  %v12341_v60 = vld [vmem:[%s17412_s9 + $0xf0] sm:$0xff] }
0x33a5   : > { %v14952_v62 = vpop.eup %14951 }
0x33a6   : > { %13689 = vmatmul.mubr.msk.bf16.vlgmr.msra.gmra.mrb[92].mxu0 %vm828_vm3, %v14952_v62  ;;  %v5649_v63 = vunpack.c.l.bf16 %v14952_v62  ;;  %v12342_v62 = vld [vmem:[%s17412_s9 + $0xf8] sm:$0xff] }
0x33a7   : > { %13699 = vmatpush3.bf16.msra.mxu0 %v5773_v12  ;;  %13700 = vmatprep.mubr.msk.bf16.mxu0 %vm15075_vm2, %v15076_v5  ;;  %v14522_v12 = vpack.c.bf16 %v12342_v62, %v12341_v60 }
0x33a8   : > { %v5650_v0 = vsel %vm828_vm3, %v5649_v63, 0.0  ;;  %14505 = vmatprep.subr.bf16.mxu0 %v15074_v2 }
0x33a9   : > { %5651 = vadd.xlane.f32.xlu1 %v5650_v0 }
0x3406   : > { %v5757_v3 = vpop.xlane.xlu0 %5756 }
0x3407   : > { %v5758_v7 = vsub.f32 %v5749_v49, %v5757_v3  ;;  %v14510_v49 = vpack.c.bf16 %v12336_v48, %v12335_v47  ;;  %v12369_v48 = vld [vmem:[%s17467_s5 + $0xe0] sm:$0xff] }
0x3409   : > { %v5759_v8 = vpack.c.bf16 %v5758_v7, %v5758_v7 }
0x340b   : > { %v5761_v9 = vmul.bf16 1069105081, %v5759_v8  ;;  %v12333_v8 = vld [vmem:[%s17418_s15 + $0x3] ss:$0 sm:$0xff] }
0x340d   : > { %14953 = vpow.bf16 %v5761_v9 }
0x3418   : > { %v14954_v13 = vpop.eup %14953 }
0x3419   : > { %13701 = vmatmul.mubr.msk.bf16.vlgmr.msra.gmra.mrb[96].mxu0 %vm828_vm3, %v14954_v13  ;;  %v5763_v14 = vunpack.c.l.bf16 %v14954_v13  ;;  %v12354_v13 = vld [vmem:[%s17414_s11 + $0x30] sm:$0xff] }
0x341a   : > { %14508 = vmatpush3.bf16.xpose.msk.msra.mxu0 %vm15310_vm6, %v14506_v11  ;;  %13715 = vmatprep.mubr.msk.f32.mxu0 %vm15075_vm2, %v15076_v5 }
0x341b   : > { %v5764_v15 = vsel %vm828_vm3, %v5763_v14, 0.0  ;;  %14525 = vmatprep.subr.bf16.mxu0 %v15074_v2  ;;  %v12355_v14 = vld [vmem:[%s17414_s11 + $0x38] sm:$0xff] }
0x341c   : > { %5765 = vadd.xlane.f32.xlu0 %v5764_v15  ;;  %v14526_v15 = vpack.c.bf16 %v12355_v14, %v12354_v13 }
0x3432   : > { %14823 = vrot.lane.b32.xlu0 %v14822_v55, %s17481_s25  ;;  %v12344_v55 = vld [vmem:[%s17413_s10 + $0x3] ss:$0 sm:$0xff] }
0x3436   : > { %v5652_v17 = vpop.xlane.xlu1 %5651 }
0x3437   : > { %14955 = vrcp.f32 %v5652_v17 }
0x3441   : > { %v14956_v18 = vpop.eup %14955 }
0x3479   : > { %v5696_v19 = vpop.f32.mrb[92].mxu0 }
0x347a   : > { %v5703_v20 = vmul.f32 %v14956_v18, %v5696_v19  ;;  %v13690_v21 = vpop.f32.mrb[93].mxu0 }
0x347b   : > { %v5699_v22 = vpop.f32.mrb[94].mxu0 }
0x347c   : > { %v13691_v23 = vpop.f32.mrb[95].mxu0  ;;  %13716 = vmatmul.mubr.msk.f32.vlgmr.msra.gmra.mrb[100].mxu0 %vm828_vm3, %v5703_v20 }
0x347d   : > { %13741 = vmatprep.mubr.msk.f32.mxu0 %vm15075_vm2, %v15076_v5  ;;  %14528 = vmatpush3.bf16.xpose.msk.msra.mxu0 %vm15488_vm8, %v14526_v15 }
0x347e   : > { %14529 = vmatprep.subr.bf16.mxu0 %v15074_v2 }
0x34a9   : > { %v5766_v1 = vpop.xlane.xlu0 %5765 }
0x34aa   : > { %14957 = vrcp.f32 %v5766_v1 }
0x34ad   : > { %v14824_v24 = vpop.permute.xlu0 %14823 }
0x34ae   : > { %v14826_v26 = vunpack.i.h.bf16 %v14824_v24  ;;  %v14825_v6 = vunpack.i.l.bf16 %v14824_v24 }
0x34b0   : > { %v14502_v28 = vpack.c.bf16 %v14826_v26, %v14825_v6 }
0x34b2   : > { %14504 = vmatpush3.bf16.xpose.msk.msra.mxu1 %vm15310_vm6, %v14502_v28 }
0x34b3   : > { %14509 = vmatprep.subr.bf16.mxu1 %v15074_v2 }
0x34b4   : > { %v14958_v30 = vpop.eup %14957 }
0x34ec   : > { %v5809_v31 = vpop.f32.mrb[96].mxu0 }
0x34ed   : > { %v5816_v32 = vmul.f32 %v14958_v30, %v5809_v31  ;;  %v13702_v33 = vpop.f32.mrb[97].mxu0  ;;  %v12357_v30 = vld [vmem:[%s17415_s12 + $0x3] ss:$0 sm:$0xff] }
0x34ee   : > { %v5812_v34 = vpop.f32.mrb[98].mxu0 }
0x34ef   : > { %v13703_v35 = vpop.f32.mrb[99].mxu0  ;;  %13709 = vmatmul.mubr.msk.f32.vlgmr.msra.gmra.mrb[92].mxu1 %vm828_vm3, %v5816_v32 }
0x34f0   : > { %13734 = vmatprep.mubr.msk.f32.mxu1 %vm15075_vm2, %v15076_v5  ;;  %14512 = vmatpush3.bf16.xpose.msk.msra.mxu1 %vm15221_vm1, %v14510_v49  ;;  %v12370_v49 = vld [vmem:[%s17467_s5 + $0xe8] sm:$0xff] }
0x34f1   : > { %14513 = vmatprep.subr.bf16.mxu1 %v15074_v2 }
0x354f   : > { %v5973_v37 = vpop.f32.mrb[100].mxu0 }
0x3550   : > { %v13717_v38 = vpop.f32.mrb[101].mxu0 }
0x3551   : > { %v12366_v38 = vld [vmem:[%s17467_s5 + $0xc8] sm:$0xff] }
0x35c2   : > { %v5896_v39 = vpop.f32.mrb[92].mxu1 }
0x35c3   : > { %v5974_v40 = vadd.f32 %v5973_v37, %v5896_v39  ;;  %v13710_v41 = vpop.f32.mrb[93].mxu1  ;;  %v12365_v37 = vld [vmem:[%s17467_s5 + $0xc0] sm:$0xff] }
0x35c5   : > { %v5983_v43 = vadd.f32 %v12330_v16, %v5974_v40  ;;  %v14530_v16 = vpack.c.bf16 %v12366_v38, %v12365_v37 }
0x35c7   : > { %5984 = vst.msk [vmem:[#allocation2] sm:$0xff] %vm732_vm0, %v5983_v43 }
0x35ce   : > { %v5985_v44 = vld [vmem:[#allocation2] sm:$0xff] }
0x35cf   : > { %v5986_v45 = vadd.f32 %v5985_v44, %v16179_v29  ;;  %v12337_v29 = vld [vmem:[%s17412_s9 + $0xd0] sm:$0xff] }
0x35d0   : > { %v14514_v51 = vpack.c.bf16 %v12338_v50, %v12337_v29  ;;  %v14538_v29 = vpack.c.bf16 %v12370_v49, %v12369_v48 }
0x35d1   : > { %v5991_v46 = vsel %vm732_vm0, %v5986_v45, 0.0 }
0x35d2   : > { %5992 = vadd.xlane.f32.xlu0 %v5991_v46  ;;  %14516 = vmatpush3.bf16.xpose.msk.msra.mxu1 %vm15221_vm1, %v14514_v51  ;;  %v12368_v46 = vld [vmem:[%s17467_s5 + $0xd8] sm:$0xff] }
0x35d3   : > { %14517 = vmatprep.subr.bf16.mxu1 %v15074_v2 }
0x35da   : > { %14520 = vmatpush3.bf16.xpose.msk.msra.mxu1 %vm15221_vm1, %v14518_v59  ;;  %v12375_v59 = vld [vmem:[%s17473_s7 + $0x4] ss:$0 sm:$0xff] }
0x35db   : > { %14521 = vmatprep.subr.bf16.mxu1 %v15074_v2 }
0x35e2   : > { %14524 = vmatpush3.bf16.xpose.msk.msra.mxu1 %vm15221_vm1, %v14522_v12 }
0x35e3   : > { %13759 = vmatprep.subr.bf16.mxu1 %v15076_v5 }
0x365f   : > { %v5993_v52 = vpop.xlane.xlu0 %5992 }
0x3660   : > { %v5994_v53 = vmul.f32 0.0625, %v5993_v52 }
0x3662   : > { %v5995_v54 = vsub.f32 %v5986_v45, %v5994_v53  ;;  %v12367_v45 = vld [vmem:[%s17467_s5 + $0xd0] sm:$0xff] }
0x3663   : > { %v14534_v47 = vpack.c.bf16 %v12368_v46, %v12367_v45 }
0x3664   : > { %v5996_v56 = vmul.f32 %v5995_v54, %v5995_v54 }
0x3666   : > { %v5997_v36 = vsel %vm732_vm0, %v5996_v56, 0.0 }
0x3667   : > { %5998 = vadd.xlane.f32.xlu1 %v5997_v36  ;;  %v12364_v36 = vld [vmem:[%s17421_s18 + $0x3] ss:$0 sm:$0xff] }
0x36f4   : > { %v5999_v63 = vpop.xlane.xlu1 %5998 }
0x36f5   : > { %v6000_v0 = vmul.f32 0.0625, %v5999_v63 }
0x36f7   : > { %v6001_v3 = vadd.f32 1e-05, %v6000_v0 }
0x36f9   : > { %14959 = vrsqrt.f32 %v6001_v3 }
0x3703   : > { %v14960_v7 = vpop.eup %14959 }
0x3704   : > { %v6003_v9 = vmul.f32 %v14960_v7, %v5995_v54  ;;  %v12363_v54 = vld [vmem:[%s17420_s17 + $0x3] ss:$0 sm:$0xff] }
0x3706   : > { %v6010_v25 = vmul.f32 %v12333_v8, %v6003_v9 }
0x3708   : > { %v6017_v11 = vadd.f32 %v12334_v10, %v6010_v25 }
0x370a   : > { %13735 = vmatmul.mubr.msk.f32.vlgmr.msra.gmra.mrb[94].mxu1 %vm732_vm0, %v6017_v11 }
0x370b   : > { %13761 = vmatprep.mubr.msk.bf16.mxu1 %vm15075_vm2, %v15076_v5 }
0x37dd   : > { %v6128_v17 = vpop.f32.mrb[94].mxu1 }
0x37de   : > { %v6129_v18 = vadd.f32 %v12344_v55, %v6128_v17  ;;  %v13736_v19 = vpop.f32.mrb[95].mxu1 }
0x37e0   : > { %v6133_v20 = vmul.f32 0.044715, %v6129_v18  ;;  %v6132_v26 = vmul.f32 0.5, %v6129_v18 }
0x37e2   : > { %v6134_v21 = vmul.f32 %v6133_v20, %v6129_v18 }
0x37e4   : > { %v6135_v22 = vmul.f32 %v6134_v21, %v6129_v18 }
0x37e6   : > { %v6136_v23 = vadd.f32 %v6135_v22, %v6129_v18 }
0x37e8   : > { %v6137_v1 = vmul.f32 0.7978846, %v6136_v23 }
0x37ea   : > { %14961 = vtanh.f32 %v6137_v1 }
0x37f4   : > { %v14962_v24 = vpop.eup %14961 }
0x37f5   : > { %v6139_v6 = vadd.f32 1.0, %v14962_v24 }
0x37f7   : > { %v6140_v28 = vmul.f32 %v6139_v6, %v6132_v26 }
0x37f9   : > { %13742 = vmatmul.mubr.msk.f32.vlgmr.msra.gmra.mrb[102].mxu0 %vm1983_vm7, %v6140_v28 }
0x37fa   : > { %13756 = vmatprep.mubr.msk.f32.mxu0 %vm15075_vm2, %v15076_v5  ;;  %14532 = vmatpush3.bf16.xpose.msk.msra.mxu0 %vm15221_vm1, %v14530_v16  ;;  %v12372_v16 = vld [vmem:[%s17474_s26 + $0x40] sm:$0xff] }
0x37fb   : > { %14533 = vmatprep.subr.bf16.mxu0 %v15074_v2 }
0x3802   : > { %14536 = vmatpush3.bf16.xpose.msk.msra.mxu0 %vm15221_vm1, %v14534_v47 }
0x3803   : > { %14537 = vmatprep.subr.bf16.mxu0 %v15074_v2 }
0x380a   : > { %14540 = vmatpush3.bf16.xpose.msk.msra.mxu0 %vm15221_vm1, %v14538_v29 }
0x380b   : > { %13765 = vmatprep.subr.bf16.mxu0 %v15076_v5 }
0x38cc   : > { %v6227_v31 = vpop.f32.mrb[102].mxu0 }
0x38cd   : > { %v6228_v32 = vadd.f32 %v12357_v30, %v6227_v31  ;;  %v13743_v33 = vpop.f32.mrb[103].mxu0 }
0x38cf   : > { %v6231_v34 = vadd.f32 %v6228_v32, %v6017_v11 }
0x38d1   : > { %v6236_v35 = vsel %vm732_vm0, %v6231_v34, 0.0 }
0x38d2   : > { %6237 = vadd.xlane.f32.xlu1 %v6236_v35 }
0x395f   : > { %v6238_v39 = vpop.xlane.xlu1 %6237 }
0x3960   : > { %v6239_v40 = vmul.f32 0.0625, %v6238_v39  ;;  %v12373_v39 = vld [vmem:[%s17474_s26 + $0x48] sm:$0xff] }
0x3961   : > { %v14827_v45 = vpack.i.bf16 %v12373_v39, %v12372_v16 }
0x3962   : > { %v6240_v41 = vsub.f32 %v6231_v34, %v6239_v40  ;;  %v14546_v40 = vpack.c.bf16 %v12373_v39, %v12372_v16 }
0x3964   : > { %v6241_v43 = vmul.f32 %v6240_v41, %v6240_v41 }
0x3966   : > { %v6242_v44 = vsel %vm732_vm0, %v6241_v43, 0.0 }
0x3967   : > { %6243 = vadd.xlane.f32.xlu1 %v6242_v44 }
0x39f4   : > { %v6244_v50 = vpop.xlane.xlu1 %6243 }
0x39f5   : > { %v6245_v51 = vmul.f32 0.0625, %v6244_v50 }
0x39f7   : > { %v6246_v52 = vadd.f32 1e-05, %v6245_v51 }
0x39f9   : > { %14963 = vrsqrt.f32 %v6246_v52 }
0x3a03   : > { %v14964_v53 = vpop.eup %14963 }
0x3a04   : > { %v6248_v56 = vmul.f32 %v14964_v53, %v6240_v41 }
0x3a06   : > { %v6255_v57 = vmul.f32 %v12363_v54, %v6248_v56 }
0x3a08   : > { %v16337_v58 = vadd.f32 %v12364_v36, %v6255_v57 }
0x3a0a   : > { %13757 = vmatmul.mubr.msk.f32.vlgmr.msra.gmra.mrb[104].mxu0 %vm732_vm0, %v16337_v58 }
0x3a0b   : > { %13767 = vmatprep.mubr.msk.bf16.mxu0 %vm15075_vm2, %v15076_v5 }
0x3add   : > { %v6370_v60 = vpop.f32.mrb[104].mxu0 }
0x3ade   : > { %v6371_v62 = vadd.f32 %v12375_v59, %v6370_v60  ;;  %v13758_v12 = vpop.f32.mrb[105].mxu0 }
0x3ae0   : > { %v6374_v63 = vpack.c.bf16 %v6371_v62, %v6371_v62 }
0x3ae2   : > { %6488 = vrot.lane.b32.xlu0 %v6374_v63, %s17482_s0  ;;  %6376 = vrot.lane.b32.xlu1 %v6374_v63, %s17480_s28 }
0x3ae6   : > { %6486 = vrot.lane.b32.xlu1 %v6374_v63, %s17481_s25 }
0x3b54   : > { %v6377_v0 = vpop.permute.xlu1 %6376  ;;  %v6489_v7 = vpop.permute.xlu0 %6488 }
0x3b55   : > { %v6382_v3 = vsel %vm828_vm3, %v6377_v0, 0  ;;  %v6494_v8 = vsel %vm828_vm3, %v6489_v7, 0  ;;  %v12393_v7 = vld [vmem:[%s17489_s20 + $0x4] ss:$0 sm:$0xff] }
0x3b56   : > { %13760 = vmatpush3.bf16.xpose.msra.mxu1 %v6382_v3 }
0x3b57   : > { %13771 = vmatprep.subr.bf16.mxu1 %v15076_v5 }
0x3b58   : > { %v6487_v9 = vpop.permute.xlu1 %6486 }
0x3b5d   : > { %13762 = vmatmul.mubr.msk.bf16.vlgmr.msra.gmra.mrb[96].mxu1 %vm828_vm3, %v6374_v63 }
0x3b5e   : > { %13772 = vmatpush3.bf16.xpose.msra.mxu1 %v6494_v8  ;;  %13773 = vmatprep.mubr.msk.bf16.mxu1 %vm15075_vm2, %v15076_v5 }
0x3b5f   : > { %14541 = vmatprep.subr.bf16.mxu1 %v15074_v2 }
0x3b65   : > { %13774 = vmatmul.mubr.msk.bf16.vlgmr.msra.gmra.mrb[100].mxu1 %vm828_vm3, %v6487_v9 }
0x3b66   : > { %13787 = vmatprep.mubr.msk.f32.mxu1 %vm15075_vm2, %v15076_v5 }
0x3c30   : > { %v6418_v10 = vpop.f32.mrb[96].mxu1 }
0x3c31   : > { %v6419_v25 = vadd.f32 %v6418_v10, %v15282_v27  ;;  %v13763_v11 = vpop.f32.mrb[97].mxu1 }
0x3c32   : > { %v6421_v13 = vpop.f32.mrb[98].mxu1 }
0x3c33   : > { %v13764_v14 = vpop.f32.mrb[99].mxu1  ;;  %v6424_v15 = vsel %vm828_vm3, %v6419_v25, -inf }
0x3c34   : > { %6425 = vmax.xlane.f32.xlu1 %v6424_v15  ;;  %v12400_v15 = vld [vmem:[%s17478_s24 + $0xd0] sm:$0xff] }
0x3c38   : > { %v6530_v55 = vpop.f32.mrb[100].mxu1 }
0x3c39   : > { %v6531_v17 = vadd.f32 %v6530_v55, %v15282_v27  ;;  %v13775_v18 = vpop.f32.mrb[101].mxu1  ;;  %v12401_v55 = vld [vmem:[%s17478_s24 + $0xd8] sm:$0xff] }
0x3c3a   : > { %v6533_v19 = vpop.f32.mrb[102].mxu1 }
0x3c3b   : > { %v13776_v20 = vpop.f32.mrb[103].mxu1  ;;  %v6536_v21 = vsel %vm828_vm3, %v6531_v17, -inf }
0x3c3c   : > { %6537 = vmax.xlane.f32.xlu0 %v6536_v21 }
0x3c45   : > { %6436 = vrot.lane.b32.xlu1 %v6374_v63, %s17486_s23 }
0x3c52   : > { %6548 = vrot.lane.b32.xlu0 %v6374_v63, %s17487_s4 }
0x3cc1   : > { %v6426_v22 = vpop.xlane.xlu1 %6425 }
0x3cc2   : > { %v6427_v23 = vsub.f32 %v6419_v25, %v6426_v22  ;;  %v12402_v22 = vld [vmem:[%s17478_s24 + $0xe0] sm:$0xff] }
0x3cc4   : > { %v6428_v1 = vpack.c.bf16 %v6427_v23, %v6427_v23  ;;  %v12403_v23 = vld [vmem:[%s17478_s24 + $0xe8] sm:$0xff] }
0x3cc5   : > { %v6437_v24 = vpop.permute.xlu1 %6436 }
0x3cc6   : > { %v6430_v26 = vmul.bf16 1069105081, %v6428_v1  ;;  %v6442_v6 = vsel %vm892_vm5, %v6437_v24, 0  ;;  %v14558_v1 = vpack.c.bf16 %v12403_v23, %v12402_v22  ;;  %v12398_v24 = vld [vmem:[%s17478_s24 + $0xc0] sm:$0xff] }
0x3cc7   : > { %13766 = vmatpush3.bf16.msra.mxu0 %v6442_v6  ;;  %v16428_v6 = vld [vmem:[%s17490_s29] sm:$0xff]  ;;  %s17497_s29 = sld [smem:[#allocation4_spill]] }
0x3cc8   : > { %14965 = vpow.bf16 %v6430_v26  ;;  %13777 = vmatprep.subr.bf16.mxu0 %v15076_v5  ;;  %v12399_v26 = vld [vmem:[%s17478_s24 + $0xc8] sm:$0xff] }
0x3cc9   : > { %v6538_v28 = vpop.xlane.xlu0 %6537 }
0x3cca   : > { %v6539_v30 = vsub.f32 %v6531_v17, %v6538_v28  ;;  %v14554_v17 = vpack.c.bf16 %v12401_v55, %v12400_v15  ;;  %v14550_v28 = vpack.c.bf16 %v12399_v26, %v12398_v24  ;;  %v12406_v15 = vld [vmem:[%s17483_s3 + $0x48] sm:$0xff] }
0x3ccc   : > { %v6540_v31 = vpack.c.bf16 %v6539_v30, %v6539_v30  ;;  %v12408_v30 = vld [vmem:[%s17479_s1 + $0x4] ss:$0 sm:$0xff] }
0x3ccd   : > { %v6549_v33 = vpop.permute.xlu0 %6548 }
0x3cce   : > { %v6542_v32 = vmul.bf16 1069105081, %v6540_v31  ;;  %v6554_v35 = vsel %vm892_vm5, %v6549_v33, 0 }
0x3cd0   : > { %14967 = vpow.bf16 %v6542_v32 }
0x3cd3   : > { %v14966_v34 = vpop.eup %14965 }
0x3cd4   : > { %13768 = vmatmul.mubr.msk.bf16.vlgmr.msra.gmra.mrb[108].mxu0 %vm828_vm3, %v14966_v34  ;;  %v6432_v37 = vunpack.c.l.bf16 %v14966_v34 }
0x3cd5   : > { %13778 = vmatpush3.bf16.msra.mxu0 %v6554_v35  ;;  %13779 = vmatprep.mubr.msk.bf16.mxu0 %vm15075_vm2, %v15076_v5  ;;  %v12396_v35 = vld [vmem:[%s17416_s13 + $0x4] ss:$0 sm:$0xff] }
0x3cd6   : > { %v6433_v38 = vsel %vm828_vm3, %v6432_v37, 0.0  ;;  %14545 = vmatprep.subr.bf16.mxu0 %v15074_v2 }
0x3cd7   : > { %6434 = vadd.xlane.f32.xlu1 %v6433_v38  ;;  %v12397_v38 = vld [vmem:[%s17417_s14 + $0x4] ss:$0 sm:$0xff] }
0x3cdb   : > { %v14968_v41 = vpop.eup %14967 }
0x3cdc   : > { %13780 = vmatmul.mubr.msk.bf16.vlgmr.msra.gmra.mrb[112].mxu0 %vm828_vm3, %v14968_v41  ;;  %v6544_v43 = vunpack.c.l.bf16 %v14968_v41 }
0x3cdd   : > { %13794 = vmatprep.mubr.msk.f32.mxu0 %vm15075_vm2, %v15076_v5 }
0x3cde   : > { %v6545_v44 = vsel %vm828_vm3, %v6544_v43, 0.0  ;;  %14548 = vmatpush3.bf16.xpose.msk.msra.mxu0 %vm15310_vm6, %v14546_v40 }
0x3cdf   : > { %6546 = vadd.xlane.f32.xlu0 %v6545_v44  ;;  %14553 = vmatprep.subr.bf16.mxu0 %v15074_v2 }
0x3ce8   : > { %14828 = vrot.lane.b32.xlu1 %v14827_v45, %s17481_s25 }
0x3cec   : > { %6898 = vrot.lane.b32.xlu1 %v12408_v30, %s17480_s28 }
0x3d64   : > { %v6435_v46 = vpop.xlane.xlu1 %6434 }
0x3d65   : > { %14969 = vrcp.f32 %v6435_v46 }
0x3d68   : > { %v14829_v47 = vpop.permute.xlu1 %14828 }
0x3d69   : > { %v14831_v48 = vunpack.i.h.bf16 %v14829_v47  ;;  %v14830_v49 = vunpack.i.l.bf16 %v14829_v47 }
0x3d6b   : > { %v14542_v29 = vpack.c.bf16 %v14831_v48, %v14830_v49 }
0x3d6c   : > { %v6547_v50 = vpop.xlane.xlu0 %6546  ;;  %v6899_v40 = vpop.permute.xlu1 %6898 }
0x3d6d   : > { %14544 = vmatpush3.bf16.xpose.msk.msra.mxu1 %vm15310_vm6, %v14542_v29  ;;  %14971 = vrcp.f32 %v6547_v50 }
0x3d6e   : > { %14549 = vmatprep.subr.bf16.mxu1 %v15074_v2 }
0x3d6f   : > { %v14970_v51 = vpop.eup %14969 }
0x3d77   : > { %v14972_v57 = vpop.eup %14971 }
0x3da7   : > { %v6478_v52 = vpop.f32.mrb[108].mxu0 }
0x3da8   : > { %v6485_v53 = vmul.f32 %v14970_v51, %v6478_v52  ;;  %v13769_v54 = vpop.f32.mrb[109].mxu0 }
0x3da9   : > { %v6481_v56 = vpop.f32.mrb[110].mxu0 }
0x3daa   : > { %v13770_v36 = vpop.f32.mrb[111].mxu0  ;;  %13795 = vmatmul.mubr.msk.f32.vlgmr.msra.gmra.mrb[106].mxu0 %vm828_vm3, %v6485_v53 }
0x3dab   : > { %13812 = vmatprep.mubr.msk.f32.mxu0 %vm15075_vm2, %v15076_v5  ;;  %14556 = vmatpush3.bf16.xpose.msk.msra.mxu0 %vm15221_vm1, %v14554_v17 }
0x3dac   : > { %14557 = vmatprep.subr.bf16.mxu0 %v15074_v2 }
0x3daf   : > { %v6590_v59 = vpop.f32.mrb[112].mxu0 }
0x3db0   : > { %v6597_v60 = vmul.f32 %v14972_v57, %v6590_v59  ;;  %v13781_v62 = vpop.f32.mrb[113].mxu0 }
0x3db1   : > { %v6593_v12 = vpop.f32.mrb[114].mxu0 }
0x3db2   : > { %v13782_v63 = vpop.f32.mrb[115].mxu0  ;;  %13788 = vmatmul.mubr.msk.f32.vlgmr.msra.gmra.mrb[104].mxu1 %vm828_vm3, %v6597_v60 }
0x3db3   : > { %13801 = vmatprep.mubr.msk.f32.mxu1 %vm15075_vm2, %v15076_v5  ;;  %14560 = vmatpush3.bf16.xpose.msk.msra.mxu0 %vm15221_vm1, %v14558_v1 }
0x3db4   : > { %13821 = vmatprep.subr.bf16.mxu0 %v15076_v5  ;;  %14552 = vmatpush3.bf16.xpose.msk.msra.mxu1 %vm15221_vm1, %v14550_v28 }
0x3db5   : > { %13815 = vmatprep.subr.bf16.mxu1 %v15076_v5 }
0x3dba   : > { %13813 = vmatmul.mubr.msk.f32.vlgmr.msra.gmra.mrb[116].mxu0 %vm732_vm0, %v16428_v6 }
0x3dbb   : > { %13823 = vmatprep.mubr.msk.bf16.mxu0 %vm15075_vm2, %v15076_v5 }
0x3e7d   : > { %v6754_v0 = vpop.f32.mrb[106].mxu0 }
0x3e7e   : > { %v13796_v3 = vpop.f32.mrb[107].mxu0 }
0x3e85   : > { %v6677_v8 = vpop.f32.mrb[104].mxu1 }
0x3e86   : > { %v6755_v9 = vadd.f32 %v6754_v0, %v6677_v8  ;;  %v13789_v10 = vpop.f32.mrb[105].mxu1 }
0x3e88   : > { %v6764_v25 = vadd.f32 %v12393_v7, %v6755_v9 }
0x3e8a   : > { %6765 = vst.msk [vmem:[#allocation2] sm:$0xff] %vm732_vm0, %v6764_v25 }
0x3e8d   : > { %v6979_v41 = vpop.f32.mrb[116].mxu0 }
0x3e8e   : > { %v6980_v43 = vadd.f32 %v6979_v41, %v6899_v40  ;;  %v13814_v44 = vpop.f32.mrb[117].mxu0 }
0x3e90   : > { %v6984_v45 = vpack.c.bf16 %v6980_v43, %v6980_v43 }
0x3e91   : > { %v6766_v11 = vld [vmem:[#allocation2] sm:$0xff] }
0x3e92   : > { %v6767_v13 = vadd.f32 %v6766_v11, %v16337_v58  ;;  %v6989_v46 = vsel %vm828_vm3, %v6984_v45, 0 }
0x3e94   : > { %v6772_v14 = vsel %vm732_vm0, %v6767_v13, 0.0 }
0x3e95   : > { %6773 = vadd.xlane.f32.xlu0 %v6772_v14  ;;  %v12405_v14 = vld [vmem:[%s17483_s3 + $0x40] sm:$0xff] }
0x3e96   : > { %v14832_v55 = vpack.i.bf16 %v12406_v15, %v12405_v14  ;;  %v14566_v17 = vpack.c.bf16 %v12406_v15, %v12405_v14 }
0x3f22   : > { %v6774_v18 = vpop.xlane.xlu0 %6773 }
0x3f23   : > { %v6775_v58 = vmul.f32 0.0625, %v6774_v18 }
0x3f25   : > { %v6776_v19 = vsub.f32 %v6767_v13, %v6775_v58 }
0x3f27   : > { %v6777_v20 = vmul.f32 %v6776_v19, %v6776_v19 }
0x3f29   : > { %v6778_v21 = vsel %vm732_vm0, %v6777_v20, 0.0 }
0x3f2a   : > { %6779 = vadd.xlane.f32.xlu0 %v6778_v21 }
0x3f40   : > { %7097 = vrot.lane.b32.xlu0 %v6984_v45, %s17481_s25 }
0x3fb7   : > { %v6780_v31 = vpop.xlane.xlu0 %6779 }
0x3fb8   : > { %v6781_v32 = vmul.f32 0.0625, %v6780_v31 }
0x3fba   : > { %v6782_v33 = vadd.f32 1e-05, %v6781_v32 }
0x3fbb   : > { %v7098_v48 = vpop.permute.xlu0 %7097 }
0x3fbc   : > { %14973 = vrsqrt.f32 %v6782_v33  ;;  %v7103_v51 = vsel %vm828_vm3, %v7098_v48, 0 }
0x3fc6   : > { %v14974_v34 = vpop.eup %14973 }
0x3fc7   : > { %v6784_v37 = vmul.f32 %v14974_v34, %v6776_v19 }
0x3fc9   : > { %v6791_v16 = vmul.f32 %v12396_v35, %v6784_v37 }
0x3fcb   : > { %v16447_v39 = vadd.f32 %v12397_v38, %v6791_v16 }
0x3fcd   : > { %13802 = vmatmul.mubr.msk.f32.vlgmr.msra.gmra.mrb[106].mxu1 %vm732_vm0, %v16447_v39 }
0x3fce   : > { %13817 = vmatprep.mubr.msk.bf16.mxu1 %vm15075_vm2, %v15076_v5  ;;  %13816 = vmatpush3.bf16.xpose.msra.mxu1 %v6989_v46 }
0x3fcf   : > { %13827 = vmatprep.subr.bf16.mxu1 %v15076_v5 }
0x40a0   : > { %v6894_v47 = vpop.f32.mrb[106].mxu1 }
0x40a1   : > { %v6895_v49 = vadd.f32 %v12408_v30, %v6894_v47  ;;  %v13803_v29 = vpop.f32.mrb[107].mxu1 }
0x40a2   : > { %v12427_v29 = vld [vmem:[%s17411_s8 + $0x4] ss:$0 sm:$0xff] }
0x40a3   : > { %v6983_v50 = vpack.c.bf16 %v6895_v49, %v6895_v49 }
0x40a5   : > { %7095 = vrot.lane.b32.xlu1 %v6983_v50, %s17481_s25  ;;  %13818 = vmatmul.mubr.msk.bf16.vlgmr.msra.gmra.mrb[108].mxu1 %vm828_vm3, %v6983_v50 }
0x40a6   : > { %13828 = vmatpush3.bf16.xpose.msra.mxu1 %v7103_v51  ;;  %13829 = vmatprep.mubr.msk.bf16.mxu1 %vm15075_vm2, %v15076_v5 }
0x40a7   : > { %14561 = vmatprep.subr.bf16.mxu1 %v15074_v2 }
0x4117   : > { %v7096_v52 = vpop.permute.xlu1 %7095 }
0x4118   : > { %13830 = vmatmul.mubr.msk.bf16.vlgmr.msra.gmra.mrb[112].mxu1 %vm828_vm3, %v7096_v52 }
0x4119   : > { %13843 = vmatprep.mubr.msk.f32.mxu1 %vm15075_vm2, %v15076_v5 }
0x4178   : > { %v7025_v53 = vpop.f32.mrb[108].mxu1 }
0x4179   : > { %v13819_v54 = vpop.f32.mrb[109].mxu1  ;;  %v7031_v56 = vsel %vm828_vm3, %v7025_v53, -inf }
0x417a   : > { %7032 = vmax.xlane.f32.xlu1 %v7031_v56  ;;  %v7028_v36 = vpop.f32.mrb[110].mxu1 }
0x417b   : > { %v13820_v57 = vpop.f32.mrb[111].mxu1 }
0x417c   : > { %v12432_v57 = vld [vmem:[%s17412_s9 + $0x100] sm:$0xff] }
0x418b   : > { %7044 = vrot.lane.b32.xlu1 %v6984_v45, %s17480_s28 }
0x41eb   : > { %v7139_v59 = vpop.f32.mrb[112].mxu1 }
0x41ec   : > { %v13831_v60 = vpop.f32.mrb[113].mxu1  ;;  %v7145_v62 = vsel %vm828_vm3, %v7139_v59, -inf }
0x41ed   : > { %7146 = vmax.xlane.f32.xlu0 %v7145_v62  ;;  %v7142_v12 = vpop.f32.mrb[114].mxu1  ;;  %v12435_v62 = vld [vmem:[%s17412_s9 + $0x118] sm:$0xff] }
0x41ee   : > { %v13832_v63 = vpop.f32.mrb[115].mxu1 }
0x4203   : > { %7157 = vrot.lane.b32.xlu0 %v6984_v45, %s17482_s0 }
0x4207   : > { %v7033_v0 = vpop.xlane.xlu1 %7032 }
0x4208   : > { %v7034_v3 = vsub.f32 %v7025_v53, %v7033_v0 }
0x420a   : > { %v7035_v7 = vpack.c.bf16 %v7034_v3, %v7034_v3 }
0x420b   : > { %v7045_v8 = vpop.permute.xlu1 %7044 }
0x420c   : > { %v7037_v9 = vmul.bf16 1069105081, %v7035_v7  ;;  %v7050_v10 = vsel %vm892_vm5, %v7045_v8, 0 }
0x420d   : > { %13822 = vmatpush3.bf16.msra.mxu0 %v7050_v10  ;;  %v12437_v10 = vld [vmem:[%s17412_s9 + $0x128] sm:$0xff] }
0x420e   : > { %14975 = vpow.bf16 %v7037_v9  ;;  %13833 = vmatprep.subr.bf16.mxu0 %v15076_v5  ;;  %v12436_v9 = vld [vmem:[%s17412_s9 + $0x120] sm:$0xff] }
0x4219   : > { %v14976_v25 = vpop.eup %14975 }
0x421a   : > { %13824 = vmatmul.mubr.msk.bf16.vlgmr.msra.gmra.mrb[120].mxu0 %vm828_vm3, %v14976_v25  ;;  %v7039_v11 = vunpack.c.l.bf16 %v14976_v25  ;;  %v14578_v25 = vpack.c.bf16 %v12437_v10, %v12436_v9  ;;  %v12461_v9 = vld [vmem:[%s17421_s18 + $0x4] ss:$0 sm:$0xff] }
0x421b   : > { %13835 = vmatprep.mubr.msk.bf16.mxu0 %vm15075_vm2, %v15076_v5 }
0x421c   : > { %v7040_v13 = vsel %vm828_vm3, %v7039_v11, 0.0  ;;  %v12438_v11 = vld [vmem:[%s17412_s9 + $0x130] sm:$0xff] }
0x421d   : > { %7041 = vadd.xlane.f32.xlu1 %v7040_v13  ;;  %v12439_v13 = vld [vmem:[%s17412_s9 + $0x138] sm:$0xff] }
0x421e   : > { %v14582_v14 = vpack.c.bf16 %v12439_v13, %v12438_v11  ;;  %v12472_v11 = vld [vmem:[%s17473_s7 + $0x5] ss:$0 sm:$0xff] }
0x422e   : > { %14833 = vrot.lane.b32.xlu1 %v14832_v55, %s17481_s25 }
0x427a   : > { %v7147_v18 = vpop.xlane.xlu0 %7146 }
0x427b   : > { %v7148_v58 = vsub.f32 %v7139_v59, %v7147_v18  ;;  %v12433_v59 = vld [vmem:[%s17412_s9 + $0x108] sm:$0xff] }
0x427c   : > { %v14570_v60 = vpack.c.bf16 %v12433_v59, %v12432_v57  ;;  %v12465_v57 = vld [vmem:[%s17467_s5 + $0x108] sm:$0xff] }
0x427d   : > { %v7149_v19 = vpack.c.bf16 %v7148_v58, %v7148_v58  ;;  %v12430_v58 = vld [vmem:[%s17418_s15 + $0x4] ss:$0 sm:$0xff] }
0x427e   : > { %v7158_v20 = vpop.permute.xlu0 %7157 }
0x427f   : > { %v7151_v21 = vmul.bf16 1069105081, %v7149_v19  ;;  %v7163_v22 = vsel %vm892_vm5, %v7158_v20, 0  ;;  %v12431_v20 = vld [vmem:[%s17419_s16 + $0x4] ss:$0 sm:$0xff] }
0x4280   : > { %13834 = vmatpush3.bf16.msra.mxu0 %v7163_v22 }
0x4281   : > { %14977 = vpow.bf16 %v7151_v21  ;;  %14565 = vmatprep.subr.bf16.mxu0 %v15074_v2 }
0x428c   : > { %v14978_v23 = vpop.eup %14977 }
0x428d   : > { %13836 = vmatmul.mubr.msk.bf16.vlgmr.msra.gmra.mrb[124].mxu0 %vm828_vm3, %v14978_v23  ;;  %v7153_v1 = vunpack.c.l.bf16 %v14978_v23  ;;  %v12451_v23 = vld [vmem:[%s17414_s11 + $0x40] sm:$0xff] }
0x428e   : > { %14568 = vmatpush3.bf16.xpose.msk.msra.mxu0 %vm15310_vm6, %v14566_v17  ;;  %13850 = vmatprep.mubr.msk.f32.mxu0 %vm15075_vm2, %v15076_v5 }
0x428f   : > { %v7154_v24 = vsel %vm828_vm3, %v7153_v1, 0.0  ;;  %14585 = vmatprep.subr.bf16.mxu0 %v15074_v2  ;;  %v12452_v1 = vld [vmem:[%s17414_s11 + $0x48] sm:$0xff] }
0x4290   : > { %7155 = vadd.xlane.f32.xlu0 %v7154_v24  ;;  %v14586_v24 = vpack.c.bf16 %v12452_v1, %v12451_v23 }
0x42aa   : > { %v7042_v26 = vpop.xlane.xlu1 %7041 }
0x42ab   : > { %14979 = vrcp.f32 %v7042_v26  ;;  %v12441_v26 = vld [vmem:[%s17413_s10 + $0x4] ss:$0 sm:$0xff] }
0x42ae   : > { %v14834_v28 = vpop.permute.xlu1 %14833 }
0x42af   : > { %v14836_v30 = vunpack.i.h.bf16 %v14834_v28  ;;  %v14835_v31 = vunpack.i.l.bf16 %v14834_v28 }
0x42b1   : > { %v14562_v32 = vpack.c.bf16 %v14836_v30, %v14835_v31 }
0x42b3   : > { %14564 = vmatpush3.bf16.xpose.msk.msra.mxu1 %vm15310_vm6, %v14562_v32 }
0x42b4   : > { %14569 = vmatprep.subr.bf16.mxu1 %v15074_v2 }
0x42b5   : > { %v14980_v33 = vpop.eup %14979 }
0x42ed   : > { %v7086_v34 = vpop.f32.mrb[120].mxu0 }
0x42ee   : > { %v7093_v35 = vmul.f32 %v14980_v33, %v7086_v34  ;;  %v13825_v37 = vpop.f32.mrb[121].mxu0 }
0x42ef   : > { %v7089_v38 = vpop.f32.mrb[122].mxu0 }
0x42f0   : > { %v13826_v16 = vpop.f32.mrb[123].mxu0  ;;  %13851 = vmatmul.mubr.msk.f32.vlgmr.msra.gmra.mrb[118].mxu0 %vm828_vm3, %v7093_v35 }
0x42f1   : > { %13876 = vmatprep.mubr.msk.f32.mxu0 %vm15075_vm2, %v15076_v5  ;;  %14588 = vmatpush3.bf16.xpose.msk.msra.mxu0 %vm15488_vm8, %v14586_v24 }
0x42f2   : > { %14589 = vmatprep.subr.bf16.mxu0 %v15074_v2 }
0x431d   : > { %v7156_v40 = vpop.xlane.xlu0 %7155 }
0x431e   : > { %14981 = vrcp.f32 %v7156_v40 }
0x4328   : > { %v14982_v41 = vpop.eup %14981 }
0x4360   : > { %v7199_v43 = vpop.f32.mrb[124].mxu0 }
0x4361   : > { %v7206_v44 = vmul.f32 %v14982_v41, %v7199_v43  ;;  %v13837_v45 = vpop.f32.mrb[125].mxu0  ;;  %v12454_v43 = vld [vmem:[%s17415_s12 + $0x4] ss:$0 sm:$0xff] }
0x4362   : > { %v7202_v46 = vpop.f32.mrb[126].mxu0 }
0x4363   : > { %v13838_v47 = vpop.f32.mrb[127].mxu0  ;;  %13844 = vmatmul.mubr.msk.f32.vlgmr.msra.gmra.mrb[116].mxu1 %vm828_vm3, %v7206_v44 }
0x4364   : > { %13869 = vmatprep.mubr.msk.f32.mxu1 %vm15075_vm2, %v15076_v5  ;;  %14572 = vmatpush3.bf16.xpose.msk.msra.mxu1 %vm15221_vm1, %v14570_v60  ;;  %v12466_v60 = vld [vmem:[%s17467_s5 + $0x110] sm:$0xff] }
0x4365   : > { %14573 = vmatprep.subr.bf16.mxu1 %v15074_v2 }
0x43c3   : > { %v7363_v48 = vpop.f32.mrb[118].mxu0 }
0x43c4   : > { %v13852_v49 = vpop.f32.mrb[119].mxu0 }
0x43c5   : > { %v12462_v49 = vld [vmem:[%s17467_s5 + $0xf0] sm:$0xff] }
0x4436   : > { %v7286_v50 = vpop.f32.mrb[116].mxu1 }
0x4437   : > { %v7364_v51 = vadd.f32 %v7363_v48, %v7286_v50  ;;  %v13845_v52 = vpop.f32.mrb[117].mxu1 }
0x4439   : > { %v7373_v53 = vadd.f32 %v12427_v29, %v7364_v51  ;;  %v12463_v29 = vld [vmem:[%s17467_s5 + $0xf8] sm:$0xff] }
0x443a   : > { %v14590_v50 = vpack.c.bf16 %v12463_v29, %v12462_v49 }
0x443b   : > { %7374 = vst.msk [vmem:[#allocation2] sm:$0xff] %vm732_vm0, %v7373_v53 }
0x4442   : > { %v7375_v54 = vld [vmem:[#allocation2] sm:$0xff] }
0x4443   : > { %v7376_v56 = vadd.f32 %v7375_v54, %v16447_v39  ;;  %v12434_v39 = vld [vmem:[%s17412_s9 + $0x110] sm:$0xff] }
0x4444   : > { %v14574_v12 = vpack.c.bf16 %v12435_v62, %v12434_v39  ;;  %v12467_v39 = vld [vmem:[%s17467_s5 + $0x118] sm:$0xff] }
0x4445   : > { %v7381_v36 = vsel %vm732_vm0, %v7376_v56, 0.0  ;;  %v14598_v62 = vpack.c.bf16 %v12467_v39, %v12466_v60 }
0x4446   : > { %7382 = vadd.xlane.f32.xlu0 %v7381_v36  ;;  %14576 = vmatpush3.bf16.xpose.msk.msra.mxu1 %vm15221_vm1, %v14574_v12  ;;  %v12464_v36 = vld [vmem:[%s17467_s5 + $0x100] sm:$0xff] }
0x4447   : > { %14577 = vmatprep.subr.bf16.mxu1 %v15074_v2  ;;  %v14594_v59 = vpack.c.bf16 %v12465_v57, %v12464_v36 }
0x444e   : > { %14580 = vmatpush3.bf16.xpose.msk.msra.mxu1 %vm15221_vm1, %v14578_v25 }
0x444f   : > { %14581 = vmatprep.subr.bf16.mxu1 %v15074_v2 }
0x4456   : > { %14584 = vmatpush3.bf16.xpose.msk.msra.mxu1 %vm15221_vm1, %v14582_v14 }
0x4457   : > { %13894 = vmatprep.subr.bf16.mxu1 %v15076_v5 }
0x44d3   : > { %v7383_v63 = vpop.xlane.xlu0 %7382 }
0x44d4   : > { %v7384_v0 = vmul.f32 0.0625, %v7383_v63 }
0x44d6   : > { %v7385_v3 = vsub.f32 %v7376_v56, %v7384_v0 }
0x44d8   : > { %v7386_v7 = vmul.f32 %v7385_v3, %v7385_v3 }
0x44da   : > { %v7387_v8 = vsel %vm732_vm0, %v7386_v7, 0.0  ;;  %v12460_v7 = vld [vmem:[%s17420_s17 + $0x4] ss:$0 sm:$0xff] }
0x44db   : > { %7388 = vadd.xlane.f32.xlu0 %v7387_v8 }
0x4568   : > { %v7389_v15 = vpop.xlane.xlu0 %7388 }
0x4569   : > { %v7390_v55 = vmul.f32 0.0625, %v7389_v15 }
0x456b   : > { %v7391_v17 = vadd.f32 1e-05, %v7390_v55 }
0x456d   : > { %14983 = vrsqrt.f32 %v7391_v17 }
0x4577   : > { %v14984_v18 = vpop.eup %14983 }
0x4578   : > { %v7393_v19 = vmul.f32 %v14984_v18, %v7385_v3 }
0x457a   : > { %v7400_v21 = vmul.f32 %v12430_v58, %v7393_v19 }
0x457c   : > { %v7407_v22 = vadd.f32 %v12431_v20, %v7400_v21 }
0x457e   : > { %13870 = vmatmul.mubr.msk.f32.vlgmr.msra.gmra.mrb[118].mxu1 %vm732_vm0, %v7407_v22 }
0x457f   : > { %13896 = vmatprep.mubr.msk.bf16.mxu1 %vm15075_vm2, %v15076_v5 }
0x4651   : > { %v7518_v28 = vpop.f32.mrb[118].mxu1 }
0x4652   : > { %v7519_v30 = vadd.f32 %v12441_v26, %v7518_v28  ;;  %v13871_v31 = vpop.f32.mrb[119].mxu1 }
0x4654   : > { %v7523_v32 = vmul.f32 0.044715, %v7519_v30  ;;  %v7522_v16 = vmul.f32 0.5, %v7519_v30 }
0x4656   : > { %v7524_v33 = vmul.f32 %v7523_v32, %v7519_v30 }
0x4658   : > { %v7525_v34 = vmul.f32 %v7524_v33, %v7519_v30 }
0x465a   : > { %v7526_v35 = vadd.f32 %v7525_v34, %v7519_v30 }
0x465c   : > { %v7527_v37 = vmul.f32 0.7978846, %v7526_v35 }
0x465e   : > { %14985 = vtanh.f32 %v7527_v37 }
0x4668   : > { %v14986_v38 = vpop.eup %14985 }
0x4669   : > { %v7529_v40 = vadd.f32 1.0, %v14986_v38 }
0x466b   : > { %v7530_v41 = vmul.f32 %v7529_v40, %v7522_v16 }
0x466d   : > { %13877 = vmatmul.mubr.msk.f32.vlgmr.msra.gmra.mrb[128].mxu0 %vm1983_vm7, %v7530_v41 }
0x466e   : > { %13891 = vmatprep.mubr.msk.f32.mxu0 %vm15075_vm2, %v15076_v5  ;;  %14592 = vmatpush3.bf16.xpose.msk.msra.mxu0 %vm15221_vm1, %v14590_v50 }
0x466f   : > { %14593 = vmatprep.subr.bf16.mxu0 %v15074_v2 }
0x4676   : > { %14596 = vmatpush3.bf16.xpose.msk.msra.mxu0 %vm15221_vm1, %v14594_v59 }
0x4677   : > { %14597 = vmatprep.subr.bf16.mxu0 %v15074_v2 }
0x467e   : > { %14600 = vmatpush3.bf16.xpose.msk.msra.mxu0 %vm15221_vm1, %v14598_v62 }
0x467f   : > { %13900 = vmatprep.subr.bf16.mxu0 %v15076_v5 }
0x4740   : > { %v7617_v44 = vpop.f32.mrb[128].mxu0 }
0x4741   : > { %v7618_v45 = vadd.f32 %v12454_v43, %v7617_v44  ;;  %v13878_v46 = vpop.f32.mrb[129].mxu0 }
0x4743   : > { %v7621_v47 = vadd.f32 %v7618_v45, %v7407_v22 }
0x4745   : > { %v7626_v48 = vsel %vm732_vm0, %v7621_v47, 0.0 }
0x4746   : > { %7627 = vadd.xlane.f32.xlu1 %v7626_v48 }
0x47d3   : > { %v7628_v51 = vpop.xlane.xlu1 %7627 }
0x47d4   : > { %v7629_v52 = vmul.f32 0.0625, %v7628_v51  ;;  %v12469_v51 = vld [vmem:[%s17474_s26 + $0x50] sm:$0xff] }
0x47d6   : > { %v7630_v53 = vsub.f32 %v7621_v47, %v7629_v52  ;;  %v12470_v52 = vld [vmem:[%s17474_s26 + $0x58] sm:$0xff] }
0x47d7   : > { %v14837_v57 = vpack.i.bf16 %v12470_v52, %v12469_v51 }
0x47d8   : > { %v7631_v54 = vmul.f32 %v7630_v53, %v7630_v53 }
0x47da   : > { %v7632_v56 = vsel %vm732_vm0, %v7631_v54, 0.0 }
0x47db   : > { %7633 = vadd.xlane.f32.xlu0 %v7632_v56 }
0x4868   : > { %v7634_v12 = vpop.xlane.xlu0 %7633 }
0x4869   : > { %v7635_v63 = vmul.f32 0.0625, %v7634_v12 }
0x486b   : > { %v7636_v0 = vadd.f32 1e-05, %v7635_v63 }
0x486d   : > { %14987 = vrsqrt.f32 %v7636_v0 }
0x4877   : > { %v14988_v3 = vpop.eup %14987 }
0x4878   : > { %v7638_v8 = vmul.f32 %v14988_v3, %v7630_v53  ;;  %v14606_v53 = vpack.c.bf16 %v12470_v52, %v12469_v51 }
0x487a   : > { %v7645_v10 = vmul.f32 %v12460_v7, %v7638_v8 }
0x487c   : > { %v16605_v25 = vadd.f32 %v12461_v9, %v7645_v10 }
0x487e   : > { %13892 = vmatmul.mubr.msk.f32.vlgmr.msra.gmra.mrb[130].mxu0 %vm732_vm0, %v16605_v25 }
0x487f   : > { %13902 = vmatprep.mubr.msk.bf16.mxu0 %vm15075_vm2, %v15076_v5 }
0x4951   : > { %v7760_v13 = vpop.f32.mrb[130].mxu0 }
0x4952   : > { %v7761_v14 = vadd.f32 %v12472_v11, %v7760_v13  ;;  %v13893_v15 = vpop.f32.mrb[131].mxu0 }
0x4954   : > { %v7764_v55 = vpack.c.bf16 %v7761_v14, %v7761_v14 }
0x4956   : > { %7766 = vrot.lane.b32.xlu0 %v7764_v55, %s17480_s28 }
0x495a   : > { %7878 = vrot.lane.b32.xlu0 %v7764_v55, %s17482_s0 }
0x495e   : > { %7876 = vrot.lane.b32.xlu0 %v7764_v55, %s17481_s25 }
0x49c8   : > { %v7767_v17 = vpop.permute.xlu0 %7766 }
0x49c9   : > { %v7772_v18 = vsel %vm828_vm3, %v7767_v17, 0 }
0x49ca   : > { %13895 = vmatpush3.bf16.xpose.msra.mxu1 %v7772_v18 }
0x49cb   : > { %13906 = vmatprep.subr.bf16.mxu1 %v15076_v5 }
0x49cc   : > { %v7879_v58 = vpop.permute.xlu0 %7878 }
0x49cd   : > { %v7884_v19 = vsel %vm828_vm3, %v7879_v58, 0 }
0x49d0   : > { %v7877_v20 = vpop.permute.xlu0 %7876 }
0x49d1   : > { %13897 = vmatmul.mubr.msk.bf16.vlgmr.msra.gmra.mrb[120].mxu1 %vm828_vm3, %v7764_v55 }
0x49d2   : > { %13907 = vmatpush3.bf16.xpose.msra.mxu1 %v7884_v19  ;;  %13908 = vmatprep.mubr.msk.bf16.mxu1 %vm15075_vm2, %v15076_v5  ;;  %v12490_v19 = vld [vmem:[%s17491_s6 + $0x5] ss:$0 sm:$0xff] }
0x49d3   : > { %14601 = vmatprep.subr.bf16.mxu1 %v15074_v2 }
0x49d9   : > { %13909 = vmatmul.mubr.msk.bf16.vlgmr.msra.gmra.mrb[124].mxu1 %vm828_vm3, %v7877_v20 }
0x49da   : > { %13922 = vmatprep.mubr.msk.f32.mxu1 %vm15075_vm2, %v15076_v5 }
0x4aa4   : > { %v7808_v21 = vpop.f32.mrb[120].mxu1 }
0x4aa5   : > { %v7809_v22 = vadd.f32 %v7808_v21, %v15282_v27  ;;  %v13898_v23 = vpop.f32.mrb[121].mxu1 }
0x4aa6   : > { %v7811_v1 = vpop.f32.mrb[122].mxu1 }
0x4aa7   : > { %v13899_v24 = vpop.f32.mrb[123].mxu1  ;;  %v7814_v26 = vsel %vm828_vm3, %v7809_v22, -inf }
0x4aa8   : > { %7815 = vmax.xlane.f32.xlu1 %v7814_v26 }
0x4aac   : > { %v7920_v28 = vpop.f32.mrb[124].mxu1 }
0x4aad   : > { %v7921_v30 = vadd.f32 %v7920_v28, %v15282_v27  ;;  %v13910_v31 = vpop.f32.mrb[125].mxu1  ;;  %v12497_v28 = vld [vmem:[%s17478_s24 + $0x100] sm:$0xff] }
0x4aae   : > { %v7923_v32 = vpop.f32.mrb[126].mxu1 }
0x4aaf   : > { %v13911_v33 = vpop.f32.mrb[127].mxu1  ;;  %v7926_v34 = vsel %vm828_vm3, %v7921_v30, -inf }
0x4ab0   : > { %7927 = vmax.xlane.f32.xlu0 %v7926_v34 }
0x4ab9   : > { %7826 = vrot.lane.b32.xlu1 %v7764_v55, %s17486_s23 }
0x4abd   : > { %7938 = vrot.lane.b32.xlu1 %v7764_v55, %s17487_s4 }
0x4b35   : > { %v7816_v35 = vpop.xlane.xlu1 %7815 }
0x4b36   : > { %v7817_v37 = vsub.f32 %v7809_v22, %v7816_v35 }
0x4b38   : > { %v7818_v38 = vpack.c.bf16 %v7817_v37, %v7817_v37  ;;  %v12499_v37 = vld [vmem:[%s17478_s24 + $0x110] sm:$0xff] }
0x4b39   : > { %v7827_v16 = vpop.permute.xlu1 %7826 }
0x4b3a   : > { %v7820_v40 = vmul.bf16 1069105081, %v7818_v38  ;;  %v7832_v41 = vsel %vm892_vm5, %v7827_v16, 0  ;;  %v12500_v38 = vld [vmem:[%s17478_s24 + $0x118] sm:$0xff] }
0x4b3b   : > { %13901 = vmatpush3.bf16.msra.mxu0 %v7832_v41  ;;  %v14618_v16 = vpack.c.bf16 %v12500_v38, %v12499_v37  ;;  %v12496_v41 = vld [vmem:[%s17478_s24 + $0xf8] sm:$0xff] }
0x4b3c   : > { %14989 = vpow.bf16 %v7820_v40  ;;  %13912 = vmatprep.subr.bf16.mxu0 %v15076_v5  ;;  %v12495_v40 = vld [vmem:[%s17478_s24 + $0xf0] sm:$0xff] }
0x4b3d   : > { %v7928_v43 = vpop.xlane.xlu0 %7927  ;;  %v7939_v47 = vpop.permute.xlu1 %7938 }
0x4b3e   : > { %v7929_v44 = vsub.f32 %v7921_v30, %v7928_v43  ;;  %v7944_v49 = vsel %vm892_vm5, %v7939_v47, 0  ;;  %v12498_v30 = vld [vmem:[%s17478_s24 + $0x108] sm:$0xff]  ;;  %v14610_v43 = vpack.c.bf16 %v12496_v41, %v12495_v40 }
0x4b3f   : > { %v14614_v31 = vpack.c.bf16 %v12498_v30, %v12497_v28 }
0x4b40   : > { %v7930_v45 = vpack.c.bf16 %v7929_v44, %v7929_v44  ;;  %v12505_v44 = vld [vmem:[%s17479_s1 + $0x5] ss:$0 sm:$0xff] }
0x4b42   : > { %v7932_v46 = vmul.bf16 1069105081, %v7930_v45 }
0x4b44   : > { %14991 = vpow.bf16 %v7932_v46 }
0x4b47   : > { %v14990_v48 = vpop.eup %14989 }
0x4b48   : > { %13903 = vmatmul.mubr.msk.bf16.vlgmr.msra.gmra.mrb[132].mxu0 %vm828_vm3, %v14990_v48  ;;  %v7822_v29 = vunpack.c.l.bf16 %v14990_v48  ;;  %v12493_v48 = vld [vmem:[%s17416_s13 + $0x5] ss:$0 sm:$0xff] }
0x4b49   : > { %13913 = vmatpush3.bf16.msra.mxu0 %v7944_v49  ;;  %13914 = vmatprep.mubr.msk.bf16.mxu0 %vm15075_vm2, %v15076_v5 }
0x4b4a   : > { %v7823_v50 = vsel %vm828_vm3, %v7822_v29, 0.0  ;;  %14605 = vmatprep.subr.bf16.mxu0 %v15074_v2  ;;  %v12494_v29 = vld [vmem:[%s17417_s14 + $0x5] ss:$0 sm:$0xff] }
0x4b4b   : > { %7824 = vadd.xlane.f32.xlu1 %v7823_v50 }
0x4b4f   : > { %v14992_v54 = vpop.eup %14991 }
0x4b50   : > { %13915 = vmatmul.mubr.msk.bf16.vlgmr.msra.gmra.mrb[136].mxu0 %vm828_vm3, %v14992_v54  ;;  %v7934_v56 = vunpack.c.l.bf16 %v14992_v54 }
0x4b51   : > { %13929 = vmatprep.mubr.msk.f32.mxu0 %vm15075_vm2, %v15076_v5 }
0x4b52   : > { %v7935_v36 = vsel %vm828_vm3, %v7934_v56, 0.0  ;;  %14608 = vmatpush3.bf16.xpose.msk.msra.mxu0 %vm15310_vm6, %v14606_v53 }
0x4b53   : > { %7936 = vadd.xlane.f32.xlu0 %v7935_v36  ;;  %14613 = vmatprep.subr.bf16.mxu0 %v15074_v2 }
0x4b69   : > { %14838 = vrot.lane.b32.xlu0 %v14837_v57, %s17481_s25 }
0x4bd8   : > { %v7825_v63 = vpop.xlane.xlu1 %7824 }
0x4bd9   : > { %14993 = vrcp.f32 %v7825_v63 }
0x4be0   : > { %v7937_v59 = vpop.xlane.xlu0 %7936 }
0x4be1   : > { %14995 = vrcp.f32 %v7937_v59 }
0x4be3   : > { %v14994_v0 = vpop.eup %14993 }
0x4be4   : > { %v14839_v60 = vpop.permute.xlu0 %14838 }
0x4be5   : > { %v14841_v39 = vunpack.i.h.bf16 %v14839_v60  ;;  %v14840_v62 = vunpack.i.l.bf16 %v14839_v60 }
0x4be7   : > { %v14602_v12 = vpack.c.bf16 %v14841_v39, %v14840_v62 }
0x4be9   : > { %14604 = vmatpush3.bf16.xpose.msk.msra.mxu1 %vm15310_vm6, %v14602_v12 }
0x4bea   : > { %14609 = vmatprep.subr.bf16.mxu1 %v15074_v2 }
0x4beb   : > { %v14996_v11 = vpop.eup %14995 }
0x4c1b   : > { %v7868_v3 = vpop.f32.mrb[132].mxu0 }
0x4c1c   : > { %v7875_v7 = vmul.f32 %v14994_v0, %v7868_v3  ;;  %v13904_v8 = vpop.f32.mrb[133].mxu0 }
0x4c1d   : > { %v7871_v9 = vpop.f32.mrb[134].mxu0 }
0x4c1e   : > { %v13905_v10 = vpop.f32.mrb[135].mxu0  ;;  %13930 = vmatmul.mubr.msk.f32.vlgmr.msra.gmra.mrb[140].mxu0 %vm828_vm3, %v7875_v7 }
0x4c1f   : > { %13947 = vmatprep.mubr.msk.f32.mxu0 %vm15075_vm2, %v15076_v5  ;;  %14616 = vmatpush3.bf16.xpose.msk.msra.mxu0 %vm15221_vm1, %v14614_v31 }
0x4c20   : > { %14617 = vmatprep.subr.bf16.mxu0 %v15074_v2 }
0x4c23   : > { %v7980_v13 = vpop.f32.mrb[136].mxu0 }
0x4c24   : > { %v7987_v14 = vmul.f32 %v14996_v11, %v7980_v13  ;;  %v13916_v15 = vpop.f32.mrb[137].mxu0 }
0x4c25   : > { %v7983_v55 = vpop.f32.mrb[138].mxu0 }
0x4c26   : > { %v13917_v17 = vpop.f32.mrb[139].mxu0  ;;  %13923 = vmatmul.mubr.msk.f32.vlgmr.msra.gmra.mrb[128].mxu1 %vm828_vm3, %v7987_v14 }
0x4c27   : > { %13936 = vmatprep.mubr.msk.f32.mxu1 %vm15075_vm2, %v15076_v5  ;;  %14620 = vmatpush3.bf16.xpose.msk.msra.mxu0 %vm15221_vm1, %v14618_v16 }
0x4c28   : > { %13956 = vmatprep.subr.bf16.mxu0 %v15076_v5  ;;  %14612 = vmatpush3.bf16.xpose.msk.msra.mxu1 %vm15221_vm1, %v14610_v43 }
0x4c29   : > { %13950 = vmatprep.subr.bf16.mxu1 %v15076_v5 }
0x4c2e   : > { %13948 = vmatmul.mubr.msk.f32.vlgmr.msra.gmra.mrb[142].mxu0 %vm732_vm0, %v16428_v6 }
0x4c2f   : > { %13958 = vmatprep.mubr.msk.bf16.mxu0 %vm15075_vm2, %v15076_v5 }
0x4cf1   : > { %v8144_v18 = vpop.f32.mrb[140].mxu0 }
0x4cf2   : > { %v13931_v58 = vpop.f32.mrb[141].mxu0 }
0x4cf9   : > { %v8067_v20 = vpop.f32.mrb[128].mxu1 }
0x4cfa   : > { %v8145_v21 = vadd.f32 %v8144_v18, %v8067_v20  ;;  %v13924_v22 = vpop.f32.mrb[129].mxu1 }
0x4cfc   : > { %v8154_v23 = vadd.f32 %v12490_v19, %v8145_v21 }
0x4cfe   : > { %8155 = vst.msk [vmem:[#allocation2] sm:$0xff] %vm732_vm0, %v8154_v23 }
0x4d01   : > { %v8369_v53 = vpop.f32.mrb[142].mxu0 }
0x4d02   : > { %v13949_v56 = vpop.f32.mrb[143].mxu0 }
0x4d05   : > { %v8156_v1 = vld [vmem:[#allocation2] sm:$0xff] }
0x4d06   : > { %v8157_v24 = vadd.f32 %v8156_v1, %v16605_v25 }
0x4d08   : > { %v8162_v26 = vsel %vm732_vm0, %v8157_v24, 0.0 }
0x4d09   : > { %8163 = vadd.xlane.f32.xlu0 %v8162_v26 }
0x4d96   : > { %v8164_v32 = vpop.xlane.xlu0 %8163 }
0x4d97   : > { %v8165_v33 = vmul.f32 0.0625, %v8164_v32 }
0x4d99   : > { %v8166_v25 = vsub.f32 %v8157_v24, %v8165_v33  ;;  %v12502_v33 = vld [vmem:[%s17483_s3 + $0x50] sm:$0xff] }
0x4d9b   : > { %v8167_v34 = vmul.f32 %v8166_v25, %v8166_v25 }
0x4d9d   : > { %v8168_v35 = vsel %vm732_vm0, %v8167_v34, 0.0 }
0x4d9e   : > { %8169 = vadd.xlane.f32.xlu1 %v8168_v35 }
0x4daf   : > { %8288 = vrot.lane.b32.xlu1 %v12505_v44, %s17480_s28 }
0x4e2b   : > { %v8170_v45 = vpop.xlane.xlu1 %8169 }
0x4e2c   : > { %v8171_v46 = vmul.f32 0.0625, %v8170_v45 }
0x4e2e   : > { %v8172_v47 = vadd.f32 1e-05, %v8171_v46 }
0x4e2f   : > { %v8289_v52 = vpop.permute.xlu1 %8288 }
0x4e30   : > { %14997 = vrsqrt.f32 %v8172_v47  ;;  %v8370_v54 = vadd.f32 %v8369_v53, %v8289_v52 }
0x4e32   : > { %v8374_v36 = vpack.c.bf16 %v8370_v54, %v8370_v54 }
0x4e34   : > { %8487 = vrot.lane.b32.xlu1 %v8374_v36, %s17481_s25  ;;  %v8379_v57 = vsel %vm828_vm3, %v8374_v36, 0 }
0x4e3a   : > { %v14998_v6 = vpop.eup %14997 }
0x4e3b   : > { %v8174_v49 = vmul.f32 %v14998_v6, %v8166_v25  ;;  %v12503_v25 = vld [vmem:[%s17483_s3 + $0x58] sm:$0xff] }
0x4e3c   : > { %v14626_v34 = vpack.c.bf16 %v12503_v25, %v12502_v33  ;;  %v14842_v16 = vpack.i.bf16 %v12503_v25, %v12502_v33  ;;  %v12528_v33 = vld [vmem:[%s17419_s16 + $0x5] ss:$0 sm:$0xff] }
0x4e3d   : > { %v8181_v50 = vmul.f32 %v12493_v48, %v8174_v49 }
0x4e3f   : > { %v16712_v51 = vadd.f32 %v12494_v29, %v8181_v50 }
0x4e41   : > { %13937 = vmatmul.mubr.msk.f32.vlgmr.msra.gmra.mrb[130].mxu1 %vm732_vm0, %v16712_v51 }
0x4e42   : > { %13952 = vmatprep.mubr.msk.bf16.mxu1 %vm15075_vm2, %v15076_v5  ;;  %13951 = vmatpush3.bf16.xpose.msra.mxu1 %v8379_v57 }
0x4e43   : > { %13962 = vmatprep.subr.bf16.mxu1 %v15076_v5 }
0x4ea6   : > { %v8488_v60 = vpop.permute.xlu1 %8487 }
0x4ea7   : > { %v8493_v63 = vsel %vm828_vm3, %v8488_v60, 0 }
0x4f14   : > { %v8284_v59 = vpop.f32.mrb[130].mxu1 }
0x4f15   : > { %v8285_v39 = vadd.f32 %v12505_v44, %v8284_v59  ;;  %v13938_v62 = vpop.f32.mrb[131].mxu1 }
0x4f17   : > { %v8373_v12 = vpack.c.bf16 %v8285_v39, %v8285_v39  ;;  %v12524_v39 = vld [vmem:[%s17411_s8 + $0x5] ss:$0 sm:$0xff] }
0x4f19   : > { %8485 = vrot.lane.b32.xlu1 %v8373_v12, %s17481_s25  ;;  %13953 = vmatmul.mubr.msk.bf16.vlgmr.msra.gmra.mrb[132].mxu1 %vm828_vm3, %v8373_v12 }
0x4f1a   : > { %13963 = vmatpush3.bf16.xpose.msra.mxu1 %v8493_v63  ;;  %13964 = vmatprep.mubr.msk.bf16.mxu1 %vm15075_vm2, %v15076_v5 }
0x4f1b   : > { %14621 = vmatprep.subr.bf16.mxu1 %v15074_v2 }
0x4f8b   : > { %v8486_v0 = vpop.permute.xlu1 %8485 }
0x4f8c   : > { %13965 = vmatmul.mubr.msk.bf16.vlgmr.msra.gmra.mrb[136].mxu1 %vm828_vm3, %v8486_v0 }
0x4f8d   : > { %13978 = vmatprep.mubr.msk.f32.mxu1 %vm15075_vm2, %v15076_v5 }
0x4fec   : > { %v8415_v3 = vpop.f32.mrb[132].mxu1 }
0x4fed   : > { %v13954_v7 = vpop.f32.mrb[133].mxu1  ;;  %v8421_v8 = vsel %vm828_vm3, %v8415_v3, -inf }
0x4fee   : > { %8422 = vmax.xlane.f32.xlu0 %v8421_v8  ;;  %v8418_v9 = vpop.f32.mrb[134].mxu1 }
0x4fef   : > { %v13955_v10 = vpop.f32.mrb[135].mxu1  ;;  %v12529_v9 = vld [vmem:[%s17412_s9 + $0x140] sm:$0xff] }
0x4ff0   : > { %v12530_v10 = vld [vmem:[%s17412_s9 + $0x148] sm:$0xff] }
0x5004   : > { %8434 = vrot.lane.b32.xlu0 %v8374_v36, %s17480_s28 }
0x5008   : > { %8547 = vrot.lane.b32.xlu0 %v8374_v36, %s17482_s0 }
0x505f   : > { %v8529_v11 = vpop.f32.mrb[136].mxu1 }
0x5060   : > { %v13966_v13 = vpop.f32.mrb[137].mxu1  ;;  %v8535_v14 = vsel %vm828_vm3, %v8529_v11, -inf }
0x5061   : > { %8536 = vmax.xlane.f32.xlu1 %v8535_v14  ;;  %v8532_v15 = vpop.f32.mrb[138].mxu1  ;;  %v12532_v13 = vld [vmem:[%s17412_s9 + $0x158] sm:$0xff] }
0x5062   : > { %v13967_v55 = vpop.f32.mrb[139].mxu1 }
0x507b   : > { %v8423_v17 = vpop.xlane.xlu0 %8422 }
0x507c   : > { %v8424_v18 = vsub.f32 %v8415_v3, %v8423_v17 }
0x507e   : > { %v8425_v58 = vpack.c.bf16 %v8424_v18, %v8424_v18 }
0x507f   : > { %v8435_v19 = vpop.permute.xlu0 %8434 }
0x5080   : > { %v8427_v20 = vmul.bf16 1069105081, %v8425_v58  ;;  %v8440_v21 = vsel %vm892_vm5, %v8435_v19, 0  ;;  %v12533_v19 = vld [vmem:[%s17412_s9 + $0x160] sm:$0xff] }
0x5081   : > { %13957 = vmatpush3.bf16.msra.mxu0 %v8440_v21 }
0x5082   : > { %14999 = vpow.bf16 %v8427_v20  ;;  %13968 = vmatprep.subr.bf16.mxu0 %v15076_v5  ;;  %v12534_v20 = vld [vmem:[%s17412_s9 + $0x168] sm:$0xff] }
0x5083   : > { %v8548_v22 = vpop.permute.xlu0 %8547  ;;  %v14638_v21 = vpack.c.bf16 %v12534_v20, %v12533_v19 }
0x5084   : > { %v8553_v1 = vsel %vm892_vm5, %v8548_v22, 0  ;;  %v12535_v22 = vld [vmem:[%s17412_s9 + $0x170] sm:$0xff] }
0x508d   : > { %v15000_v23 = vpop.eup %14999 }
0x508e   : > { %13959 = vmatmul.mubr.msk.bf16.vlgmr.msra.gmra.mrb[144].mxu0 %vm828_vm3, %v15000_v23  ;;  %v8429_v24 = vunpack.c.l.bf16 %v15000_v23  ;;  %v12536_v23 = vld [vmem:[%s17412_s9 + $0x178] sm:$0xff] }
0x508f   : > { %13969 = vmatpush3.bf16.msra.mxu0 %v8553_v1  ;;  %13970 = vmatprep.mubr.msk.bf16.mxu0 %vm15075_vm2, %v15076_v5  ;;  %v14642_v1 = vpack.c.bf16 %v12536_v23, %v12535_v22 }
0x5090   : > { %v8430_v26 = vsel %vm828_vm3, %v8429_v24, 0.0  ;;  %14625 = vmatprep.subr.bf16.mxu0 %v15074_v2 }
0x5091   : > { %8431 = vadd.xlane.f32.xlu0 %v8430_v26 }
0x50ee   : > { %v8537_v28 = vpop.xlane.xlu1 %8536 }
0x50ef   : > { %v8538_v30 = vsub.f32 %v8529_v11, %v8537_v28  ;;  %v14630_v11 = vpack.c.bf16 %v12530_v10, %v12529_v9  ;;  %v12563_v10 = vld [vmem:[%s17467_s5 + $0x140] sm:$0xff] }
0x50f1   : > { %v8539_v31 = vpack.c.bf16 %v8538_v30, %v8538_v30 }
0x50f3   : > { %v8541_v32 = vmul.bf16 1069105081, %v8539_v31  ;;  %v12527_v31 = vld [vmem:[%s17418_s15 + $0x5] ss:$0 sm:$0xff] }
0x50f5   : > { %15001 = vpow.bf16 %v8541_v32 }
0x5100   : > { %v15002_v35 = vpop.eup %15001 }
0x5101   : > { %13971 = vmatmul.mubr.msk.bf16.vlgmr.msra.gmra.mrb[148].mxu0 %vm828_vm3, %v15002_v35  ;;  %v8543_v37 = vunpack.c.l.bf16 %v15002_v35  ;;  %v12548_v35 = vld [vmem:[%s17414_s11 + $0x50] sm:$0xff] }
0x5102   : > { %14628 = vmatpush3.bf16.xpose.msk.msra.mxu0 %vm15310_vm6, %v14626_v34  ;;  %13985 = vmatprep.mubr.msk.f32.mxu0 %vm15075_vm2, %v15076_v5 }
0x5103   : > { %v8544_v38 = vsel %vm828_vm3, %v8543_v37, 0.0  ;;  %14645 = vmatprep.subr.bf16.mxu0 %v15074_v2  ;;  %v12549_v37 = vld [vmem:[%s17414_s11 + $0x58] sm:$0xff] }
0x5104   : > { %8545 = vadd.xlane.f32.xlu1 %v8544_v38  ;;  %v14646_v38 = vpack.c.bf16 %v12549_v37, %v12548_v35 }
0x5115   : > { %14843 = vrot.lane.b32.xlu1 %v14842_v16, %s17481_s25  ;;  %v12538_v16 = vld [vmem:[%s17413_s10 + $0x5] ss:$0 sm:$0xff] }
0x511e   : > { %v8432_v40 = vpop.xlane.xlu0 %8431 }
0x511f   : > { %15003 = vrcp.f32 %v8432_v40 }
0x5129   : > { %v15004_v41 = vpop.eup %15003 }
0x5161   : > { %v8476_v43 = vpop.f32.mrb[144].mxu0 }
0x5162   : > { %v8483_v44 = vmul.f32 %v15004_v41, %v8476_v43  ;;  %v13960_v45 = vpop.f32.mrb[145].mxu0 }
0x5163   : > { %v8479_v46 = vpop.f32.mrb[146].mxu0 }
0x5164   : > { %v13961_v47 = vpop.f32.mrb[147].mxu0  ;;  %13986 = vmatmul.mubr.msk.f32.vlgmr.msra.gmra.mrb[152].mxu0 %vm828_vm3, %v8483_v44 }
0x5165   : > { %14011 = vmatprep.mubr.msk.f32.mxu0 %vm15075_vm2, %v15076_v5  ;;  %14648 = vmatpush3.bf16.xpose.msk.msra.mxu0 %vm15488_vm8, %v14646_v38 }
0x5166   : > { %14649 = vmatprep.subr.bf16.mxu0 %v15074_v2 }
0x5191   : > { %v8546_v6 = vpop.xlane.xlu1 %8545 }
0x5192   : > { %15005 = vrcp.f32 %v8546_v6 }
0x5195   : > { %v14844_v48 = vpop.permute.xlu1 %14843 }
0x5196   : > { %v14846_v49 = vunpack.i.h.bf16 %v14844_v48  ;;  %v14845_v29 = vunpack.i.l.bf16 %v14844_v48 }
0x5198   : > { %v14622_v50 = vpack.c.bf16 %v14846_v49, %v14845_v29 }
0x519a   : > { %14624 = vmatpush3.bf16.xpose.msk.msra.mxu1 %vm15310_vm6, %v14622_v50 }
0x519b   : > { %14629 = vmatprep.subr.bf16.mxu1 %v15074_v2 }
0x519c   : > { %v15006_v52 = vpop.eup %15005 }
0x51d4   : > { %v8589_v53 = vpop.f32.mrb[148].mxu0 }
0x51d5   : > { %v8596_v54 = vmul.f32 %v15006_v52, %v8589_v53  ;;  %v13972_v56 = vpop.f32.mrb[149].mxu0  ;;  %v12551_v52 = vld [vmem:[%s17415_s12 + $0x5] ss:$0 sm:$0xff] }
0x51d6   : > { %v8592_v36 = vpop.f32.mrb[150].mxu0 }
0x51d7   : > { %v13973_v57 = vpop.f32.mrb[151].mxu0  ;;  %13979 = vmatmul.mubr.msk.f32.vlgmr.msra.gmra.mrb[140].mxu1 %vm828_vm3, %v8596_v54 }
0x51d8   : > { %14004 = vmatprep.mubr.msk.f32.mxu1 %vm15075_vm2, %v15076_v5  ;;  %14632 = vmatpush3.bf16.xpose.msk.msra.mxu1 %vm15221_vm1, %v14630_v11  ;;  %v12564_v11 = vld [vmem:[%s17467_s5 + $0x148] sm:$0xff] }
0x51d9   : > { %14633 = vmatprep.subr.bf16.mxu1 %v15074_v2 }
0x5237   : > { %v8753_v59 = vpop.f32.mrb[152].mxu0 }
0x5238   : > { %v13987_v60 = vpop.f32.mrb[153].mxu0 }
0x5239   : > { %v12560_v60 = vld [vmem:[%s17467_s5 + $0x128] sm:$0xff] }
0x52aa   : > { %v8676_v62 = vpop.f32.mrb[140].mxu1 }
0x52ab   : > { %v8754_v12 = vadd.f32 %v8753_v59, %v8676_v62  ;;  %v13980_v63 = vpop.f32.mrb[141].mxu1  ;;  %v12559_v59 = vld [vmem:[%s17467_s5 + $0x120] sm:$0xff] }
0x52ad   : > { %v8763_v0 = vadd.f32 %v12524_v39, %v8754_v12  ;;  %v14650_v39 = vpack.c.bf16 %v12560_v60, %v12559_v59 }
0x52af   : > { %8764 = vst.msk [vmem:[#allocation2] sm:$0xff] %vm732_vm0, %v8763_v0 }
0x52b6   : > { %v8765_v3 = vld [vmem:[#allocation2] sm:$0xff] }
0x52b7   : > { %v8766_v7 = vadd.f32 %v8765_v3, %v16712_v51  ;;  %v12531_v51 = vld [vmem:[%s17412_s9 + $0x150] sm:$0xff] }
0x52b8   : > { %v14634_v14 = vpack.c.bf16 %v12532_v13, %v12531_v51  ;;  %v14658_v51 = vpack.c.bf16 %v12564_v11, %v12563_v10 }
0x52b9   : > { %v8771_v8 = vsel %vm732_vm0, %v8766_v7, 0.0 }
0x52ba   : > { %8772 = vadd.xlane.f32.xlu1 %v8771_v8  ;;  %14636 = vmatpush3.bf16.xpose.msk.msra.mxu1 %vm15221_vm1, %v14634_v14  ;;  %v12562_v8 = vld [vmem:[%s17467_s5 + $0x138] sm:$0xff] }
0x52bb   : > { %14637 = vmatprep.subr.bf16.mxu1 %v15074_v2 }
0x52c2   : > { %14640 = vmatpush3.bf16.xpose.msk.msra.mxu1 %vm15221_vm1, %v14638_v21  ;;  %v12569_v21 = vld [vmem:[%s17473_s7 + $0x6] ss:$0 sm:$0xff] }
0x52c3   : > { %14641 = vmatprep.subr.bf16.mxu1 %v15074_v2 }
0x52ca   : > { %14644 = vmatpush3.bf16.xpose.msk.msra.mxu1 %vm15221_vm1, %v14642_v1 }
0x52cb   : > { %14029 = vmatprep.subr.bf16.mxu1 %v15076_v5 }
0x5347   : > { %v8773_v15 = vpop.xlane.xlu1 %8772 }
0x5348   : > { %v8774_v55 = vmul.f32 0.0625, %v8773_v15 }
0x534a   : > { %v8775_v17 = vsub.f32 %v8766_v7, %v8774_v55  ;;  %v12561_v7 = vld [vmem:[%s17467_s5 + $0x130] sm:$0xff] }
0x534b   : > { %v14654_v9 = vpack.c.bf16 %v12562_v8, %v12561_v7 }
0x534c   : > { %v8776_v18 = vmul.f32 %v8775_v17, %v8775_v17 }
0x534e   : > { %v8777_v58 = vsel %vm732_vm0, %v8776_v18, 0.0 }
0x534f   : > { %8778 = vadd.xlane.f32.xlu0 %v8777_v58  ;;  %v12558_v58 = vld [vmem:[%s17421_s18 + $0x5] ss:$0 sm:$0xff] }
0x53dc   : > { %v8779_v24 = vpop.xlane.xlu0 %8778 }
0x53dd   : > { %v8780_v26 = vmul.f32 0.0625, %v8779_v24 }
0x53df   : > { %v8781_v28 = vadd.f32 1e-05, %v8780_v26 }
0x53e1   : > { %15007 = vrsqrt.f32 %v8781_v28 }
0x53eb   : > { %v15008_v30 = vpop.eup %15007 }
0x53ec   : > { %v8783_v32 = vmul.f32 %v15008_v30, %v8775_v17  ;;  %v12557_v17 = vld [vmem:[%s17420_s17 + $0x5] ss:$0 sm:$0xff] }
0x53ee   : > { %v8790_v25 = vmul.f32 %v12527_v31, %v8783_v32 }
0x53f0   : > { %v8797_v34 = vadd.f32 %v12528_v33, %v8790_v25 }
0x53f2   : > { %14005 = vmatmul.mubr.msk.f32.vlgmr.msra.gmra.mrb[142].mxu1 %vm732_vm0, %v8797_v34 }
0x53f3   : > { %14031 = vmatprep.mubr.msk.bf16.mxu1 %vm15075_vm2, %v15076_v5 }
0x54c5   : > { %v8908_v40 = vpop.f32.mrb[142].mxu1 }
0x54c6   : > { %v8909_v41 = vadd.f32 %v12538_v16, %v8908_v40  ;;  %v14006_v43 = vpop.f32.mrb[143].mxu1 }
0x54c8   : > { %v8913_v44 = vmul.f32 0.044715, %v8909_v41  ;;  %v8912_v49 = vmul.f32 0.5, %v8909_v41 }
0x54ca   : > { %v8914_v45 = vmul.f32 %v8913_v44, %v8909_v41 }
0x54cc   : > { %v8915_v46 = vmul.f32 %v8914_v45, %v8909_v41 }
0x54ce   : > { %v8916_v47 = vadd.f32 %v8915_v46, %v8909_v41 }
0x54d0   : > { %v8917_v6 = vmul.f32 0.7978846, %v8916_v47 }
0x54d2   : > { %15009 = vtanh.f32 %v8917_v6 }
0x54dc   : > { %v15010_v48 = vpop.eup %15009 }
0x54dd   : > { %v8919_v29 = vadd.f32 1.0, %v15010_v48 }
0x54df   : > { %v8920_v50 = vmul.f32 %v8919_v29, %v8912_v49 }
0x54e1   : > { %14012 = vmatmul.mubr.msk.f32.vlgmr.msra.gmra.mrb[154].mxu0 %vm1983_vm7, %v8920_v50 }
0x54e2   : > { %14026 = vmatprep.mubr.msk.f32.mxu0 %vm15075_vm2, %v15076_v5  ;;  %14652 = vmatpush3.bf16.xpose.msk.msra.mxu0 %vm15221_vm1, %v14650_v39  ;;  %v12566_v39 = vld [vmem:[%s17474_s26 + $0x60] sm:$0xff] }
0x54e3   : > { %14653 = vmatprep.subr.bf16.mxu0 %v15074_v2 }
0x54ea   : > { %14656 = vmatpush3.bf16.xpose.msk.msra.mxu0 %vm15221_vm1, %v14654_v9 }
0x54eb   : > { %14657 = vmatprep.subr.bf16.mxu0 %v15074_v2 }
0x54f2   : > { %14660 = vmatpush3.bf16.xpose.msk.msra.mxu0 %vm15221_vm1, %v14658_v51 }
0x54f3   : > { %14035 = vmatprep.subr.bf16.mxu0 %v15076_v5 }
0x55b4   : > { %v9007_v53 = vpop.f32.mrb[154].mxu0 }
0x55b5   : > { %v9008_v54 = vadd.f32 %v12551_v52, %v9007_v53  ;;  %v14013_v56 = vpop.f32.mrb[155].mxu0 }
0x55b7   : > { %v9011_v36 = vadd.f32 %v9008_v54, %v8797_v34 }
0x55b9   : > { %v9016_v57 = vsel %vm732_vm0, %v9011_v36, 0.0 }
0x55ba   : > { %9017 = vadd.xlane.f32.xlu0 %v9016_v57 }
0x5647   : > { %v9018_v62 = vpop.xlane.xlu0 %9017 }
0x5648   : > { %v9019_v12 = vmul.f32 0.0625, %v9018_v62  ;;  %v12567_v62 = vld [vmem:[%s17474_s26 + $0x68] sm:$0xff] }
0x5649   : > { %v14847_v7 = vpack.i.bf16 %v12567_v62, %v12566_v39 }
0x564a   : > { %v9020_v63 = vsub.f32 %v9011_v36, %v9019_v12  ;;  %v14666_v12 = vpack.c.bf16 %v12567_v62, %v12566_v39 }
0x564c   : > { %v9021_v0 = vmul.f32 %v9020_v63, %v9020_v63 }
0x564e   : > { %v9022_v3 = vsel %vm732_vm0, %v9021_v0, 0.0 }
0x564f   : > { %9023 = vadd.xlane.f32.xlu0 %v9022_v3 }
0x56dc   : > { %v9024_v13 = vpop.xlane.xlu0 %9023 }
0x56dd   : > { %v9025_v14 = vmul.f32 0.0625, %v9024_v13 }
0x56df   : > { %v9026_v15 = vadd.f32 1e-05, %v9025_v14 }
0x56e1   : > { %15011 = vrsqrt.f32 %v9026_v15 }
0x56eb   : > { %v15012_v55 = vpop.eup %15011 }
0x56ec   : > { %v9028_v18 = vmul.f32 %v15012_v55, %v9020_v63 }
0x56ee   : > { %v9035_v19 = vmul.f32 %v12557_v17, %v9028_v18 }
0x56f0   : > { %v16870_v20 = vadd.f32 %v12558_v58, %v9035_v19 }
0x56f2   : > { %14027 = vmatmul.mubr.msk.f32.vlgmr.msra.gmra.mrb[156].mxu0 %vm732_vm0, %v16870_v20 }
0x56f3   : > { %14037 = vmatprep.mubr.msk.bf16.mxu0 %vm15075_vm2, %v15076_v5 }
0x57c5   : > { %v9150_v22 = vpop.f32.mrb[156].mxu0 }
0x57c6   : > { %v9151_v23 = vadd.f32 %v12569_v21, %v9150_v22  ;;  %v14028_v1 = vpop.f32.mrb[157].mxu0 }
0x57c8   : > { %v9154_v24 = vpack.c.bf16 %v9151_v23, %v9151_v23 }
0x57ca   : > { %9268 = vrot.lane.b32.xlu1 %v9154_v24, %s17482_s0  ;;  %9156 = vrot.lane.b32.xlu0 %v9154_v24, %s17480_s28 }
0x57ce   : > { %9266 = vrot.lane.b32.xlu0 %v9154_v24, %s17481_s25 }
0x583c   : > { %v9157_v26 = vpop.permute.xlu0 %9156  ;;  %v9269_v30 = vpop.permute.xlu1 %9268 }
0x583d   : > { %v9162_v28 = vsel %vm828_vm3, %v9157_v26, 0  ;;  %v9274_v31 = vsel %vm828_vm3, %v9269_v30, 0  ;;  %v12587_v30 = vld [vmem:[%s17491_s6 + $0x6] ss:$0 sm:$0xff] }
0x583e   : > { %14030 = vmatpush3.bf16.xpose.msra.mxu1 %v9162_v28 }
0x583f   : > { %14041 = vmatprep.subr.bf16.mxu1 %v15076_v5 }
0x5840   : > { %v9267_v32 = vpop.permute.xlu0 %9266 }
0x5845   : > { %14032 = vmatmul.mubr.msk.bf16.vlgmr.msra.gmra.mrb[144].mxu1 %vm828_vm3, %v9154_v24 }
0x5846   : > { %14042 = vmatpush3.bf16.xpose.msra.mxu1 %v9274_v31  ;;  %14043 = vmatprep.mubr.msk.bf16.mxu1 %vm15075_vm2, %v15076_v5 }
0x5847   : > { %14661 = vmatprep.subr.bf16.mxu1 %v15074_v2 }
0x584d   : > { %14044 = vmatmul.mubr.msk.bf16.vlgmr.msra.gmra.mrb[148].mxu1 %vm828_vm3, %v9267_v32 }
0x584e   : > { %14057 = vmatprep.mubr.msk.f32.mxu1 %vm15075_vm2, %v15076_v5 }
0x5918   : > { %v9198_v33 = vpop.f32.mrb[144].mxu1 }
0x5919   : > { %v9199_v25 = vadd.f32 %v9198_v33, %v15282_v27  ;;  %v14033_v34 = vpop.f32.mrb[145].mxu1 }
0x591a   : > { %v9201_v35 = vpop.f32.mrb[146].mxu1 }
0x591b   : > { %v14034_v37 = vpop.f32.mrb[147].mxu1  ;;  %v9204_v38 = vsel %vm828_vm3, %v9199_v25, -inf }
0x591c   : > { %9205 = vmax.xlane.f32.xlu0 %v9204_v38  ;;  %v12594_v38 = vld [vmem:[%s17478_s24 + $0x130] sm:$0xff] }
0x5920   : > { %v9310_v16 = vpop.f32.mrb[148].mxu1 }
0x5921   : > { %v9311_v40 = vadd.f32 %v9310_v16, %v15282_v27  ;;  %v14045_v41 = vpop.f32.mrb[149].mxu1  ;;  %v12595_v16 = vld [vmem:[%s17478_s24 + $0x138] sm:$0xff] }
0x5922   : > { %v9313_v43 = vpop.f32.mrb[150].mxu1 }
0x5923   : > { %v14046_v44 = vpop.f32.mrb[151].mxu1  ;;  %v9316_v45 = vsel %vm828_vm3, %v9311_v40, -inf }
0x5924   : > { %9317 = vmax.xlane.f32.xlu1 %v9316_v45 }
0x5932   : > { %9216 = vrot.lane.b32.xlu0 %v9154_v24, %s17486_s23 }
0x5935   : > { %9328 = vrot.lane.b32.xlu1 %v9154_v24, %s17487_s4 }
0x59a9   : > { %v9206_v46 = vpop.xlane.xlu0 %9205 }
0x59aa   : > { %v9207_v47 = vsub.f32 %v9199_v25, %v9206_v46  ;;  %v12596_v46 = vld [vmem:[%s17478_s24 + $0x140] sm:$0xff] }
0x59ac   : > { %v9208_v6 = vpack.c.bf16 %v9207_v47, %v9207_v47  ;;  %v12597_v47 = vld [vmem:[%s17478_s24 + $0x148] sm:$0xff] }
0x59ad   : > { %v9217_v48 = vpop.permute.xlu0 %9216 }
0x59ae   : > { %v9210_v49 = vmul.bf16 1069105081, %v9208_v6  ;;  %v9222_v29 = vsel %vm892_vm5, %v9217_v48, 0  ;;  %v14678_v6 = vpack.c.bf16 %v12597_v47, %v12596_v46  ;;  %v12592_v48 = vld [vmem:[%s17478_s24 + $0x120] sm:$0xff] }
0x59af   : > { %14036 = vmatpush3.bf16.msra.mxu0 %v9222_v29  ;;  %v16961_v29 = vld [vmem:[%s17492_s22] sm:$0xff] }
0x59b0   : > { %15013 = vpow.bf16 %v9210_v49  ;;  %14047 = vmatprep.subr.bf16.mxu0 %v15076_v5  ;;  %v12593_v49 = vld [vmem:[%s17478_s24 + $0x128] sm:$0xff] }
0x59b1   : > { %v9318_v50 = vpop.xlane.xlu1 %9317 }
0x59b2   : > { %v9319_v52 = vsub.f32 %v9311_v40, %v9318_v50  ;;  %v14674_v40 = vpack.c.bf16 %v12595_v16, %v12594_v38  ;;  %v14670_v50 = vpack.c.bf16 %v12593_v49, %v12592_v48  ;;  %v12600_v38 = vld [vmem:[%s17483_s3 + $0x68] sm:$0xff] }
0x59b4   : > { %v9320_v53 = vpack.c.bf16 %v9319_v52, %v9319_v52  ;;  %v12602_v52 = vld [vmem:[%s17479_s1 + $0x6] ss:$0 sm:$0xff] }
0x59b5   : > { %v9329_v56 = vpop.permute.xlu1 %9328 }
0x59b6   : > { %v9322_v54 = vmul.bf16 1069105081, %v9320_v53  ;;  %v9334_v57 = vsel %vm892_vm5, %v9329_v56, 0 }
0x59b8   : > { %15015 = vpow.bf16 %v9322_v54 }
0x59bb   : > { %v15014_v36 = vpop.eup %15013 }
0x59bc   : > { %14038 = vmatmul.mubr.msk.bf16.vlgmr.msra.gmra.mrb[160].mxu0 %vm828_vm3, %v15014_v36  ;;  %v9212_v59 = vunpack.c.l.bf16 %v15014_v36 }
0x59bd   : > { %14048 = vmatpush3.bf16.msra.mxu0 %v9334_v57  ;;  %14049 = vmatprep.mubr.msk.bf16.mxu0 %vm15075_vm2, %v15076_v5  ;;  %v12590_v57 = vld [vmem:[%s17416_s13 + $0x6] ss:$0 sm:$0xff] }
0x59be   : > { %v9213_v60 = vsel %vm828_vm3, %v9212_v59, 0.0  ;;  %14665 = vmatprep.subr.bf16.mxu0 %v15074_v2 }
0x59bf   : > { %9214 = vadd.xlane.f32.xlu0 %v9213_v60  ;;  %v12591_v60 = vld [vmem:[%s17417_s14 + $0x6] ss:$0 sm:$0xff] }
0x59c3   : > { %v15016_v63 = vpop.eup %15015 }
0x59c4   : > { %14050 = vmatmul.mubr.msk.bf16.vlgmr.msra.gmra.mrb[164].mxu0 %vm828_vm3, %v15016_v63  ;;  %v9324_v0 = vunpack.c.l.bf16 %v15016_v63 }
0x59c5   : > { %14064 = vmatprep.mubr.msk.f32.mxu0 %vm15075_vm2, %v15076_v5 }
0x59c6   : > { %v9325_v3 = vsel %vm828_vm3, %v9324_v0, 0.0  ;;  %14668 = vmatpush3.bf16.xpose.msk.msra.mxu0 %vm15310_vm6, %v14666_v12 }
0x59c7   : > { %9326 = vadd.xlane.f32.xlu1 %v9325_v3  ;;  %14673 = vmatprep.subr.bf16.mxu0 %v15074_v2 }
0x59d5   : > { %14848 = vrot.lane.b32.xlu0 %v14847_v7, %s17481_s25 }
0x59d9   : > { %9678 = vrot.lane.b32.xlu0 %v12602_v52, %s17480_s28 }
0x5a4c   : > { %v9215_v8 = vpop.xlane.xlu0 %9214 }
0x5a4d   : > { %15017 = vrcp.f32 %v9215_v8 }
0x5a50   : > { %v14849_v9 = vpop.permute.xlu0 %14848 }
0x5a51   : > { %v14851_v10 = vunpack.i.h.bf16 %v14849_v9  ;;  %v14850_v11 = vunpack.i.l.bf16 %v14849_v9 }
0x5a53   : > { %v14662_v51 = vpack.c.bf16 %v14851_v10, %v14850_v11 }
0x5a54   : > { %v9327_v13 = vpop.xlane.xlu1 %9326  ;;  %v9679_v12 = vpop.permute.xlu0 %9678 }
0x5a55   : > { %14664 = vmatpush3.bf16.xpose.msk.msra.mxu1 %vm15310_vm6, %v14662_v51  ;;  %15019 = vrcp.f32 %v9327_v13 }
0x5a56   : > { %14669 = vmatprep.subr.bf16.mxu1 %v15074_v2 }
0x5a57   : > { %v15018_v14 = vpop.eup %15017 }
0x5a5f   : > { %v15020_v19 = vpop.eup %15019 }
0x5a8f   : > { %v9258_v15 = vpop.f32.mrb[160].mxu0 }
0x5a90   : > { %v9265_v55 = vmul.f32 %v15018_v14, %v9258_v15  ;;  %v14039_v17 = vpop.f32.mrb[161].mxu0 }
0x5a91   : > { %v9261_v18 = vpop.f32.mrb[162].mxu0 }
0x5a92   : > { %v14040_v58 = vpop.f32.mrb[163].mxu0  ;;  %14065 = vmatmul.mubr.msk.f32.vlgmr.msra.gmra.mrb[158].mxu0 %vm828_vm3, %v9265_v55 }
0x5a93   : > { %14082 = vmatprep.mubr.msk.f32.mxu0 %vm15075_vm2, %v15076_v5  ;;  %14676 = vmatpush3.bf16.xpose.msk.msra.mxu0 %vm15221_vm1, %v14674_v40 }
0x5a94   : > { %14677 = vmatprep.subr.bf16.mxu0 %v15074_v2 }
0x5a97   : > { %v9370_v21 = vpop.f32.mrb[164].mxu0 }
0x5a98   : > { %v9377_v22 = vmul.f32 %v15020_v19, %v9370_v21  ;;  %v14051_v23 = vpop.f32.mrb[165].mxu0 }
0x5a99   : > { %v9373_v1 = vpop.f32.mrb[166].mxu0 }
0x5a9a   : > { %v14052_v24 = vpop.f32.mrb[167].mxu0  ;;  %14058 = vmatmul.mubr.msk.f32.vlgmr.msra.gmra.mrb[152].mxu1 %vm828_vm3, %v9377_v22 }
0x5a9b   : > { %14071 = vmatprep.mubr.msk.f32.mxu1 %vm15075_vm2, %v15076_v5  ;;  %14680 = vmatpush3.bf16.xpose.msk.msra.mxu0 %vm15221_vm1, %v14678_v6 }
0x5a9c   : > { %14091 = vmatprep.subr.bf16.mxu0 %v15076_v5  ;;  %14672 = vmatpush3.bf16.xpose.msk.msra.mxu1 %vm15221_vm1, %v14670_v50 }
0x5a9d   : > { %14085 = vmatprep.subr.bf16.mxu1 %v15076_v5 }
0x5aa2   : > { %14083 = vmatmul.mubr.msk.f32.vlgmr.msra.gmra.mrb[168].mxu0 %vm732_vm0, %v16961_v29 }
0x5aa3   : > { %14093 = vmatprep.mubr.msk.bf16.mxu0 %vm15075_vm2, %v15076_v5 }
0x5b65   : > { %v9534_v26 = vpop.f32.mrb[158].mxu0 }
0x5b66   : > { %v14066_v28 = vpop.f32.mrb[159].mxu0 }
0x5b6d   : > { %v9457_v31 = vpop.f32.mrb[152].mxu1 }
0x5b6e   : > { %v9535_v32 = vadd.f32 %v9534_v26, %v9457_v31  ;;  %v14059_v33 = vpop.f32.mrb[153].mxu1 }
0x5b70   : > { %v9544_v25 = vadd.f32 %v12587_v30, %v9535_v32 }
0x5b72   : > { %9545 = vst.msk [vmem:[#allocation2] sm:$0xff] %vm732_vm0, %v9544_v25 }
0x5b75   : > { %v9759_v63 = vpop.f32.mrb[168].mxu0 }
0x5b76   : > { %v9760_v0 = vadd.f32 %v9759_v63, %v9679_v12  ;;  %v14084_v3 = vpop.f32.mrb[169].mxu0 }
0x5b78   : > { %v9764_v7 = vpack.c.bf16 %v9760_v0, %v9760_v0 }
0x5b79   : > { %v9546_v34 = vld [vmem:[#allocation2] sm:$0xff] }
0x5b7a   : > { %v9547_v35 = vadd.f32 %v9546_v34, %v16870_v20  ;;  %v9769_v8 = vsel %vm828_vm3, %v9764_v7, 0 }
0x5b7c   : > { %v9552_v37 = vsel %vm732_vm0, %v9547_v35, 0.0 }
0x5b7d   : > { %9553 = vadd.xlane.f32.xlu1 %v9552_v37  ;;  %v12599_v37 = vld [vmem:[%s17483_s3 + $0x60] sm:$0xff] }
0x5b7e   : > { %v14686_v16 = vpack.c.bf16 %v12600_v38, %v12599_v37  ;;  %v14852_v40 = vpack.i.bf16 %v12600_v38, %v12599_v37 }
0x5c0a   : > { %v9554_v41 = vpop.xlane.xlu1 %9553 }
0x5c0b   : > { %v9555_v20 = vmul.f32 0.0625, %v9554_v41 }
0x5c0d   : > { %v9556_v43 = vsub.f32 %v9547_v35, %v9555_v20 }
0x5c0f   : > { %v9557_v44 = vmul.f32 %v9556_v43, %v9556_v43 }
0x5c11   : > { %v9558_v45 = vsel %vm732_vm0, %v9557_v44, 0.0 }
0x5c12   : > { %9559 = vadd.xlane.f32.xlu1 %v9558_v45 }
0x5c23   : > { %9877 = vrot.lane.b32.xlu1 %v9764_v7, %s17481_s25 }
0x5c9f   : > { %v9560_v53 = vpop.xlane.xlu1 %9559 }
0x5ca0   : > { %v9561_v54 = vmul.f32 0.0625, %v9560_v53 }
0x5ca2   : > { %v9562_v56 = vadd.f32 1e-05, %v9561_v54 }
0x5ca3   : > { %v9878_v10 = vpop.permute.xlu1 %9877 }
0x5ca4   : > { %15021 = vrsqrt.f32 %v9562_v56  ;;  %v9883_v14 = vsel %vm828_vm3, %v9878_v10, 0 }
0x5cae   : > { %v15022_v36 = vpop.eup %15021 }
0x5caf   : > { %v9564_v59 = vmul.f32 %v15022_v36, %v9556_v43 }
0x5cb1   : > { %v9571_v39 = vmul.f32 %v12590_v57, %v9564_v59 }
0x5cb3   : > { %v16980_v62 = vadd.f32 %v12591_v60, %v9571_v39 }
0x5cb5   : > { %14072 = vmatmul.mubr.msk.f32.vlgmr.msra.gmra.mrb[154].mxu1 %vm732_vm0, %v16980_v62 }
0x5cb6   : > { %14087 = vmatprep.mubr.msk.bf16.mxu1 %vm15075_vm2, %v15076_v5  ;;  %14086 = vmatpush3.bf16.xpose.msra.mxu1 %v9769_v8 }
0x5cb7   : > { %14097 = vmatprep.subr.bf16.mxu1 %v15076_v5 }
0x5d88   : > { %v9674_v9 = vpop.f32.mrb[154].mxu1 }
0x5d89   : > { %v9675_v11 = vadd.f32 %v12602_v52, %v9674_v9  ;;  %v14073_v51 = vpop.f32.mrb[155].mxu1 }
0x5d8a   : > { %v12621_v51 = vld [vmem:[%s17411_s8 + $0x6] ss:$0 sm:$0xff] }
0x5d8b   : > { %v9763_v13 = vpack.c.bf16 %v9675_v11, %v9675_v11 }
0x5d8d   : > { %9875 = vrot.lane.b32.xlu0 %v9763_v13, %s17481_s25  ;;  %14088 = vmatmul.mubr.msk.bf16.vlgmr.msra.gmra.mrb[156].mxu1 %vm828_vm3, %v9763_v13 }
0x5d8e   : > { %14098 = vmatpush3.bf16.xpose.msra.mxu1 %v9883_v14  ;;  %14099 = vmatprep.mubr.msk.bf16.mxu1 %vm15075_vm2, %v15076_v5 }
0x5d8f   : > { %14681 = vmatprep.subr.bf16.mxu1 %v15074_v2 }
0x5dff   : > { %v9876_v15 = vpop.permute.xlu0 %9875 }
0x5e00   : > { %14100 = vmatmul.mubr.msk.bf16.vlgmr.msra.gmra.mrb[160].mxu1 %vm828_vm3, %v9876_v15 }
0x5e01   : > { %14113 = vmatprep.mubr.msk.f32.mxu1 %vm15075_vm2, %v15076_v5 }
0x5e60   : > { %v9805_v55 = vpop.f32.mrb[156].mxu1 }
0x5e61   : > { %v14089_v17 = vpop.f32.mrb[157].mxu1  ;;  %v9811_v18 = vsel %vm828_vm3, %v9805_v55, -inf }
0x5e62   : > { %9812 = vmax.xlane.f32.xlu0 %v9811_v18  ;;  %v9808_v58 = vpop.f32.mrb[158].mxu1 }
0x5e63   : > { %v14090_v19 = vpop.f32.mrb[159].mxu1 }
0x5e64   : > { %v12626_v19 = vld [vmem:[%s17412_s9 + $0x180] sm:$0xff] }
0x5e78   : > { %9824 = vrot.lane.b32.xlu0 %v9764_v7, %s17480_s28 }
0x5ed3   : > { %v9919_v21 = vpop.f32.mrb[160].mxu1 }
0x5ed4   : > { %v14101_v22 = vpop.f32.mrb[161].mxu1  ;;  %v9925_v23 = vsel %vm828_vm3, %v9919_v21, -inf }
0x5ed5   : > { %9926 = vmax.xlane.f32.xlu1 %v9925_v23  ;;  %v9922_v1 = vpop.f32.mrb[162].mxu1  ;;  %v12629_v23 = vld [vmem:[%s17412_s9 + $0x198] sm:$0xff] }
0x5ed6   : > { %v14102_v24 = vpop.f32.mrb[163].mxu1 }
0x5ee6   : > { %9937 = vrot.lane.b32.xlu1 %v9764_v7, %s17482_s0 }
0x5eef   : > { %v9813_v26 = vpop.xlane.xlu0 %9812 }
0x5ef0   : > { %v9814_v28 = vsub.f32 %v9805_v55, %v9813_v26 }
0x5ef2   : > { %v9815_v30 = vpack.c.bf16 %v9814_v28, %v9814_v28 }
0x5ef3   : > { %v9825_v31 = vpop.permute.xlu0 %9824 }
0x5ef4   : > { %v9817_v32 = vmul.bf16 1069105081, %v9815_v30  ;;  %v9830_v33 = vsel %vm892_vm5, %v9825_v31, 0 }
0x5ef5   : > { %14092 = vmatpush3.bf16.msra.mxu0 %v9830_v33  ;;  %v12631_v33 = vld [vmem:[%s17412_s9 + $0x1a8] sm:$0xff] }
0x5ef6   : > { %15023 = vpow.bf16 %v9817_v32  ;;  %14103 = vmatprep.subr.bf16.mxu0 %v15076_v5  ;;  %v12630_v32 = vld [vmem:[%s17412_s9 + $0x1a0] sm:$0xff] }
0x5f01   : > { %v15024_v25 = vpop.eup %15023 }
0x5f02   : > { %14094 = vmatmul.mubr.msk.bf16.vlgmr.msra.gmra.mrb[172].mxu0 %vm828_vm3, %v15024_v25  ;;  %v9819_v34 = vunpack.c.l.bf16 %v15024_v25  ;;  %v14698_v25 = vpack.c.bf16 %v12631_v33, %v12630_v32  ;;  %v12655_v32 = vld [vmem:[%s17421_s18 + $0x6] ss:$0 sm:$0xff] }
0x5f03   : > { %14105 = vmatprep.mubr.msk.bf16.mxu0 %vm15075_vm2, %v15076_v5 }
0x5f04   : > { %v9820_v35 = vsel %vm828_vm3, %v9819_v34, 0.0  ;;  %v12632_v34 = vld [vmem:[%s17412_s9 + $0x1b0] sm:$0xff] }
0x5f05   : > { %9821 = vadd.xlane.f32.xlu0 %v9820_v35  ;;  %v12633_v35 = vld [vmem:[%s17412_s9 + $0x1b8] sm:$0xff] }
0x5f06   : > { %v14702_v37 = vpack.c.bf16 %v12633_v35, %v12632_v34  ;;  %v12666_v34 = vld [vmem:[%s17473_s7 + $0x7] ss:$0 sm:$0xff] }
0x5f1b   : > { %14853 = vrot.lane.b32.xlu0 %v14852_v40, %s17481_s25 }
0x5f62   : > { %v9927_v41 = vpop.xlane.xlu1 %9926 }
0x5f63   : > { %v9928_v20 = vsub.f32 %v9919_v21, %v9927_v41  ;;  %v12627_v21 = vld [vmem:[%s17412_s9 + $0x188] sm:$0xff] }
0x5f64   : > { %v14690_v22 = vpack.c.bf16 %v12627_v21, %v12626_v19  ;;  %v12659_v19 = vld [vmem:[%s17467_s5 + $0x168] sm:$0xff] }
0x5f65   : > { %v9929_v43 = vpack.c.bf16 %v9928_v20, %v9928_v20  ;;  %v12624_v20 = vld [vmem:[%s17418_s15 + $0x6] ss:$0 sm:$0xff] }
0x5f66   : > { %v9938_v44 = vpop.permute.xlu1 %9937 }
0x5f67   : > { %v9931_v45 = vmul.bf16 1069105081, %v9929_v43  ;;  %v9943_v46 = vsel %vm892_vm5, %v9938_v44, 0  ;;  %v12625_v44 = vld [vmem:[%s17419_s16 + $0x6] ss:$0 sm:$0xff] }
0x5f68   : > { %14104 = vmatpush3.bf16.msra.mxu0 %v9943_v46 }
0x5f69   : > { %15025 = vpow.bf16 %v9931_v45  ;;  %14685 = vmatprep.subr.bf16.mxu0 %v15074_v2 }
0x5f74   : > { %v15026_v47 = vpop.eup %15025 }
0x5f75   : > { %14106 = vmatmul.mubr.msk.bf16.vlgmr.msra.gmra.mrb[176].mxu0 %vm828_vm3, %v15026_v47  ;;  %v9933_v6 = vunpack.c.l.bf16 %v15026_v47  ;;  %v12645_v47 = vld [vmem:[%s17414_s11 + $0x60] sm:$0xff] }
0x5f76   : > { %14688 = vmatpush3.bf16.xpose.msk.msra.mxu0 %vm15310_vm6, %v14686_v16  ;;  %14120 = vmatprep.mubr.msk.f32.mxu0 %vm15075_vm2, %v15076_v5 }
0x5f77   : > { %v9934_v48 = vsel %vm828_vm3, %v9933_v6, 0.0  ;;  %14705 = vmatprep.subr.bf16.mxu0 %v15074_v2  ;;  %v12646_v6 = vld [vmem:[%s17414_s11 + $0x68] sm:$0xff] }
0x5f78   : > { %9935 = vadd.xlane.f32.xlu1 %v9934_v48  ;;  %v14706_v48 = vpack.c.bf16 %v12646_v6, %v12645_v47 }
0x5f92   : > { %v9822_v49 = vpop.xlane.xlu0 %9821 }
0x5f93   : > { %15027 = vrcp.f32 %v9822_v49  ;;  %v12635_v49 = vld [vmem:[%s17413_s10 + $0x6] ss:$0 sm:$0xff] }
0x5f96   : > { %v14854_v50 = vpop.permute.xlu0 %14853 }
0x5f97   : > { %v14856_v52 = vunpack.i.h.bf16 %v14854_v50  ;;  %v14855_v53 = vunpack.i.l.bf16 %v14854_v50 }
0x5f99   : > { %v14682_v54 = vpack.c.bf16 %v14856_v52, %v14855_v53 }
0x5f9b   : > { %14684 = vmatpush3.bf16.xpose.msk.msra.mxu1 %vm15310_vm6, %v14682_v54 }
0x5f9c   : > { %14689 = vmatprep.subr.bf16.mxu1 %v15074_v2 }
0x5f9d   : > { %v15028_v56 = vpop.eup %15027 }
0x5fd5   : > { %v9866_v36 = vpop.f32.mrb[172].mxu0 }
0x5fd6   : > { %v9873_v57 = vmul.f32 %v15028_v56, %v9866_v36  ;;  %v14095_v59 = vpop.f32.mrb[173].mxu0 }
0x5fd7   : > { %v9869_v60 = vpop.f32.mrb[174].mxu0 }
0x5fd8   : > { %v14096_v39 = vpop.f32.mrb[175].mxu0  ;;  %14121 = vmatmul.mubr.msk.f32.vlgmr.msra.gmra.mrb[170].mxu0 %vm828_vm3, %v9873_v57 }
0x5fd9   : > { %14146 = vmatprep.mubr.msk.f32.mxu0 %vm15075_vm2, %v15076_v5  ;;  %14708 = vmatpush3.bf16.xpose.msk.msra.mxu0 %vm15488_vm8, %v14706_v48 }
0x5fda   : > { %14709 = vmatprep.subr.bf16.mxu0 %v15074_v2 }
0x6005   : > { %v9936_v12 = vpop.xlane.xlu1 %9935 }
0x6006   : > { %15029 = vrcp.f32 %v9936_v12 }
0x6010   : > { %v15030_v63 = vpop.eup %15029 }
0x6048   : > { %v9979_v0 = vpop.f32.mrb[176].mxu0 }
0x6049   : > { %v9986_v3 = vmul.f32 %v15030_v63, %v9979_v0  ;;  %v14107_v7 = vpop.f32.mrb[177].mxu0  ;;  %v12648_v0 = vld [vmem:[%s17415_s12 + $0x6] ss:$0 sm:$0xff] }
0x604a   : > { %v9982_v8 = vpop.f32.mrb[178].mxu0 }
0x604b   : > { %v14108_v9 = vpop.f32.mrb[179].mxu0  ;;  %14114 = vmatmul.mubr.msk.f32.vlgmr.msra.gmra.mrb[164].mxu1 %vm828_vm3, %v9986_v3 }
0x604c   : > { %14139 = vmatprep.mubr.msk.f32.mxu1 %vm15075_vm2, %v15076_v5  ;;  %14692 = vmatpush3.bf16.xpose.msk.msra.mxu1 %vm15221_vm1, %v14690_v22  ;;  %v12660_v22 = vld [vmem:[%s17467_s5 + $0x170] sm:$0xff] }
0x604d   : > { %14693 = vmatprep.subr.bf16.mxu1 %v15074_v2 }
0x60ab   : > { %v10143_v10 = vpop.f32.mrb[170].mxu0 }
0x60ac   : > { %v14122_v11 = vpop.f32.mrb[171].mxu0 }
0x60ad   : > { %v12656_v11 = vld [vmem:[%s17467_s5 + $0x150] sm:$0xff] }
0x611e   : > { %v10066_v13 = vpop.f32.mrb[164].mxu1 }
0x611f   : > { %v10144_v14 = vadd.f32 %v10143_v10, %v10066_v13  ;;  %v14115_v15 = vpop.f32.mrb[165].mxu1 }
0x6121   : > { %v10153_v55 = vadd.f32 %v12621_v51, %v10144_v14  ;;  %v12657_v51 = vld [vmem:[%s17467_s5 + $0x158] sm:$0xff] }
0x6122   : > { %v14710_v13 = vpack.c.bf16 %v12657_v51, %v12656_v11 }
0x6123   : > { %10154 = vst.msk [vmem:[#allocation2] sm:$0xff] %vm732_vm0, %v10153_v55 }
0x612a   : > { %v10155_v17 = vld [vmem:[#allocation2] sm:$0xff] }
0x612b   : > { %v10156_v18 = vadd.f32 %v10155_v17, %v16980_v62  ;;  %v12628_v62 = vld [vmem:[%s17412_s9 + $0x190] sm:$0xff] }
0x612c   : > { %v14694_v1 = vpack.c.bf16 %v12629_v23, %v12628_v62  ;;  %v12661_v62 = vld [vmem:[%s17467_s5 + $0x178] sm:$0xff] }
0x612d   : > { %v10161_v58 = vsel %vm732_vm0, %v10156_v18, 0.0  ;;  %v14718_v23 = vpack.c.bf16 %v12661_v62, %v12660_v22 }
0x612e   : > { %10162 = vadd.xlane.f32.xlu1 %v10161_v58  ;;  %14696 = vmatpush3.bf16.xpose.msk.msra.mxu1 %vm15221_vm1, %v14694_v1  ;;  %v12658_v58 = vld [vmem:[%s17467_s5 + $0x160] sm:$0xff] }
0x612f   : > { %14697 = vmatprep.subr.bf16.mxu1 %v15074_v2  ;;  %v14714_v21 = vpack.c.bf16 %v12659_v19, %v12658_v58 }
0x6136   : > { %14700 = vmatpush3.bf16.xpose.msk.msra.mxu1 %vm15221_vm1, %v14698_v25 }
0x6137   : > { %14701 = vmatprep.subr.bf16.mxu1 %v15074_v2 }
0x613e   : > { %14704 = vmatpush3.bf16.xpose.msk.msra.mxu1 %vm15221_vm1, %v14702_v37 }
0x613f   : > { %14164 = vmatprep.subr.bf16.mxu1 %v15076_v5 }
0x61bb   : > { %v10163_v24 = vpop.xlane.xlu1 %10162 }
0x61bc   : > { %v10164_v26 = vmul.f32 0.0625, %v10163_v24 }
0x61be   : > { %v10165_v28 = vsub.f32 %v10156_v18, %v10164_v26 }
0x61c0   : > { %v10166_v30 = vmul.f32 %v10165_v28, %v10165_v28 }
0x61c2   : > { %v10167_v31 = vsel %vm732_vm0, %v10166_v30, 0.0  ;;  %v12654_v30 = vld [vmem:[%s17420_s17 + $0x6] ss:$0 sm:$0xff] }
0x61c3   : > { %10168 = vadd.xlane.f32.xlu1 %v10167_v31 }
0x6250   : > { %v10169_v38 = vpop.xlane.xlu1 %10168 }
0x6251   : > { %v10170_v16 = vmul.f32 0.0625, %v10169_v38 }
0x6253   : > { %v10171_v40 = vadd.f32 1e-05, %v10170_v16 }
0x6255   : > { %15031 = vrsqrt.f32 %v10171_v40 }
0x625f   : > { %v15032_v41 = vpop.eup %15031 }
0x6260   : > { %v10173_v43 = vmul.f32 %v15032_v41, %v10165_v28 }
0x6262   : > { %v10180_v45 = vmul.f32 %v12624_v20, %v10173_v43 }
0x6264   : > { %v10187_v46 = vadd.f32 %v12625_v44, %v10180_v45 }
0x6266   : > { %14140 = vmatmul.mubr.msk.f32.vlgmr.msra.gmra.mrb[166].mxu1 %vm732_vm0, %v10187_v46 }
0x6267   : > { %14166 = vmatprep.mubr.msk.bf16.mxu1 %vm15075_vm2, %v15076_v5 }
0x6339   : > { %v10298_v50 = vpop.f32.mrb[166].mxu1 }
0x633a   : > { %v10299_v52 = vadd.f32 %v12635_v49, %v10298_v50  ;;  %v14141_v53 = vpop.f32.mrb[167].mxu1 }
0x633c   : > { %v10303_v54 = vmul.f32 0.044715, %v10299_v52  ;;  %v10302_v39 = vmul.f32 0.5, %v10299_v52 }
0x633e   : > { %v10304_v56 = vmul.f32 %v10303_v54, %v10299_v52 }
0x6340   : > { %v10305_v36 = vmul.f32 %v10304_v56, %v10299_v52 }
0x6342   : > { %v10306_v57 = vadd.f32 %v10305_v36, %v10299_v52 }
0x6344   : > { %v10307_v59 = vmul.f32 0.7978846, %v10306_v57 }
0x6346   : > { %15033 = vtanh.f32 %v10307_v59 }
0x6350   : > { %v15034_v60 = vpop.eup %15033 }
0x6351   : > { %v10309_v12 = vadd.f32 1.0, %v15034_v60 }
0x6353   : > { %v10310_v63 = vmul.f32 %v10309_v12, %v10302_v39 }
0x6355   : > { %14147 = vmatmul.mubr.msk.f32.vlgmr.msra.gmra.mrb[180].mxu0 %vm1983_vm7, %v10310_v63 }
0x6356   : > { %14161 = vmatprep.mubr.msk.f32.mxu0 %vm15075_vm2, %v15076_v5  ;;  %14712 = vmatpush3.bf16.xpose.msk.msra.mxu0 %vm15221_vm1, %v14710_v13  ;;  %v12663_v13 = vld [vmem:[%s17474_s26 + $0x70] sm:$0xff] }
0x6357   : > { %14713 = vmatprep.subr.bf16.mxu0 %v15074_v2 }
0x635e   : > { %14716 = vmatpush3.bf16.xpose.msk.msra.mxu0 %vm15221_vm1, %v14714_v21 }
0x635f   : > { %14717 = vmatprep.subr.bf16.mxu0 %v15074_v2 }
0x6366   : > { %14720 = vmatpush3.bf16.xpose.msk.msra.mxu0 %vm15221_vm1, %v14718_v23 }
0x6367   : > { %14170 = vmatprep.subr.bf16.mxu0 %v15076_v5 }
0x6428   : > { %v10397_v3 = vpop.f32.mrb[180].mxu0 }
0x6429   : > { %v10398_v7 = vadd.f32 %v12648_v0, %v10397_v3  ;;  %v14148_v8 = vpop.f32.mrb[181].mxu0 }
0x642b   : > { %v10401_v9 = vadd.f32 %v10398_v7, %v10187_v46 }
0x642d   : > { %v10406_v10 = vsel %vm732_vm0, %v10401_v9, 0.0 }
0x642e   : > { %10407 = vadd.xlane.f32.xlu0 %v10406_v10 }
0x64bb   : > { %v10408_v14 = vpop.xlane.xlu0 %10407 }
0x64bc   : > { %v10409_v15 = vmul.f32 0.0625, %v10408_v14  ;;  %v12664_v14 = vld [vmem:[%s17474_s26 + $0x78] sm:$0xff] }
0x64bd   : > { %v14857_v58 = vpack.i.bf16 %v12664_v14, %v12663_v13 }
0x64be   : > { %v10410_v55 = vsub.f32 %v10401_v9, %v10409_v15  ;;  %v14726_v15 = vpack.c.bf16 %v12664_v14, %v12663_v13 }
0x64c0   : > { %v10411_v17 = vmul.f32 %v10410_v55, %v10410_v55 }
0x64c2   : > { %v10412_v18 = vsel %vm732_vm0, %v10411_v17, 0.0 }
0x64c3   : > { %10413 = vadd.xlane.f32.xlu1 %v10412_v18 }
0x6550   : > { %v10414_v1 = vpop.xlane.xlu1 %10413 }
0x6551   : > { %v10415_v24 = vmul.f32 0.0625, %v10414_v1 }
0x6553   : > { %v10416_v26 = vadd.f32 1e-05, %v10415_v24 }
0x6555   : > { %15035 = vrsqrt.f32 %v10416_v26 }
0x655f   : > { %v15036_v28 = vpop.eup %15035 }
0x6560   : > { %v10418_v31 = vmul.f32 %v15036_v28, %v10410_v55 }
0x6562   : > { %v10425_v33 = vmul.f32 %v12654_v30, %v10418_v31 }
0x6564   : > { %v17138_v25 = vadd.f32 %v12655_v32, %v10425_v33 }
0x6566   : > { %14162 = vmatmul.mubr.msk.f32.vlgmr.msra.gmra.mrb[182].mxu0 %vm732_vm0, %v17138_v25 }
0x6567   : > { %14172 = vmatprep.mubr.msk.bf16.mxu0 %vm15075_vm2, %v15076_v5 }
0x6639   : > { %v10540_v35 = vpop.f32.mrb[182].mxu0 }
0x663a   : > { %v10541_v37 = vadd.f32 %v12666_v34, %v10540_v35  ;;  %v14163_v38 = vpop.f32.mrb[183].mxu0 }
0x663c   : > { %v10544_v16 = vpack.c.bf16 %v10541_v37, %v10541_v37 }
0x663e   : > { %10546 = vrot.lane.b32.xlu1 %v10544_v16, %s17480_s28 }
0x6642   : > { %10658 = vrot.lane.b32.xlu1 %v10544_v16, %s17482_s0 }
0x6646   : > { %10656 = vrot.lane.b32.xlu1 %v10544_v16, %s17481_s25 }
0x66b0   : > { %v10547_v40 = vpop.permute.xlu1 %10546 }
0x66b1   : > { %v10552_v41 = vsel %vm828_vm3, %v10547_v40, 0 }
0x66b2   : > { %14165 = vmatpush3.bf16.xpose.msra.mxu1 %v10552_v41 }
0x66b3   : > { %14176 = vmatprep.subr.bf16.mxu1 %v15076_v5 }
0x66b4   : > { %v10659_v20 = vpop.permute.xlu1 %10658 }
0x66b5   : > { %v10664_v43 = vsel %vm828_vm3, %v10659_v20, 0  ;;  %v12684_v20 = vld [vmem:[%s17493_s2 + $0x7] ss:$0 sm:$0xff]  ;;  %s17500_s2 = sld [smem:[#allocation18_spill]] }
0x66b8   : > { %v10657_v44 = vpop.permute.xlu1 %10656 }
0x66b9   : > { %14167 = vmatmul.mubr.msk.bf16.vlgmr.msra.gmra.mrb[168].mxu1 %vm828_vm3, %v10544_v16 }
0x66ba   : > { %14177 = vmatpush3.bf16.xpose.msra.mxu1 %v10664_v43  ;;  %14178 = vmatprep.mubr.msk.bf16.mxu1 %vm15075_vm2, %v15076_v5 }
0x66bb   : > { %14721 = vmatprep.subr.bf16.mxu1 %v15074_v2 }
0x66c1   : > { %14179 = vmatmul.mubr.msk.bf16.vlgmr.msra.gmra.mrb[172].mxu1 %vm828_vm3, %v10657_v44 }
0x66c2   : > { %14192 = vmatprep.mubr.msk.f32.mxu1 %vm15075_vm2, %v15076_v5 }
0x678c   : > { %v10588_v45 = vpop.f32.mrb[168].mxu1 }
0x678d   : > { %v10589_v46 = vadd.f32 %v10588_v45, %v15282_v27  ;;  %v14168_v47 = vpop.f32.mrb[169].mxu1 }
0x678e   : > { %v10591_v6 = vpop.f32.mrb[170].mxu1 }
0x678f   : > { %v14169_v48 = vpop.f32.mrb[171].mxu1  ;;  %v10594_v49 = vsel %vm828_vm3, %v10589_v46, -inf }
0x6790   : > { %10595 = vmax.xlane.f32.xlu0 %v10594_v49  ;;  %v12691_v49 = vld [vmem:[%s17478_s24 + $0x160] sm:$0xff] }
0x6794   : > { %v10700_v50 = vpop.f32.mrb[172].mxu1 }
0x6795   : > { %v10701_v52 = vadd.f32 %v10700_v50, %v15282_v27  ;;  %v14180_v53 = vpop.f32.mrb[173].mxu1  ;;  %v12692_v50 = vld [vmem:[%s17478_s24 + $0x168] sm:$0xff] }
0x6796   : > { %v10703_v54 = vpop.f32.mrb[174].mxu1 }
0x6797   : > { %v14181_v56 = vpop.f32.mrb[175].mxu1  ;;  %v10706_v36 = vsel %vm828_vm3, %v10701_v52, -inf }
0x6798   : > { %10707 = vmax.xlane.f32.xlu1 %v10706_v36 }
0x67a6   : > { %10606 = vrot.lane.b32.xlu0 %v10544_v16, %s17486_s23  ;;  %s17499_s23 = sld [smem:[#allocation15_spill]] }
0x67aa   : > { %10718 = vrot.lane.b32.xlu0 %v10544_v16, %s17487_s4  ;;  %s17494_s4 = sld [smem:[#allocation16_spill]] }
0x67b0   : > { %s17495_s27 = smov %s17494_s4 }
0x681d   : > { %v10596_v57 = vpop.xlane.xlu0 %10595 }
0x681e   : > { %v10597_v59 = vsub.f32 %v10589_v46, %v10596_v57  ;;  %v12693_v57 = vld [vmem:[%s17478_s24 + $0x170] sm:$0xff] }
0x6820   : > { %v10598_v60 = vpack.c.bf16 %v10597_v59, %v10597_v59  ;;  %v12694_v59 = vld [vmem:[%s17478_s24 + $0x178] sm:$0xff] }
0x6821   : > { %v10607_v39 = vpop.permute.xlu0 %10606 }
0x6822   : > { %v10600_v12 = vmul.bf16 1069105081, %v10598_v60  ;;  %v10612_v63 = vsel %vm892_vm5, %v10607_v39, 0  ;;  %v14738_v60 = vpack.c.bf16 %v12694_v59, %v12693_v57  ;;  %v12689_v39 = vld [vmem:[%s17478_s24 + $0x150] sm:$0xff] }
0x6823   : > { %14171 = vmatpush3.bf16.msra.mxu0 %v10612_v63 }
0x6824   : > { %15037 = vpow.bf16 %v10600_v12  ;;  %14182 = vmatprep.subr.bf16.mxu0 %v15076_v5  ;;  %v12690_v12 = vld [vmem:[%s17478_s24 + $0x158] sm:$0xff] }
0x6825   : > { %v10708_v27 = vpop.xlane.xlu1 %10707  ;;  %v10719_v8 = vpop.permute.xlu0 %10718  ;;  %v14730_v63 = vpack.c.bf16 %v12690_v12, %v12689_v39 }
0x6826   : > { %v10709_v0 = vsub.f32 %v10701_v52, %v10708_v27  ;;  %v10724_v10 = vsel %vm892_vm5, %v10719_v8, 0  ;;  %v14734_v52 = vpack.c.bf16 %v12692_v50, %v12691_v49  ;;  %v12699_v27 = vld [vmem:[%s17479_s1 + $0x7] ss:$0 sm:$0xff] }
0x6827   : > { %v12687_v8 = vld [vmem:[%s17416_s13 + $0x7] ss:$0 sm:$0xff] }
0x6828   : > { %v10710_v3 = vpack.c.bf16 %v10709_v0, %v10709_v0 }
0x682a   : > { %v10712_v7 = vmul.bf16 1069105081, %v10710_v3 }
0x682c   : > { %15039 = vpow.bf16 %v10712_v7 }
0x682f   : > { %v15038_v9 = vpop.eup %15037 }
0x6830   : > { %14173 = vmatmul.mubr.msk.bf16.vlgmr.msra.gmra.mrb[184].mxu0 %vm828_vm3, %v15038_v9  ;;  %v10602_v11 = vunpack.c.l.bf16 %v15038_v9 }
0x6831   : > { %14183 = vmatpush3.bf16.msra.mxu0 %v10724_v10  ;;  %14184 = vmatprep.mubr.msk.bf16.mxu0 %vm15075_vm2, %v15076_v5  ;;  %v12688_v10 = vld [vmem:[%s17417_s14 + $0x7] ss:$0 sm:$0xff] }
0x6832   : > { %v10603_v51 = vsel %vm828_vm3, %v10602_v11, 0.0  ;;  %14725 = vmatprep.subr.bf16.mxu0 %v15074_v2 }
0x6833   : > { %10604 = vadd.xlane.f32.xlu0 %v10603_v51 }
0x6837   : > { %v15040_v55 = vpop.eup %15039 }
0x6838   : > { %14185 = vmatmul.mubr.msk.bf16.vlgmr.msra.gmra.mrb[188].mxu0 %vm828_vm3, %v15040_v55  ;;  %v10714_v17 = vunpack.c.l.bf16 %v15040_v55 }
0x6839   : > { %14199 = vmatprep.mubr.msk.f32.mxu0 %vm15075_vm2, %v15076_v5 }
0x683a   : > { %v10715_v18 = vsel %vm828_vm3, %v10714_v17, 0.0  ;;  %14728 = vmatpush3.bf16.xpose.msk.msra.mxu0 %vm15310_vm6, %v14726_v15 }
0x683b   : > { %10716 = vadd.xlane.f32.xlu1 %v10715_v18  ;;  %14733 = vmatprep.subr.bf16.mxu0 %v15074_v2 }
0x684c   : > { %14858 = vrot.lane.b32.xlu1 %v14857_v58, %s17481_s25 }
0x68c0   : > { %v10605_v1 = vpop.xlane.xlu0 %10604 }
0x68c1   : > { %15041 = vrcp.f32 %v10605_v1 }
0x68c8   : > { %v10717_v19 = vpop.xlane.xlu1 %10716 }
0x68c9   : > { %15043 = vrcp.f32 %v10717_v19 }
0x68cb   : > { %v15042_v24 = vpop.eup %15041 }
0x68cc   : > { %v14859_v21 = vpop.permute.xlu1 %14858 }
0x68cd   : > { %v14861_v22 = vunpack.i.h.bf16 %v14859_v21  ;;  %v14860_v62 = vunpack.i.l.bf16 %v14859_v21 }
0x68cf   : > { %v14722_v23 = vpack.c.bf16 %v14861_v22, %v14860_v62 }
0x68d1   : > { %14724 = vmatpush3.bf16.xpose.msk.msra.mxu1 %vm15310_vm6, %v14722_v23 }
0x68d2   : > { %14729 = vmatprep.subr.bf16.mxu1 %v15074_v2 }
0x68d3   : > { %v15044_v33 = vpop.eup %15043 }
0x6903   : > { %v10648_v26 = vpop.f32.mrb[184].mxu0 }
0x6904   : > { %v10655_v28 = vmul.f32 %v15042_v24, %v10648_v26  ;;  %v14174_v30 = vpop.f32.mrb[185].mxu0 }
0x6905   : > { %v10651_v31 = vpop.f32.mrb[186].mxu0 }
0x6906   : > { %v14175_v32 = vpop.f32.mrb[187].mxu0  ;;  %14200 = vmatmul.mubr.msk.f32.vlgmr.msra.gmra.mrb[192].mxu0 %vm828_vm3, %v10655_v28 }
0x6907   : > { %14217 = vmatprep.mubr.msk.f32.mxu0 %vm15075_vm2, %v15076_v5  ;;  %14736 = vmatpush3.bf16.xpose.msk.msra.mxu0 %vm15221_vm1, %v14734_v52 }
0x6908   : > { %14737 = vmatprep.subr.bf16.mxu0 %v15074_v2 }
0x690b   : > { %v10760_v34 = vpop.f32.mrb[188].mxu0 }
0x690c   : > { %v10767_v35 = vmul.f32 %v15044_v33, %v10760_v34  ;;  %v14186_v37 = vpop.f32.mrb[189].mxu0 }
0x690d   : > { %v10763_v38 = vpop.f32.mrb[190].mxu0 }
0x690e   : > { %v14187_v16 = vpop.f32.mrb[191].mxu0  ;;  %14193 = vmatmul.mubr.msk.f32.vlgmr.msra.gmra.mrb[176].mxu1 %vm828_vm3, %v10767_v35 }
0x690f   : > { %14206 = vmatprep.mubr.msk.f32.mxu1 %vm15075_vm2, %v15076_v5  ;;  %14740 = vmatpush3.bf16.xpose.msk.msra.mxu0 %vm15221_vm1, %v14738_v60 }
0x6910   : > { %14226 = vmatprep.subr.bf16.mxu0 %v15076_v5  ;;  %14732 = vmatpush3.bf16.xpose.msk.msra.mxu1 %vm15221_vm1, %v14730_v63 }
0x6911   : > { %14220 = vmatprep.subr.bf16.mxu1 %v15076_v5 }
0x6916   : > { %14218 = vmatmul.mubr.msk.f32.vlgmr.msra.gmra.mrb[194].mxu0 %vm732_vm0, %v16961_v29 }
0x6917   : > { %14228 = vmatprep.mubr.msk.bf16.mxu0 %vm15075_vm2, %v15076_v5 }
0x69d9   : > { %v10924_v40 = vpop.f32.mrb[192].mxu0 }
0x69da   : > { %v14201_v41 = vpop.f32.mrb[193].mxu0 }
0x69e1   : > { %v10847_v43 = vpop.f32.mrb[176].mxu1 }
0x69e2   : > { %v10925_v44 = vadd.f32 %v10924_v40, %v10847_v43  ;;  %v14194_v45 = vpop.f32.mrb[177].mxu1 }
0x69e4   : > { %v10934_v46 = vadd.f32 %v12684_v20, %v10925_v44 }
0x69e6   : > { %10935 = vst.msk [vmem:[#allocation2] sm:$0xff] %vm732_vm0, %v10934_v46 }
0x69e9   : > { %v11149_v14 = vpop.f32.mrb[194].mxu0 }
0x69ea   : > { %v14219_v55 = vpop.f32.mrb[195].mxu0 }
0x69ed   : > { %v10936_v47 = vld [vmem:[#allocation2] sm:$0xff] }
0x69ee   : > { %v10937_v6 = vadd.f32 %v10936_v47, %v17138_v25 }
0x69f0   : > { %v10942_v48 = vsel %vm732_vm0, %v10937_v6, 0.0 }
0x69f1   : > { %10943 = vadd.xlane.f32.xlu1 %v10942_v48 }
0x6a7e   : > { %v10944_v53 = vpop.xlane.xlu1 %10943 }
0x6a7f   : > { %v10945_v54 = vmul.f32 0.0625, %v10944_v53  ;;  %v12696_v53 = vld [vmem:[%s17483_s3 + $0x70] sm:$0xff] }
0x6a81   : > { %v10946_v25 = vsub.f32 %v10937_v6, %v10945_v54  ;;  %v12697_v54 = vld [vmem:[%s17483_s3 + $0x78] sm:$0xff] }
0x6a82   : > { %v14862_v59 = vpack.i.bf16 %v12697_v54, %v12696_v53 }
0x6a83   : > { %v10947_v56 = vmul.f32 %v10946_v25, %v10946_v25 }
0x6a85   : > { %v10948_v36 = vsel %vm732_vm0, %v10947_v56, 0.0 }
0x6a86   : > { %10949 = vadd.xlane.f32.xlu0 %v10948_v36 }
0x6a9c   : > { %11068 = vrot.lane.b32.xlu0 %v12699_v27, %s17480_s28 }
0x6b13   : > { %v10950_v0 = vpop.xlane.xlu0 %10949 }
0x6b14   : > { %v10951_v3 = vmul.f32 0.0625, %v10950_v0 }
0x6b16   : > { %v10952_v7 = vadd.f32 1e-05, %v10951_v3 }
0x6b17   : > { %v11069_v13 = vpop.permute.xlu0 %11068 }
0x6b18   : > { %15045 = vrsqrt.f32 %v10952_v7  ;;  %v11150_v15 = vadd.f32 %v11149_v14, %v11069_v13 }
0x6b1a   : > { %v11154_v17 = vpack.c.bf16 %v11150_v15, %v11150_v15 }
0x6b1c   : > { %11267 = vrot.lane.b32.xlu0 %v11154_v17, %s17481_s25  ;;  %v11159_v18 = vsel %vm828_vm3, %v11154_v17, 0 }
0x6b22   : > { %v15046_v29 = vpop.eup %15045 }
0x6b23   : > { %v10954_v9 = vmul.f32 %v15046_v29, %v10946_v25  ;;  %v14746_v25 = vpack.c.bf16 %v12697_v54, %v12696_v53  ;;  %v12732_v54 = vld [vmem:[%s17413_s10 + $0x7] ss:$0 sm:$0xff] }
0x6b25   : > { %v10961_v11 = vmul.f32 %v12687_v8, %v10954_v9 }
0x6b27   : > { %v17245_v51 = vadd.f32 %v12688_v10, %v10961_v11 }
0x6b29   : > { %14207 = vmatmul.mubr.msk.f32.vlgmr.msra.gmra.mrb[178].mxu1 %vm732_vm0, %v17245_v51 }
0x6b2a   : > { %14222 = vmatprep.mubr.msk.bf16.mxu1 %vm15075_vm2, %v15076_v5  ;;  %14221 = vmatpush3.bf16.xpose.msra.mxu1 %v11159_v18 }
0x6b2b   : > { %14232 = vmatprep.subr.bf16.mxu1 %v15076_v5 }
0x6b8e   : > { %v11268_v19 = vpop.permute.xlu0 %11267 }
0x6b8f   : > { %v11273_v23 = vsel %vm828_vm3, %v11268_v19, 0 }
0x6bfc   : > { %v11064_v58 = vpop.f32.mrb[178].mxu1 }
0x6bfd   : > { %v11065_v21 = vadd.f32 %v12699_v27, %v11064_v58  ;;  %v14208_v22 = vpop.f32.mrb[179].mxu1 }
0x6bff   : > { %v11153_v62 = vpack.c.bf16 %v11065_v21, %v11065_v21 }
0x6c01   : > { %11265 = vrot.lane.b32.xlu0 %v11153_v62, %s17481_s25  ;;  %14223 = vmatmul.mubr.msk.bf16.vlgmr.msra.gmra.mrb[180].mxu1 %vm828_vm3, %v11153_v62 }
0x6c02   : > { %14233 = vmatpush3.bf16.xpose.msra.mxu1 %v11273_v23  ;;  %14234 = vmatprep.mubr.msk.bf16.mxu1 %vm15075_vm2, %v15076_v5 }
0x6c03   : > { %14741 = vmatprep.subr.bf16.mxu1 %v15074_v2 }
0x6c73   : > { %v11266_v1 = vpop.permute.xlu0 %11265 }
0x6c74   : > { %14235 = vmatmul.mubr.msk.bf16.vlgmr.msra.gmra.mrb[184].mxu1 %vm828_vm3, %v11266_v1 }
0x6c75   : > { %14248 = vmatprep.mubr.msk.f32.mxu1 %vm15075_vm2, %v15076_v5 }
0x6cd4   : > { %v11195_v24 = vpop.f32.mrb[180].mxu1 }
0x6cd5   : > { %v14224_v26 = vpop.f32.mrb[181].mxu1  ;;  %v11201_v28 = vsel %vm828_vm3, %v11195_v24, -inf }
0x6cd6   : > { %11202 = vmax.xlane.f32.xlu1 %v11201_v28  ;;  %v11198_v30 = vpop.f32.mrb[182].mxu1  ;;  %v12724_v26 = vld [vmem:[%s17412_s9 + $0x1c8] sm:$0xff] }
0x6cd7   : > { %v14225_v31 = vpop.f32.mrb[183].mxu1  ;;  %v12726_v30 = vld [vmem:[%s17412_s9 + $0x1d8] sm:$0xff] }
0x6ce7   : > { %11214 = vrot.lane.b32.xlu1 %v11154_v17, %s17480_s28 }
0x6ceb   : > { %11327 = vrot.lane.b32.xlu1 %v11154_v17, %s17482_s0  ;;  %s12760_s0 = sshll.u32 %s17497_s29, 4 }
0x6cec   : > { %s707_s20 = scalar_lea.vmem %s17500_s2, %s12760_s0 }
0x6d47   : > { %v11309_v32 = vpop.f32.mrb[184].mxu1 }
0x6d48   : > { %v14236_v33 = vpop.f32.mrb[185].mxu1  ;;  %v11315_v34 = vsel %vm828_vm3, %v11309_v32, -inf }
0x6d49   : > { %11316 = vmax.xlane.f32.xlu0 %v11315_v34  ;;  %v11312_v35 = vpop.f32.mrb[186].mxu1 }
0x6d4a   : > { %v14237_v37 = vpop.f32.mrb[187].mxu1 }
0x6d63   : > { %v11203_v38 = vpop.xlane.xlu1 %11202 }
0x6d64   : > { %v11204_v16 = vsub.f32 %v11195_v24, %v11203_v38  ;;  %v12727_v38 = vld [vmem:[%s17412_s9 + $0x1e0] sm:$0xff] }
0x6d66   : > { %v11205_v40 = vpack.c.bf16 %v11204_v16, %v11204_v16  ;;  %v12728_v16 = vld [vmem:[%s17412_s9 + $0x1e8] sm:$0xff] }
0x6d67   : > { %v11215_v41 = vpop.permute.xlu1 %11214 }
0x6d68   : > { %v11207_v20 = vmul.bf16 1069105081, %v11205_v40  ;;  %v11220_v43 = vsel %vm892_vm5, %v11215_v41, 0  ;;  %v14758_v40 = vpack.c.bf16 %v12728_v16, %v12727_v38  ;;  %v12729_v41 = vld [vmem:[%s17412_s9 + $0x1f0] sm:$0xff]  ;;  %v12753_v16 = vld [vmem:[%s17498_s30] ss:$0 sm:$0xff] }
0x6d69   : > { %14227 = vmatpush3.bf16.msra.mxu0 %v11220_v43 }
0x6d6a   : > { %15047 = vpow.bf16 %v11207_v20  ;;  %14238 = vmatprep.subr.bf16.mxu0 %v15076_v5  ;;  %v12730_v20 = vld [vmem:[%s17412_s9 + $0x1f8] sm:$0xff] }
0x6d6b   : > { %v11328_v44 = vpop.permute.xlu1 %11327  ;;  %v14762_v43 = vpack.c.bf16 %v12730_v20, %v12729_v41  ;;  %v12754_v41 = vld [vmem:[%s17499_s23] ss:$0 sm:$0xff] }
0x6d6c   : > { %v11333_v46 = vsel %vm892_vm5, %v11328_v44, 0 }
0x6d75   : > { %v15048_v45 = vpop.eup %15047 }
0x6d76   : > { %14229 = vmatmul.mubr.msk.bf16.vlgmr.msra.gmra.mrb[196].mxu0 %vm828_vm3, %v15048_v45  ;;  %v11209_v47 = vunpack.c.l.bf16 %v15048_v45 }
0x6d77   : > { %14239 = vmatpush3.bf16.msra.mxu0 %v11333_v46  ;;  %14240 = vmatprep.mubr.msk.bf16.mxu0 %vm15075_vm2, %v15076_v5 }
0x6d78   : > { %v11210_v6 = vsel %vm828_vm3, %v11209_v47, 0.0  ;;  %14745 = vmatprep.subr.bf16.mxu0 %v15074_v2 }
0x6d79   : > { %11211 = vadd.xlane.f32.xlu1 %v11210_v6 }
0x6dd6   : > { %v11317_v48 = vpop.xlane.xlu0 %11316 }
0x6dd7   : > { %v11318_v49 = vsub.f32 %v11309_v32, %v11317_v48  ;;  %v12722_v48 = vld [vmem:[%s17419_s16 + $0x7] ss:$0 sm:$0xff] }
0x6dd9   : > { %v11319_v50 = vpack.c.bf16 %v11318_v49, %v11318_v49 }
0x6ddb   : > { %v11321_v52 = vmul.bf16 1069105081, %v11319_v50 }
0x6ddd   : > { %15049 = vpow.bf16 %v11321_v52  ;;  %v12743_v52 = vld [vmem:[%s17414_s11 + $0x78] sm:$0xff] }
0x6dde   : > { %v14766_v53 = vpack.c.bf16 %v12743_v52, %v12742_v4 }
0x6de8   : > { %v15050_v56 = vpop.eup %15049 }
0x6de9   : > { %14241 = vmatmul.mubr.msk.bf16.vlgmr.msra.gmra.mrb[200].mxu0 %vm828_vm3, %v15050_v56  ;;  %v11323_v36 = vunpack.c.l.bf16 %v15050_v56 }
0x6dea   : > { %14748 = vmatpush3.bf16.xpose.msk.msra.mxu0 %vm15310_vm6, %v14746_v25  ;;  %14255 = vmatprep.mubr.msk.f32.mxu0 %vm15075_vm2, %v15076_v5 }
0x6deb   : > { %v11324_v57 = vsel %vm828_vm3, %v11323_v36, 0.0  ;;  %14765 = vmatprep.subr.bf16.mxu0 %v15074_v2 }
0x6dec   : > { %11325 = vadd.xlane.f32.xlu0 %v11324_v57 }
0x6e02   : > { %14863 = vrot.lane.b32.xlu0 %v14862_v59, %s17481_s25 }
0x6e06   : > { %v11212_v60 = vpop.xlane.xlu1 %11211 }
0x6e07   : > { %15051 = vrcp.f32 %v11212_v60 }
0x6e11   : > { %v15052_v39 = vpop.eup %15051 }
0x6e49   : > { %v11256_v12 = vpop.f32.mrb[196].mxu0 }
0x6e4a   : > { %v11263_v63 = vmul.f32 %v15052_v39, %v11256_v12  ;;  %v14230_v27 = vpop.f32.mrb[197].mxu0 }
0x6e4b   : > { %v11259_v0 = vpop.f32.mrb[198].mxu0 }
0x6e4c   : > { %v14231_v3 = vpop.f32.mrb[199].mxu0  ;;  %14256 = vmatmul.mubr.msk.f32.vlgmr.msra.gmra.mrb[204].mxu0 %vm828_vm3, %v11263_v63 }
0x6e4d   : > { %14281 = vmatprep.mubr.msk.f32.mxu0 %vm15075_vm2, %v15076_v5  ;;  %14768 = vmatpush3.bf16.xpose.msk.msra.mxu0 %vm15488_vm8, %v14766_v53 }
0x6e79   : > { %v11326_v7 = vpop.xlane.xlu0 %11325 }
0x6e7a   : > { %15053 = vrcp.f32 %v11326_v7 }
0x6e7d   : > { %v14864_v29 = vpop.permute.xlu0 %14863 }
0x6e7e   : > { %v14866_v8 = vunpack.i.h.bf16 %v14864_v29  ;;  %v14865_v9 = vunpack.i.l.bf16 %v14864_v29 }
0x6e80   : > { %v14742_v10 = vpack.c.bf16 %v14866_v8, %v14865_v9 }
0x6e82   : > { %14744 = vmatpush3.bf16.xpose.msk.msra.mxu1 %vm15310_vm6, %v14742_v10 }
0x6e83   : > { %14749 = vmatprep.subr.bf16.mxu1 %v15074_v2 }
0x6e84   : > { %v15054_v11 = vpop.eup %15053 }
0x6ebc   : > { %v11369_v13 = vpop.f32.mrb[200].mxu0 }
0x6ebd   : > { %v11376_v14 = vmul.f32 %v15054_v11, %v11369_v13  ;;  %v14242_v15 = vpop.f32.mrb[201].mxu0 }
0x6ebe   : > { %v11372_v55 = vpop.f32.mrb[202].mxu0 }
0x6ebf   : > { %v14243_v17 = vpop.f32.mrb[203].mxu0  ;;  %14249 = vmatmul.mubr.msk.f32.vlgmr.msra.gmra.mrb[188].mxu1 %vm828_vm3, %v11376_v14 }
0x6ec0   : > { %14274 = vmatprep.mubr.msk.f32.mxu1 %vm15075_vm2, %v15076_v5  ;;  %v12723_v5 = vld [vmem:[%s17412_s9 + $0x1c0] sm:$0xff] }
0x6ec1   : > { %v14750_v28 = vpack.c.bf16 %v12724_v26, %v12723_v5 }
0x6ec3   : > { %14752 = vmatpush3.bf16.xpose.msk.msra.mxu1 %vm15221_vm1, %v14750_v28 }
0x6ec4   : > { %14753 = vmatprep.subr.bf16.mxu1 %v15074_v2 }
0x6f1f   : > { %v11533_v18 = vpop.f32.mrb[204].mxu0 }
0x6f20   : > { %v14257_v58 = vpop.f32.mrb[205].mxu0 }
0x6f92   : > { %v11456_v19 = vpop.f32.mrb[188].mxu1 }
0x6f93   : > { %v11534_v21 = vadd.f32 %v11533_v18, %v11456_v19  ;;  %v14250_v22 = vpop.f32.mrb[189].mxu1  ;;  %v12751_v19 = vld [vmem:[%s17420_s17 + $0x7] ss:$0 sm:$0xff] }
0x6f94   : > { %v12752_v22 = vld [vmem:[%s17421_s18 + $0x7] ss:$0 sm:$0xff] }
0x6f95   : > { %v11543_v62 = vadd.f32 %v12718_v61, %v11534_v21 }
0x6f97   : > { %11544 = vst.msk [vmem:[#allocation2] sm:$0xff] %vm732_vm0, %v11543_v62 }
0x6f9e   : > { %v11545_v23 = vld [vmem:[#allocation2] sm:$0xff] }
0x6f9f   : > { %v11546_v1 = vadd.f32 %v11545_v23, %v17245_v51  ;;  %v12725_v51 = vld [vmem:[%s17412_s9 + $0x1d0] sm:$0xff] }
0x6fa0   : > { %v14754_v31 = vpack.c.bf16 %v12726_v30, %v12725_v51  ;;  %v11852_v30 = vld [vmem:[%s17494_s4] sm:$0xff] }
0x6fa1   : > { %v11551_v24 = vsel %vm732_vm0, %v11546_v1, 0.0 }
0x6fa2   : > { %11552 = vadd.xlane.f32.xlu0 %v11551_v24  ;;  %14756 = vmatpush3.bf16.xpose.msk.msra.mxu1 %vm15221_vm1, %v14754_v31  ;;  %v11855_v31 = vld [vmem:[%s17496_s21 + $0x8] sm:$0xff] }
0x6fa3   : > { %14757 = vmatprep.subr.bf16.mxu1 %v15074_v2 }
0x6faa   : > { %14760 = vmatpush3.bf16.xpose.msk.msra.mxu1 %vm15221_vm1, %v14758_v40 }
0x6fab   : > { %14761 = vmatprep.subr.bf16.mxu1 %v15074_v2  ;;  %v12721_v2 = vld [vmem:[%s17418_s15 + $0x7] ss:$0 sm:$0xff] }
0x6fb2   : > { %14764 = vmatpush3.bf16.xpose.msk.msra.mxu1 %vm15221_vm1, %v14762_v43 }
0x702f   : > { %v11553_v32 = vpop.xlane.xlu0 %11552 }
0x7030   : > { %v11554_v33 = vmul.f32 0.0625, %v11553_v32  ;;  %v11854_v32 = vld [vmem:[%s17496_s21] sm:$0xff] }
0x7032   : > { %v11555_v34 = vsub.f32 %v11546_v1, %v11554_v33  ;;  %v15083_v33 = vmov 0  }
0x7033   : > { %14868 = vset.pattern.permute.xlu0 %v15083_v33  ;;  %14867 = vset.pattern.permute.xlu1 %v15083_v33 }
0x7034   : > { %v11556_v35 = vmul.f32 %v11555_v34, %v11555_v34  ;;  %11863 = vperm.xlu0 %14868, %v11855_v31  }
0x7036   : > { %v11557_v37 = vsel %vm732_vm0, %v11556_v35, 0.0 }
0x7037   : > { %11558 = vadd.xlane.f32.xlu1 %v11557_v37 }
0x70c4   : > { %v11559_v44 = vpop.xlane.xlu1 %11558 }
0x70c5   : > { %v11560_v45 = vmul.f32 0.0625, %v11559_v44  ;;  %v11853_v44 = vld [vmem:[%s17495_s27 + $0x8] sm:$0xff] }
0x70c7   : > { %v11561_v46 = vadd.f32 1e-05, %v11560_v45  ;;  %v11864_v45 = vpop.permute.xlu0 %11863 }
0x70c9   : > { %15055 = vrsqrt.f32 %v11561_v46 }
0x70d3   : > { %v15056_v47 = vpop.eup %15055 }
0x70d4   : > { %v11563_v6 = vmul.f32 %v15056_v47, %v11555_v34 }
0x70d6   : > { %v11570_v49 = vmul.f32 %v12721_v2, %v11563_v6 }
0x70d8   : > { %v11577_v50 = vadd.f32 %v12722_v48, %v11570_v49 }
0x70da   : > { %14275 = vmatmul.mubr.msk.f32.vlgmr.msra.gmra.mrb[190].mxu1 %vm732_vm0, %v11577_v50 }
0x71ad   : > { %v11688_v25 = vpop.f32.mrb[190].mxu1 }
0x71ae   : > { %v11689_v56 = vadd.f32 %v12732_v54, %v11688_v25  ;;  %v14276_v36 = vpop.f32.mrb[191].mxu1 }
0x71b0   : > { %v11693_v57 = vmul.f32 0.044715, %v11689_v56  ;;  %v11692_v27 = vmul.f32 0.5, %v11689_v56 }
0x71b2   : > { %v11694_v59 = vmul.f32 %v11693_v57, %v11689_v56 }
0x71b4   : > { %v11695_v60 = vmul.f32 %v11694_v59, %v11689_v56 }
0x71b6   : > { %v11696_v39 = vadd.f32 %v11695_v60, %v11689_v56 }
0x71b8   : > { %v11697_v12 = vmul.f32 0.7978846, %v11696_v39 }
0x71ba   : > { %15057 = vtanh.f32 %v11697_v12 }
0x71c4   : > { %v15058_v63 = vpop.eup %15057 }
0x71c5   : > { %v11699_v0 = vadd.f32 1.0, %v15058_v63 }
0x71c7   : > { %v11700_v3 = vmul.f32 %v11699_v0, %v11692_v27 }
0x71c9   : > { %14282 = vmatmul.mubr.msk.f32.vlgmr.msra.gmra.mrb[206].mxu0 %vm1983_vm7, %v11700_v3 }
0x71ca   : > { %14286 = vmatprep.mubr.msk.f32.mxu0 %vm732_vm0, %v11852_v30 }
0x729c   : > { %v11787_v7 = vpop.f32.mrb[206].mxu0 }
0x729d   : > { %v11788_v29 = vadd.f32 %v12745_v42, %v11787_v7  ;;  %v14283_v8 = vpop.f32.mrb[207].mxu0 }
0x729f   : > { %v11791_v9 = vadd.f32 %v11788_v29, %v11577_v50 }
0x72a1   : > { %v11796_v10 = vsel %vm732_vm0, %v11791_v9, 0.0 }
0x72a2   : > { %11797 = vadd.xlane.f32.xlu1 %v11796_v10 }
0x732f   : > { %v11798_v11 = vpop.xlane.xlu1 %11797 }
0x7330   : > { %v11799_v13 = vmul.f32 0.0625, %v11798_v11 }
0x7332   : > { %v11800_v14 = vsub.f32 %v11791_v9, %v11799_v13 }
0x7334   : > { %v11801_v15 = vmul.f32 %v11800_v14, %v11800_v14 }
0x7336   : > { %v11802_v55 = vsel %vm732_vm0, %v11801_v15, 0.0 }
0x7337   : > { %11803 = vadd.xlane.f32.xlu1 %v11802_v55 }
0x73c4   : > { %v11804_v17 = vpop.xlane.xlu1 %11803 }
0x73c5   : > { %v11805_v18 = vmul.f32 0.0625, %v11804_v17 }
0x73c7   : > { %v11806_v58 = vadd.f32 1e-05, %v11805_v18 }
0x73c9   : > { %15059 = vrsqrt.f32 %v11806_v58 }
0x73d3   : > { %v15060_v61 = vpop.eup %15059 }
0x73d4   : > { %v11808_v21 = vmul.f32 %v15060_v61, %v11800_v14 }
0x73d6   : > { %v11815_v62 = vmul.f32 %v12751_v19, %v11808_v21 }
0x73d8   : > { %v11822_v23 = vadd.f32 %v12752_v22, %v11815_v62 }
0x73da   : > { %v11825_v1 = vsel %vm732_vm0, %v11822_v23, 0.0 }
0x73db   : > { %11826 = vadd.xlane.f32.xlu1 %v11825_v1 }
0x7468   : > { %v11827_v24 = vpop.xlane.xlu1 %11826 }
0x7469   : > { %v11828_v5 = vmul.f32 0.0625, %v11827_v24 }
0x746b   : > { %v11829_v26 = vsub.f32 %v11822_v23, %v11828_v5 }
0x746d   : > { %v11830_v28 = vmul.f32 %v11829_v26, %v11829_v26 }
0x746f   : > { %v11831_v51 = vsel %vm732_vm0, %v11830_v28, 0.0 }
0x7470   : > { %11832 = vadd.xlane.f32.xlu1 %v11831_v51 }
0x7481   : > { %11858 = vperm.xlu1 %14867, %v11854_v32  }
0x74fd   : > { %v11833_v34 = vpop.xlane.xlu1 %11832 }
0x74fe   : > { %v11834_v35 = vmul.f32 0.0625, %v11833_v34 }
0x7500   : > { %v11835_v37 = vadd.f32 1e-05, %v11834_v35 }
0x7501   : > { %v11859_v46 = vpop.permute.xlu1 %11858 }
0x7502   : > { %15061 = vrsqrt.f32 %v11835_v37 }
0x750c   : > { %v15062_v38 = vpop.eup %15061 }
0x750d   : > { %v11837_v40 = vmul.f32 %v15062_v38, %v11829_v26 }
0x750f   : > { %v11844_v20 = vmul.f32 %v12753_v16, %v11837_v40 }
0x7511   : > { %v11851_v43 = vadd.f32 %v12754_v41, %v11844_v20 }
0x7513   : > { %14284 = vmatprep.subr.msk.mxu0 %vm732_vm0, %v11851_v43 }
0x7514   : > { %14285 = vmatpush3.xpose.msk.msra.mxu0 %vm732_vm0, %v11851_v43 }
0x7517   : > { %14287 = vmatmul.mubr.msk.f32.vlgmr.msra.gmra.mrb[208].mxu0 %vm732_vm0, %v11853_v44 }
0x75ea   : > { %v14288_v47 = vpop.f32.mrb[208].mxu0 }
0x75eb   : > { %v11947_v2 = vadd.f32 %v14288_v47, %v11864_v45  ;;  %v11941_v6 = vpop.f32.mrb[209].mxu0 }
0x75ec   : > { %v11942_v48 = vadd.f32 %v11941_v6, %v11859_v46 }
0x75ed   : > { %11951 = vst.msk [vmem:[%s707_s20 + $0x8] sm:$0xff] %vm828_vm3, %v11947_v2 }
0x75ee   : > { %11950 = vst.msk [vmem:[%s707_s20] sm:$0xff] %vm828_vm3, %v11942_v48 }
0x75ef PF: > { %s17501_s30 = sld [smem:[#allocation3_spill]] }
0x75f5   : > { %s33_s4 = sadd.s32 1, %s17501_s30  }
0x75f6   : > { %p30_p4 = scmp.ge.s32.totalorder %s33_s4, 4  }
0x75f8   :  { %32 = sbr.rel (!%p30_p4) target bundleno = 14 (0xe), region = 268 }

</bundles_post_ra>
